<compile_context>
chip_gen: v7x
topology: tpu7x:2x2x1
jax: 0.10.0
libtpu: 0.0.40
codegen_flags: <defaults>
</compile_context>

<pallas_src>
import math
import functools

import jax
import jax.numpy as jnp
from jax.experimental import pallas as pl
from jax.experimental.pallas import tpu as pltpu

BN_EPS = 1e-5
LAYER_CFG = [(64, 1, 1), (128, 2, 1), (256, 1, 2), (512, 1, 4)]  # (planes, stride, dilation)


def _round_up(x, m):
    return ((x + m - 1) // m) * m


# --------------------------------------------------------------------------
# Pallas kernels
# --------------------------------------------------------------------------

def _mm_bias_act_kernel(relu, has_res, x_ref, w_ref, b_ref, *refs):
    """Tiled GEMM (bf16 in, f32 acc) with fused bias (+residual) (+ReLU) epilogue."""
    if has_res:
        r_ref, o_ref, acc_ref = refs
    else:
        r_ref = None
        o_ref, acc_ref = refs

    k = pl.program_id(2)

    @pl.when(k == 0)
    def _():
        acc_ref[...] = jnp.zeros_like(acc_ref)

    acc_ref[...] += jnp.dot(x_ref[...], w_ref[...],
                            preferred_element_type=jnp.float32)

    @pl.when(k == pl.num_programs(2) - 1)
    def _():
        y = acc_ref[...] + b_ref[...]
        if has_res:
            y = y + r_ref[...]
        if relu:
            y = jnp.maximum(y, 0.0)
        o_ref[...] = y.astype(o_ref.dtype)


def _head_kernel(x_ref, w_ref, b_ref, o_ref):
    """Fused global average pool (over axis 1) + Linear."""
    pooled = jnp.mean(x_ref[...], axis=1)                       # (R, C) f32
    y = jnp.dot(pooled.astype(jnp.bfloat16), w_ref[...],
                preferred_element_type=jnp.float32)
    o_ref[...] = y + b_ref[...]


# --------------------------------------------------------------------------
# GEMM wrapper (bias + optional residual + optional ReLU fused)
# --------------------------------------------------------------------------

def matmul_bias_act(x, w, bias, relu, residual=None):
    """out = act((x @ w) + bias [+ residual]); bias broadcast over rows."""
    M, K = x.shape
    K2, N = w.shape
    assert K == K2

    # Right-sized tiles (per perf review): small-M layers don't pad M up to 128,
    # tn matches the 256-wide MXU when possible, tk is large to cut K-steps.
    tm = min(128, _round_up(M, 16))
    Np0 = _round_up(N, 128)
    tn = 256 if (Np0 >= 256 and Np0 % 256 == 0) else 128
    tk = min(512, _round_up(K, 128))

    Mp = _round_up(M, tm)
    Kp = _round_up(K, tk)
    Np = _round_up(N, tn)

    xb = x.astype(jnp.bfloat16)
    wb = w.astype(jnp.bfloat16)
    xp = jnp.pad(xb, ((0, Mp - M), (0, Kp - K)))
    wp = jnp.pad(wb, ((0, Kp - K), (0, Np - N)))
    bp = jnp.pad(bias.astype(jnp.float32).reshape(1, N), ((0, 0), (0, Np - N)))

    in_specs = [
        pl.BlockSpec((tm, tk), lambda i, j, k: (i, k)),
        pl.BlockSpec((tk, tn), lambda i, j, k: (k, j)),
        pl.BlockSpec((1, tn), lambda i, j, k: (0, j)),
    ]
    args = [xp, wp, bp]
    has_res = residual is not None
    if has_res:
        rp = jnp.pad(residual.astype(jnp.float32), ((0, Mp - M), (0, Np - N)))
        in_specs.append(pl.BlockSpec((tm, tn), lambda i, j, k: (i, j)))
        args.append(rp)

    grid = (Mp // tm, Np // tn, Kp // tk)

    out = pl.pallas_call(
        functools.partial(_mm_bias_act_kernel, relu, has_res),
        out_shape=jax.ShapeDtypeStruct((Mp, Np), jnp.float32),
        grid_spec=pltpu.PrefetchScalarGridSpec(
            num_scalar_prefetch=0,
            grid=grid,
            in_specs=in_specs,
            out_specs=pl.BlockSpec((tm, tn), lambda i, j, k: (i, j)),
            scratch_shapes=[pltpu.VMEM((tm, tn), jnp.float32)],
        ),
        compiler_params=pltpu.CompilerParams(
            dimension_semantics=("parallel", "parallel", "arbitrary")),
    )(*args)
    return out[:M, :N]


# --------------------------------------------------------------------------
# Glue: patch extraction with zero-tap pruning, conv / pool wrappers
# --------------------------------------------------------------------------

def _extract_patches(x, k, stride, padding, dilation, pad_value=0.0,
                     prune_zero_taps=True):
    """Return ([slices], [kept (i,j,l) taps], (Do,Ho,Wo)).

    Taps whose strided window lies entirely inside the padding region (along
    any spatial axis) are pruned at trace time; with zero padding and no conv
    bias they contribute exactly nothing to the output.
    """
    N, D, H, W, C = x.shape
    xp = jnp.pad(x, ((0, 0), (padding,) * 2, (padding,) * 2, (padding,) * 2, (0, 0)),
                 constant_values=pad_value)

    def osz(n):
        return (n + 2 * padding - dilation * (k - 1) - 1) // stride + 1

    Do, Ho, Wo = osz(D), osz(H), osz(W)

    def tap_all_pad(i, n):
        first = i * dilation
        last = i * dilation + stride * (osz(n) - 1)
        return (last < padding) or (first >= padding + n)

    slices, taps = [], []
    for i in range(k):
        for j in range(k):
            for l in range(k):
                if prune_zero_taps and (tap_all_pad(i, D) or tap_all_pad(j, H)
                                        or tap_all_pad(l, W)):
                    continue
                sl = xp[:,
                        i * dilation: i * dilation + stride * (Do - 1) + 1: stride,
                        j * dilation: j * dilation + stride * (Ho - 1) + 1: stride,
                        l * dilation: l * dilation + stride * (Wo - 1) + 1: stride,
                        :]
                slices.append(sl)
                taps.append((i, j, l))
    return slices, taps, (Do, Ho, Wo)


def conv3d_bn_act(x, w, scale, bias, stride, padding, dilation, relu, residual=None):
    """Conv3d (no bias) + folded BatchNorm3d + optional residual add + ReLU.

    w: (k, k, k, Cin, Cout).  BN scale is folded into w; bias rides in the
    GEMM epilogue.  `residual` (same shape as the conv output) is fused into
    the epilogue as well.
    """
    k, _, _, cin, cout = w.shape

    # bf16 activations into the GEMM (f32 accumulation inside the kernel).
    xb = x.astype(jnp.bfloat16)
    slices, taps, (Do, Ho, Wo) = _extract_patches(xb, k, stride, padding, dilation)

    N = x.shape[0]
    M = N * Do * Ho * Wo

    # Fold BN scale into the weights (f32), keep only the kept taps, cast bf16.
    w_f = w * scale.reshape(1, 1, 1, 1, cout)
    w2d = jnp.concatenate([w_f[i, j, l] for (i, j, l) in taps], axis=0)
    w2d = w2d.astype(jnp.bfloat16)                               # (T*Cin, Cout)

    x2d = jnp.concatenate([s.reshape(M, cin) for s in slices], axis=-1)  # (M, T*Cin) bf16

    res2d = None
    if residual is not None:
        res2d = residual.reshape(M, cout)

    y = matmul_bias_act(x2d, w2d, bias, relu, residual=res2d)
    return y.reshape(N, Do, Ho, Wo, cout)


def maxpool3d(x, k=3, stride=2, padding=1):
    # Per perf review: running-maximum tree over the k^3 shifted/strided windows,
    # fused by XLA -- avoids materializing a 27x im2col tensor in HBM.
    neg = float(jnp.finfo(jnp.float32).min)
    slices, _, _ = _extract_patches(x, k, stride, padding, 1, pad_value=neg)
    out = slices[0]
    for s in slices[1:]:
        out = jnp.maximum(out, s)
    return out


def head_avgpool_fc(x, fc_w, fc_b):
    """Fused global average pool + Linear in a single tiny Pallas kernel."""
    N, D, H, W, C = x.shape
    S = D * H * W
    nc = fc_w.shape[1]
    R = max(8, _round_up(N, 8))
    Ncol = _round_up(nc, 128)

    xm = jnp.pad(x.reshape(N, S, C), ((0, R - N), (0, 0), (0, 0)))
    wp = jnp.pad(fc_w, ((0, 0), (0, Ncol - nc))).astype(jnp.bfloat16)
    bp = jnp.pad(fc_b.astype(jnp.float32).reshape(1, nc), ((0, 0), (0, Ncol - nc)))

    out = pl.pallas_call(
        _head_kernel,
        out_shape=jax.ShapeDtypeStruct((R, Ncol), jnp.float32),
        grid=(1,),
        in_specs=[pl.BlockSpec((R, S, C), lambda i: (0, 0, 0)),
                  pl.BlockSpec((C, Ncol), lambda i: (0, 0)),
                  pl.BlockSpec((1, Ncol), lambda i: (0, 0))],
        out_specs=pl.BlockSpec((R, Ncol), lambda i: (0, 0)),
    )(xm, wp, bp)
    return out[:N, :nc]


# --------------------------------------------------------------------------
# Parameters (deterministic init matching the PyTorch __init__)
# --------------------------------------------------------------------------

def _bn_affine(c):
    # inference BN: gamma=1, beta=0, running_mean=0, running_var=1
    scale = jnp.full((c,), 1.0 / math.sqrt(1.0 + BN_EPS), jnp.float32)
    bias = jnp.zeros((c,), jnp.float32)
    return scale, bias


def _kaiming_conv(key, k, cin, cout):
    # kaiming_normal_(mode='fan_out'), a=0 -> std = sqrt(2 / (k^3 * cout))
    fan_out = k * k * k * cout
    std = math.sqrt(2.0 / fan_out)
    return std * jax.random.normal(key, (k, k, k, cin, cout), jnp.float32)


def init_params(key, in_channel, num_date_diff_classes, layers=(1, 1, 1, 1)):
    keys = iter(jax.random.split(key, 128))
    params = {'conv1_w': _kaiming_conv(next(keys), 7, in_channel, 64)}
    inplanes = 64
    all_layers = []
    for (planes, stride, dilation), nblocks in zip(LAYER_CFG, layers):
        blocks = []
        for b in range(nblocks):
            s = stride if b == 0 else 1
            blk = {
                'conv1_w': _kaiming_conv(next(keys), 3, inplanes, planes),
                'conv2_w': _kaiming_conv(next(keys), 3, planes, planes),
            }
            if b == 0 and (s != 1 or inplanes != planes):  # shortcut_type='B'
                blk['ds_w'] = _kaiming_conv(next(keys), 1, inplanes, planes)
            blocks.append(blk)
            inplanes = planes
        all_layers.append(blocks)
    params['layers'] = all_layers
    # nn.Linear default init (untouched by the module's init loop)
    bound = 1.0 / math.sqrt(512)
    params['fc_w'] = jax.random.uniform(next(keys), (512, num_date_diff_classes),
                                        jnp.float32, -bound, bound)
    params['fc_b'] = jax.random.uniform(next(keys), (num_date_diff_classes,),
                                        jnp.float32, -bound, bound)
    return params


# --------------------------------------------------------------------------
# Forward pass
# --------------------------------------------------------------------------

def basic_block_forward(x, blk, stride, dilation):
    planes = blk['conv1_w'].shape[-1]
    sc1, bi1 = _bn_affine(planes)   # bn1 of the block
    sc2, bi2 = _bn_affine(planes)   # bn2 of the block

    out = conv3d_bn_act(x, blk['conv1_w'], sc1, bi1,
                        stride=stride, padding=dilation, dilation=dilation, relu=True)

    if 'ds_w' in blk:
        # NOTE: the downsample path has its OWN BatchNorm module in PyTorch;
        # here it is identity-folded like the others (see TODO at top of file),
        # but kept structurally separate.
        sc_ds, bi_ds = _bn_affine(planes)
        residual = conv3d_bn_act(x, blk['ds_w'], sc_ds, bi_ds,
                                 stride=stride, padding=0, dilation=1, relu=False)
    else:
        residual = x

    # conv2 + bn2 + residual add + ReLU fused into one GEMM epilogue.
    return conv3d_bn_act(out, blk['conv2_w'], sc2, bi2,
                         stride=1, padding=dilation, dilation=dilation, relu=True,
                         residual=residual)


def resnet_forward(params, image, sample_input_D=16, sample_input_H=16, sample_input_W=16):
    # image: (N, C, D, H, W) as in PyTorch  ->  NDHWC internally
    x = jnp.transpose(image, (0, 2, 3, 4, 1)).astype(jnp.float32)

    sc, bi = _bn_affine(64)
    x = conv3d_bn_act(x, params['conv1_w'], sc, bi,
                      stride=2, padding=3, dilation=1, relu=True)   # conv1+bn1+relu
    x = maxpool3d(x, 3, 2, 1)                                       # maxpool

    for (planes, stride, dilation), blocks in zip(LAYER_CFG, params['layers']):
        for bidx, blk in enumerate(blocks):
            x = basic_block_forward(x, blk, stride if bidx == 0 else 1, dilation)

    # AvgPool3d((ceil(D/8), ceil(H/8), ceil(W/8)), stride=1): at these shapes the
    # kernel covers the whole remaining feature map, i.e. a global average.
    last = (math.ceil(sample_input_D / 8),
            math.ceil(sample_input_H / 8),
            math.ceil(sample_input_W / 8))
    assert tuple(x.shape[1:4]) == last, (x.shape, last)

    # global avgpool + fc_date_diff fused in one Pallas kernel
    return head_avgpool_fc(x, params['fc_w'], params['fc_b'])


# --------------------------------------------------------------------------

if __name__ == "__main__":
    key = jax.random.PRNGKey(0)
    pkey, xkey = jax.random.split(key)

    batch, in_channel = 2, 1
    D = H = W = 16
    num_date_diff_classes = 3

    params = init_params(pkey, in_channel, num_date_diff_classes, layers=(1, 1, 1, 1))
    image = jax.random.normal(xkey, (batch, in_channel, D, H, W), jnp.float32)

    fwd = jax.jit(resnet_forward)
    out = fwd(params, image)
    out = jax.block_until_ready(out)

    assert out.shape == (batch, num_date_diff_classes), out.shape
    assert bool(jnp.all(jnp.isfinite(out)))
    print("KERNEL_OK")
</pallas_src>

<mosaic_0001>
module attributes {stable_mosaic.version = 11 : i64} {
  func.func @_mm_bias_act_kernel(%arg0: i32, %arg1: i32, %arg2: i32, %arg3: memref<128x384xbf16, #tpu.memory_space<vmem>>, %arg4: memref<384x128xbf16, #tpu.memory_space<vmem>>, %arg5: memref<1x128xf32, #tpu.memory_space<vmem>>, %arg6: memref<128x128xf32, #tpu.memory_space<vmem>>, %arg7: memref<128x128xf32, #tpu.memory_space<vmem>>) attributes {dimension_semantics = [#tpu.dimension_semantics<parallel>, #tpu.dimension_semantics<parallel>, #tpu.dimension_semantics<arbitrary>], iteration_bounds = array<i64: 8, 1, 1>, scalar_prefetch = 0 : i64, scratch_operands = 1 : i64, tpu.core_type = #tpu.core_type<tc>, window_params = [{transform_indices = @transform_0, window_bounds = array<i64: 128, 384>}, {transform_indices = @transform_1, window_bounds = array<i64: 384, 128>}, {transform_indices = @transform_2, window_bounds = array<i64: 1, 128>}, {transform_indices = @transform_3, window_bounds = array<i64: 128, 128>}]} {
    %c0_i32 = arith.constant 0 : i32
    %0 = arith.cmpi eq, %arg2, %c0_i32 : i32
    %1 = arith.extui %0 : i1 to i32
    %c0_i32_0 = arith.constant 0 : i32
    %2 = arith.cmpi ne, %1, %c0_i32_0 : i32
    scf.if %2 {
      %cst_10 = arith.constant 0.000000e+00 : f32
      %12 = vector.broadcast %cst_10 : f32 to vector<128x128xf32>
      %c0_11 = arith.constant 0 : index
      %c0_12 = arith.constant 0 : index
      %13 = vector.load %arg7[%c0_11, %c0_12] : memref<128x128xf32, #tpu.memory_space<vmem>>, vector<128x128xf32>
      tpu.vector_store %arg7[%c0_11, %c0_12], %12 {strides = array<i32>} : memref<128x128xf32, #tpu.memory_space<vmem>>, vector<128x128xf32>,
    } else {
    }
    %c0 = arith.constant 0 : index
    %c0_1 = arith.constant 0 : index
    %3 = vector.load %arg7[%c0, %c0_1] : memref<128x128xf32, #tpu.memory_space<vmem>>, vector<128x128xf32>
    %c0_2 = arith.constant 0 : index
    %c0_3 = arith.constant 0 : index
    %4 = vector.load %arg3[%c0_2, %c0_3] : memref<128x384xbf16, #tpu.memory_space<vmem>>, vector<128x384xbf16>
    %c0_4 = arith.constant 0 : index
    %c0_5 = arith.constant 0 : index
    %5 = vector.load %arg4[%c0_4, %c0_5] : memref<384x128xbf16, #tpu.memory_space<vmem>>, vector<384x128xbf16>
    %cst = arith.constant dense<0.000000e+00> : vector<128x128xf32>
    %6 = tpu.matmul %4, %5, %cst {dimension_numbers = #tpu.dot_dimension_numbers<[1], [0], [0], [1], [0, 0, 1, 1], [], []>} : vector<128x384xbf16>, vector<384x128xbf16>, vector<128x128xf32> -> vector<128x128xf32>
    %7 = arith.addf %3, %6 : vector<128x128xf32>
    %c0_6 = arith.constant 0 : index
    %c0_7 = arith.constant 0 : index
    %8 = vector.load %arg7[%c0_6, %c0_7] : memref<128x128xf32, #tpu.memory_space<vmem>>, vector<128x128xf32>
    tpu.vector_store %arg7[%c0_6, %c0_7], %7 {strides = array<i32>} : memref<128x128xf32, #tpu.memory_space<vmem>>, vector<128x128xf32>,
    %c0_i32_8 = arith.constant 0 : i32
    %9 = arith.cmpi eq, %arg2, %c0_i32_8 : i32
    %10 = arith.extui %9 : i1 to i32
    %c0_i32_9 = arith.constant 0 : i32
    %11 = arith.cmpi ne, %10, %c0_i32_9 : i32
    scf.if %11 {
      %c0_10 = arith.constant 0 : index
      %c0_11 = arith.constant 0 : index
      %12 = vector.load %arg7[%c0_10, %c0_11] : memref<128x128xf32, #tpu.memory_space<vmem>>, vector<128x128xf32>
      %c0_12 = arith.constant 0 : index
      %c0_13 = arith.constant 0 : index
      %13 = vector.load %arg5[%c0_12, %c0_13] : memref<1x128xf32, #tpu.memory_space<vmem>>, vector<1x128xf32>
      %14 = vector.broadcast %13 : vector<1x128xf32> to vector<128x128xf32>
      %15 = arith.addf %12, %14 : vector<128x128xf32>
      %cst_14 = arith.constant 0.000000e+00 : f32
      %16 = vector.broadcast %cst_14 : f32 to vector<128x128xf32>
      %17 = arith.maximumf %15, %16 : vector<128x128xf32>
      %c0_15 = arith.constant 0 : index
      %c0_16 = arith.constant 0 : index
      %18 = vector.load %arg6[%c0_15, %c0_16] : memref<128x128xf32, #tpu.memory_space<vmem>>, vector<128x128xf32>
      tpu.vector_store %arg6[%c0_15, %c0_16], %17 {strides = array<i32>} : memref<128x128xf32, #tpu.memory_space<vmem>>, vector<128x128xf32>,
    } else {
    }
    return
  }
  func.func @transform_0(%arg0: i32, %arg1: i32, %arg2: i32) -> (i32, i32) {
    %c0_i32 = arith.constant 0 : i32
    return %arg0, %arg2 : i32, i32
  }
  func.func @transform_1(%arg0: i32, %arg1: i32, %arg2: i32) -> (i32, i32) {
    %c0_i32 = arith.constant 0 : i32
    return %arg2, %arg1 : i32, i32
  }
  func.func @transform_2(%arg0: i32, %arg1: i32, %arg2: i32) -> (i32, i32) {
    %c0_i32 = arith.constant 0 : i32
    %c0_i32_0 = arith.constant 0 : i32
    return %c0_i32, %arg1 : i32, i32
  }
  func.func @transform_3(%arg0: i32, %arg1: i32, %arg2: i32) -> (i32, i32) {
    %c0_i32 = arith.constant 0 : i32
    return %arg0, %arg1 : i32, i32
  }
}

module attributes {stable_mosaic.version = 11 : i64} {
  func.func @_mm_bias_act_kernel(%arg0: i32, %arg1: i32, %arg2: i32, %arg3: memref<128x512xbf16, #tpu.memory_space<vmem>>, %arg4: memref<512x128xbf16, #tpu.memory_space<vmem>>, %arg5: memref<1x128xf32, #tpu.memory_space<vmem>>, %arg6: memref<128x128xf32, #tpu.memory_space<vmem>>, %arg7: memref<128x128xf32, #tpu.memory_space<vmem>>) attributes {dimension_semantics = [#tpu.dimension_semantics<parallel>, #tpu.dimension_semantics<parallel>, #tpu.dimension_semantics<arbitrary>], iteration_bounds = array<i64: 1, 1, 4>, scalar_prefetch = 0 : i64, scratch_operands = 1 : i64, tpu.core_type = #tpu.core_type<tc>, window_params = [{transform_indices = @transform_0, window_bounds = array<i64: 128, 512>}, {transform_indices = @transform_1, window_bounds = array<i64: 512, 128>}, {transform_indices = @transform_2, window_bounds = array<i64: 1, 128>}, {transform_indices = @transform_3, window_bounds = array<i64: 128, 128>}]} {
    %c0_i32 = arith.constant 0 : i32
    %0 = arith.cmpi eq, %arg2, %c0_i32 : i32
    %1 = arith.extui %0 : i1 to i32
    %c0_i32_0 = arith.constant 0 : i32
    %2 = arith.cmpi ne, %1, %c0_i32_0 : i32
    scf.if %2 {
      %cst_9 = arith.constant 0.000000e+00 : f32
      %12 = vector.broadcast %cst_9 : f32 to vector<128x128xf32>
      %c0_10 = arith.constant 0 : index
      %c0_11 = arith.constant 0 : index
      %13 = vector.load %arg7[%c0_10, %c0_11] : memref<128x128xf32, #tpu.memory_space<vmem>>, vector<128x128xf32>
      tpu.vector_store %arg7[%c0_10, %c0_11], %12 {strides = array<i32>} : memref<128x128xf32, #tpu.memory_space<vmem>>, vector<128x128xf32>,
    } else {
    }
    %c0 = arith.constant 0 : index
    %c0_1 = arith.constant 0 : index
    %3 = vector.load %arg7[%c0, %c0_1] : memref<128x128xf32, #tpu.memory_space<vmem>>, vector<128x128xf32>
    %c0_2 = arith.constant 0 : index
    %c0_3 = arith.constant 0 : index
    %4 = vector.load %arg3[%c0_2, %c0_3] : memref<128x512xbf16, #tpu.memory_space<vmem>>, vector<128x512xbf16>
    %c0_4 = arith.constant 0 : index
    %c0_5 = arith.constant 0 : index
    %5 = vector.load %arg4[%c0_4, %c0_5] : memref<512x128xbf16, #tpu.memory_space<vmem>>, vector<512x128xbf16>
    %cst = arith.constant dense<0.000000e+00> : vector<128x128xf32>
    %6 = tpu.matmul %4, %5, %cst {dimension_numbers = #tpu.dot_dimension_numbers<[1], [0], [0], [1], [0, 0, 1, 1], [], []>} : vector<128x512xbf16>, vector<512x128xbf16>, vector<128x128xf32> -> vector<128x128xf32>
    %7 = arith.addf %3, %6 : vector<128x128xf32>
    %c0_6 = arith.constant 0 : index
    %c0_7 = arith.constant 0 : index
    %8 = vector.load %arg7[%c0_6, %c0_7] : memref<128x128xf32, #tpu.memory_space<vmem>>, vector<128x128xf32>
    tpu.vector_store %arg7[%c0_6, %c0_7], %7 {strides = array<i32>} : memref<128x128xf32, #tpu.memory_space<vmem>>, vector<128x128xf32>,
    %c3_i32 = arith.constant 3 : i32
    %9 = arith.cmpi eq, %arg2, %c3_i32 : i32
    %10 = arith.extui %9 : i1 to i32
    %c0_i32_8 = arith.constant 0 : i32
    %11 = arith.cmpi ne, %10, %c0_i32_8 : i32
    scf.if %11 {
      %c0_9 = arith.constant 0 : index
      %c0_10 = arith.constant 0 : index
      %12 = vector.load %arg7[%c0_9, %c0_10] : memref<128x128xf32, #tpu.memory_space<vmem>>, vector<128x128xf32>
      %c0_11 = arith.constant 0 : index
      %c0_12 = arith.constant 0 : index
      %13 = vector.load %arg5[%c0_11, %c0_12] : memref<1x128xf32, #tpu.memory_space<vmem>>, vector<1x128xf32>
      %14 = vector.broadcast %13 : vector<1x128xf32> to vector<128x128xf32>
      %15 = arith.addf %12, %14 : vector<128x128xf32>
      %cst_13 = arith.constant 0.000000e+00 : f32
      %16 = vector.broadcast %cst_13 : f32 to vector<128x128xf32>
      %17 = arith.maximumf %15, %16 : vector<128x128xf32>
      %c0_14 = arith.constant 0 : index
      %c0_15 = arith.constant 0 : index
      %18 = vector.load %arg6[%c0_14, %c0_15] : memref<128x128xf32, #tpu.memory_space<vmem>>, vector<128x128xf32>
      tpu.vector_store %arg6[%c0_14, %c0_15], %17 {strides = array<i32>} : memref<128x128xf32, #tpu.memory_space<vmem>>, vector<128x128xf32>,
    } else {
    }
    return
  }
  func.func @transform_0(%arg0: i32, %arg1: i32, %arg2: i32) -> (i32, i32) {
    %c0_i32 = arith.constant 0 : i32
    return %arg0, %arg2 : i32, i32
  }
  func.func @transform_1(%arg0: i32, %arg1: i32, %arg2: i32) -> (i32, i32) {
    %c0_i32 = arith.constant 0 : i32
    return %arg2, %arg1 : i32, i32
  }
  func.func @transform_2(%arg0: i32, %arg1: i32, %arg2: i32) -> (i32, i32) {
    %c0_i32 = arith.constant 0 : i32
    %c0_i32_0 = arith.constant 0 : i32
    return %c0_i32, %arg1 : i32, i32
  }
  func.func @transform_3(%arg0: i32, %arg1: i32, %arg2: i32) -> (i32, i32) {
    %c0_i32 = arith.constant 0 : i32
    return %arg0, %arg1 : i32, i32
  }
}

module attributes {stable_mosaic.version = 11 : i64} {
  func.func @_mm_bias_act_kernel(%arg0: i32, %arg1: i32, %arg2: i32, %arg3: memref<128x512xbf16, #tpu.memory_space<vmem>>, %arg4: memref<512x128xbf16, #tpu.memory_space<vmem>>, %arg5: memref<1x128xf32, #tpu.memory_space<vmem>>, %arg6: memref<128x128xf32, #tpu.memory_space<vmem>>, %arg7: memref<128x128xf32, #tpu.memory_space<vmem>>, %arg8: memref<128x128xf32, #tpu.memory_space<vmem>>) attributes {dimension_semantics = [#tpu.dimension_semantics<parallel>, #tpu.dimension_semantics<parallel>, #tpu.dimension_semantics<arbitrary>], iteration_bounds = array<i64: 1, 1, 4>, scalar_prefetch = 0 : i64, scratch_operands = 1 : i64, tpu.core_type = #tpu.core_type<tc>, window_params = [{transform_indices = @transform_0, window_bounds = array<i64: 128, 512>}, {transform_indices = @transform_1, window_bounds = array<i64: 512, 128>}, {transform_indices = @transform_2, window_bounds = array<i64: 1, 128>}, {transform_indices = @transform_3, window_bounds = array<i64: 128, 128>}, {transform_indices = @transform_4, window_bounds = array<i64: 128, 128>}]} {
    %c0_i32 = arith.constant 0 : i32
    %0 = arith.cmpi eq, %arg2, %c0_i32 : i32
    %1 = arith.extui %0 : i1 to i32
    %c0_i32_0 = arith.constant 0 : i32
    %2 = arith.cmpi ne, %1, %c0_i32_0 : i32
    scf.if %2 {
      %cst_9 = arith.constant 0.000000e+00 : f32
      %12 = vector.broadcast %cst_9 : f32 to vector<128x128xf32>
      %c0_10 = arith.constant 0 : index
      %c0_11 = arith.constant 0 : index
      %13 = vector.load %arg8[%c0_10, %c0_11] : memref<128x128xf32, #tpu.memory_space<vmem>>, vector<128x128xf32>
      tpu.vector_store %arg8[%c0_10, %c0_11], %12 {strides = array<i32>} : memref<128x128xf32, #tpu.memory_space<vmem>>, vector<128x128xf32>,
    } else {
    }
    %c0 = arith.constant 0 : index
    %c0_1 = arith.constant 0 : index
    %3 = vector.load %arg8[%c0, %c0_1] : memref<128x128xf32, #tpu.memory_space<vmem>>, vector<128x128xf32>
    %c0_2 = arith.constant 0 : index
    %c0_3 = arith.constant 0 : index
    %4 = vector.load %arg3[%c0_2, %c0_3] : memref<128x512xbf16, #tpu.memory_space<vmem>>, vector<128x512xbf16>
    %c0_4 = arith.constant 0 : index
    %c0_5 = arith.constant 0 : index
    %5 = vector.load %arg4[%c0_4, %c0_5] : memref<512x128xbf16, #tpu.memory_space<vmem>>, vector<512x128xbf16>
    %cst = arith.constant dense<0.000000e+00> : vector<128x128xf32>
    %6 = tpu.matmul %4, %5, %cst {dimension_numbers = #tpu.dot_dimension_numbers<[1], [0], [0], [1], [0, 0, 1, 1], [], []>} : vector<128x512xbf16>, vector<512x128xbf16>, vector<128x128xf32> -> vector<128x128xf32>
    %7 = arith.addf %3, %6 : vector<128x128xf32>
    %c0_6 = arith.constant 0 : index
    %c0_7 = arith.constant 0 : index
    %8 = vector.load %arg8[%c0_6, %c0_7] : memref<128x128xf32, #tpu.memory_space<vmem>>, vector<128x128xf32>
    tpu.vector_store %arg8[%c0_6, %c0_7], %7 {strides = array<i32>} : memref<128x128xf32, #tpu.memory_space<vmem>>, vector<128x128xf32>,
    %c3_i32 = arith.constant 3 : i32
    %9 = arith.cmpi eq, %arg2, %c3_i32 : i32
    %10 = arith.extui %9 : i1 to i32
    %c0_i32_8 = arith.constant 0 : i32
    %11 = arith.cmpi ne, %10, %c0_i32_8 : i32
    scf.if %11 {
      %c0_9 = arith.constant 0 : index
      %c0_10 = arith.constant 0 : index
      %12 = vector.load %arg8[%c0_9, %c0_10] : memref<128x128xf32, #tpu.memory_space<vmem>>, vector<128x128xf32>
      %c0_11 = arith.constant 0 : index
      %c0_12 = arith.constant 0 : index
      %13 = vector.load %arg5[%c0_11, %c0_12] : memref<1x128xf32, #tpu.memory_space<vmem>>, vector<1x128xf32>
      %14 = vector.broadcast %13 : vector<1x128xf32> to vector<128x128xf32>
      %15 = arith.addf %12, %14 : vector<128x128xf32>
      %c0_13 = arith.constant 0 : index
      %c0_14 = arith.constant 0 : index
      %16 = vector.load %arg6[%c0_13, %c0_14] : memref<128x128xf32, #tpu.memory_space<vmem>>, vector<128x128xf32>
      %17 = arith.addf %15, %16 : vector<128x128xf32>
      %cst_15 = arith.constant 0.000000e+00 : f32
      %18 = vector.broadcast %cst_15 : f32 to vector<128x128xf32>
      %19 = arith.maximumf %17, %18 : vector<128x128xf32>
      %c0_16 = arith.constant 0 : index
      %c0_17 = arith.constant 0 : index
      %20 = vector.load %arg7[%c0_16, %c0_17] : memref<128x128xf32, #tpu.memory_space<vmem>>, vector<128x128xf32>
      tpu.vector_store %arg7[%c0_16, %c0_17], %19 {strides = array<i32>} : memref<128x128xf32, #tpu.memory_space<vmem>>, vector<128x128xf32>,
    } else {
    }
    return
  }
  func.func @transform_0(%arg0: i32, %arg1: i32, %arg2: i32) -> (i32, i32) {
    %c0_i32 = arith.constant 0 : i32
    return %arg0, %arg2 : i32, i32
  }
  func.func @transform_1(%arg0: i32, %arg1: i32, %arg2: i32) -> (i32, i32) {
    %c0_i32 = arith.constant 0 : i32
    return %arg2, %arg1 : i32, i32
  }
  func.func @transform_2(%arg0: i32, %arg1: i32, %arg2: i32) -> (i32, i32) {
    %c0_i32 = arith.constant 0 : i32
    %c0_i32_0 = arith.constant 0 : i32
    return %c0_i32, %arg1 : i32, i32
  }
  func.func @transform_3(%arg0: i32, %arg1: i32, %arg2: i32) -> (i32, i32) {
    %c0_i32 = arith.constant 0 : i32
    return %arg0, %arg1 : i32, i32
  }
  func.func @transform_4(%arg0: i32, %arg1: i32, %arg2: i32) -> (i32, i32) {
    %c0_i32 = arith.constant 0 : i32
    return %arg0, %arg1 : i32, i32
  }
}

module attributes {stable_mosaic.version = 11 : i64} {
  func.func @_mm_bias_act_kernel(%arg0: i32, %arg1: i32, %arg2: i32, %arg3: memref<16x512xbf16, #tpu.memory_space<vmem>>, %arg4: memref<512x128xbf16, #tpu.memory_space<vmem>>, %arg5: memref<1x128xf32, #tpu.memory_space<vmem>>, %arg6: memref<16x128xf32, #tpu.memory_space<vmem>>, %arg7: memref<16x128xf32, #tpu.memory_space<vmem>>) attributes {dimension_semantics = [#tpu.dimension_semantics<parallel>, #tpu.dimension_semantics<parallel>, #tpu.dimension_semantics<arbitrary>], iteration_bounds = array<i64: 1, 1, 4>, scalar_prefetch = 0 : i64, scratch_operands = 1 : i64, tpu.core_type = #tpu.core_type<tc>, window_params = [{transform_indices = @transform_0, window_bounds = array<i64: 16, 512>}, {transform_indices = @transform_1, window_bounds = array<i64: 512, 128>}, {transform_indices = @transform_2, window_bounds = array<i64: 1, 128>}, {transform_indices = @transform_3, window_bounds = array<i64: 16, 128>}]} {
    %c0_i32 = arith.constant 0 : i32
    %0 = arith.cmpi eq, %arg2, %c0_i32 : i32
    %1 = arith.extui %0 : i1 to i32
    %c0_i32_0 = arith.constant 0 : i32
    %2 = arith.cmpi ne, %1, %c0_i32_0 : i32
    scf.if %2 {
      %cst_9 = arith.constant 0.000000e+00 : f32
      %12 = vector.broadcast %cst_9 : f32 to vector<16x128xf32>
      %c0_10 = arith.constant 0 : index
      %c0_11 = arith.constant 0 : index
      %13 = vector.load %arg7[%c0_10, %c0_11] : memref<16x128xf32, #tpu.memory_space<vmem>>, vector<16x128xf32>
      tpu.vector_store %arg7[%c0_10, %c0_11], %12 {strides = array<i32>} : memref<16x128xf32, #tpu.memory_space<vmem>>, vector<16x128xf32>,
    } else {
    }
    %c0 = arith.constant 0 : index
    %c0_1 = arith.constant 0 : index
    %3 = vector.load %arg7[%c0, %c0_1] : memref<16x128xf32, #tpu.memory_space<vmem>>, vector<16x128xf32>
    %c0_2 = arith.constant 0 : index
    %c0_3 = arith.constant 0 : index
    %4 = vector.load %arg3[%c0_2, %c0_3] : memref<16x512xbf16, #tpu.memory_space<vmem>>, vector<16x512xbf16>
    %c0_4 = arith.constant 0 : index
    %c0_5 = arith.constant 0 : index
    %5 = vector.load %arg4[%c0_4, %c0_5] : memref<512x128xbf16, #tpu.memory_space<vmem>>, vector<512x128xbf16>
    %cst = arith.constant dense<0.000000e+00> : vector<16x128xf32>
    %6 = tpu.matmul %4, %5, %cst {dimension_numbers = #tpu.dot_dimension_numbers<[1], [0], [0], [1], [0, 0, 1, 1], [], []>} : vector<16x512xbf16>, vector<512x128xbf16>, vector<16x128xf32> -> vector<16x128xf32>
    %7 = arith.addf %3, %6 : vector<16x128xf32>
    %c0_6 = arith.constant 0 : index
    %c0_7 = arith.constant 0 : index
    %8 = vector.load %arg7[%c0_6, %c0_7] : memref<16x128xf32, #tpu.memory_space<vmem>>, vector<16x128xf32>
    tpu.vector_store %arg7[%c0_6, %c0_7], %7 {strides = array<i32>} : memref<16x128xf32, #tpu.memory_space<vmem>>, vector<16x128xf32>,
    %c3_i32 = arith.constant 3 : i32
    %9 = arith.cmpi eq, %arg2, %c3_i32 : i32
    %10 = arith.extui %9 : i1 to i32
    %c0_i32_8 = arith.constant 0 : i32
    %11 = arith.cmpi ne, %10, %c0_i32_8 : i32
    scf.if %11 {
      %c0_9 = arith.constant 0 : index
      %c0_10 = arith.constant 0 : index
      %12 = vector.load %arg7[%c0_9, %c0_10] : memref<16x128xf32, #tpu.memory_space<vmem>>, vector<16x128xf32>
      %c0_11 = arith.constant 0 : index
      %c0_12 = arith.constant 0 : index
      %13 = vector.load %arg5[%c0_11, %c0_12] : memref<1x128xf32, #tpu.memory_space<vmem>>, vector<1x128xf32>
      %14 = vector.broadcast %13 : vector<1x128xf32> to vector<16x128xf32>
      %15 = arith.addf %12, %14 : vector<16x128xf32>
      %cst_13 = arith.constant 0.000000e+00 : f32
      %16 = vector.broadcast %cst_13 : f32 to vector<16x128xf32>
      %17 = arith.maximumf %15, %16 : vector<16x128xf32>
      %c0_14 = arith.constant 0 : index
      %c0_15 = arith.constant 0 : index
      %18 = vector.load %arg6[%c0_14, %c0_15] : memref<16x128xf32, #tpu.memory_space<vmem>>, vector<16x128xf32>
      tpu.vector_store %arg6[%c0_14, %c0_15], %17 {strides = array<i32>} : memref<16x128xf32, #tpu.memory_space<vmem>>, vector<16x128xf32>,
    } else {
    }
    return
  }
  func.func @transform_0(%arg0: i32, %arg1: i32, %arg2: i32) -> (i32, i32) {
    %c0_i32 = arith.constant 0 : i32
    return %arg0, %arg2 : i32, i32
  }
  func.func @transform_1(%arg0: i32, %arg1: i32, %arg2: i32) -> (i32, i32) {
    %c0_i32 = arith.constant 0 : i32
    return %arg2, %arg1 : i32, i32
  }
  func.func @transform_2(%arg0: i32, %arg1: i32, %arg2: i32) -> (i32, i32) {
    %c0_i32 = arith.constant 0 : i32
    %c0_i32_0 = arith.constant 0 : i32
    return %c0_i32, %arg1 : i32, i32
  }
  func.func @transform_3(%arg0: i32, %arg1: i32, %arg2: i32) -> (i32, i32) {
    %c0_i32 = arith.constant 0 : i32
    return %arg0, %arg1 : i32, i32
  }
}

module attributes {stable_mosaic.version = 11 : i64} {
  func.func @_mm_bias_act_kernel(%arg0: i32, %arg1: i32, %arg2: i32, %arg3: memref<16x512xbf16, #tpu.memory_space<vmem>>, %arg4: memref<512x128xbf16, #tpu.memory_space<vmem>>, %arg5: memref<1x128xf32, #tpu.memory_space<vmem>>, %arg6: memref<16x128xf32, #tpu.memory_space<vmem>>, %arg7: memref<16x128xf32, #tpu.memory_space<vmem>>, %arg8: memref<16x128xf32, #tpu.memory_space<vmem>>) attributes {dimension_semantics = [#tpu.dimension_semantics<parallel>, #tpu.dimension_semantics<parallel>, #tpu.dimension_semantics<arbitrary>], iteration_bounds = array<i64: 1, 1, 7>, scalar_prefetch = 0 : i64, scratch_operands = 1 : i64, tpu.core_type = #tpu.core_type<tc>, window_params = [{transform_indices = @transform_0, window_bounds = array<i64: 16, 512>}, {transform_indices = @transform_1, window_bounds = array<i64: 512, 128>}, {transform_indices = @transform_2, window_bounds = array<i64: 1, 128>}, {transform_indices = @transform_3, window_bounds = array<i64: 16, 128>}, {transform_indices = @transform_4, window_bounds = array<i64: 16, 128>}]} {
    %c0_i32 = arith.constant 0 : i32
    %0 = arith.cmpi eq, %arg2, %c0_i32 : i32
    %1 = arith.extui %0 : i1 to i32
    %c0_i32_0 = arith.constant 0 : i32
    %2 = arith.cmpi ne, %1, %c0_i32_0 : i32
    scf.if %2 {
      %cst_9 = arith.constant 0.000000e+00 : f32
      %12 = vector.broadcast %cst_9 : f32 to vector<16x128xf32>
      %c0_10 = arith.constant 0 : index
      %c0_11 = arith.constant 0 : index
      %13 = vector.load %arg8[%c0_10, %c0_11] : memref<16x128xf32, #tpu.memory_space<vmem>>, vector<16x128xf32>
      tpu.vector_store %arg8[%c0_10, %c0_11], %12 {strides = array<i32>} : memref<16x128xf32, #tpu.memory_space<vmem>>, vector<16x128xf32>,
    } else {
    }
    %c0 = arith.constant 0 : index
    %c0_1 = arith.constant 0 : index
    %3 = vector.load %arg8[%c0, %c0_1] : memref<16x128xf32, #tpu.memory_space<vmem>>, vector<16x128xf32>
    %c0_2 = arith.constant 0 : index
    %c0_3 = arith.constant 0 : index
    %4 = vector.load %arg3[%c0_2, %c0_3] : memref<16x512xbf16, #tpu.memory_space<vmem>>, vector<16x512xbf16>
    %c0_4 = arith.constant 0 : index
    %c0_5 = arith.constant 0 : index
    %5 = vector.load %arg4[%c0_4, %c0_5] : memref<512x128xbf16, #tpu.memory_space<vmem>>, vector<512x128xbf16>
    %cst = arith.constant dense<0.000000e+00> : vector<16x128xf32>
    %6 = tpu.matmul %4, %5, %cst {dimension_numbers = #tpu.dot_dimension_numbers<[1], [0], [0], [1], [0, 0, 1, 1], [], []>} : vector<16x512xbf16>, vector<512x128xbf16>, vector<16x128xf32> -> vector<16x128xf32>
    %7 = arith.addf %3, %6 : vector<16x128xf32>
    %c0_6 = arith.constant 0 : index
    %c0_7 = arith.constant 0 : index
    %8 = vector.load %arg8[%c0_6, %c0_7] : memref<16x128xf32, #tpu.memory_space<vmem>>, vector<16x128xf32>
    tpu.vector_store %arg8[%c0_6, %c0_7], %7 {strides = array<i32>} : memref<16x128xf32, #tpu.memory_space<vmem>>, vector<16x128xf32>,
    %c6_i32 = arith.constant 6 : i32
    %9 = arith.cmpi eq, %arg2, %c6_i32 : i32
    %10 = arith.extui %9 : i1 to i32
    %c0_i32_8 = arith.constant 0 : i32
    %11 = arith.cmpi ne, %10, %c0_i32_8 : i32
    scf.if %11 {
      %c0_9 = arith.constant 0 : index
      %c0_10 = arith.constant 0 : index
      %12 = vector.load %arg8[%c0_9, %c0_10] : memref<16x128xf32, #tpu.memory_space<vmem>>, vector<16x128xf32>
      %c0_11 = arith.constant 0 : index
      %c0_12 = arith.constant 0 : index
      %13 = vector.load %arg5[%c0_11, %c0_12] : memref<1x128xf32, #tpu.memory_space<vmem>>, vector<1x128xf32>
      %14 = vector.broadcast %13 : vector<1x128xf32> to vector<16x128xf32>
      %15 = arith.addf %12, %14 : vector<16x128xf32>
      %c0_13 = arith.constant 0 : index
      %c0_14 = arith.constant 0 : index
      %16 = vector.load %arg6[%c0_13, %c0_14] : memref<16x128xf32, #tpu.memory_space<vmem>>, vector<16x128xf32>
      %17 = arith.addf %15, %16 : vector<16x128xf32>
      %cst_15 = arith.constant 0.000000e+00 : f32
      %18 = vector.broadcast %cst_15 : f32 to vector<16x128xf32>
      %19 = arith.maximumf %17, %18 : vector<16x128xf32>
      %c0_16 = arith.constant 0 : index
      %c0_17 = arith.constant 0 : index
      %20 = vector.load %arg7[%c0_16, %c0_17] : memref<16x128xf32, #tpu.memory_space<vmem>>, vector<16x128xf32>
      tpu.vector_store %arg7[%c0_16, %c0_17], %19 {strides = array<i32>} : memref<16x128xf32, #tpu.memory_space<vmem>>, vector<16x128xf32>,
    } else {
    }
    return
  }
  func.func @transform_0(%arg0: i32, %arg1: i32, %arg2: i32) -> (i32, i32) {
    %c0_i32 = arith.constant 0 : i32
    return %arg0, %arg2 : i32, i32
  }
  func.func @transform_1(%arg0: i32, %arg1: i32, %arg2: i32) -> (i32, i32) {
    %c0_i32 = arith.constant 0 : i32
    return %arg2, %arg1 : i32, i32
  }
  func.func @transform_2(%arg0: i32, %arg1: i32, %arg2: i32) -> (i32, i32) {
    %c0_i32 = arith.constant 0 : i32
    %c0_i32_0 = arith.constant 0 : i32
    return %c0_i32, %arg1 : i32, i32
  }
  func.func @transform_3(%arg0: i32, %arg1: i32, %arg2: i32) -> (i32, i32) {
    %c0_i32 = arith.constant 0 : i32
    return %arg0, %arg1 : i32, i32
  }
  func.func @transform_4(%arg0: i32, %arg1: i32, %arg2: i32) -> (i32, i32) {
    %c0_i32 = arith.constant 0 : i32
    return %arg0, %arg1 : i32, i32
  }
}

module attributes {stable_mosaic.version = 11 : i64} {
  func.func @_mm_bias_act_kernel(%arg0: i32, %arg1: i32, %arg2: i32, %arg3: memref<16x128xbf16, #tpu.memory_space<vmem>>, %arg4: memref<128x128xbf16, #tpu.memory_space<vmem>>, %arg5: memref<1x128xf32, #tpu.memory_space<vmem>>, %arg6: memref<16x128xf32, #tpu.memory_space<vmem>>, %arg7: memref<16x128xf32, #tpu.memory_space<vmem>>) attributes {dimension_semantics = [#tpu.dimension_semantics<parallel>, #tpu.dimension_semantics<parallel>, #tpu.dimension_semantics<arbitrary>], iteration_bounds = array<i64: 1, 1, 1>, scalar_prefetch = 0 : i64, scratch_operands = 1 : i64, tpu.core_type = #tpu.core_type<tc>, window_params = [{transform_indices = @transform_0, window_bounds = array<i64: 16, 128>}, {transform_indices = @transform_1, window_bounds = array<i64: 128, 128>}, {transform_indices = @transform_2, window_bounds = array<i64: 1, 128>}, {transform_indices = @transform_3, window_bounds = array<i64: 16, 128>}]} {
    %c0_i32 = arith.constant 0 : i32
    %0 = arith.cmpi eq, %arg2, %c0_i32 : i32
    %1 = arith.extui %0 : i1 to i32
    %c0_i32_0 = arith.constant 0 : i32
    %2 = arith.cmpi ne, %1, %c0_i32_0 : i32
    scf.if %2 {
      %cst_10 = arith.constant 0.000000e+00 : f32
      %12 = vector.broadcast %cst_10 : f32 to vector<16x128xf32>
      %c0_11 = arith.constant 0 : index
      %c0_12 = arith.constant 0 : index
      %13 = vector.load %arg7[%c0_11, %c0_12] : memref<16x128xf32, #tpu.memory_space<vmem>>, vector<16x128xf32>
      tpu.vector_store %arg7[%c0_11, %c0_12], %12 {strides = array<i32>} : memref<16x128xf32, #tpu.memory_space<vmem>>, vector<16x128xf32>,
    } else {
    }
    %c0 = arith.constant 0 : index
    %c0_1 = arith.constant 0 : index
    %3 = vector.load %arg7[%c0, %c0_1] : memref<16x128xf32, #tpu.memory_space<vmem>>, vector<16x128xf32>
    %c0_2 = arith.constant 0 : index
    %c0_3 = arith.constant 0 : index
    %4 = vector.load %arg3[%c0_2, %c0_3] : memref<16x128xbf16, #tpu.memory_space<vmem>>, vector<16x128xbf16>
    %c0_4 = arith.constant 0 : index
    %c0_5 = arith.constant 0 : index
    %5 = vector.load %arg4[%c0_4, %c0_5] : memref<128x128xbf16, #tpu.memory_space<vmem>>, vector<128x128xbf16>
    %cst = arith.constant dense<0.000000e+00> : vector<16x128xf32>
    %6 = tpu.matmul %4, %5, %cst {dimension_numbers = #tpu.dot_dimension_numbers<[1], [0], [0], [1], [0, 0, 1, 1], [], []>} : vector<16x128xbf16>, vector<128x128xbf16>, vector<16x128xf32> -> vector<16x128xf32>
    %7 = arith.addf %3, %6 : vector<16x128xf32>
    %c0_6 = arith.constant 0 : index
    %c0_7 = arith.constant 0 : index
    %8 = vector.load %arg7[%c0_6, %c0_7] : memref<16x128xf32, #tpu.memory_space<vmem>>, vector<16x128xf32>
    tpu.vector_store %arg7[%c0_6, %c0_7], %7 {strides = array<i32>} : memref<16x128xf32, #tpu.memory_space<vmem>>, vector<16x128xf32>,
    %c0_i32_8 = arith.constant 0 : i32
    %9 = arith.cmpi eq, %arg2, %c0_i32_8 : i32
    %10 = arith.extui %9 : i1 to i32
    %c0_i32_9 = arith.constant 0 : i32
    %11 = arith.cmpi ne, %10, %c0_i32_9 : i32
    scf.if %11 {
      %c0_10 = arith.constant 0 : index
      %c0_11 = arith.constant 0 : index
      %12 = vector.load %arg7[%c0_10, %c0_11] : memref<16x128xf32, #tpu.memory_space<vmem>>, vector<16x128xf32>
      %c0_12 = arith.constant 0 : index
      %c0_13 = arith.constant 0 : index
      %13 = vector.load %arg5[%c0_12, %c0_13] : memref<1x128xf32, #tpu.memory_space<vmem>>, vector<1x128xf32>
      %14 = vector.broadcast %13 : vector<1x128xf32> to vector<16x128xf32>
      %15 = arith.addf %12, %14 : vector<16x128xf32>
      %c0_14 = arith.constant 0 : index
      %c0_15 = arith.constant 0 : index
      %16 = vector.load %arg6[%c0_14, %c0_15] : memref<16x128xf32, #tpu.memory_space<vmem>>, vector<16x128xf32>
      tpu.vector_store %arg6[%c0_14, %c0_15], %15 {strides = array<i32>} : memref<16x128xf32, #tpu.memory_space<vmem>>, vector<16x128xf32>,
    } else {
    }
    return
  }
  func.func @transform_0(%arg0: i32, %arg1: i32, %arg2: i32) -> (i32, i32) {
    %c0_i32 = arith.constant 0 : i32
    return %arg0, %arg2 : i32, i32
  }
  func.func @transform_1(%arg0: i32, %arg1: i32, %arg2: i32) -> (i32, i32) {
    %c0_i32 = arith.constant 0 : i32
    return %arg2, %arg1 : i32, i32
  }
  func.func @transform_2(%arg0: i32, %arg1: i32, %arg2: i32) -> (i32, i32) {
    %c0_i32 = arith.constant 0 : i32
    %c0_i32_0 = arith.constant 0 : i32
    return %c0_i32, %arg1 : i32, i32
  }
  func.func @transform_3(%arg0: i32, %arg1: i32, %arg2: i32) -> (i32, i32) {
    %c0_i32 = arith.constant 0 : i32
    return %arg0, %arg1 : i32, i32
  }
}

module attributes {stable_mosaic.version = 11 : i64} {
  func.func @_mm_bias_act_kernel(%arg0: i32, %arg1: i32, %arg2: i32, %arg3: memref<16x128xbf16, #tpu.memory_space<vmem>>, %arg4: memref<128x256xbf16, #tpu.memory_space<vmem>>, %arg5: memref<1x256xf32, #tpu.memory_space<vmem>>, %arg6: memref<16x256xf32, #tpu.memory_space<vmem>>, %arg7: memref<16x256xf32, #tpu.memory_space<vmem>>) attributes {dimension_semantics = [#tpu.dimension_semantics<parallel>, #tpu.dimension_semantics<parallel>, #tpu.dimension_semantics<arbitrary>], iteration_bounds = array<i64: 1, 1, 1>, scalar_prefetch = 0 : i64, scratch_operands = 1 : i64, tpu.core_type = #tpu.core_type<tc>, window_params = [{transform_indices = @transform_0, window_bounds = array<i64: 16, 128>}, {transform_indices = @transform_1, window_bounds = array<i64: 128, 256>}, {transform_indices = @transform_2, window_bounds = array<i64: 1, 256>}, {transform_indices = @transform_3, window_bounds = array<i64: 16, 256>}]} {
    %c0_i32 = arith.constant 0 : i32
    %0 = arith.cmpi eq, %arg2, %c0_i32 : i32
    %1 = arith.extui %0 : i1 to i32
    %c0_i32_0 = arith.constant 0 : i32
    %2 = arith.cmpi ne, %1, %c0_i32_0 : i32
    scf.if %2 {
      %cst_10 = arith.constant 0.000000e+00 : f32
      %12 = vector.broadcast %cst_10 : f32 to vector<16x256xf32>
      %c0_11 = arith.constant 0 : index
      %c0_12 = arith.constant 0 : index
      %13 = vector.load %arg7[%c0_11, %c0_12] : memref<16x256xf32, #tpu.memory_space<vmem>>, vector<16x256xf32>
      tpu.vector_store %arg7[%c0_11, %c0_12], %12 {strides = array<i32>} : memref<16x256xf32, #tpu.memory_space<vmem>>, vector<16x256xf32>,
    } else {
    }
    %c0 = arith.constant 0 : index
    %c0_1 = arith.constant 0 : index
    %3 = vector.load %arg7[%c0, %c0_1] : memref<16x256xf32, #tpu.memory_space<vmem>>, vector<16x256xf32>
    %c0_2 = arith.constant 0 : index
    %c0_3 = arith.constant 0 : index
    %4 = vector.load %arg3[%c0_2, %c0_3] : memref<16x128xbf16, #tpu.memory_space<vmem>>, vector<16x128xbf16>
    %c0_4 = arith.constant 0 : index
    %c0_5 = arith.constant 0 : index
    %5 = vector.load %arg4[%c0_4, %c0_5] : memref<128x256xbf16, #tpu.memory_space<vmem>>, vector<128x256xbf16>
    %cst = arith.constant dense<0.000000e+00> : vector<16x256xf32>
    %6 = tpu.matmul %4, %5, %cst {dimension_numbers = #tpu.dot_dimension_numbers<[1], [0], [0], [1], [0, 0, 1, 1], [], []>} : vector<16x128xbf16>, vector<128x256xbf16>, vector<16x256xf32> -> vector<16x256xf32>
    %7 = arith.addf %3, %6 : vector<16x256xf32>
    %c0_6 = arith.constant 0 : index
    %c0_7 = arith.constant 0 : index
    %8 = vector.load %arg7[%c0_6, %c0_7] : memref<16x256xf32, #tpu.memory_space<vmem>>, vector<16x256xf32>
    tpu.vector_store %arg7[%c0_6, %c0_7], %7 {strides = array<i32>} : memref<16x256xf32, #tpu.memory_space<vmem>>, vector<16x256xf32>,
    %c0_i32_8 = arith.constant 0 : i32
    %9 = arith.cmpi eq, %arg2, %c0_i32_8 : i32
    %10 = arith.extui %9 : i1 to i32
    %c0_i32_9 = arith.constant 0 : i32
    %11 = arith.cmpi ne, %10, %c0_i32_9 : i32
    scf.if %11 {
      %c0_10 = arith.constant 0 : index
      %c0_11 = arith.constant 0 : index
      %12 = vector.load %arg7[%c0_10, %c0_11] : memref<16x256xf32, #tpu.memory_space<vmem>>, vector<16x256xf32>
      %c0_12 = arith.constant 0 : index
      %c0_13 = arith.constant 0 : index
      %13 = vector.load %arg5[%c0_12, %c0_13] : memref<1x256xf32, #tpu.memory_space<vmem>>, vector<1x256xf32>
      %14 = vector.broadcast %13 : vector<1x256xf32> to vector<16x256xf32>
      %15 = arith.addf %12, %14 : vector<16x256xf32>
      %cst_14 = arith.constant 0.000000e+00 : f32
      %16 = vector.broadcast %cst_14 : f32 to vector<16x256xf32>
      %17 = arith.maximumf %15, %16 : vector<16x256xf32>
      %c0_15 = arith.constant 0 : index
      %c0_16 = arith.constant 0 : index
      %18 = vector.load %arg6[%c0_15, %c0_16] : memref<16x256xf32, #tpu.memory_space<vmem>>, vector<16x256xf32>
      tpu.vector_store %arg6[%c0_15, %c0_16], %17 {strides = array<i32>} : memref<16x256xf32, #tpu.memory_space<vmem>>, vector<16x256xf32>,
    } else {
    }
    return
  }
  func.func @transform_0(%arg0: i32, %arg1: i32, %arg2: i32) -> (i32, i32) {
    %c0_i32 = arith.constant 0 : i32
    return %arg0, %arg2 : i32, i32
  }
  func.func @transform_1(%arg0: i32, %arg1: i32, %arg2: i32) -> (i32, i32) {
    %c0_i32 = arith.constant 0 : i32
    return %arg2, %arg1 : i32, i32
  }
  func.func @transform_2(%arg0: i32, %arg1: i32, %arg2: i32) -> (i32, i32) {
    %c0_i32 = arith.constant 0 : i32
    %c0_i32_0 = arith.constant 0 : i32
    return %c0_i32, %arg1 : i32, i32
  }
  func.func @transform_3(%arg0: i32, %arg1: i32, %arg2: i32) -> (i32, i32) {
    %c0_i32 = arith.constant 0 : i32
    return %arg0, %arg1 : i32, i32
  }
}

module attributes {stable_mosaic.version = 11 : i64} {
  func.func @_mm_bias_act_kernel(%arg0: i32, %arg1: i32, %arg2: i32, %arg3: memref<16x256xbf16, #tpu.memory_space<vmem>>, %arg4: memref<256x256xbf16, #tpu.memory_space<vmem>>, %arg5: memref<1x256xf32, #tpu.memory_space<vmem>>, %arg6: memref<16x256xf32, #tpu.memory_space<vmem>>, %arg7: memref<16x256xf32, #tpu.memory_space<vmem>>, %arg8: memref<16x256xf32, #tpu.memory_space<vmem>>) attributes {dimension_semantics = [#tpu.dimension_semantics<parallel>, #tpu.dimension_semantics<parallel>, #tpu.dimension_semantics<arbitrary>], iteration_bounds = array<i64: 1, 1, 1>, scalar_prefetch = 0 : i64, scratch_operands = 1 : i64, tpu.core_type = #tpu.core_type<tc>, window_params = [{transform_indices = @transform_0, window_bounds = array<i64: 16, 256>}, {transform_indices = @transform_1, window_bounds = array<i64: 256, 256>}, {transform_indices = @transform_2, window_bounds = array<i64: 1, 256>}, {transform_indices = @transform_3, window_bounds = array<i64: 16, 256>}, {transform_indices = @transform_4, window_bounds = array<i64: 16, 256>}]} {
    %c0_i32 = arith.constant 0 : i32
    %0 = arith.cmpi eq, %arg2, %c0_i32 : i32
    %1 = arith.extui %0 : i1 to i32
    %c0_i32_0 = arith.constant 0 : i32
    %2 = arith.cmpi ne, %1, %c0_i32_0 : i32
    scf.if %2 {
      %cst_10 = arith.constant 0.000000e+00 : f32
      %12 = vector.broadcast %cst_10 : f32 to vector<16x256xf32>
      %c0_11 = arith.constant 0 : index
      %c0_12 = arith.constant 0 : index
      %13 = vector.load %arg8[%c0_11, %c0_12] : memref<16x256xf32, #tpu.memory_space<vmem>>, vector<16x256xf32>
      tpu.vector_store %arg8[%c0_11, %c0_12], %12 {strides = array<i32>} : memref<16x256xf32, #tpu.memory_space<vmem>>, vector<16x256xf32>,
    } else {
    }
    %c0 = arith.constant 0 : index
    %c0_1 = arith.constant 0 : index
    %3 = vector.load %arg8[%c0, %c0_1] : memref<16x256xf32, #tpu.memory_space<vmem>>, vector<16x256xf32>
    %c0_2 = arith.constant 0 : index
    %c0_3 = arith.constant 0 : index
    %4 = vector.load %arg3[%c0_2, %c0_3] : memref<16x256xbf16, #tpu.memory_space<vmem>>, vector<16x256xbf16>
    %c0_4 = arith.constant 0 : index
    %c0_5 = arith.constant 0 : index
    %5 = vector.load %arg4[%c0_4, %c0_5] : memref<256x256xbf16, #tpu.memory_space<vmem>>, vector<256x256xbf16>
    %cst = arith.constant dense<0.000000e+00> : vector<16x256xf32>
    %6 = tpu.matmul %4, %5, %cst {dimension_numbers = #tpu.dot_dimension_numbers<[1], [0], [0], [1], [0, 0, 1, 1], [], []>} : vector<16x256xbf16>, vector<256x256xbf16>, vector<16x256xf32> -> vector<16x256xf32>
    %7 = arith.addf %3, %6 : vector<16x256xf32>
    %c0_6 = arith.constant 0 : index
    %c0_7 = arith.constant 0 : index
    %8 = vector.load %arg8[%c0_6, %c0_7] : memref<16x256xf32, #tpu.memory_space<vmem>>, vector<16x256xf32>
    tpu.vector_store %arg8[%c0_6, %c0_7], %7 {strides = array<i32>} : memref<16x256xf32, #tpu.memory_space<vmem>>, vector<16x256xf32>,
    %c0_i32_8 = arith.constant 0 : i32
    %9 = arith.cmpi eq, %arg2, %c0_i32_8 : i32
    %10 = arith.extui %9 : i1 to i32
    %c0_i32_9 = arith.constant 0 : i32
    %11 = arith.cmpi ne, %10, %c0_i32_9 : i32
    scf.if %11 {
      %c0_10 = arith.constant 0 : index
      %c0_11 = arith.constant 0 : index
      %12 = vector.load %arg8[%c0_10, %c0_11] : memref<16x256xf32, #tpu.memory_space<vmem>>, vector<16x256xf32>
      %c0_12 = arith.constant 0 : index
      %c0_13 = arith.constant 0 : index
      %13 = vector.load %arg5[%c0_12, %c0_13] : memref<1x256xf32, #tpu.memory_space<vmem>>, vector<1x256xf32>
      %14 = vector.broadcast %13 : vector<1x256xf32> to vector<16x256xf32>
      %15 = arith.addf %12, %14 : vector<16x256xf32>
      %c0_14 = arith.constant 0 : index
      %c0_15 = arith.constant 0 : index
      %16 = vector.load %arg6[%c0_14, %c0_15] : memref<16x256xf32, #tpu.memory_space<vmem>>, vector<16x256xf32>
      %17 = arith.addf %15, %16 : vector<16x256xf32>
      %cst_16 = arith.constant 0.000000e+00 : f32
      %18 = vector.broadcast %cst_16 : f32 to vector<16x256xf32>
      %19 = arith.maximumf %17, %18 : vector<16x256xf32>
      %c0_17 = arith.constant 0 : index
      %c0_18 = arith.constant 0 : index
      %20 = vector.load %arg7[%c0_17, %c0_18] : memref<16x256xf32, #tpu.memory_space<vmem>>, vector<16x256xf32>
      tpu.vector_store %arg7[%c0_17, %c0_18], %19 {strides = array<i32>} : memref<16x256xf32, #tpu.memory_space<vmem>>, vector<16x256xf32>,
    } else {
    }
    return
  }
  func.func @transform_0(%arg0: i32, %arg1: i32, %arg2: i32) -> (i32, i32) {
    %c0_i32 = arith.constant 0 : i32
    return %arg0, %arg2 : i32, i32
  }
  func.func @transform_1(%arg0: i32, %arg1: i32, %arg2: i32) -> (i32, i32) {
    %c0_i32 = arith.constant 0 : i32
    return %arg2, %arg1 : i32, i32
  }
  func.func @transform_2(%arg0: i32, %arg1: i32, %arg2: i32) -> (i32, i32) {
    %c0_i32 = arith.constant 0 : i32
    %c0_i32_0 = arith.constant 0 : i32
    return %c0_i32, %arg1 : i32, i32
  }
  func.func @transform_3(%arg0: i32, %arg1: i32, %arg2: i32) -> (i32, i32) {
    %c0_i32 = arith.constant 0 : i32
    return %arg0, %arg1 : i32, i32
  }
  func.func @transform_4(%arg0: i32, %arg1: i32, %arg2: i32) -> (i32, i32) {
    %c0_i32 = arith.constant 0 : i32
    return %arg0, %arg1 : i32, i32
  }
}

module attributes {stable_mosaic.version = 11 : i64} {
  func.func @_mm_bias_act_kernel(%arg0: i32, %arg1: i32, %arg2: i32, %arg3: memref<16x128xbf16, #tpu.memory_space<vmem>>, %arg4: memref<128x256xbf16, #tpu.memory_space<vmem>>, %arg5: memref<1x256xf32, #tpu.memory_space<vmem>>, %arg6: memref<16x256xf32, #tpu.memory_space<vmem>>, %arg7: memref<16x256xf32, #tpu.memory_space<vmem>>) attributes {dimension_semantics = [#tpu.dimension_semantics<parallel>, #tpu.dimension_semantics<parallel>, #tpu.dimension_semantics<arbitrary>], iteration_bounds = array<i64: 1, 1, 1>, scalar_prefetch = 0 : i64, scratch_operands = 1 : i64, tpu.core_type = #tpu.core_type<tc>, window_params = [{transform_indices = @transform_0, window_bounds = array<i64: 16, 128>}, {transform_indices = @transform_1, window_bounds = array<i64: 128, 256>}, {transform_indices = @transform_2, window_bounds = array<i64: 1, 256>}, {transform_indices = @transform_3, window_bounds = array<i64: 16, 256>}]} {
    %c0_i32 = arith.constant 0 : i32
    %0 = arith.cmpi eq, %arg2, %c0_i32 : i32
    %1 = arith.extui %0 : i1 to i32
    %c0_i32_0 = arith.constant 0 : i32
    %2 = arith.cmpi ne, %1, %c0_i32_0 : i32
    scf.if %2 {
      %cst_10 = arith.constant 0.000000e+00 : f32
      %12 = vector.broadcast %cst_10 : f32 to vector<16x256xf32>
      %c0_11 = arith.constant 0 : index
      %c0_12 = arith.constant 0 : index
      %13 = vector.load %arg7[%c0_11, %c0_12] : memref<16x256xf32, #tpu.memory_space<vmem>>, vector<16x256xf32>
      tpu.vector_store %arg7[%c0_11, %c0_12], %12 {strides = array<i32>} : memref<16x256xf32, #tpu.memory_space<vmem>>, vector<16x256xf32>,
    } else {
    }
    %c0 = arith.constant 0 : index
    %c0_1 = arith.constant 0 : index
    %3 = vector.load %arg7[%c0, %c0_1] : memref<16x256xf32, #tpu.memory_space<vmem>>, vector<16x256xf32>
    %c0_2 = arith.constant 0 : index
    %c0_3 = arith.constant 0 : index
    %4 = vector.load %arg3[%c0_2, %c0_3] : memref<16x128xbf16, #tpu.memory_space<vmem>>, vector<16x128xbf16>
    %c0_4 = arith.constant 0 : index
    %c0_5 = arith.constant 0 : index
    %5 = vector.load %arg4[%c0_4, %c0_5] : memref<128x256xbf16, #tpu.memory_space<vmem>>, vector<128x256xbf16>
    %cst = arith.constant dense<0.000000e+00> : vector<16x256xf32>
    %6 = tpu.matmul %4, %5, %cst {dimension_numbers = #tpu.dot_dimension_numbers<[1], [0], [0], [1], [0, 0, 1, 1], [], []>} : vector<16x128xbf16>, vector<128x256xbf16>, vector<16x256xf32> -> vector<16x256xf32>
    %7 = arith.addf %3, %6 : vector<16x256xf32>
    %c0_6 = arith.constant 0 : index
    %c0_7 = arith.constant 0 : index
    %8 = vector.load %arg7[%c0_6, %c0_7] : memref<16x256xf32, #tpu.memory_space<vmem>>, vector<16x256xf32>
    tpu.vector_store %arg7[%c0_6, %c0_7], %7 {strides = array<i32>} : memref<16x256xf32, #tpu.memory_space<vmem>>, vector<16x256xf32>,
    %c0_i32_8 = arith.constant 0 : i32
    %9 = arith.cmpi eq, %arg2, %c0_i32_8 : i32
    %10 = arith.extui %9 : i1 to i32
    %c0_i32_9 = arith.constant 0 : i32
    %11 = arith.cmpi ne, %10, %c0_i32_9 : i32
    scf.if %11 {
      %c0_10 = arith.constant 0 : index
      %c0_11 = arith.constant 0 : index
      %12 = vector.load %arg7[%c0_10, %c0_11] : memref<16x256xf32, #tpu.memory_space<vmem>>, vector<16x256xf32>
      %c0_12 = arith.constant 0 : index
      %c0_13 = arith.constant 0 : index
      %13 = vector.load %arg5[%c0_12, %c0_13] : memref<1x256xf32, #tpu.memory_space<vmem>>, vector<1x256xf32>
      %14 = vector.broadcast %13 : vector<1x256xf32> to vector<16x256xf32>
      %15 = arith.addf %12, %14 : vector<16x256xf32>
      %c0_14 = arith.constant 0 : index
      %c0_15 = arith.constant 0 : index
      %16 = vector.load %arg6[%c0_14, %c0_15] : memref<16x256xf32, #tpu.memory_space<vmem>>, vector<16x256xf32>
      tpu.vector_store %arg6[%c0_14, %c0_15], %15 {strides = array<i32>} : memref<16x256xf32, #tpu.memory_space<vmem>>, vector<16x256xf32>,
    } else {
    }
    return
  }
  func.func @transform_0(%arg0: i32, %arg1: i32, %arg2: i32) -> (i32, i32) {
    %c0_i32 = arith.constant 0 : i32
    return %arg0, %arg2 : i32, i32
  }
  func.func @transform_1(%arg0: i32, %arg1: i32, %arg2: i32) -> (i32, i32) {
    %c0_i32 = arith.constant 0 : i32
    return %arg2, %arg1 : i32, i32
  }
  func.func @transform_2(%arg0: i32, %arg1: i32, %arg2: i32) -> (i32, i32) {
    %c0_i32 = arith.constant 0 : i32
    %c0_i32_0 = arith.constant 0 : i32
    return %c0_i32, %arg1 : i32, i32
  }
  func.func @transform_3(%arg0: i32, %arg1: i32, %arg2: i32) -> (i32, i32) {
    %c0_i32 = arith.constant 0 : i32
    return %arg0, %arg1 : i32, i32
  }
}

module attributes {stable_mosaic.version = 11 : i64} {
  func.func @_mm_bias_act_kernel(%arg0: i32, %arg1: i32, %arg2: i32, %arg3: memref<16x256xbf16, #tpu.memory_space<vmem>>, %arg4: memref<256x256xbf16, #tpu.memory_space<vmem>>, %arg5: memref<1x256xf32, #tpu.memory_space<vmem>>, %arg6: memref<16x256xf32, #tpu.memory_space<vmem>>, %arg7: memref<16x256xf32, #tpu.memory_space<vmem>>) attributes {dimension_semantics = [#tpu.dimension_semantics<parallel>, #tpu.dimension_semantics<parallel>, #tpu.dimension_semantics<arbitrary>], iteration_bounds = array<i64: 1, 2, 1>, scalar_prefetch = 0 : i64, scratch_operands = 1 : i64, tpu.core_type = #tpu.core_type<tc>, window_params = [{transform_indices = @transform_0, window_bounds = array<i64: 16, 256>}, {transform_indices = @transform_1, window_bounds = array<i64: 256, 256>}, {transform_indices = @transform_2, window_bounds = array<i64: 1, 256>}, {transform_indices = @transform_3, window_bounds = array<i64: 16, 256>}]} {
    %c0_i32 = arith.constant 0 : i32
    %0 = arith.cmpi eq, %arg2, %c0_i32 : i32
    %1 = arith.extui %0 : i1 to i32
    %c0_i32_0 = arith.constant 0 : i32
    %2 = arith.cmpi ne, %1, %c0_i32_0 : i32
    scf.if %2 {
      %cst_10 = arith.constant 0.000000e+00 : f32
      %12 = vector.broadcast %cst_10 : f32 to vector<16x256xf32>
      %c0_11 = arith.constant 0 : index
      %c0_12 = arith.constant 0 : index
      %13 = vector.load %arg7[%c0_11, %c0_12] : memref<16x256xf32, #tpu.memory_space<vmem>>, vector<16x256xf32>
      tpu.vector_store %arg7[%c0_11, %c0_12], %12 {strides = array<i32>} : memref<16x256xf32, #tpu.memory_space<vmem>>, vector<16x256xf32>,
    } else {
    }
    %c0 = arith.constant 0 : index
    %c0_1 = arith.constant 0 : index
    %3 = vector.load %arg7[%c0, %c0_1] : memref<16x256xf32, #tpu.memory_space<vmem>>, vector<16x256xf32>
    %c0_2 = arith.constant 0 : index
    %c0_3 = arith.constant 0 : index
    %4 = vector.load %arg3[%c0_2, %c0_3] : memref<16x256xbf16, #tpu.memory_space<vmem>>, vector<16x256xbf16>
    %c0_4 = arith.constant 0 : index
    %c0_5 = arith.constant 0 : index
    %5 = vector.load %arg4[%c0_4, %c0_5] : memref<256x256xbf16, #tpu.memory_space<vmem>>, vector<256x256xbf16>
    %cst = arith.constant dense<0.000000e+00> : vector<16x256xf32>
    %6 = tpu.matmul %4, %5, %cst {dimension_numbers = #tpu.dot_dimension_numbers<[1], [0], [0], [1], [0, 0, 1, 1], [], []>} : vector<16x256xbf16>, vector<256x256xbf16>, vector<16x256xf32> -> vector<16x256xf32>
    %7 = arith.addf %3, %6 : vector<16x256xf32>
    %c0_6 = arith.constant 0 : index
    %c0_7 = arith.constant 0 : index
    %8 = vector.load %arg7[%c0_6, %c0_7] : memref<16x256xf32, #tpu.memory_space<vmem>>, vector<16x256xf32>
    tpu.vector_store %arg7[%c0_6, %c0_7], %7 {strides = array<i32>} : memref<16x256xf32, #tpu.memory_space<vmem>>, vector<16x256xf32>,
    %c0_i32_8 = arith.constant 0 : i32
    %9 = arith.cmpi eq, %arg2, %c0_i32_8 : i32
    %10 = arith.extui %9 : i1 to i32
    %c0_i32_9 = arith.constant 0 : i32
    %11 = arith.cmpi ne, %10, %c0_i32_9 : i32
    scf.if %11 {
      %c0_10 = arith.constant 0 : index
      %c0_11 = arith.constant 0 : index
      %12 = vector.load %arg7[%c0_10, %c0_11] : memref<16x256xf32, #tpu.memory_space<vmem>>, vector<16x256xf32>
      %c0_12 = arith.constant 0 : index
      %c0_13 = arith.constant 0 : index
      %13 = vector.load %arg5[%c0_12, %c0_13] : memref<1x256xf32, #tpu.memory_space<vmem>>, vector<1x256xf32>
      %14 = vector.broadcast %13 : vector<1x256xf32> to vector<16x256xf32>
      %15 = arith.addf %12, %14 : vector<16x256xf32>
      %cst_14 = arith.constant 0.000000e+00 : f32
      %16 = vector.broadcast %cst_14 : f32 to vector<16x256xf32>
      %17 = arith.maximumf %15, %16 : vector<16x256xf32>
      %c0_15 = arith.constant 0 : index
      %c0_16 = arith.constant 0 : index
      %18 = vector.load %arg6[%c0_15, %c0_16] : memref<16x256xf32, #tpu.memory_space<vmem>>, vector<16x256xf32>
      tpu.vector_store %arg6[%c0_15, %c0_16], %17 {strides = array<i32>} : memref<16x256xf32, #tpu.memory_space<vmem>>, vector<16x256xf32>,
    } else {
    }
    return
  }
  func.func @transform_0(%arg0: i32, %arg1: i32, %arg2: i32) -> (i32, i32) {
    %c0_i32 = arith.constant 0 : i32
    return %arg0, %arg2 : i32, i32
  }
  func.func @transform_1(%arg0: i32, %arg1: i32, %arg2: i32) -> (i32, i32) {
    %c0_i32 = arith.constant 0 : i32
    return %arg2, %arg1 : i32, i32
  }
  func.func @transform_2(%arg0: i32, %arg1: i32, %arg2: i32) -> (i32, i32) {
    %c0_i32 = arith.constant 0 : i32
    %c0_i32_0 = arith.constant 0 : i32
    return %c0_i32, %arg1 : i32, i32
  }
  func.func @transform_3(%arg0: i32, %arg1: i32, %arg2: i32) -> (i32, i32) {
    %c0_i32 = arith.constant 0 : i32
    return %arg0, %arg1 : i32, i32
  }
}

module attributes {stable_mosaic.version = 11 : i64} {
  func.func @_mm_bias_act_kernel(%arg0: i32, %arg1: i32, %arg2: i32, %arg3: memref<16x256xbf16, #tpu.memory_space<vmem>>, %arg4: memref<256x256xbf16, #tpu.memory_space<vmem>>, %arg5: memref<1x256xf32, #tpu.memory_space<vmem>>, %arg6: memref<16x256xf32, #tpu.memory_space<vmem>>, %arg7: memref<16x256xf32, #tpu.memory_space<vmem>>) attributes {dimension_semantics = [#tpu.dimension_semantics<parallel>, #tpu.dimension_semantics<parallel>, #tpu.dimension_semantics<arbitrary>], iteration_bounds = array<i64: 1, 2, 1>, scalar_prefetch = 0 : i64, scratch_operands = 1 : i64, tpu.core_type = #tpu.core_type<tc>, window_params = [{transform_indices = @transform_0, window_bounds = array<i64: 16, 256>}, {transform_indices = @transform_1, window_bounds = array<i64: 256, 256>}, {transform_indices = @transform_2, window_bounds = array<i64: 1, 256>}, {transform_indices = @transform_3, window_bounds = array<i64: 16, 256>}]} {
    %c0_i32 = arith.constant 0 : i32
    %0 = arith.cmpi eq, %arg2, %c0_i32 : i32
    %1 = arith.extui %0 : i1 to i32
    %c0_i32_0 = arith.constant 0 : i32
    %2 = arith.cmpi ne, %1, %c0_i32_0 : i32
    scf.if %2 {
      %cst_10 = arith.constant 0.000000e+00 : f32
      %12 = vector.broadcast %cst_10 : f32 to vector<16x256xf32>
      %c0_11 = arith.constant 0 : index
      %c0_12 = arith.constant 0 : index
      %13 = vector.load %arg7[%c0_11, %c0_12] : memref<16x256xf32, #tpu.memory_space<vmem>>, vector<16x256xf32>
      tpu.vector_store %arg7[%c0_11, %c0_12], %12 {strides = array<i32>} : memref<16x256xf32, #tpu.memory_space<vmem>>, vector<16x256xf32>,
    } else {
    }
    %c0 = arith.constant 0 : index
    %c0_1 = arith.constant 0 : index
    %3 = vector.load %arg7[%c0, %c0_1] : memref<16x256xf32, #tpu.memory_space<vmem>>, vector<16x256xf32>
    %c0_2 = arith.constant 0 : index
    %c0_3 = arith.constant 0 : index
    %4 = vector.load %arg3[%c0_2, %c0_3] : memref<16x256xbf16, #tpu.memory_space<vmem>>, vector<16x256xbf16>
    %c0_4 = arith.constant 0 : index
    %c0_5 = arith.constant 0 : index
    %5 = vector.load %arg4[%c0_4, %c0_5] : memref<256x256xbf16, #tpu.memory_space<vmem>>, vector<256x256xbf16>
    %cst = arith.constant dense<0.000000e+00> : vector<16x256xf32>
    %6 = tpu.matmul %4, %5, %cst {dimension_numbers = #tpu.dot_dimension_numbers<[1], [0], [0], [1], [0, 0, 1, 1], [], []>} : vector<16x256xbf16>, vector<256x256xbf16>, vector<16x256xf32> -> vector<16x256xf32>
    %7 = arith.addf %3, %6 : vector<16x256xf32>
    %c0_6 = arith.constant 0 : index
    %c0_7 = arith.constant 0 : index
    %8 = vector.load %arg7[%c0_6, %c0_7] : memref<16x256xf32, #tpu.memory_space<vmem>>, vector<16x256xf32>
    tpu.vector_store %arg7[%c0_6, %c0_7], %7 {strides = array<i32>} : memref<16x256xf32, #tpu.memory_space<vmem>>, vector<16x256xf32>,
    %c0_i32_8 = arith.constant 0 : i32
    %9 = arith.cmpi eq, %arg2, %c0_i32_8 : i32
    %10 = arith.extui %9 : i1 to i32
    %c0_i32_9 = arith.constant 0 : i32
    %11 = arith.cmpi ne, %10, %c0_i32_9 : i32
    scf.if %11 {
      %c0_10 = arith.constant 0 : index
      %c0_11 = arith.constant 0 : index
      %12 = vector.load %arg7[%c0_10, %c0_11] : memref<16x256xf32, #tpu.memory_space<vmem>>, vector<16x256xf32>
      %c0_12 = arith.constant 0 : index
      %c0_13 = arith.constant 0 : index
      %13 = vector.load %arg5[%c0_12, %c0_13] : memref<1x256xf32, #tpu.memory_space<vmem>>, vector<1x256xf32>
      %14 = vector.broadcast %13 : vector<1x256xf32> to vector<16x256xf32>
      %15 = arith.addf %12, %14 : vector<16x256xf32>
      %c0_14 = arith.constant 0 : index
      %c0_15 = arith.constant 0 : index
      %16 = vector.load %arg6[%c0_14, %c0_15] : memref<16x256xf32, #tpu.memory_space<vmem>>, vector<16x256xf32>
      tpu.vector_store %arg6[%c0_14, %c0_15], %15 {strides = array<i32>} : memref<16x256xf32, #tpu.memory_space<vmem>>, vector<16x256xf32>,
    } else {
    }
    return
  }
  func.func @transform_0(%arg0: i32, %arg1: i32, %arg2: i32) -> (i32, i32) {
    %c0_i32 = arith.constant 0 : i32
    return %arg0, %arg2 : i32, i32
  }
  func.func @transform_1(%arg0: i32, %arg1: i32, %arg2: i32) -> (i32, i32) {
    %c0_i32 = arith.constant 0 : i32
    return %arg2, %arg1 : i32, i32
  }
  func.func @transform_2(%arg0: i32, %arg1: i32, %arg2: i32) -> (i32, i32) {
    %c0_i32 = arith.constant 0 : i32
    %c0_i32_0 = arith.constant 0 : i32
    return %c0_i32, %arg1 : i32, i32
  }
  func.func @transform_3(%arg0: i32, %arg1: i32, %arg2: i32) -> (i32, i32) {
    %c0_i32 = arith.constant 0 : i32
    return %arg0, %arg1 : i32, i32
  }
}

module attributes {stable_mosaic.version = 11 : i64} {
  func.func @_mm_bias_act_kernel(%arg0: i32, %arg1: i32, %arg2: i32, %arg3: memref<16x512xbf16, #tpu.memory_space<vmem>>, %arg4: memref<512x256xbf16, #tpu.memory_space<vmem>>, %arg5: memref<1x256xf32, #tpu.memory_space<vmem>>, %arg6: memref<16x256xf32, #tpu.memory_space<vmem>>, %arg7: memref<16x256xf32, #tpu.memory_space<vmem>>, %arg8: memref<16x256xf32, #tpu.memory_space<vmem>>) attributes {dimension_semantics = [#tpu.dimension_semantics<parallel>, #tpu.dimension_semantics<parallel>, #tpu.dimension_semantics<arbitrary>], iteration_bounds = array<i64: 1, 2, 1>, scalar_prefetch = 0 : i64, scratch_operands = 1 : i64, tpu.core_type = #tpu.core_type<tc>, window_params = [{transform_indices = @transform_0, window_bounds = array<i64: 16, 512>}, {transform_indices = @transform_1, window_bounds = array<i64: 512, 256>}, {transform_indices = @transform_2, window_bounds = array<i64: 1, 256>}, {transform_indices = @transform_3, window_bounds = array<i64: 16, 256>}, {transform_indices = @transform_4, window_bounds = array<i64: 16, 256>}]} {
    %c0_i32 = arith.constant 0 : i32
    %0 = arith.cmpi eq, %arg2, %c0_i32 : i32
    %1 = arith.extui %0 : i1 to i32
    %c0_i32_0 = arith.constant 0 : i32
    %2 = arith.cmpi ne, %1, %c0_i32_0 : i32
    scf.if %2 {
      %cst_10 = arith.constant 0.000000e+00 : f32
      %12 = vector.broadcast %cst_10 : f32 to vector<16x256xf32>
      %c0_11 = arith.constant 0 : index
      %c0_12 = arith.constant 0 : index
      %13 = vector.load %arg8[%c0_11, %c0_12] : memref<16x256xf32, #tpu.memory_space<vmem>>, vector<16x256xf32>
      tpu.vector_store %arg8[%c0_11, %c0_12], %12 {strides = array<i32>} : memref<16x256xf32, #tpu.memory_space<vmem>>, vector<16x256xf32>,
    } else {
    }
    %c0 = arith.constant 0 : index
    %c0_1 = arith.constant 0 : index
    %3 = vector.load %arg8[%c0, %c0_1] : memref<16x256xf32, #tpu.memory_space<vmem>>, vector<16x256xf32>
    %c0_2 = arith.constant 0 : index
    %c0_3 = arith.constant 0 : index
    %4 = vector.load %arg3[%c0_2, %c0_3] : memref<16x512xbf16, #tpu.memory_space<vmem>>, vector<16x512xbf16>
    %c0_4 = arith.constant 0 : index
    %c0_5 = arith.constant 0 : index
    %5 = vector.load %arg4[%c0_4, %c0_5] : memref<512x256xbf16, #tpu.memory_space<vmem>>, vector<512x256xbf16>
    %cst = arith.constant dense<0.000000e+00> : vector<16x256xf32>
    %6 = tpu.matmul %4, %5, %cst {dimension_numbers = #tpu.dot_dimension_numbers<[1], [0], [0], [1], [0, 0, 1, 1], [], []>} : vector<16x512xbf16>, vector<512x256xbf16>, vector<16x256xf32> -> vector<16x256xf32>
    %7 = arith.addf %3, %6 : vector<16x256xf32>
    %c0_6 = arith.constant 0 : index
    %c0_7 = arith.constant 0 : index
    %8 = vector.load %arg8[%c0_6, %c0_7] : memref<16x256xf32, #tpu.memory_space<vmem>>, vector<16x256xf32>
    tpu.vector_store %arg8[%c0_6, %c0_7], %7 {strides = array<i32>} : memref<16x256xf32, #tpu.memory_space<vmem>>, vector<16x256xf32>,
    %c0_i32_8 = arith.constant 0 : i32
    %9 = arith.cmpi eq, %arg2, %c0_i32_8 : i32
    %10 = arith.extui %9 : i1 to i32
    %c0_i32_9 = arith.constant 0 : i32
    %11 = arith.cmpi ne, %10, %c0_i32_9 : i32
    scf.if %11 {
      %c0_10 = arith.constant 0 : index
      %c0_11 = arith.constant 0 : index
      %12 = vector.load %arg8[%c0_10, %c0_11] : memref<16x256xf32, #tpu.memory_space<vmem>>, vector<16x256xf32>
      %c0_12 = arith.constant 0 : index
      %c0_13 = arith.constant 0 : index
      %13 = vector.load %arg5[%c0_12, %c0_13] : memref<1x256xf32, #tpu.memory_space<vmem>>, vector<1x256xf32>
      %14 = vector.broadcast %13 : vector<1x256xf32> to vector<16x256xf32>
      %15 = arith.addf %12, %14 : vector<16x256xf32>
      %c0_14 = arith.constant 0 : index
      %c0_15 = arith.constant 0 : index
      %16 = vector.load %arg6[%c0_14, %c0_15] : memref<16x256xf32, #tpu.memory_space<vmem>>, vector<16x256xf32>
      %17 = arith.addf %15, %16 : vector<16x256xf32>
      %cst_16 = arith.constant 0.000000e+00 : f32
      %18 = vector.broadcast %cst_16 : f32 to vector<16x256xf32>
      %19 = arith.maximumf %17, %18 : vector<16x256xf32>
      %c0_17 = arith.constant 0 : index
      %c0_18 = arith.constant 0 : index
      %20 = vector.load %arg7[%c0_17, %c0_18] : memref<16x256xf32, #tpu.memory_space<vmem>>, vector<16x256xf32>
      tpu.vector_store %arg7[%c0_17, %c0_18], %19 {strides = array<i32>} : memref<16x256xf32, #tpu.memory_space<vmem>>, vector<16x256xf32>,
    } else {
    }
    return
  }
  func.func @transform_0(%arg0: i32, %arg1: i32, %arg2: i32) -> (i32, i32) {
    %c0_i32 = arith.constant 0 : i32
    return %arg0, %arg2 : i32, i32
  }
  func.func @transform_1(%arg0: i32, %arg1: i32, %arg2: i32) -> (i32, i32) {
    %c0_i32 = arith.constant 0 : i32
    return %arg2, %arg1 : i32, i32
  }
  func.func @transform_2(%arg0: i32, %arg1: i32, %arg2: i32) -> (i32, i32) {
    %c0_i32 = arith.constant 0 : i32
    %c0_i32_0 = arith.constant 0 : i32
    return %c0_i32, %arg1 : i32, i32
  }
  func.func @transform_3(%arg0: i32, %arg1: i32, %arg2: i32) -> (i32, i32) {
    %c0_i32 = arith.constant 0 : i32
    return %arg0, %arg1 : i32, i32
  }
  func.func @transform_4(%arg0: i32, %arg1: i32, %arg2: i32) -> (i32, i32) {
    %c0_i32 = arith.constant 0 : i32
    return %arg0, %arg1 : i32, i32
  }
}

module attributes {stable_mosaic.version = 11 : i64} {
  func.func @_head_kernel(%arg0: i32, %arg1: memref<8x8x512xf32, #tpu.memory_space<vmem>>, %arg2: memref<512x128xbf16, #tpu.memory_space<vmem>>, %arg3: memref<1x128xf32, #tpu.memory_space<vmem>>, %arg4: memref<8x128xf32, #tpu.memory_space<vmem>>) attributes {dimension_semantics = [#tpu.dimension_semantics<arbitrary>], iteration_bounds = array<i64: 1>, scalar_prefetch = 0 : i64, scratch_operands = 0 : i64, tpu.core_type = #tpu.core_type<tc>, window_params = [{pipeline_mode = #tpu.pipeline_mode<synchronous>, transform_indices = @transform_0, window_bounds = array<i64: 8, 8, 512>}, {pipeline_mode = #tpu.pipeline_mode<synchronous>, transform_indices = @transform_1, window_bounds = array<i64: 512, 128>}, {pipeline_mode = #tpu.pipeline_mode<synchronous>, transform_indices = @transform_2, window_bounds = array<i64: 1, 128>}, {pipeline_mode = #tpu.pipeline_mode<synchronous>, transform_indices = @transform_3, window_bounds = array<i64: 8, 128>}]} {
    %c0 = arith.constant 0 : index
    %c0_0 = arith.constant 0 : index
    %c0_1 = arith.constant 0 : index
    %0 = vector.load %arg1[%c0, %c0_0, %c0_1] : memref<8x8x512xf32, #tpu.memory_space<vmem>>, vector<8x8x512xf32>
    %cst = arith.constant dense<0.000000e+00> : vector<8x512xf32>
    %1 = vector.multi_reduction <add>, %0, %cst [1] : vector<8x8x512xf32> to vector<8x512xf32>
    %cst_2 = arith.constant 8.000000e+00 : f32
    %2 = vector.broadcast %cst_2 : f32 to vector<8x512xf32>
    %3 = arith.divf %1, %2 : vector<8x512xf32>
    %4 = arith.truncf %3 : vector<8x512xf32> to vector<8x512xbf16>
    %c0_3 = arith.constant 0 : index
    %c0_4 = arith.constant 0 : index
    %5 = vector.load %arg2[%c0_3, %c0_4] : memref<512x128xbf16, #tpu.memory_space<vmem>>, vector<512x128xbf16>
    %cst_5 = arith.constant dense<0.000000e+00> : vector<8x128xf32>
    %6 = tpu.matmul %4, %5, %cst_5 {dimension_numbers = #tpu.dot_dimension_numbers<[1], [0], [0], [1], [0, 0, 1, 1], [], []>} : vector<8x512xbf16>, vector<512x128xbf16>, vector<8x128xf32> -> vector<8x128xf32>
    %c0_6 = arith.constant 0 : index
    %c0_7 = arith.constant 0 : index
    %7 = vector.load %arg3[%c0_6, %c0_7] : memref<1x128xf32, #tpu.memory_space<vmem>>, vector<1x128xf32>
    %8 = vector.broadcast %7 : vector<1x128xf32> to vector<8x128xf32>
    %9 = arith.addf %6, %8 : vector<8x128xf32>
    %c0_8 = arith.constant 0 : index
    %c0_9 = arith.constant 0 : index
    %10 = vector.load %arg4[%c0_8, %c0_9] : memref<8x128xf32, #tpu.memory_space<vmem>>, vector<8x128xf32>
    tpu.vector_store %arg4[%c0_8, %c0_9], %9 {strides = array<i32>} : memref<8x128xf32, #tpu.memory_space<vmem>>, vector<8x128xf32>,
    return
  }
  func.func @transform_0(%arg0: i32) -> (i32, i32, i32) {
    %c0_i32 = arith.constant 0 : i32
    %c0_i32_0 = arith.constant 0 : i32
    %c0_i32_1 = arith.constant 0 : i32
    %c0_i32_2 = arith.constant 0 : i32
    return %c0_i32, %c0_i32_0, %c0_i32_1 : i32, i32, i32
  }
  func.func @transform_1(%arg0: i32) -> (i32, i32) {
    %c0_i32 = arith.constant 0 : i32
    %c0_i32_0 = arith.constant 0 : i32
    %c0_i32_1 = arith.constant 0 : i32
    return %c0_i32, %c0_i32_0 : i32, i32
  }
  func.func @transform_2(%arg0: i32) -> (i32, i32) {
    %c0_i32 = arith.constant 0 : i32
    %c0_i32_0 = arith.constant 0 : i32
    %c0_i32_1 = arith.constant 0 : i32
    return %c0_i32, %c0_i32_0 : i32, i32
  }
  func.func @transform_3(%arg0: i32) -> (i32, i32) {
    %c0_i32 = arith.constant 0 : i32
    %c0_i32_0 = arith.constant 0 : i32
    %c0_i32_1 = arith.constant 0 : i32
    return %c0_i32, %c0_i32_0 : i32, i32
  }
}

</mosaic_0001>

<bundles_post_ra>
// kernel: resnet_forward.13
= control target key start
LH: loop header
LB: loop body
LE: loop exit
PB: predicated region body
PF: predicated region fallthrough
CT: control target
= control target key end

     0   :  { %s1369_s12 = smov 0   ;;  %s1371_s13 = smov 0   ;;  %s1546_s0 = inlined_call_operand.vmem [shape: bf16[1024,384], index: 0, kind: input, shape index: {}]   ;;  %s1547_s1 = inlined_call_operand.vmem [shape: bf16[384,128], index: 1, kind: input, shape index: {}]   ;;  %s1548_s2 = inlined_call_operand.vmem [shape: f32[1,128], index: 2, kind: input, shape index: {}]   ;;  %s1549_s3 = inlined_call_operand.vmem [shape: f32[1024,128], index: 3, kind: output, shape index: {}]  }
   0x1   :  { %s1373_s14 = smov 0  }
   0x2 LB: > { %s32_s15 = sadd.s32 1, %s1343_s13  ;;  %p1076_p0 = scmp.ge.s32.totalorder %s1347_s14, 1  ;;  %s1347_s14 = sphi %s1373_s14, %s13_s14   ;;  %s1343_s13 = sphi %s1371_s13, %s1551_s13   ;;  %s1339_s12 = sphi %s1369_s12, %s1550_s12  }
   0x3   : > { %p34_p1 = scmp.ge.s32.totalorder %s32_s15, 8  ;;  %p191_p2 = scmp.lt.s32.totalorder %s1347_s14, 9 }
   0x5   : > { %s1553_s15 = smov (%p34_p1, %s32_s15), 0  ;;  %p192_p3 = pnand %p1076_p0, %p191_p2 }
   0x6   : > { %v1269_v0 = vld [vmem:[%s1547_s1 + $0x40] sm:$0xff] (!%p192_p3)   ;;  %v1272_v3 = vld [vmem:[%s1547_s1 + $0x48] sm:$0xff] (!%p192_p3)   ;;  %v1275_v6 = vld [vmem:[%s1547_s1 + $0x50] sm:$0xff] (!%p192_p3)   ;;  %s1077_s5 = sshll.u32 (!%p192_p3), %s1339_s12, 4 }
   0x7   : > { %195 = sbr.rel (%p192_p3) target bundleno = 319 (0x13f), region = 32  ;;  %v1270_v1 = vld [vmem:[%s1547_s1] sm:$0xff] (!%p192_p3)   ;;  %1132 = vmatprep.subr.bf16.mxu0 (!%p192_p3), %v1269_v0  ;;  %v1273_v4 = vld [vmem:[%s1547_s1 + $0x8] sm:$0xff] (!%p192_p3)   ;;  %v1276_v7 = vld [vmem:[%s1547_s1 + $0x10] sm:$0xff] (!%p192_p3)   ;;  %p236_p4 = scmp.lt.s32.totalorder (!%p192_p3), %s1077_s5, 127 }
   0x8   : > { %v1271_v2 = vld [vmem:[%s1547_s1 + $0x80] sm:$0xff] (!%p192_p3)   ;;  %1133 = vmatpush3.bf16.msra.mxu0 (!%p192_p3), %v1270_v1  ;;  %v1274_v5 = vld [vmem:[%s1547_s1 + $0x88] sm:$0xff] (!%p192_p3)   ;;  %v1277_v8 = vld [vmem:[%s1547_s1 + $0x90] sm:$0xff] (!%p192_p3)  }
   0x9   : > { %1212 = vmatprep.subr.bf16.mxu1 (!%p192_p3), %v1271_v2  ;;  %1134 = vmatprep.subr.bf16.mxu0 (!%p192_p3), %v1272_v3  ;;  %v1278_v9 = vld [vmem:[%s1547_s1 + $0x58] sm:$0xff] (!%p192_p3)   ;;  %v1281_v12 = vld [vmem:[%s1547_s1 + $0x60] sm:$0xff] (!%p192_p3)   ;;  %v1284_v15 = vld [vmem:[%s1547_s1 + $0x68] sm:$0xff] (!%p192_p3)  }
   0xa   : > { %1213 = vmatpush3.bf16.msra.mxu1 (!%p192_p3), %v1271_v2  ;;  %v1279_v10 = vld [vmem:[%s1547_s1 + $0x18] sm:$0xff] (!%p192_p3)   ;;  %v1283_v13 = vld [vmem:[%s1547_s1 + $0xa0] sm:$0xff] (!%p192_p3)   ;;  %v1286_v16 = vld [vmem:[%s1547_s1 + $0xa8] sm:$0xff] (!%p192_p3)  }
   0xb   : > { %1214 = vmatprep.subr.bf16.mxu1 (!%p192_p3), %v1274_v5  ;;  %v1280_v11 = vld [vmem:[%s1547_s1 + $0x98] sm:$0xff] (!%p192_p3)   ;;  %v1282_v14 = vld [vmem:[%s1547_s1 + $0x20] sm:$0xff] (!%p192_p3)   ;;  %v1285_v17 = vld [vmem:[%s1547_s1 + $0x28] sm:$0xff] (!%p192_p3)  }
   0xc   : > { %1135 = vmatpush3.bf16.msra.mxu0 (!%p192_p3), %v1273_v4  ;;  %v1287_v18 = vld [vmem:[%s1547_s1 + $0x70] sm:$0xff] (!%p192_p3)   ;;  %v1290_v21 = vld [vmem:[%s1547_s1 + $0x78] sm:$0xff] (!%p192_p3)   ;;  %v1497_v55 = vld [vmem:[%s1548_s2] ss:$0 sm:$0xff] (!%p192_p3) }
   0xd   : > { %1136 = vmatprep.subr.bf16.mxu0 (!%p192_p3), %v1275_v6  ;;  %v1288_v19 = vld [vmem:[%s1547_s1 + $0x30] sm:$0xff] (!%p192_p3)   ;;  %v1292_v22 = vld [vmem:[%s1547_s1 + $0xb8] sm:$0xff] (!%p192_p3)  }
   0xe   : > { %1215 = vmatpush3.bf16.msra.mxu1 %v1274_v5  ;;  %s1555_s5 = smov (!%p236_p4, %s1077_s5), 127  ;;  %v1289_v20 = vld [vmem:[%s1547_s1 + $0xb0] sm:$0xff]   ;;  %v1291_v25 = vld [vmem:[%s1547_s1 + $0x38] sm:$0xff]  }
   0xf   : > { %1216 = vmatprep.subr.bf16.mxu1 %v1277_v8  ;;  %s1244_s27 = smul.u32 12, %s1555_s5  ;;  %s1080_s24 = sshll.u32 %s1555_s5, 3 }
  0x10   : > { %1137 = vmatpush3.bf16.msra.mxu0 %v1276_v7 }
  0x11   : > { %1138 = vmatprep.subr.bf16.mxu0 %v1278_v9  ;;  %s1459_s16 = scalar_lea.vmem %s1546_s0, %s1244_s27  ;;  %s1504_s27 = scalar_lea.vmem %s1549_s3, %s1080_s24 }
  0x12   : > { %1217 = vmatpush3.bf16.msra.mxu1 %v1277_v8  ;;  %v1295_v23 = vld [vmem:[%s1459_s16 + $0x4] ss:$12 sps:$4 sm:$0xff]   ;;  %v1296_v24 = vld [vmem:[%s1459_s16 + $0x8] ss:$12 sps:$4 sm:$0xff]   ;;  %v1293_v26 = vld [vmem:[%s1459_s16] ss:$12 sps:$4 sm:$0xff]  }
  0x13   : > { %1218 = vmatprep.subr.bf16.mxu1 %v1280_v11  ;;  %688 = vmatprep.mubr.bf16.mxu0 %v1295_v23  ;;  %v1298_v27 = vld [vmem:[%s1459_s16 + $0x1c] ss:$12 sps:$4 sm:$0xff]   ;;  %v1297_v28 = vld [vmem:[%s1459_s16 + $0x20] ss:$12 sps:$4 sm:$0xff]   ;;  %v1304_v29 = vld [vmem:[%s1459_s16 + $0x38] ss:$12 sps:$4 sm:$0xff]  }
  0x14   : > { %1139 = vmatpush3.bf16.msra.mxu0 %v1279_v10  ;;  %1228 = vmatprep.mubr.bf16.mxu1 %v1296_v24  ;;  %v1300_v30 = vld [vmem:[%s1459_s16 + $0x18] ss:$12 sps:$4 sm:$0xff]   ;;  %v1301_v31 = vld [vmem:[%s1459_s16 + $0x34] ss:$12 sps:$4 sm:$0xff]   ;;  %v1305_v32 = vld [vmem:[%s1459_s16 + $0x50] ss:$12 sps:$4 sm:$0xff]  }
  0x15   : > { %1140 = vmatprep.subr.bf16.mxu0 %v1281_v12  ;;  %v1312_v33 = vld [vmem:[%s1459_s16 + $0x68] ss:$12 sps:$4 sm:$0xff]   ;;  %v1303_v34 = vld [vmem:[%s1459_s16 + $0x30] ss:$12 sps:$4 sm:$0xff]   ;;  %v1306_v35 = vld [vmem:[%s1459_s16 + $0x4c] ss:$12 sps:$4 sm:$0xff]  }
  0x16   : > { %1219 = vmatpush3.bf16.msra.mxu1 %v1280_v11  ;;  %v1313_v36 = vld [vmem:[%s1459_s16 + $0x80] ss:$12 sps:$4 sm:$0xff]   ;;  %v1320_v37 = vld [vmem:[%s1459_s16 + $0x98] ss:$12 sps:$4 sm:$0xff]   ;;  %v1308_v38 = vld [vmem:[%s1459_s16 + $0x48] ss:$12 sps:$4 sm:$0xff]  }
  0x17   : > { %1220 = vmatprep.subr.bf16.mxu1 %v1283_v13  ;;  %v1309_v39 = vld [vmem:[%s1459_s16 + $0x64] ss:$12 sps:$4 sm:$0xff]   ;;  %v1311_v41 = vld [vmem:[%s1459_s16 + $0x60] ss:$12 sps:$4 sm:$0xff]   ;;  %v1314_v42 = vld [vmem:[%s1459_s16 + $0x7c] ss:$12 sps:$4 sm:$0xff]  }
  0x18   : > { %1141 = vmatpush3.bf16.msra.mxu0 %v1282_v14  ;;  %v1321_v40 = vld [vmem:[%s1459_s16 + $0xb0] ss:$12 sps:$4 sm:$0xff]   ;;  %v1316_v43 = vld [vmem:[%s1459_s16 + $0x78] ss:$12 sps:$4 sm:$0xff]   ;;  %v1317_v44 = vld [vmem:[%s1459_s16 + $0x94] ss:$12 sps:$4 sm:$0xff]  }
  0x19   : > { %1142 = vmatprep.subr.bf16.mxu0 %v1284_v15  ;;  %v1319_v45 = vld [vmem:[%s1459_s16 + $0x90] ss:$12 sps:$4 sm:$0xff]   ;;  %v1322_v46 = vld [vmem:[%s1459_s16 + $0xac] ss:$12 sps:$4 sm:$0xff]   ;;  %v1324_v47 = vld [vmem:[%s1459_s16 + $0xa8] ss:$12 sps:$4 sm:$0xff]  }
  0x1a   : > { %1221 = vmatpush3.bf16.msra.mxu1 %v1283_v13 }
  0x1b   : > { %1222 = vmatprep.subr.bf16.mxu1 %v1286_v16 }
  0x1c   : > { %1143 = vmatpush3.bf16.msra.mxu0 %v1285_v17 }
  0x1d   : > { %1144 = vmatprep.subr.bf16.mxu0 %v1287_v18 }
  0x1e   : > { %1223 = vmatpush3.bf16.msra.mxu1 %v1286_v16 }
  0x1f   : > { %1224 = vmatprep.subr.bf16.mxu1 %v1289_v20 }
  0x20   : > { %1145 = vmatpush3.bf16.msra.mxu0 %v1288_v19 }
  0x21   : > { %1146 = vmatprep.subr.bf16.mxu0 %v1290_v21 }
  0x22   : > { %1225 = vmatpush3.bf16.msra.mxu1 %v1289_v20 }
  0x23   : > { %1226 = vmatprep.subr.bf16.mxu1 %v1292_v22 }
  0x24   : > { %1147 = vmatpush3.bf16.msra.mxu0 %v1291_v25 }
  0x26   : > { %1227 = vmatpush3.bf16.msra.mxu1 %v1292_v22 }
  0x27   : > { %689 = vmatmul.mubr.bf16.vlgmr.msra.gmra.mrb[0].mxu0 %v1293_v26 }
  0x28   : > { %696 = vmatprep.mubr.bf16.mxu0 %v1298_v27 }
  0x29   : > { %1229 = vmatmul.mubr.bf16.vlgmr.msra.gmra.mrb[0].mxu1 %v1297_v28 }
  0x2a   : > { %1232 = vmatprep.mubr.bf16.mxu1 %v1304_v29 }
  0x2f   : > { %697 = vmatmul.mubr.bf16.gmra.mrb[4].mxu0 %v1300_v30 }
  0x30   : > { %704 = vmatprep.mubr.bf16.mxu0 %v1301_v31 }
  0x31   : > { %1233 = vmatmul.mubr.bf16.gmra.mrb[4].mxu1 %v1305_v32 }
  0x32   : > { %1236 = vmatprep.mubr.bf16.mxu1 %v1312_v33 }
  0x37   : > { %705 = vmatmul.mubr.bf16.gmra.mrb[8].mxu0 %v1303_v34 }
  0x38   : > { %712 = vmatprep.mubr.bf16.mxu0 %v1306_v35 }
  0x39   : > { %1237 = vmatmul.mubr.bf16.gmra.mrb[8].mxu1 %v1313_v36 }
  0x3a   : > { %1240 = vmatprep.mubr.bf16.mxu1 %v1320_v37 }
  0x3f   : > { %713 = vmatmul.mubr.bf16.gmra.mrb[12].mxu0 %v1308_v38 }
  0x40   : > { %720 = vmatprep.mubr.bf16.mxu0 %v1309_v39 }
  0x41   : > { %1241 = vmatmul.mubr.bf16.gmra.mrb[12].mxu1 %v1321_v40 }
  0x47   : > { %721 = vmatmul.mubr.bf16.gmra.mrb[16].mxu0 %v1311_v41 }
  0x48   : > { %728 = vmatprep.mubr.bf16.mxu0 %v1314_v42 }
  0x4f   : > { %729 = vmatmul.mubr.bf16.gmra.mrb[20].mxu0 %v1316_v43 }
  0x50   : > { %736 = vmatprep.mubr.bf16.mxu0 %v1317_v44 }
  0x57   : > { %737 = vmatmul.mubr.bf16.gmra.mrb[24].mxu0 %v1319_v45 }
  0x58   : > { %744 = vmatprep.mubr.bf16.mxu0 %v1322_v46 }
  0x5f   : > { %745 = vmatmul.mubr.bf16.gmra.mrb[28].mxu0 %v1324_v47 }
  0xfa   : > { %v1148_v48 = vpop.f32.mrb[0].mxu0 }
  0xfb   : > { %v1149_v49 = vpop.f32.mrb[1].mxu0 }
  0xfc   : > { %v1150_v50 = vadd.f32 %v1149_v49, %v1148_v48  ;;  %v1151_v51 = vpop.f32.mrb[2].mxu0  ;;  %v1230_v52 = vpop.f32.mrb[0].mxu1 }
  0xfd   : > { %v1152_v53 = vpop.f32.mrb[3].mxu0  ;;  %v787_v54 = vpop.f32.mrb[1].mxu1 }
  0xfe   : > { %v1153_v56 = vadd.f32 %v1152_v53, %v1151_v51  ;;  %v788_v57 = vadd.f32 %v1150_v50, %v787_v54  ;;  %v1231_v58 = vpop.f32.mrb[2].mxu1 }
  0xff   : > { %v790_v59 = vpop.f32.mrb[3].mxu1 }
 0x100   : > { %v908_v60 = vadd.f32 %v1497_v55, %v788_v57  ;;  %v791_v61 = vadd.f32 %v1153_v56, %v790_v59 }
 0x102   : > { %v924_v62 = vmax.f32 %v908_v60, 0.0  ;;  %v909_v63 = vadd.f32 %v1497_v55, %v791_v61  ;;  %v1154_v0 = vpop.f32.mrb[4].mxu0 }
 0x103   : > { %v1155_v1 = vpop.f32.mrb[5].mxu0 }
 0x104   : > { %940 = vst [vmem:[%s1504_s27] sm:$0xff] %v924_v62  ;;  %v925_v2 = vmax.f32 %v909_v63, 0.0  ;;  %v1156_v3 = vadd.f32 %v1155_v1, %v1154_v0  ;;  %v1157_v4 = vpop.f32.mrb[6].mxu0  ;;  %v1234_v5 = vpop.f32.mrb[4].mxu1 }
 0x105   : > { %v1158_v6 = vpop.f32.mrb[7].mxu0  ;;  %v803_v7 = vpop.f32.mrb[5].mxu1 }
 0x106   : > { %941 = vst [vmem:[%s1504_s27 + $0x8] sm:$0xff] %v925_v2  ;;  %v796_v8 = vadd.f32 %v1230_v52, %v1156_v3  ;;  %v1159_v9 = vadd.f32 %v1158_v6, %v1157_v4  ;;  %v1235_v10 = vpop.f32.mrb[6].mxu1 }
 0x107   : > { %v806_v11 = vpop.f32.mrb[7].mxu1 }
 0x108   : > { %v910_v12 = vadd.f32 %v1497_v55, %v796_v8  ;;  %v799_v13 = vadd.f32 %v1231_v58, %v1159_v9 }
 0x10a   : > { %v926_v14 = vmax.f32 %v910_v12, 0.0  ;;  %v911_v15 = vadd.f32 %v1497_v55, %v799_v13  ;;  %v1160_v16 = vpop.f32.mrb[8].mxu0 }
 0x10b   : > { %v1161_v17 = vpop.f32.mrb[9].mxu0 }
 0x10c   : > { %942 = vst [vmem:[%s1504_s27 + $0x10] sm:$0xff] %v926_v14  ;;  %v927_v18 = vmax.f32 %v911_v15, 0.0  ;;  %v1162_v19 = vadd.f32 %v1161_v17, %v1160_v16  ;;  %v1163_v20 = vpop.f32.mrb[10].mxu0  ;;  %v1238_v21 = vpop.f32.mrb[8].mxu1 }
 0x10d   : > { %v1164_v22 = vpop.f32.mrb[11].mxu0  ;;  %v819_v23 = vpop.f32.mrb[9].mxu1 }
 0x10e   : > { %943 = vst [vmem:[%s1504_s27 + $0x18] sm:$0xff] %v927_v18  ;;  %v1165_v24 = vadd.f32 %v1164_v22, %v1163_v20  ;;  %v804_v25 = vadd.f32 %v1162_v19, %v803_v7  ;;  %v1239_v26 = vpop.f32.mrb[10].mxu1 }
 0x10f   : > { %v822_v27 = vpop.f32.mrb[11].mxu1 }
 0x110   : > { %v912_v28 = vadd.f32 %v1497_v55, %v804_v25  ;;  %v807_v29 = vadd.f32 %v1165_v24, %v806_v11 }
 0x112   : > { %v928_v30 = vmax.f32 %v912_v28, 0.0  ;;  %v913_v31 = vadd.f32 %v1497_v55, %v807_v29  ;;  %v1166_v32 = vpop.f32.mrb[12].mxu0 }
 0x113   : > { %v1167_v33 = vpop.f32.mrb[13].mxu0 }
 0x114   : > { %944 = vst [vmem:[%s1504_s27 + $0x20] sm:$0xff] %v928_v30  ;;  %v929_v34 = vmax.f32 %v913_v31, 0.0  ;;  %v1168_v35 = vadd.f32 %v1167_v33, %v1166_v32  ;;  %v1169_v36 = vpop.f32.mrb[14].mxu0  ;;  %v1242_v37 = vpop.f32.mrb[12].mxu1 }
 0x115   : > { %v1170_v38 = vpop.f32.mrb[15].mxu0  ;;  %v835_v39 = vpop.f32.mrb[13].mxu1 }
 0x116   : > { %945 = vst [vmem:[%s1504_s27 + $0x28] sm:$0xff] %v929_v34  ;;  %v812_v40 = vadd.f32 %v1234_v5, %v1168_v35  ;;  %v1171_v41 = vadd.f32 %v1170_v38, %v1169_v36  ;;  %v1243_v42 = vpop.f32.mrb[14].mxu1 }
 0x117   : > { %v838_v43 = vpop.f32.mrb[15].mxu1 }
 0x118   : > { %v914_v44 = vadd.f32 %v1497_v55, %v812_v40  ;;  %v815_v45 = vadd.f32 %v1235_v10, %v1171_v41 }
 0x11a   : > { %v930_v46 = vmax.f32 %v914_v44, 0.0  ;;  %v915_v47 = vadd.f32 %v1497_v55, %v815_v45  ;;  %v1172_v48 = vpop.f32.mrb[16].mxu0 }
 0x11b   : > { %v1173_v49 = vpop.f32.mrb[17].mxu0 }
 0x11c   : > { %946 = vst [vmem:[%s1504_s27 + $0x30] sm:$0xff] %v930_v46  ;;  %v931_v50 = vmax.f32 %v915_v47, 0.0  ;;  %v1174_v51 = vadd.f32 %v1173_v49, %v1172_v48  ;;  %v1175_v52 = vpop.f32.mrb[18].mxu0 }
 0x11d   : > { %v1176_v53 = vpop.f32.mrb[19].mxu0 }
 0x11e   : > { %947 = vst [vmem:[%s1504_s27 + $0x38] sm:$0xff] %v931_v50  ;;  %v1177_v54 = vadd.f32 %v1176_v53, %v1175_v52  ;;  %v820_v56 = vadd.f32 %v1174_v51, %v819_v23 }
 0x120   : > { %v916_v57 = vadd.f32 %v1497_v55, %v820_v56  ;;  %v823_v58 = vadd.f32 %v1177_v54, %v822_v27 }
 0x122   : > { %v932_v59 = vmax.f32 %v916_v57, 0.0  ;;  %v917_v60 = vadd.f32 %v1497_v55, %v823_v58  ;;  %v1178_v61 = vpop.f32.mrb[20].mxu0 }
 0x123   : > { %v1179_v62 = vpop.f32.mrb[21].mxu0 }
 0x124   : > { %948 = vst [vmem:[%s1504_s27 + $0x40] sm:$0xff] %v932_v59  ;;  %v933_v63 = vmax.f32 %v917_v60, 0.0  ;;  %v1180_v0 = vadd.f32 %v1179_v62, %v1178_v61  ;;  %v1181_v1 = vpop.f32.mrb[22].mxu0 }
 0x125   : > { %v1182_v2 = vpop.f32.mrb[23].mxu0 }
 0x126   : > { %949 = vst [vmem:[%s1504_s27 + $0x48] sm:$0xff] %v933_v63  ;;  %v828_v3 = vadd.f32 %v1238_v21, %v1180_v0  ;;  %v1183_v4 = vadd.f32 %v1182_v2, %v1181_v1 }
 0x128   : > { %v918_v5 = vadd.f32 %v1497_v55, %v828_v3  ;;  %v831_v6 = vadd.f32 %v1239_v26, %v1183_v4 }
 0x12a   : > { %v934_v7 = vmax.f32 %v918_v5, 0.0  ;;  %v919_v8 = vadd.f32 %v1497_v55, %v831_v6  ;;  %v1184_v9 = vpop.f32.mrb[24].mxu0 }
 0x12b   : > { %v1185_v10 = vpop.f32.mrb[25].mxu0 }
 0x12c   : > { %950 = vst [vmem:[%s1504_s27 + $0x50] sm:$0xff] %v934_v7  ;;  %v935_v11 = vmax.f32 %v919_v8, 0.0  ;;  %v1186_v12 = vadd.f32 %v1185_v10, %v1184_v9  ;;  %v1187_v13 = vpop.f32.mrb[26].mxu0 }
 0x12d   : > { %v1188_v14 = vpop.f32.mrb[27].mxu0 }
 0x12e   : > { %951 = vst [vmem:[%s1504_s27 + $0x58] sm:$0xff] %v935_v11  ;;  %v1189_v15 = vadd.f32 %v1188_v14, %v1187_v13  ;;  %v836_v16 = vadd.f32 %v1186_v12, %v835_v39 }
 0x130   : > { %v920_v17 = vadd.f32 %v1497_v55, %v836_v16  ;;  %v839_v18 = vadd.f32 %v1189_v15, %v838_v43 }
 0x132   : > { %v936_v19 = vmax.f32 %v920_v17, 0.0  ;;  %v921_v20 = vadd.f32 %v1497_v55, %v839_v18  ;;  %v1190_v21 = vpop.f32.mrb[28].mxu0 }
 0x133   : > { %v1191_v22 = vpop.f32.mrb[29].mxu0 }
 0x134   : > { %952 = vst [vmem:[%s1504_s27 + $0x60] sm:$0xff] %v936_v19  ;;  %v937_v23 = vmax.f32 %v921_v20, 0.0  ;;  %v1192_v24 = vadd.f32 %v1191_v22, %v1190_v21  ;;  %v1193_v25 = vpop.f32.mrb[30].mxu0 }
 0x135   : > { %v1194_v26 = vpop.f32.mrb[31].mxu0 }
 0x136   : > { %953 = vst [vmem:[%s1504_s27 + $0x68] sm:$0xff] %v937_v23  ;;  %v844_v27 = vadd.f32 %v1242_v37, %v1192_v24  ;;  %v1195_v28 = vadd.f32 %v1194_v26, %v1193_v25 }
 0x138   : > { %v922_v29 = vadd.f32 %v1497_v55, %v844_v27  ;;  %v847_v30 = vadd.f32 %v1243_v42, %v1195_v28 }
 0x13a   : > { %v938_v31 = vmax.f32 %v922_v29, 0.0  ;;  %v923_v32 = vadd.f32 %v1497_v55, %v847_v30 }
 0x13c   : > { %954 = vst [vmem:[%s1504_s27 + $0x70] sm:$0xff] %v938_v31  ;;  %v939_v33 = vmax.f32 %v923_v32, 0.0 }
 0x13e   : > { %955 = vst [vmem:[%s1504_s27 + $0x78] sm:$0xff] %v939_v33 }
 0x13f PF: > { %s13_s14 = sadd.s32 1, %s1347_s14   ;;  %s1550_s12 = smov %s1343_s13 }
 0x140   : > { %p10_p5 = scmp.ge.s32.totalorder %s13_s14, 10   ;;  %s1551_s13 = smov %s1553_s15 }
 0x142   :  { %12 = sbr.rel (!%p10_p5) target bundleno = 2 (0x2), region = 76 }

// kernel: resnet_forward.14
= control target key start
LH: loop header
LB: loop body
LE: loop exit
PB: predicated region body
PF: predicated region fallthrough
CT: control target
= control target key end

     0   :  { %s1625_s12 = smov 0   ;;  %s1627_s13 = smov 0   ;;  %s1879_s0 = inlined_call_operand.vmem [shape: bf16[128,2048], index: 0, kind: input, shape index: {}]   ;;  %s1880_s1 = inlined_call_operand.vmem [shape: bf16[2048,128], index: 1, kind: input, shape index: {}]   ;;  %s1881_s2 = inlined_call_operand.vmem [shape: f32[1,128], index: 2, kind: input, shape index: {}]   ;;  %s1882_s3 = inlined_call_operand.vmem [shape: f32[128,128], index: 3, kind: output, shape index: {}]  }
   0x1   :  { %s1629_s14 = smov 0   ;;  %s1631_s15 = smov 0  }
   0x2   :  { %s1633_s16 = smov 0  }
   0x3 LB: > { %s25_s17 = sadd.s32 1, %s1598_s15  ;;  %p48_p1 = scmp.ne.s32.totalorder %s1590_s13, %s1586_s12  ;;  %s1602_s16 = sphi %s1633_s16, %s13_s16   ;;  %s1598_s15 = sphi %s1631_s15, %s1886_s15   ;;  %s1594_s14 = sphi %s1629_s14, %s1885_s14   ;;  %s1590_s13 = sphi %s1627_s13, %s1884_s13   ;;  %s1586_s12 = sphi %s1625_s12, %s1883_s12  }
   0x4   : > { %p26_p0 = scmp.ge.s32.totalorder %s25_s17, 4  ;;  %p49_p2 = scmp.eq.s32.totalorder %s1602_s16, 0 }
   0x5   : > { %s41_s19 = sadd.s32 1, %s1590_s13  ;;  %p1235_p5 = scmp.ge.s32.totalorder %s1602_s16, 4 }
   0x6   : > { %s1888_s17 = smov (%p26_p0, %s25_s17), 0  ;;  %p50_p3 = por %p49_p2, %p48_p1 }
   0x7   : > { %s37_s18 = ssub.s32 %s1598_s15, %s1888_s17  ;;  %162 = sbr.rel (%p1235_p5) target bundleno = 34 (0x22), region = 20 }
   0x8   : > { %p39_p4 = scmp.eq.s32.totalorder %s37_s18, 0 }
   0xa   : > { %s1660_s20 = scalar_select %p39_p4, %s1590_s13, %s41_s19  }
   0xe   : > { %165 = sbr.rel (!%p50_p3) target bundleno = 34 (0x22), region = 24  ;;  %s167_s21 = sand.u32 (%p50_p3), 1, %s1590_s13  }
   0xf   : > { %s1314_s22 = sshll.u32 (%p50_p3), %s1598_s15, 4  ;;  %s1236_s23 = sshll.u32 (%p50_p3), %s167_s21, 8 }
  0x10   : > { %s1668_s26 = scalar_lea.vmem (%p50_p3), %s1879_s0, %s1314_s22  ;;  %s1673_s27 = scalar_lea.vmem (%p50_p3), [#allocation3], %s1236_s23 }
  0x11   : > { %v188_v0 = vld [vmem:[%s1668_s26] sm:$0xff] (%p50_p3)  ;;  %v190_v1 = vld [vmem:[%s1668_s26 + $0x8] sm:$0xff] (%p50_p3) }
  0x12   : > { %v192_v2 = vld [vmem:[%s1668_s26 + $0x40] sm:$0xff] (%p50_p3)  ;;  %189 = vst [vmem:[%s1673_s27] sm:$0xff] (%p50_p3), %v188_v0  ;;  %191 = vst [vmem:[%s1673_s27 + $0x8] sm:$0xff] (%p50_p3), %v190_v1  ;;  %v194_v3 = vld [vmem:[%s1668_s26 + $0x48] sm:$0xff] (%p50_p3) }
  0x13   : > { %193 = vst [vmem:[%s1673_s27 + $0x10] sm:$0xff] (%p50_p3), %v192_v2  ;;  %v196_v4 = vld [vmem:[%s1668_s26 + $0x80] sm:$0xff] (%p50_p3)  ;;  %v198_v5 = vld [vmem:[%s1668_s26 + $0x88] sm:$0xff] (%p50_p3)  ;;  %195 = vst [vmem:[%s1673_s27 + $0x18] sm:$0xff] (%p50_p3), %v194_v3 }
  0x14   : > { %197 = vst [vmem:[%s1673_s27 + $0x20] sm:$0xff] (%p50_p3), %v196_v4  ;;  %199 = vst [vmem:[%s1673_s27 + $0x28] sm:$0xff] (%p50_p3), %v198_v5  ;;  %v200_v6 = vld [vmem:[%s1668_s26 + $0xc0] sm:$0xff] (%p50_p3)  ;;  %v202_v7 = vld [vmem:[%s1668_s26 + $0xc8] sm:$0xff] (%p50_p3) }
  0x15   : > { %v204_v8 = vld [vmem:[%s1668_s26 + $0x100] sm:$0xff]  ;;  %201 = vst [vmem:[%s1673_s27 + $0x30] sm:$0xff] %v200_v6  ;;  %203 = vst [vmem:[%s1673_s27 + $0x38] sm:$0xff] %v202_v7  ;;  %v206_v9 = vld [vmem:[%s1668_s26 + $0x108] sm:$0xff] }
  0x16   : > { %205 = vst [vmem:[%s1673_s27 + $0x40] sm:$0xff] %v204_v8  ;;  %v208_v10 = vld [vmem:[%s1668_s26 + $0x140] sm:$0xff]  ;;  %v210_v11 = vld [vmem:[%s1668_s26 + $0x148] sm:$0xff]  ;;  %207 = vst [vmem:[%s1673_s27 + $0x48] sm:$0xff] %v206_v9 }
  0x17   : > { %209 = vst [vmem:[%s1673_s27 + $0x50] sm:$0xff] %v208_v10  ;;  %211 = vst [vmem:[%s1673_s27 + $0x58] sm:$0xff] %v210_v11  ;;  %v212_v12 = vld [vmem:[%s1668_s26 + $0x180] sm:$0xff]  ;;  %v214_v13 = vld [vmem:[%s1668_s26 + $0x188] sm:$0xff] }
  0x18   : > { %v216_v14 = vld [vmem:[%s1668_s26 + $0x1c0] sm:$0xff]  ;;  %213 = vst [vmem:[%s1673_s27 + $0x60] sm:$0xff] %v212_v12  ;;  %215 = vst [vmem:[%s1673_s27 + $0x68] sm:$0xff] %v214_v13  ;;  %v218_v15 = vld [vmem:[%s1668_s26 + $0x1c8] sm:$0xff] }
  0x19   : > { %217 = vst [vmem:[%s1673_s27 + $0x70] sm:$0xff] %v216_v14  ;;  %v220_v16 = vld [vmem:[%s1668_s26 + $0x200] sm:$0xff]  ;;  %v222_v17 = vld [vmem:[%s1668_s26 + $0x208] sm:$0xff]  ;;  %219 = vst [vmem:[%s1673_s27 + $0x78] sm:$0xff] %v218_v15 }
  0x1a   : > { %221 = vst [vmem:[%s1673_s27 + $0x80] sm:$0xff] %v220_v16  ;;  %223 = vst [vmem:[%s1673_s27 + $0x88] sm:$0xff] %v222_v17  ;;  %v224_v18 = vld [vmem:[%s1668_s26 + $0x240] sm:$0xff]  ;;  %v226_v19 = vld [vmem:[%s1668_s26 + $0x248] sm:$0xff] }
  0x1b   : > { %v228_v20 = vld [vmem:[%s1668_s26 + $0x280] sm:$0xff]  ;;  %225 = vst [vmem:[%s1673_s27 + $0x90] sm:$0xff] %v224_v18  ;;  %227 = vst [vmem:[%s1673_s27 + $0x98] sm:$0xff] %v226_v19  ;;  %v230_v21 = vld [vmem:[%s1668_s26 + $0x288] sm:$0xff] }
  0x1c   : > { %229 = vst [vmem:[%s1673_s27 + $0xa0] sm:$0xff] %v228_v20  ;;  %v232_v22 = vld [vmem:[%s1668_s26 + $0x2c0] sm:$0xff]  ;;  %v234_v23 = vld [vmem:[%s1668_s26 + $0x2c8] sm:$0xff]  ;;  %231 = vst [vmem:[%s1673_s27 + $0xa8] sm:$0xff] %v230_v21 }
  0x1d   : > { %233 = vst [vmem:[%s1673_s27 + $0xb0] sm:$0xff] %v232_v22  ;;  %235 = vst [vmem:[%s1673_s27 + $0xb8] sm:$0xff] %v234_v23  ;;  %v236_v24 = vld [vmem:[%s1668_s26 + $0x300] sm:$0xff]  ;;  %v238_v25 = vld [vmem:[%s1668_s26 + $0x308] sm:$0xff] }
  0x1e   : > { %v240_v26 = vld [vmem:[%s1668_s26 + $0x340] sm:$0xff]  ;;  %237 = vst [vmem:[%s1673_s27 + $0xc0] sm:$0xff] %v236_v24  ;;  %239 = vst [vmem:[%s1673_s27 + $0xc8] sm:$0xff] %v238_v25  ;;  %v242_v27 = vld [vmem:[%s1668_s26 + $0x348] sm:$0xff] }
  0x1f   : > { %241 = vst [vmem:[%s1673_s27 + $0xd0] sm:$0xff] %v240_v26  ;;  %v244_v28 = vld [vmem:[%s1668_s26 + $0x380] sm:$0xff]  ;;  %v246_v29 = vld [vmem:[%s1668_s26 + $0x388] sm:$0xff]  ;;  %243 = vst [vmem:[%s1673_s27 + $0xd8] sm:$0xff] %v242_v27 }
  0x20   : > { %245 = vst [vmem:[%s1673_s27 + $0xe0] sm:$0xff] %v244_v28  ;;  %247 = vst [vmem:[%s1673_s27 + $0xe8] sm:$0xff] %v246_v29  ;;  %v248_v30 = vld [vmem:[%s1668_s26 + $0x3c0] sm:$0xff]  ;;  %v250_v31 = vld [vmem:[%s1668_s26 + $0x3c8] sm:$0xff] }
  0x21   : > { %249 = vst [vmem:[%s1673_s27 + $0xf0] sm:$0xff] %v248_v30  ;;  %251 = vst [vmem:[%s1673_s27 + $0xf8] sm:$0xff] %v250_v31 }
  0x22 PF: > { %p1239_p6 = scmp.ge.s32.totalorder %s1602_s16, 1  ;;  %p268_p7 = scmp.lt.s32.totalorder %s1602_s16, 5 }
  0x24   : > { %p269_p8 = pnand %p1239_p6, %p268_p7 }
  0x25   : > { %s275_s28 = sand.u32 (!%p269_p8), 1, %s1586_s12   ;;  %s1241_s29 = sshll.u32 (!%p269_p8), %s1594_s14, 6 }
  0x26   : > { %272 = sbr.rel (%p269_p8) target bundleno = 380 (0x17c), region = 51  ;;  %s1240_s30 = sshll.u32 (!%p269_p8), %s275_s28, 8 }
  0x27   : > { %p315_p9 = scmp.lt.s32.totalorder (!%p269_p8), %s1241_s29, 255  ;;  %s1745_s8 = scalar_lea.vmem (!%p269_p8), [#allocation3], %s1240_s30 }
  0x28   : > { %p1243_p10 = scmp.ne.s32.totalorder (!%p269_p8), %s1594_s14, 0 }
  0x2d   : > { %s1890_s29 = smov (!%p315_p9, %s1241_s29), 255  ;;  %339 = sbr.rel (%p1243_p10) target bundleno = 55 (0x37), region = 59 }
  0x2e   : > { %s1242_s4 = sshll.u32 %s1890_s29, 2  ;;  %v1604_v32 = vmov (!%p1243_p10), 0.0  }
  0x2f   : > { %s1743_s7 = scalar_lea.vmem %s1880_s1, %s1242_s4  ;;  %340 = vst [vmem:[#allocation2] sm:$0xff] (!%p1243_p10), %v1604_v32  ;;  %341 = vst [vmem:[#allocation2 + $0x8] sm:$0xff] (!%p1243_p10), %v1604_v32 }
  0x30   : > { %342 = vst [vmem:[#allocation2 + $0x10] sm:$0xff] (!%p1243_p10), %v1604_v32  ;;  %343 = vst [vmem:[#allocation2 + $0x18] sm:$0xff] (!%p1243_p10), %v1604_v32 }
  0x31   : > { %344 = vst [vmem:[#allocation2 + $0x20] sm:$0xff] (!%p1243_p10), %v1604_v32  ;;  %345 = vst [vmem:[#allocation2 + $0x28] sm:$0xff] (!%p1243_p10), %v1604_v32 }
  0x32   : > { %346 = vst [vmem:[#allocation2 + $0x30] sm:$0xff] (!%p1243_p10), %v1604_v32  ;;  %347 = vst [vmem:[#allocation2 + $0x38] sm:$0xff] (!%p1243_p10), %v1604_v32 }
  0x33   : > { %348 = vst [vmem:[#allocation2 + $0x40] sm:$0xff] (!%p1243_p10), %v1604_v32  ;;  %349 = vst [vmem:[#allocation2 + $0x48] sm:$0xff] (!%p1243_p10), %v1604_v32 }
  0x34   : > { %350 = vst [vmem:[#allocation2 + $0x50] sm:$0xff] %v1604_v32  ;;  %351 = vst [vmem:[#allocation2 + $0x58] sm:$0xff] %v1604_v32 }
  0x35   : > { %352 = vst [vmem:[#allocation2 + $0x60] sm:$0xff] %v1604_v32  ;;  %353 = vst [vmem:[#allocation2 + $0x68] sm:$0xff] %v1604_v32 }
  0x36   : > { %354 = vst [vmem:[#allocation2 + $0x70] sm:$0xff] %v1604_v32  ;;  %355 = vst [vmem:[#allocation2 + $0x78] sm:$0xff] %v1604_v32 }
  0x37 PF: > { %v1484_v33 = vld [vmem:[%s1743_s7 + $0x40] sm:$0xff]   ;;  %v1488_v37 = vld [vmem:[%s1743_s7 + $0x48] sm:$0xff]   ;;  %v1492_v41 = vld [vmem:[%s1743_s7 + $0x50] sm:$0xff]   ;;  %p1308_p11 = scmp.ne.s32.totalorder %s1594_s14, 3 }
  0x38   : > { %v1485_v34 = vld [vmem:[%s1743_s7 + $0xc0] sm:$0xff]   ;;  %1315 = vmatprep.subr.bf16.mxu0 %v1484_v33  ;;  %v1489_v38 = vld [vmem:[%s1743_s7 + $0xc8] sm:$0xff]   ;;  %v1493_v42 = vld [vmem:[%s1743_s7 + $0xd0] sm:$0xff]  }
  0x39   : > { %v1486_v35 = vld [vmem:[%s1743_s7] sm:$0xff]   ;;  %1379 = vmatprep.subr.bf16.mxu1 %v1485_v34  ;;  %v1490_v39 = vld [vmem:[%s1743_s7 + $0x8] sm:$0xff]   ;;  %v1494_v43 = vld [vmem:[%s1743_s7 + $0x10] sm:$0xff]  }
  0x3a   : > { %v1487_v36 = vld [vmem:[%s1743_s7 + $0x80] sm:$0xff]   ;;  %1316 = vmatpush3.bf16.msra.mxu0 %v1486_v35  ;;  %v1491_v40 = vld [vmem:[%s1743_s7 + $0x88] sm:$0xff]   ;;  %v1495_v44 = vld [vmem:[%s1743_s7 + $0x90] sm:$0xff]  }
  0x3b   : > { %1380 = vmatpush3.bf16.msra.mxu1 %v1487_v36  ;;  %1317 = vmatprep.subr.bf16.mxu0 %v1488_v37  ;;  %v1496_v45 = vld [vmem:[%s1743_s7 + $0x58] sm:$0xff]   ;;  %v1500_v49 = vld [vmem:[%s1743_s7 + $0x60] sm:$0xff]   ;;  %v1504_v53 = vld [vmem:[%s1743_s7 + $0x68] sm:$0xff]  }
  0x3c   : > { %1381 = vmatprep.subr.bf16.mxu1 %v1489_v38  ;;  %v1497_v46 = vld [vmem:[%s1743_s7 + $0xd8] sm:$0xff]   ;;  %v1501_v50 = vld [vmem:[%s1743_s7 + $0xe0] sm:$0xff]   ;;  %v1505_v54 = vld [vmem:[%s1743_s7 + $0xe8] sm:$0xff]  }
  0x3d   : > { %v1498_v47 = vld [vmem:[%s1743_s7 + $0x18] sm:$0xff]   ;;  %v1502_v51 = vld [vmem:[%s1743_s7 + $0x20] sm:$0xff]   ;;  %v1506_v55 = vld [vmem:[%s1743_s7 + $0x28] sm:$0xff]  }
  0x3e   : > { %1318 = vmatpush3.bf16.msra.mxu0 %v1490_v39  ;;  %v1499_v48 = vld [vmem:[%s1743_s7 + $0x98] sm:$0xff]   ;;  %v1503_v52 = vld [vmem:[%s1743_s7 + $0xa0] sm:$0xff]   ;;  %v1507_v56 = vld [vmem:[%s1743_s7 + $0xa8] sm:$0xff]  }
  0x3f   : > { %1382 = vmatpush3.bf16.msra.mxu1 %v1491_v40  ;;  %1319 = vmatprep.subr.bf16.mxu0 %v1492_v41  ;;  %v1508_v57 = vld [vmem:[%s1743_s7 + $0x70] sm:$0xff]   ;;  %v1512_v61 = vld [vmem:[%s1743_s7 + $0x78] sm:$0xff]  }
  0x40   : > { %1383 = vmatprep.subr.bf16.mxu1 %v1493_v42  ;;  %v1509_v58 = vld [vmem:[%s1743_s7 + $0xf0] sm:$0xff]   ;;  %v1513_v62 = vld [vmem:[%s1743_s7 + $0xf8] sm:$0xff]   ;;  %v356_v42 = vld [vmem:[#allocation2] sm:$0xff] }
  0x41   : > { %v1510_v59 = vld [vmem:[%s1743_s7 + $0x30] sm:$0xff]   ;;  %v1514_v63 = vld [vmem:[%s1743_s7 + $0x38] sm:$0xff]  }
  0x42   : > { %1320 = vmatpush3.bf16.msra.mxu0 %v1494_v43  ;;  %v1511_v60 = vld [vmem:[%s1743_s7 + $0xb0] sm:$0xff]   ;;  %v1515_v0 = vld [vmem:[%s1743_s7 + $0xb8] sm:$0xff]  }
  0x43   : > { %1384 = vmatpush3.bf16.msra.mxu1 %v1495_v44  ;;  %1321 = vmatprep.subr.bf16.mxu0 %v1496_v45  ;;  %v1516_v1 = vld [vmem:[%s1745_s8] ss:$16 sps:$4 sm:$0xff]   ;;  %v1518_v2 = vld [vmem:[%s1745_s8 + $0x4] ss:$16 sps:$4 sm:$0xff]   ;;  %v1519_v3 = vld [vmem:[%s1745_s8 + $0x8] ss:$16 sps:$4 sm:$0xff]  }
  0x44   : > { %1385 = vmatprep.subr.bf16.mxu1 %v1497_v46  ;;  %v1521_v4 = vld [vmem:[%s1745_s8 + $0xc] ss:$16 sps:$4 sm:$0xff]   ;;  %852 = vmatprep.mubr.bf16.mxu0 %v1518_v2  ;;  %v1522_v5 = vld [vmem:[%s1745_s8 + $0x24] ss:$16 sps:$4 sm:$0xff]   ;;  %v1526_v7 = vld [vmem:[%s1745_s8 + $0x20] ss:$16 sps:$4 sm:$0xff]  }
  0x45   : > { %949 = vmatprep.mubr.bf16.mxu1 %v1521_v4  ;;  %v1524_v6 = vld [vmem:[%s1745_s8 + $0x2c] ss:$16 sps:$4 sm:$0xff]   ;;  %v1527_v8 = vld [vmem:[%s1745_s8 + $0x28] ss:$16 sps:$4 sm:$0xff]   ;;  %v1528_v9 = vld [vmem:[%s1745_s8 + $0x44] ss:$16 sps:$4 sm:$0xff]  }
  0x46   : > { %1322 = vmatpush3.bf16.msra.mxu0 %v1498_v47  ;;  %v1530_v10 = vld [vmem:[%s1745_s8 + $0x4c] ss:$16 sps:$4 sm:$0xff]   ;;  %v1532_v11 = vld [vmem:[%s1745_s8 + $0x40] ss:$16 sps:$4 sm:$0xff]   ;;  %v1533_v12 = vld [vmem:[%s1745_s8 + $0x48] ss:$16 sps:$4 sm:$0xff]  }
  0x47   : > { %1386 = vmatpush3.bf16.msra.mxu1 %v1499_v48  ;;  %1323 = vmatprep.subr.bf16.mxu0 %v1500_v49  ;;  %v1534_v13 = vld [vmem:[%s1745_s8 + $0x64] ss:$16 sps:$4 sm:$0xff]   ;;  %v1536_v14 = vld [vmem:[%s1745_s8 + $0x6c] ss:$16 sps:$4 sm:$0xff]   ;;  %v1538_v15 = vld [vmem:[%s1745_s8 + $0x60] ss:$16 sps:$4 sm:$0xff]  }
  0x48   : > { %1387 = vmatprep.subr.bf16.mxu1 %v1501_v50  ;;  %v1539_v16 = vld [vmem:[%s1745_s8 + $0x68] ss:$16 sps:$4 sm:$0xff]   ;;  %v1540_v17 = vld [vmem:[%s1745_s8 + $0x84] ss:$16 sps:$4 sm:$0xff]   ;;  %v1542_v18 = vld [vmem:[%s1745_s8 + $0x8c] ss:$16 sps:$4 sm:$0xff]  }
  0x49   : > { %v1544_v19 = vld [vmem:[%s1745_s8 + $0x80] ss:$16 sps:$4 sm:$0xff]   ;;  %v1545_v20 = vld [vmem:[%s1745_s8 + $0x88] ss:$16 sps:$4 sm:$0xff]   ;;  %v1546_v21 = vld [vmem:[%s1745_s8 + $0xa4] ss:$16 sps:$4 sm:$0xff]  }
  0x4a   : > { %1324 = vmatpush3.bf16.msra.mxu0 %v1502_v51  ;;  %v1548_v22 = vld [vmem:[%s1745_s8 + $0xac] ss:$16 sps:$4 sm:$0xff]   ;;  %v1550_v23 = vld [vmem:[%s1745_s8 + $0xa0] ss:$16 sps:$4 sm:$0xff]   ;;  %v1551_v24 = vld [vmem:[%s1745_s8 + $0xa8] ss:$16 sps:$4 sm:$0xff]  }
  0x4b   : > { %1388 = vmatpush3.bf16.msra.mxu1 %v1503_v52  ;;  %1325 = vmatprep.subr.bf16.mxu0 %v1504_v53  ;;  %v1552_v25 = vld [vmem:[%s1745_s8 + $0xc4] ss:$16 sps:$4 sm:$0xff]   ;;  %v1554_v26 = vld [vmem:[%s1745_s8 + $0xcc] ss:$16 sps:$4 sm:$0xff]   ;;  %v1556_v27 = vld [vmem:[%s1745_s8 + $0xc0] ss:$16 sps:$4 sm:$0xff]  }
  0x4c   : > { %1389 = vmatprep.subr.bf16.mxu1 %v1505_v54  ;;  %v1557_v28 = vld [vmem:[%s1745_s8 + $0xc8] ss:$16 sps:$4 sm:$0xff]   ;;  %v1558_v29 = vld [vmem:[%s1745_s8 + $0xe4] ss:$16 sps:$4 sm:$0xff]   ;;  %v1560_v30 = vld [vmem:[%s1745_s8 + $0xec] ss:$16 sps:$4 sm:$0xff]  }
  0x4d   : > { %v1562_v31 = vld [vmem:[%s1745_s8 + $0xe0] ss:$16 sps:$4 sm:$0xff]   ;;  %v1563_v32 = vld [vmem:[%s1745_s8 + $0xe8] ss:$16 sps:$4 sm:$0xff]  }
  0x4e   : > { %1326 = vmatpush3.bf16.msra.mxu0 %v1506_v55  ;;  %v357_v47 = vld [vmem:[#allocation2 + $0x8] sm:$0xff] }
  0x4f   : > { %1390 = vmatpush3.bf16.msra.mxu1 %v1507_v56  ;;  %1327 = vmatprep.subr.bf16.mxu0 %v1508_v57 }
  0x50   : > { %1391 = vmatprep.subr.bf16.mxu1 %v1509_v58 }
  0x52   : > { %1328 = vmatpush3.bf16.msra.mxu0 %v1510_v59 }
  0x53   : > { %1392 = vmatpush3.bf16.msra.mxu1 %v1511_v60  ;;  %1329 = vmatprep.subr.bf16.mxu0 %v1512_v61  ;;  %v358_v60 = vld [vmem:[#allocation2 + $0x10] sm:$0xff] }
  0x54   : > { %1393 = vmatprep.subr.bf16.mxu1 %v1513_v62 }
  0x56   : > { %1330 = vmatpush3.bf16.msra.mxu0 %v1514_v63 }
  0x57   : > { %1394 = vmatpush3.bf16.msra.mxu1 %v1515_v0 }
  0x59   : > { %853 = vmatmul.mubr.bf16.vlgmr.msra.gmra.mrb[0].mxu0 %v1516_v1  ;;  %v359_v1 = vld [vmem:[#allocation2 + $0x18] sm:$0xff] }
  0x5a   : > { %950 = vmatmul.mubr.bf16.vlgmr.msra.gmra.mrb[0].mxu1 %v1519_v3  ;;  %860 = vmatprep.mubr.bf16.mxu0 %v1522_v5 }
  0x5b   : > { %957 = vmatprep.mubr.bf16.mxu1 %v1524_v6 }
  0x61   : > { %861 = vmatmul.mubr.bf16.gmra.mrb[4].mxu0 %v1526_v7 }
  0x62   : > { %958 = vmatmul.mubr.bf16.gmra.mrb[4].mxu1 %v1527_v8  ;;  %868 = vmatprep.mubr.bf16.mxu0 %v1528_v9 }
  0x63   : > { %965 = vmatprep.mubr.bf16.mxu1 %v1530_v10 }
  0x69   : > { %869 = vmatmul.mubr.bf16.gmra.mrb[8].mxu0 %v1532_v11 }
  0x6a   : > { %966 = vmatmul.mubr.bf16.gmra.mrb[8].mxu1 %v1533_v12  ;;  %876 = vmatprep.mubr.bf16.mxu0 %v1534_v13 }
  0x6b   : > { %973 = vmatprep.mubr.bf16.mxu1 %v1536_v14  ;;  %v360_v14 = vld [vmem:[#allocation2 + $0x20] sm:$0xff] }
  0x71   : > { %877 = vmatmul.mubr.bf16.gmra.mrb[12].mxu0 %v1538_v15 }
  0x72   : > { %974 = vmatmul.mubr.bf16.gmra.mrb[12].mxu1 %v1539_v16  ;;  %884 = vmatprep.mubr.bf16.mxu0 %v1540_v17 }
  0x73   : > { %981 = vmatprep.mubr.bf16.mxu1 %v1542_v18 }
  0x79   : > { %885 = vmatmul.mubr.bf16.gmra.mrb[16].mxu0 %v1544_v19  ;;  %v361_v19 = vld [vmem:[#allocation2 + $0x28] sm:$0xff] }
  0x7a   : > { %982 = vmatmul.mubr.bf16.gmra.mrb[16].mxu1 %v1545_v20  ;;  %892 = vmatprep.mubr.bf16.mxu0 %v1546_v21 }
  0x7b   : > { %989 = vmatprep.mubr.bf16.mxu1 %v1548_v22 }
  0x81   : > { %893 = vmatmul.mubr.bf16.gmra.mrb[20].mxu0 %v1550_v23 }
  0x82   : > { %990 = vmatmul.mubr.bf16.gmra.mrb[20].mxu1 %v1551_v24  ;;  %900 = vmatprep.mubr.bf16.mxu0 %v1552_v25 }
  0x83   : > { %997 = vmatprep.mubr.bf16.mxu1 %v1554_v26 }
  0x89   : > { %901 = vmatmul.mubr.bf16.gmra.mrb[24].mxu0 %v1556_v27 }
  0x8a   : > { %998 = vmatmul.mubr.bf16.gmra.mrb[24].mxu1 %v1557_v28  ;;  %908 = vmatprep.mubr.bf16.mxu0 %v1558_v29 }
  0x8b   : > { %1005 = vmatprep.mubr.bf16.mxu1 %v1560_v30 }
  0x91   : > { %909 = vmatmul.mubr.bf16.gmra.mrb[28].mxu0 %v1562_v31 }
  0x92   : > { %1006 = vmatmul.mubr.bf16.gmra.mrb[28].mxu1 %v1563_v32  ;;  %v362_v32 = vld [vmem:[#allocation2 + $0x30] sm:$0xff] }
 0x12c   : > { %v1331_v33 = vpop.f32.mrb[0].mxu0 }
 0x12d   : > { %v1395_v34 = vpop.f32.mrb[0].mxu1  ;;  %v1332_v35 = vpop.f32.mrb[1].mxu0 }
 0x12e   : > { %v1333_v36 = vadd.f32 %v1332_v35, %v1331_v33  ;;  %v1396_v37 = vpop.f32.mrb[1].mxu1  ;;  %v1334_v38 = vpop.f32.mrb[2].mxu0 }
 0x12f   : > { %v1397_v39 = vadd.f32 %v1396_v37, %v1395_v34  ;;  %v1398_v40 = vpop.f32.mrb[2].mxu1  ;;  %v1335_v41 = vpop.f32.mrb[3].mxu0  ;;  %v363_v37 = vld [vmem:[#allocation2 + $0x38] sm:$0xff] }
 0x130   : > { %v1336_v43 = vadd.f32 %v1335_v41, %v1334_v38  ;;  %v1399_v44 = vpop.f32.mrb[3].mxu1 }
 0x131   : > { %v952_v45 = vadd.f32 %v1397_v39, %v1333_v36  ;;  %v1400_v46 = vadd.f32 %v1399_v44, %v1398_v40 }
 0x133   : > { %v1014_v48 = vadd.f32 %v952_v45, %v356_v42  ;;  %v955_v49 = vadd.f32 %v1400_v46, %v1336_v43 }
 0x134   : > { %v1337_v50 = vpop.f32.mrb[4].mxu0 }
 0x135   : > { %1030 = vst [vmem:[#allocation2] sm:$0xff] %v1014_v48  ;;  %v1015_v51 = vadd.f32 %v955_v49, %v357_v47  ;;  %v1401_v52 = vpop.f32.mrb[4].mxu1  ;;  %v1338_v53 = vpop.f32.mrb[5].mxu0 }
 0x136   : > { %v1339_v54 = vadd.f32 %v1338_v53, %v1337_v50  ;;  %v1402_v55 = vpop.f32.mrb[5].mxu1  ;;  %v1340_v56 = vpop.f32.mrb[6].mxu0  ;;  %v364_v50 = vld [vmem:[#allocation2 + $0x40] sm:$0xff] }
 0x137   : > { %1031 = vst [vmem:[#allocation2 + $0x8] sm:$0xff] %v1015_v51  ;;  %v1403_v57 = vadd.f32 %v1402_v55, %v1401_v52  ;;  %v1404_v58 = vpop.f32.mrb[6].mxu1  ;;  %v1341_v59 = vpop.f32.mrb[7].mxu0  ;;  %v365_v55 = vld [vmem:[#allocation2 + $0x48] sm:$0xff] }
 0x138   : > { %v1342_v61 = vadd.f32 %v1341_v59, %v1340_v56  ;;  %v1405_v62 = vpop.f32.mrb[7].mxu1 }
 0x139   : > { %v960_v63 = vadd.f32 %v1403_v57, %v1339_v54  ;;  %v1406_v0 = vadd.f32 %v1405_v62, %v1404_v58 }
 0x13b   : > { %v1016_v2 = vadd.f32 %v960_v63, %v358_v60  ;;  %v963_v3 = vadd.f32 %v1406_v0, %v1342_v61 }
 0x13c   : > { %v1343_v4 = vpop.f32.mrb[8].mxu0 }
 0x13d   : > { %1032 = vst [vmem:[#allocation2 + $0x10] sm:$0xff] %v1016_v2  ;;  %v1017_v5 = vadd.f32 %v963_v3, %v359_v1  ;;  %v1407_v6 = vpop.f32.mrb[8].mxu1  ;;  %v1344_v7 = vpop.f32.mrb[9].mxu0 }
 0x13e   : > { %v1345_v8 = vadd.f32 %v1344_v7, %v1343_v4  ;;  %v1408_v9 = vpop.f32.mrb[9].mxu1  ;;  %v1346_v10 = vpop.f32.mrb[10].mxu0  ;;  %v366_v4 = vld [vmem:[#allocation2 + $0x50] sm:$0xff] }
 0x13f   : > { %1033 = vst [vmem:[#allocation2 + $0x18] sm:$0xff] %v1017_v5  ;;  %v1409_v11 = vadd.f32 %v1408_v9, %v1407_v6  ;;  %v1410_v12 = vpop.f32.mrb[10].mxu1  ;;  %v1347_v13 = vpop.f32.mrb[11].mxu0  ;;  %v367_v9 = vld [vmem:[#allocation2 + $0x58] sm:$0xff] }
 0x140   : > { %v1348_v15 = vadd.f32 %v1347_v13, %v1346_v10  ;;  %v1411_v16 = vpop.f32.mrb[11].mxu1 }
 0x141   : > { %v968_v17 = vadd.f32 %v1409_v11, %v1345_v8  ;;  %v1412_v18 = vadd.f32 %v1411_v16, %v1410_v12 }
 0x143   : > { %v1018_v20 = vadd.f32 %v968_v17, %v360_v14  ;;  %v971_v21 = vadd.f32 %v1412_v18, %v1348_v15 }
 0x144   : > { %v1349_v22 = vpop.f32.mrb[12].mxu0 }
 0x145   : > { %1034 = vst [vmem:[#allocation2 + $0x20] sm:$0xff] %v1018_v20  ;;  %v1019_v23 = vadd.f32 %v971_v21, %v361_v19  ;;  %v1413_v24 = vpop.f32.mrb[12].mxu1  ;;  %v1350_v25 = vpop.f32.mrb[13].mxu0 }
 0x146   : > { %v1351_v26 = vadd.f32 %v1350_v25, %v1349_v22  ;;  %v1414_v27 = vpop.f32.mrb[13].mxu1  ;;  %v1352_v28 = vpop.f32.mrb[14].mxu0  ;;  %v368_v22 = vld [vmem:[#allocation2 + $0x60] sm:$0xff] }
 0x147   : > { %1035 = vst [vmem:[#allocation2 + $0x28] sm:$0xff] %v1019_v23  ;;  %v1415_v29 = vadd.f32 %v1414_v27, %v1413_v24  ;;  %v1416_v30 = vpop.f32.mrb[14].mxu1  ;;  %v1353_v31 = vpop.f32.mrb[15].mxu0  ;;  %v369_v27 = vld [vmem:[#allocation2 + $0x68] sm:$0xff] }
 0x148   : > { %v1354_v33 = vadd.f32 %v1353_v31, %v1352_v28  ;;  %v1417_v34 = vpop.f32.mrb[15].mxu1 }
 0x149   : > { %v976_v35 = vadd.f32 %v1415_v29, %v1351_v26  ;;  %v1418_v36 = vadd.f32 %v1417_v34, %v1416_v30 }
 0x14b   : > { %v1020_v38 = vadd.f32 %v976_v35, %v362_v32  ;;  %v979_v39 = vadd.f32 %v1418_v36, %v1354_v33 }
 0x14c   : > { %v1355_v40 = vpop.f32.mrb[16].mxu0 }
 0x14d   : > { %1036 = vst [vmem:[#allocation2 + $0x30] sm:$0xff] %v1020_v38  ;;  %v1021_v41 = vadd.f32 %v979_v39, %v363_v37  ;;  %v1419_v42 = vpop.f32.mrb[16].mxu1  ;;  %v1356_v43 = vpop.f32.mrb[17].mxu0 }
 0x14e   : > { %v1357_v44 = vadd.f32 %v1356_v43, %v1355_v40  ;;  %v1420_v45 = vpop.f32.mrb[17].mxu1  ;;  %v1358_v46 = vpop.f32.mrb[18].mxu0  ;;  %v370_v40 = vld [vmem:[#allocation2 + $0x70] sm:$0xff] }
 0x14f   : > { %1037 = vst [vmem:[#allocation2 + $0x38] sm:$0xff] %v1021_v41  ;;  %v1421_v47 = vadd.f32 %v1420_v45, %v1419_v42  ;;  %v1422_v48 = vpop.f32.mrb[18].mxu1  ;;  %v1359_v49 = vpop.f32.mrb[19].mxu0  ;;  %v371_v45 = vld [vmem:[#allocation2 + $0x78] sm:$0xff] }
 0x150   : > { %v1360_v51 = vadd.f32 %v1359_v49, %v1358_v46  ;;  %v1423_v52 = vpop.f32.mrb[19].mxu1  ;;  %v1050_v49 = vld [vmem:[#allocation2] sm:$0xff] (!%p1308_p11) }
 0x151   : > { %v984_v53 = vadd.f32 %v1421_v47, %v1357_v44  ;;  %v1424_v54 = vadd.f32 %v1423_v52, %v1422_v48 }
 0x153   : > { %v1022_v56 = vadd.f32 %v984_v53, %v364_v50  ;;  %v987_v57 = vadd.f32 %v1424_v54, %v1360_v51  ;;  %v1309_v50 = vld [vmem:[%s1881_s2] ss:$0 sm:$0xff] (!%p1308_p11)  ;;  %v1051_v51 = vld [vmem:[#allocation2 + $0x8] sm:$0xff] (!%p1308_p11)  ;;  %v1052_v54 = vld [vmem:[#allocation2 + $0x10] sm:$0xff] (!%p1308_p11) }
 0x154   : > { %v1361_v58 = vpop.f32.mrb[20].mxu0  ;;  %v1073_v52 = vadd.f32 (!%p1308_p11), %v1309_v50, %v1050_v49  ;;  %v1074_v53 = vadd.f32 (!%p1308_p11), %v1309_v50, %v1051_v51 }
 0x155   : > { %1038 = vst [vmem:[#allocation2 + $0x40] sm:$0xff] %v1022_v56  ;;  %v1023_v59 = vadd.f32 %v987_v57, %v365_v55  ;;  %v1425_v60 = vpop.f32.mrb[20].mxu1  ;;  %v1362_v61 = vpop.f32.mrb[21].mxu0  ;;  %v1053_v55 = vld [vmem:[#allocation2 + $0x18] sm:$0xff] (!%p1308_p11)  ;;  %v1054_v56 = vld [vmem:[#allocation2 + $0x20] sm:$0xff] (!%p1308_p11)  ;;  %v1075_v57 = vadd.f32 (!%p1308_p11), %v1309_v50, %v1052_v54 }
 0x156   : > { %v1363_v62 = vadd.f32 %v1362_v61, %v1361_v58  ;;  %v1426_v63 = vpop.f32.mrb[21].mxu1  ;;  %v1364_v0 = vpop.f32.mrb[22].mxu0  ;;  %v1076_v58 = vadd.f32 (!%p1308_p11), %v1309_v50, %v1053_v55  ;;  %v1056_v61 = vld [vmem:[#allocation2 + $0x30] sm:$0xff] (!%p1308_p11) }
 0x157   : > { %1039 = vst [vmem:[#allocation2 + $0x48] sm:$0xff] %v1023_v59  ;;  %v1427_v1 = vadd.f32 %v1426_v63, %v1425_v60  ;;  %v1428_v2 = vpop.f32.mrb[22].mxu1  ;;  %v1365_v3 = vpop.f32.mrb[23].mxu0  ;;  %v1077_v59 = vadd.f32 (!%p1308_p11), %v1309_v50, %v1054_v56  ;;  %v1055_v60 = vld [vmem:[#allocation2 + $0x28] sm:$0xff] (!%p1308_p11)  ;;  %v1089_v63 = vmax.f32 (!%p1308_p11), %v1073_v52, 0.0 }
 0x158   : > { %v1366_v5 = vadd.f32 %v1365_v3, %v1364_v0  ;;  %v1429_v6 = vpop.f32.mrb[23].mxu1  ;;  %v1090_v0 = vmax.f32 (!%p1308_p11), %v1074_v53, 0.0 }
 0x159   : > { %v992_v7 = vadd.f32 %v1427_v1, %v1363_v62  ;;  %v1430_v8 = vadd.f32 %v1429_v6, %v1428_v2  ;;  %v1057_v62 = vld [vmem:[#allocation2 + $0x38] sm:$0xff] (!%p1308_p11)  ;;  %v1078_v1 = vadd.f32 (!%p1308_p11), %v1309_v50, %v1055_v60  ;;  %v1079_v2 = vadd.f32 (!%p1308_p11), %v1309_v50, %v1056_v61  ;;  %1105 = vst [vmem:[%s1882_s3] sm:$0xff] (!%p1308_p11), %v1089_v63 }
 0x15a   : > { %v1091_v6 = vmax.f32 (!%p1308_p11), %v1075_v57, 0.0  ;;  %1106 = vst [vmem:[%s1882_s3 + $0x8] sm:$0xff] (!%p1308_p11), %v1090_v0 }
 0x15b   : > { %v1024_v10 = vadd.f32 %v992_v7, %v366_v4  ;;  %v995_v11 = vadd.f32 %v1430_v8, %v1366_v5  ;;  %v1092_v7 = vmax.f32 (!%p1308_p11), %v1076_v58, 0.0  ;;  %v1093_v8 = vmax.f32 (!%p1308_p11), %v1077_v59, 0.0 }
 0x15c   : > { %v1367_v12 = vpop.f32.mrb[24].mxu0  ;;  %v1058_v3 = vld [vmem:[#allocation2 + $0x40] sm:$0xff] (!%p1308_p11)  ;;  %1107 = vst [vmem:[%s1882_s3 + $0x10] sm:$0xff] (!%p1308_p11), %v1091_v6 }
 0x15d   : > { %1040 = vst [vmem:[#allocation2 + $0x50] sm:$0xff] %v1024_v10  ;;  %v1025_v13 = vadd.f32 %v995_v11, %v367_v9  ;;  %v1431_v14 = vpop.f32.mrb[24].mxu1  ;;  %v1368_v15 = vpop.f32.mrb[25].mxu0  ;;  %v1080_v9 = vadd.f32 (!%p1308_p11), %v1309_v50, %v1057_v62  ;;  %1108 = vst [vmem:[%s1882_s3 + $0x18] sm:$0xff] (!%p1308_p11), %v1092_v7 }
 0x15e   : > { %v1369_v16 = vadd.f32 %v1368_v15, %v1367_v12  ;;  %v1432_v17 = vpop.f32.mrb[25].mxu1  ;;  %v1370_v18 = vpop.f32.mrb[26].mxu0  ;;  %v1059_v4 = vld [vmem:[#allocation2 + $0x48] sm:$0xff] (!%p1308_p11)  ;;  %v1081_v15 = vadd.f32 (!%p1308_p11), %v1309_v50, %v1058_v3  ;;  %1109 = vst [vmem:[%s1882_s3 + $0x20] sm:$0xff] (!%p1308_p11), %v1093_v8 }
 0x15f   : > { %1041 = vst [vmem:[#allocation2 + $0x58] sm:$0xff] %v1025_v13  ;;  %v1433_v19 = vadd.f32 %v1432_v17, %v1431_v14  ;;  %v1434_v20 = vpop.f32.mrb[26].mxu1  ;;  %v1371_v21 = vpop.f32.mrb[27].mxu0  ;;  %v1094_v13 = vmax.f32 (!%p1308_p11), %v1078_v1, 0.0  ;;  %v1095_v14 = vmax.f32 (!%p1308_p11), %v1079_v2, 0.0 }
 0x160   : > { %v1372_v23 = vadd.f32 %v1371_v21, %v1370_v18  ;;  %v1435_v24 = vpop.f32.mrb[27].mxu1 }
 0x161   : > { %v1000_v25 = vadd.f32 %v1433_v19, %v1369_v16  ;;  %v1436_v26 = vadd.f32 %v1435_v24, %v1434_v20  ;;  %v1082_v16 = vadd.f32 (!%p1308_p11), %v1309_v50, %v1059_v4  ;;  %v1096_v19 = vmax.f32 (!%p1308_p11), %v1080_v9, 0.0  ;;  %1110 = vst [vmem:[%s1882_s3 + $0x28] sm:$0xff] (!%p1308_p11), %v1094_v13  ;;  %1111 = vst [vmem:[%s1882_s3 + $0x30] sm:$0xff] (!%p1308_p11), %v1095_v14 }
 0x163   : > { %v1026_v28 = vadd.f32 %v1000_v25, %v368_v22  ;;  %v1003_v29 = vadd.f32 %v1436_v26, %v1372_v23  ;;  %v1097_v23 = vmax.f32 (!%p1308_p11), %v1081_v15, 0.0  ;;  %v1098_v24 = vmax.f32 (!%p1308_p11), %v1082_v16, 0.0  ;;  %1112 = vst [vmem:[%s1882_s3 + $0x38] sm:$0xff] (!%p1308_p11), %v1096_v19 }
 0x164   : > { %v1373_v30 = vpop.f32.mrb[28].mxu0  ;;  %v1060_v5 = vld [vmem:[#allocation2 + $0x50] sm:$0xff] (!%p1308_p11) }
 0x165   : > { %1042 = vst [vmem:[#allocation2 + $0x60] sm:$0xff] %v1026_v28  ;;  %v1027_v31 = vadd.f32 %v1003_v29, %v369_v27  ;;  %v1437_v32 = vpop.f32.mrb[28].mxu1  ;;  %v1374_v33 = vpop.f32.mrb[29].mxu0  ;;  %v1083_v20 = vadd.f32 (!%p1308_p11), %v1309_v50, %v1060_v5  ;;  %1113 = vst [vmem:[%s1882_s3 + $0x40] sm:$0xff] (!%p1308_p11), %v1097_v23 }
 0x166   : > { %v1375_v34 = vadd.f32 %v1374_v33, %v1373_v30  ;;  %v1438_v35 = vpop.f32.mrb[29].mxu1  ;;  %v1376_v36 = vpop.f32.mrb[30].mxu0  ;;  %v1061_v10 = vld [vmem:[#allocation2 + $0x58] sm:$0xff] (!%p1308_p11)  ;;  %1114 = vst [vmem:[%s1882_s3 + $0x48] sm:$0xff] (!%p1308_p11), %v1098_v24 }
 0x167   : > { %1043 = vst [vmem:[#allocation2 + $0x68] sm:$0xff] %v1027_v31  ;;  %v1439_v37 = vadd.f32 %v1438_v35, %v1437_v32  ;;  %v1440_v38 = vpop.f32.mrb[30].mxu1  ;;  %v1377_v39 = vpop.f32.mrb[31].mxu0  ;;  %v1084_v21 = vadd.f32 (!%p1308_p11), %v1309_v50, %v1061_v10  ;;  %v1099_v27 = vmax.f32 (!%p1308_p11), %v1083_v20, 0.0 }
 0x168   : > { %v1378_v41 = vadd.f32 %v1377_v39, %v1376_v36  ;;  %v1441_v42 = vpop.f32.mrb[31].mxu1 }
 0x169   : > { %v1008_v43 = vadd.f32 %v1439_v37, %v1375_v34  ;;  %v1442_v44 = vadd.f32 %v1441_v42, %v1440_v38  ;;  %1049 = sbr.rel (%p1308_p11) target bundleno = 380 (0x17c), region = 63  ;;  %v1100_v28 = vmax.f32 (!%p1308_p11), %v1084_v21, 0.0  ;;  %1115 = vst [vmem:[%s1882_s3 + $0x50] sm:$0xff] (!%p1308_p11), %v1099_v27 }
 0x16b   : > { %v1028_v46 = vadd.f32 %v1008_v43, %v370_v40  ;;  %v1011_v47 = vadd.f32 %v1442_v44, %v1378_v41  ;;  %1116 = vst [vmem:[%s1882_s3 + $0x58] sm:$0xff] (!%p1308_p11), %v1100_v28 }
 0x16c   : > { %v1062_v11 = vld [vmem:[#allocation2 + $0x60] sm:$0xff] (!%p1308_p11) }
 0x16d   : > { %1044 = vst [vmem:[#allocation2 + $0x70] sm:$0xff] %v1028_v46  ;;  %v1029_v48 = vadd.f32 %v1011_v47, %v371_v45  ;;  %v1085_v22 = vadd.f32 (!%p1308_p11), %v1309_v50, %v1062_v11 }
 0x16e   : > { %v1063_v12 = vld [vmem:[#allocation2 + $0x68] sm:$0xff] (!%p1308_p11) }
 0x16f   : > { %1045 = vst [vmem:[#allocation2 + $0x78] sm:$0xff] %v1029_v48  ;;  %v1086_v25 = vadd.f32 (!%p1308_p11), %v1309_v50, %v1063_v12  ;;  %v1101_v29 = vmax.f32 (!%p1308_p11), %v1085_v22, 0.0 }
 0x171   : > { %v1102_v31 = vmax.f32 %v1086_v25, 0.0  ;;  %1117 = vst [vmem:[%s1882_s3 + $0x60] sm:$0xff] %v1101_v29 }
 0x173   : > { %1118 = vst [vmem:[%s1882_s3 + $0x68] sm:$0xff] %v1102_v31 }
 0x174   : > { %v1064_v17 = vld [vmem:[#allocation2 + $0x70] sm:$0xff] }
 0x175   : > { %v1087_v26 = vadd.f32 %v1309_v50, %v1064_v17 }
 0x176   : > { %v1065_v18 = vld [vmem:[#allocation2 + $0x78] sm:$0xff] }
 0x177   : > { %v1088_v30 = vadd.f32 %v1309_v50, %v1065_v18  ;;  %v1103_v32 = vmax.f32 %v1087_v26, 0.0 }
 0x179   : > { %v1104_v33 = vmax.f32 %v1088_v30, 0.0  ;;  %1119 = vst [vmem:[%s1882_s3 + $0x70] sm:$0xff] %v1103_v32 }
 0x17b   : > { %1120 = vst [vmem:[%s1882_s3 + $0x78] sm:$0xff] %v1104_v33 }
 0x17c PF: > { %s13_s16 = sadd.s32 1, %s1602_s16   ;;  %s1883_s12 = smov %s1590_s13 }
 0x17d   : > { %p10_p12 = scmp.ge.s32.totalorder %s13_s16, 6   ;;  %s1884_s13 = smov %s1660_s20 }
 0x17e   : > { %s1885_s14 = smov %s1598_s15  ;;  %s1886_s15 = smov %s1888_s17 }
 0x17f   :  { %12 = sbr.rel (!%p10_p12) target bundleno = 3 (0x3), region = 104 }

// kernel: resnet_forward.15
= control target key start
LH: loop header
LB: loop body
LE: loop exit
PB: predicated region body
PF: predicated region fallthrough
CT: control target
= control target key end

     0   :  { %s1741_s15 = smov 0   ;;  %s1743_s16 = smov 0   ;;  %s2061_s0 = inlined_call_operand.vmem [shape: bf16[128,2048], index: 0, kind: input, shape index: {}]   ;;  %s2062_s1 = inlined_call_operand.vmem [shape: bf16[2048,128], index: 1, kind: input, shape index: {}]   ;;  %s2063_s2 = inlined_call_operand.vmem [shape: f32[1,128], index: 2, kind: input, shape index: {}]   ;;  %s2064_s3 = inlined_call_operand.vmem [shape: f32[128,128], index: 3, kind: input, shape index: {}]   ;;  %s2065_s4 = inlined_call_operand.vmem [shape: f32[128,128], index: 4, kind: output, shape index: {}]  }
   0x1   :  { %s1745_s17 = smov 0   ;;  %s1747_s18 = smov 0  }
   0x2   :  { %s1749_s19 = smov 0  }
   0x3 LB: > { %s26_s20 = sadd.s32 1, %s1709_s18  ;;  %p49_p1 = scmp.ne.s32.totalorder %s1701_s16, %s1697_s15  ;;  %s1713_s19 = sphi %s1749_s19, %s14_s19   ;;  %s1709_s18 = sphi %s1747_s18, %s2069_s18   ;;  %s1705_s17 = sphi %s1745_s17, %s2068_s17   ;;  %s1701_s16 = sphi %s1743_s16, %s2067_s16   ;;  %s1697_s15 = sphi %s1741_s15, %s2066_s15  }
   0x4   : > { %p27_p0 = scmp.ge.s32.totalorder %s26_s20, 4  ;;  %p50_p2 = scmp.eq.s32.totalorder %s1713_s19, 0 }
   0x5   : > { %s42_s22 = sadd.s32 1, %s1701_s16  ;;  %p1346_p5 = scmp.ge.s32.totalorder %s1713_s19, 4 }
   0x6   : > { %s2071_s20 = smov (%p27_p0, %s26_s20), 0  ;;  %p51_p3 = por %p50_p2, %p49_p1 }
   0x7   : > { %s38_s21 = ssub.s32 %s1709_s18, %s2071_s20  ;;  %203 = sbr.rel (%p1346_p5) target bundleno = 34 (0x22), region = 24 }
   0x8   : > { %p40_p4 = scmp.eq.s32.totalorder %s38_s21, 0 }
   0xa   : > { %s1776_s23 = scalar_select %p40_p4, %s1701_s16, %s42_s22  }
   0xe   : > { %206 = sbr.rel (!%p51_p3) target bundleno = 34 (0x22), region = 28  ;;  %s208_s24 = sand.u32 (%p51_p3), 1, %s1701_s16  }
   0xf   : > { %s1425_s25 = sshll.u32 (%p51_p3), %s1709_s18, 4  ;;  %s1347_s26 = sshll.u32 (%p51_p3), %s208_s24, 8 }
  0x10   : > { %s1784_s29 = scalar_lea.vmem (%p51_p3), %s2061_s0, %s1425_s25  ;;  %s1789_s30 = scalar_lea.vmem (%p51_p3), [#allocation3], %s1347_s26 }
  0x11   : > { %v229_v0 = vld [vmem:[%s1784_s29] sm:$0xff] (%p51_p3)  ;;  %v231_v1 = vld [vmem:[%s1784_s29 + $0x8] sm:$0xff] (%p51_p3) }
  0x12   : > { %v233_v2 = vld [vmem:[%s1784_s29 + $0x40] sm:$0xff] (%p51_p3)  ;;  %230 = vst [vmem:[%s1789_s30] sm:$0xff] (%p51_p3), %v229_v0  ;;  %232 = vst [vmem:[%s1789_s30 + $0x8] sm:$0xff] (%p51_p3), %v231_v1  ;;  %v235_v3 = vld [vmem:[%s1784_s29 + $0x48] sm:$0xff] (%p51_p3) }
  0x13   : > { %234 = vst [vmem:[%s1789_s30 + $0x10] sm:$0xff] (%p51_p3), %v233_v2  ;;  %v237_v4 = vld [vmem:[%s1784_s29 + $0x80] sm:$0xff] (%p51_p3)  ;;  %v239_v5 = vld [vmem:[%s1784_s29 + $0x88] sm:$0xff] (%p51_p3)  ;;  %236 = vst [vmem:[%s1789_s30 + $0x18] sm:$0xff] (%p51_p3), %v235_v3 }
  0x14   : > { %238 = vst [vmem:[%s1789_s30 + $0x20] sm:$0xff] (%p51_p3), %v237_v4  ;;  %240 = vst [vmem:[%s1789_s30 + $0x28] sm:$0xff] (%p51_p3), %v239_v5  ;;  %v241_v6 = vld [vmem:[%s1784_s29 + $0xc0] sm:$0xff] (%p51_p3)  ;;  %v243_v7 = vld [vmem:[%s1784_s29 + $0xc8] sm:$0xff] (%p51_p3) }
  0x15   : > { %v245_v8 = vld [vmem:[%s1784_s29 + $0x100] sm:$0xff]  ;;  %242 = vst [vmem:[%s1789_s30 + $0x30] sm:$0xff] %v241_v6  ;;  %244 = vst [vmem:[%s1789_s30 + $0x38] sm:$0xff] %v243_v7  ;;  %v247_v9 = vld [vmem:[%s1784_s29 + $0x108] sm:$0xff] }
  0x16   : > { %246 = vst [vmem:[%s1789_s30 + $0x40] sm:$0xff] %v245_v8  ;;  %v249_v10 = vld [vmem:[%s1784_s29 + $0x140] sm:$0xff]  ;;  %v251_v11 = vld [vmem:[%s1784_s29 + $0x148] sm:$0xff]  ;;  %248 = vst [vmem:[%s1789_s30 + $0x48] sm:$0xff] %v247_v9 }
  0x17   : > { %250 = vst [vmem:[%s1789_s30 + $0x50] sm:$0xff] %v249_v10  ;;  %252 = vst [vmem:[%s1789_s30 + $0x58] sm:$0xff] %v251_v11  ;;  %v253_v12 = vld [vmem:[%s1784_s29 + $0x180] sm:$0xff]  ;;  %v255_v13 = vld [vmem:[%s1784_s29 + $0x188] sm:$0xff] }
  0x18   : > { %v257_v14 = vld [vmem:[%s1784_s29 + $0x1c0] sm:$0xff]  ;;  %254 = vst [vmem:[%s1789_s30 + $0x60] sm:$0xff] %v253_v12  ;;  %256 = vst [vmem:[%s1789_s30 + $0x68] sm:$0xff] %v255_v13  ;;  %v259_v15 = vld [vmem:[%s1784_s29 + $0x1c8] sm:$0xff] }
  0x19   : > { %258 = vst [vmem:[%s1789_s30 + $0x70] sm:$0xff] %v257_v14  ;;  %v261_v16 = vld [vmem:[%s1784_s29 + $0x200] sm:$0xff]  ;;  %v263_v17 = vld [vmem:[%s1784_s29 + $0x208] sm:$0xff]  ;;  %260 = vst [vmem:[%s1789_s30 + $0x78] sm:$0xff] %v259_v15 }
  0x1a   : > { %262 = vst [vmem:[%s1789_s30 + $0x80] sm:$0xff] %v261_v16  ;;  %264 = vst [vmem:[%s1789_s30 + $0x88] sm:$0xff] %v263_v17  ;;  %v265_v18 = vld [vmem:[%s1784_s29 + $0x240] sm:$0xff]  ;;  %v267_v19 = vld [vmem:[%s1784_s29 + $0x248] sm:$0xff] }
  0x1b   : > { %v269_v20 = vld [vmem:[%s1784_s29 + $0x280] sm:$0xff]  ;;  %266 = vst [vmem:[%s1789_s30 + $0x90] sm:$0xff] %v265_v18  ;;  %268 = vst [vmem:[%s1789_s30 + $0x98] sm:$0xff] %v267_v19  ;;  %v271_v21 = vld [vmem:[%s1784_s29 + $0x288] sm:$0xff] }
  0x1c   : > { %270 = vst [vmem:[%s1789_s30 + $0xa0] sm:$0xff] %v269_v20  ;;  %v273_v22 = vld [vmem:[%s1784_s29 + $0x2c0] sm:$0xff]  ;;  %v275_v23 = vld [vmem:[%s1784_s29 + $0x2c8] sm:$0xff]  ;;  %272 = vst [vmem:[%s1789_s30 + $0xa8] sm:$0xff] %v271_v21 }
  0x1d   : > { %274 = vst [vmem:[%s1789_s30 + $0xb0] sm:$0xff] %v273_v22  ;;  %276 = vst [vmem:[%s1789_s30 + $0xb8] sm:$0xff] %v275_v23  ;;  %v277_v24 = vld [vmem:[%s1784_s29 + $0x300] sm:$0xff]  ;;  %v279_v25 = vld [vmem:[%s1784_s29 + $0x308] sm:$0xff] }
  0x1e   : > { %v281_v26 = vld [vmem:[%s1784_s29 + $0x340] sm:$0xff]  ;;  %278 = vst [vmem:[%s1789_s30 + $0xc0] sm:$0xff] %v277_v24  ;;  %280 = vst [vmem:[%s1789_s30 + $0xc8] sm:$0xff] %v279_v25  ;;  %v283_v27 = vld [vmem:[%s1784_s29 + $0x348] sm:$0xff] }
  0x1f   : > { %282 = vst [vmem:[%s1789_s30 + $0xd0] sm:$0xff] %v281_v26  ;;  %v285_v28 = vld [vmem:[%s1784_s29 + $0x380] sm:$0xff]  ;;  %v287_v29 = vld [vmem:[%s1784_s29 + $0x388] sm:$0xff]  ;;  %284 = vst [vmem:[%s1789_s30 + $0xd8] sm:$0xff] %v283_v27 }
  0x20   : > { %286 = vst [vmem:[%s1789_s30 + $0xe0] sm:$0xff] %v285_v28  ;;  %288 = vst [vmem:[%s1789_s30 + $0xe8] sm:$0xff] %v287_v29  ;;  %v289_v30 = vld [vmem:[%s1784_s29 + $0x3c0] sm:$0xff]  ;;  %v291_v31 = vld [vmem:[%s1784_s29 + $0x3c8] sm:$0xff] }
  0x21   : > { %290 = vst [vmem:[%s1789_s30 + $0xf0] sm:$0xff] %v289_v30  ;;  %292 = vst [vmem:[%s1789_s30 + $0xf8] sm:$0xff] %v291_v31 }
  0x22 PF: > { %p1350_p6 = scmp.ge.s32.totalorder %s1713_s19, 1  ;;  %p309_p7 = scmp.lt.s32.totalorder %s1713_s19, 5 }
  0x24   : > { %p310_p8 = pnand %p1350_p6, %p309_p7 }
  0x25   : > { %s316_s5 = sand.u32 (!%p310_p8), 1, %s1697_s15   ;;  %s1352_s6 = sshll.u32 (!%p310_p8), %s1705_s17, 6 }
  0x26   : > { %313 = sbr.rel (%p310_p8) target bundleno = 382 (0x17e), region = 55  ;;  %s1351_s7 = sshll.u32 (!%p310_p8), %s316_s5, 8 }
  0x27   : > { %p366_p9 = scmp.lt.s32.totalorder (!%p310_p8), %s1352_s6, 255  ;;  %s1861_s12 = scalar_lea.vmem (!%p310_p8), [#allocation3], %s1351_s7 }
  0x28   : > { %p1354_p10 = scmp.ne.s32.totalorder (!%p310_p8), %s1705_s17, 0 }
  0x2d   : > { %s2073_s6 = smov (!%p366_p9, %s1352_s6), 255  ;;  %399 = sbr.rel (%p1354_p10) target bundleno = 55 (0x37), region = 63 }
  0x2e   : > { %s1353_s8 = sshll.u32 %s2073_s6, 2  ;;  %v1715_v32 = vmov (!%p1354_p10), 0.0  }
  0x2f   : > { %s1859_s11 = scalar_lea.vmem %s2062_s1, %s1353_s8  ;;  %400 = vst [vmem:[#allocation2] sm:$0xff] (!%p1354_p10), %v1715_v32  ;;  %401 = vst [vmem:[#allocation2 + $0x8] sm:$0xff] (!%p1354_p10), %v1715_v32 }
  0x30   : > { %402 = vst [vmem:[#allocation2 + $0x10] sm:$0xff] (!%p1354_p10), %v1715_v32  ;;  %403 = vst [vmem:[#allocation2 + $0x18] sm:$0xff] (!%p1354_p10), %v1715_v32 }
  0x31   : > { %404 = vst [vmem:[#allocation2 + $0x20] sm:$0xff] (!%p1354_p10), %v1715_v32  ;;  %405 = vst [vmem:[#allocation2 + $0x28] sm:$0xff] (!%p1354_p10), %v1715_v32 }
  0x32   : > { %406 = vst [vmem:[#allocation2 + $0x30] sm:$0xff] (!%p1354_p10), %v1715_v32  ;;  %407 = vst [vmem:[#allocation2 + $0x38] sm:$0xff] (!%p1354_p10), %v1715_v32 }
  0x33   : > { %408 = vst [vmem:[#allocation2 + $0x40] sm:$0xff] (!%p1354_p10), %v1715_v32  ;;  %409 = vst [vmem:[#allocation2 + $0x48] sm:$0xff] (!%p1354_p10), %v1715_v32 }
  0x34   : > { %410 = vst [vmem:[#allocation2 + $0x50] sm:$0xff] %v1715_v32  ;;  %411 = vst [vmem:[#allocation2 + $0x58] sm:$0xff] %v1715_v32 }
  0x35   : > { %412 = vst [vmem:[#allocation2 + $0x60] sm:$0xff] %v1715_v32  ;;  %413 = vst [vmem:[#allocation2 + $0x68] sm:$0xff] %v1715_v32 }
  0x36   : > { %414 = vst [vmem:[#allocation2 + $0x70] sm:$0xff] %v1715_v32  ;;  %415 = vst [vmem:[#allocation2 + $0x78] sm:$0xff] %v1715_v32 }
  0x37 PF: > { %v1595_v33 = vld [vmem:[%s1859_s11 + $0x40] sm:$0xff]   ;;  %v1599_v37 = vld [vmem:[%s1859_s11 + $0x48] sm:$0xff]   ;;  %v1603_v41 = vld [vmem:[%s1859_s11 + $0x50] sm:$0xff]   ;;  %p1419_p11 = scmp.ne.s32.totalorder %s1705_s17, 3 }
  0x38   : > { %v1596_v34 = vld [vmem:[%s1859_s11 + $0xc0] sm:$0xff]   ;;  %1426 = vmatprep.subr.bf16.mxu0 %v1595_v33  ;;  %v1600_v38 = vld [vmem:[%s1859_s11 + $0xc8] sm:$0xff]   ;;  %v1604_v42 = vld [vmem:[%s1859_s11 + $0xd0] sm:$0xff]  }
  0x39   : > { %v1597_v35 = vld [vmem:[%s1859_s11] sm:$0xff]   ;;  %1490 = vmatprep.subr.bf16.mxu1 %v1596_v34  ;;  %v1601_v39 = vld [vmem:[%s1859_s11 + $0x8] sm:$0xff]   ;;  %v1605_v43 = vld [vmem:[%s1859_s11 + $0x10] sm:$0xff]  }
  0x3a   : > { %v1598_v36 = vld [vmem:[%s1859_s11 + $0x80] sm:$0xff]   ;;  %1427 = vmatpush3.bf16.msra.mxu0 %v1597_v35  ;;  %v1602_v40 = vld [vmem:[%s1859_s11 + $0x88] sm:$0xff]   ;;  %v1606_v44 = vld [vmem:[%s1859_s11 + $0x90] sm:$0xff]  }
  0x3b   : > { %1491 = vmatpush3.bf16.msra.mxu1 %v1598_v36  ;;  %1428 = vmatprep.subr.bf16.mxu0 %v1599_v37  ;;  %v1607_v45 = vld [vmem:[%s1859_s11 + $0x58] sm:$0xff]   ;;  %v1611_v49 = vld [vmem:[%s1859_s11 + $0x60] sm:$0xff]   ;;  %v1615_v53 = vld [vmem:[%s1859_s11 + $0x68] sm:$0xff]  }
  0x3c   : > { %1492 = vmatprep.subr.bf16.mxu1 %v1600_v38  ;;  %v1608_v46 = vld [vmem:[%s1859_s11 + $0xd8] sm:$0xff]   ;;  %v1612_v50 = vld [vmem:[%s1859_s11 + $0xe0] sm:$0xff]   ;;  %v1616_v54 = vld [vmem:[%s1859_s11 + $0xe8] sm:$0xff]  }
  0x3d   : > { %v1609_v47 = vld [vmem:[%s1859_s11 + $0x18] sm:$0xff]   ;;  %v1613_v51 = vld [vmem:[%s1859_s11 + $0x20] sm:$0xff]   ;;  %v1617_v55 = vld [vmem:[%s1859_s11 + $0x28] sm:$0xff]  }
  0x3e   : > { %1429 = vmatpush3.bf16.msra.mxu0 %v1601_v39  ;;  %v1610_v48 = vld [vmem:[%s1859_s11 + $0x98] sm:$0xff]   ;;  %v1614_v52 = vld [vmem:[%s1859_s11 + $0xa0] sm:$0xff]   ;;  %v1618_v56 = vld [vmem:[%s1859_s11 + $0xa8] sm:$0xff]  }
  0x3f   : > { %1493 = vmatpush3.bf16.msra.mxu1 %v1602_v40  ;;  %1430 = vmatprep.subr.bf16.mxu0 %v1603_v41  ;;  %v1619_v57 = vld [vmem:[%s1859_s11 + $0x70] sm:$0xff]   ;;  %v1623_v61 = vld [vmem:[%s1859_s11 + $0x78] sm:$0xff]  }
  0x40   : > { %1494 = vmatprep.subr.bf16.mxu1 %v1604_v42  ;;  %v1620_v58 = vld [vmem:[%s1859_s11 + $0xf0] sm:$0xff]   ;;  %v1624_v62 = vld [vmem:[%s1859_s11 + $0xf8] sm:$0xff]   ;;  %v416_v42 = vld [vmem:[#allocation2] sm:$0xff] }
  0x41   : > { %v1621_v59 = vld [vmem:[%s1859_s11 + $0x30] sm:$0xff]   ;;  %v1625_v63 = vld [vmem:[%s1859_s11 + $0x38] sm:$0xff]  }
  0x42   : > { %1431 = vmatpush3.bf16.msra.mxu0 %v1605_v43  ;;  %v1622_v60 = vld [vmem:[%s1859_s11 + $0xb0] sm:$0xff]   ;;  %v1626_v0 = vld [vmem:[%s1859_s11 + $0xb8] sm:$0xff]  }
  0x43   : > { %1495 = vmatpush3.bf16.msra.mxu1 %v1606_v44  ;;  %1432 = vmatprep.subr.bf16.mxu0 %v1607_v45  ;;  %v1627_v1 = vld [vmem:[%s1861_s12] ss:$16 sps:$4 sm:$0xff]   ;;  %v1629_v2 = vld [vmem:[%s1861_s12 + $0x4] ss:$16 sps:$4 sm:$0xff]   ;;  %v1630_v3 = vld [vmem:[%s1861_s12 + $0x8] ss:$16 sps:$4 sm:$0xff]  }
  0x44   : > { %1496 = vmatprep.subr.bf16.mxu1 %v1608_v46  ;;  %v1632_v4 = vld [vmem:[%s1861_s12 + $0xc] ss:$16 sps:$4 sm:$0xff]   ;;  %912 = vmatprep.mubr.bf16.mxu0 %v1629_v2  ;;  %v1633_v5 = vld [vmem:[%s1861_s12 + $0x24] ss:$16 sps:$4 sm:$0xff]   ;;  %v1637_v7 = vld [vmem:[%s1861_s12 + $0x20] ss:$16 sps:$4 sm:$0xff]  }
  0x45   : > { %1009 = vmatprep.mubr.bf16.mxu1 %v1632_v4  ;;  %v1635_v6 = vld [vmem:[%s1861_s12 + $0x2c] ss:$16 sps:$4 sm:$0xff]   ;;  %v1638_v8 = vld [vmem:[%s1861_s12 + $0x28] ss:$16 sps:$4 sm:$0xff]   ;;  %v1639_v9 = vld [vmem:[%s1861_s12 + $0x44] ss:$16 sps:$4 sm:$0xff]  }
  0x46   : > { %1433 = vmatpush3.bf16.msra.mxu0 %v1609_v47  ;;  %v1641_v10 = vld [vmem:[%s1861_s12 + $0x4c] ss:$16 sps:$4 sm:$0xff]   ;;  %v1643_v11 = vld [vmem:[%s1861_s12 + $0x40] ss:$16 sps:$4 sm:$0xff]   ;;  %v1644_v12 = vld [vmem:[%s1861_s12 + $0x48] ss:$16 sps:$4 sm:$0xff]  }
  0x47   : > { %1497 = vmatpush3.bf16.msra.mxu1 %v1610_v48  ;;  %1434 = vmatprep.subr.bf16.mxu0 %v1611_v49  ;;  %v1645_v13 = vld [vmem:[%s1861_s12 + $0x64] ss:$16 sps:$4 sm:$0xff]   ;;  %v1647_v14 = vld [vmem:[%s1861_s12 + $0x6c] ss:$16 sps:$4 sm:$0xff]   ;;  %v1649_v15 = vld [vmem:[%s1861_s12 + $0x60] ss:$16 sps:$4 sm:$0xff]  }
  0x48   : > { %1498 = vmatprep.subr.bf16.mxu1 %v1612_v50  ;;  %v1650_v16 = vld [vmem:[%s1861_s12 + $0x68] ss:$16 sps:$4 sm:$0xff]   ;;  %v1651_v17 = vld [vmem:[%s1861_s12 + $0x84] ss:$16 sps:$4 sm:$0xff]   ;;  %v1653_v18 = vld [vmem:[%s1861_s12 + $0x8c] ss:$16 sps:$4 sm:$0xff]  }
  0x49   : > { %v1655_v19 = vld [vmem:[%s1861_s12 + $0x80] ss:$16 sps:$4 sm:$0xff]   ;;  %v1656_v20 = vld [vmem:[%s1861_s12 + $0x88] ss:$16 sps:$4 sm:$0xff]   ;;  %v1657_v21 = vld [vmem:[%s1861_s12 + $0xa4] ss:$16 sps:$4 sm:$0xff]  }
  0x4a   : > { %1435 = vmatpush3.bf16.msra.mxu0 %v1613_v51  ;;  %v1659_v22 = vld [vmem:[%s1861_s12 + $0xac] ss:$16 sps:$4 sm:$0xff]   ;;  %v1661_v23 = vld [vmem:[%s1861_s12 + $0xa0] ss:$16 sps:$4 sm:$0xff]   ;;  %v1662_v24 = vld [vmem:[%s1861_s12 + $0xa8] ss:$16 sps:$4 sm:$0xff]  }
  0x4b   : > { %1499 = vmatpush3.bf16.msra.mxu1 %v1614_v52  ;;  %1436 = vmatprep.subr.bf16.mxu0 %v1615_v53  ;;  %v1663_v25 = vld [vmem:[%s1861_s12 + $0xc4] ss:$16 sps:$4 sm:$0xff]   ;;  %v1665_v26 = vld [vmem:[%s1861_s12 + $0xcc] ss:$16 sps:$4 sm:$0xff]   ;;  %v1667_v27 = vld [vmem:[%s1861_s12 + $0xc0] ss:$16 sps:$4 sm:$0xff]  }
  0x4c   : > { %1500 = vmatprep.subr.bf16.mxu1 %v1616_v54  ;;  %v1668_v28 = vld [vmem:[%s1861_s12 + $0xc8] ss:$16 sps:$4 sm:$0xff]   ;;  %v1669_v29 = vld [vmem:[%s1861_s12 + $0xe4] ss:$16 sps:$4 sm:$0xff]   ;;  %v1671_v30 = vld [vmem:[%s1861_s12 + $0xec] ss:$16 sps:$4 sm:$0xff]  }
  0x4d   : > { %v1673_v31 = vld [vmem:[%s1861_s12 + $0xe0] ss:$16 sps:$4 sm:$0xff]   ;;  %v1674_v32 = vld [vmem:[%s1861_s12 + $0xe8] ss:$16 sps:$4 sm:$0xff]  }
  0x4e   : > { %1437 = vmatpush3.bf16.msra.mxu0 %v1617_v55  ;;  %v417_v47 = vld [vmem:[#allocation2 + $0x8] sm:$0xff] }
  0x4f   : > { %1501 = vmatpush3.bf16.msra.mxu1 %v1618_v56  ;;  %1438 = vmatprep.subr.bf16.mxu0 %v1619_v57 }
  0x50   : > { %1502 = vmatprep.subr.bf16.mxu1 %v1620_v58 }
  0x52   : > { %1439 = vmatpush3.bf16.msra.mxu0 %v1621_v59 }
  0x53   : > { %1503 = vmatpush3.bf16.msra.mxu1 %v1622_v60  ;;  %1440 = vmatprep.subr.bf16.mxu0 %v1623_v61  ;;  %v418_v60 = vld [vmem:[#allocation2 + $0x10] sm:$0xff] }
  0x54   : > { %1504 = vmatprep.subr.bf16.mxu1 %v1624_v62 }
  0x56   : > { %1441 = vmatpush3.bf16.msra.mxu0 %v1625_v63 }
  0x57   : > { %1505 = vmatpush3.bf16.msra.mxu1 %v1626_v0 }
  0x59   : > { %913 = vmatmul.mubr.bf16.vlgmr.msra.gmra.mrb[0].mxu0 %v1627_v1  ;;  %v419_v1 = vld [vmem:[#allocation2 + $0x18] sm:$0xff] }
  0x5a   : > { %1010 = vmatmul.mubr.bf16.vlgmr.msra.gmra.mrb[0].mxu1 %v1630_v3  ;;  %920 = vmatprep.mubr.bf16.mxu0 %v1633_v5 }
  0x5b   : > { %1017 = vmatprep.mubr.bf16.mxu1 %v1635_v6 }
  0x61   : > { %921 = vmatmul.mubr.bf16.gmra.mrb[4].mxu0 %v1637_v7 }
  0x62   : > { %1018 = vmatmul.mubr.bf16.gmra.mrb[4].mxu1 %v1638_v8  ;;  %928 = vmatprep.mubr.bf16.mxu0 %v1639_v9 }
  0x63   : > { %1025 = vmatprep.mubr.bf16.mxu1 %v1641_v10 }
  0x69   : > { %929 = vmatmul.mubr.bf16.gmra.mrb[8].mxu0 %v1643_v11 }
  0x6a   : > { %1026 = vmatmul.mubr.bf16.gmra.mrb[8].mxu1 %v1644_v12  ;;  %936 = vmatprep.mubr.bf16.mxu0 %v1645_v13 }
  0x6b   : > { %1033 = vmatprep.mubr.bf16.mxu1 %v1647_v14  ;;  %v420_v14 = vld [vmem:[#allocation2 + $0x20] sm:$0xff] }
  0x71   : > { %937 = vmatmul.mubr.bf16.gmra.mrb[12].mxu0 %v1649_v15 }
  0x72   : > { %1034 = vmatmul.mubr.bf16.gmra.mrb[12].mxu1 %v1650_v16  ;;  %944 = vmatprep.mubr.bf16.mxu0 %v1651_v17 }
  0x73   : > { %1041 = vmatprep.mubr.bf16.mxu1 %v1653_v18 }
  0x79   : > { %945 = vmatmul.mubr.bf16.gmra.mrb[16].mxu0 %v1655_v19  ;;  %v421_v19 = vld [vmem:[#allocation2 + $0x28] sm:$0xff] }
  0x7a   : > { %1042 = vmatmul.mubr.bf16.gmra.mrb[16].mxu1 %v1656_v20  ;;  %952 = vmatprep.mubr.bf16.mxu0 %v1657_v21 }
  0x7b   : > { %1049 = vmatprep.mubr.bf16.mxu1 %v1659_v22 }
  0x81   : > { %953 = vmatmul.mubr.bf16.gmra.mrb[20].mxu0 %v1661_v23 }
  0x82   : > { %1050 = vmatmul.mubr.bf16.gmra.mrb[20].mxu1 %v1662_v24  ;;  %960 = vmatprep.mubr.bf16.mxu0 %v1663_v25 }
  0x83   : > { %1057 = vmatprep.mubr.bf16.mxu1 %v1665_v26 }
  0x89   : > { %961 = vmatmul.mubr.bf16.gmra.mrb[24].mxu0 %v1667_v27 }
  0x8a   : > { %1058 = vmatmul.mubr.bf16.gmra.mrb[24].mxu1 %v1668_v28  ;;  %968 = vmatprep.mubr.bf16.mxu0 %v1669_v29 }
  0x8b   : > { %1065 = vmatprep.mubr.bf16.mxu1 %v1671_v30 }
  0x91   : > { %969 = vmatmul.mubr.bf16.gmra.mrb[28].mxu0 %v1673_v31 }
  0x92   : > { %1066 = vmatmul.mubr.bf16.gmra.mrb[28].mxu1 %v1674_v32  ;;  %v422_v32 = vld [vmem:[#allocation2 + $0x30] sm:$0xff] }
 0x12c   : > { %v1442_v33 = vpop.f32.mrb[0].mxu0 }
 0x12d   : > { %v1506_v34 = vpop.f32.mrb[0].mxu1  ;;  %v1443_v35 = vpop.f32.mrb[1].mxu0 }
 0x12e   : > { %v1444_v36 = vadd.f32 %v1443_v35, %v1442_v33  ;;  %v1507_v37 = vpop.f32.mrb[1].mxu1  ;;  %v1445_v38 = vpop.f32.mrb[2].mxu0 }
 0x12f   : > { %v1508_v39 = vadd.f32 %v1507_v37, %v1506_v34  ;;  %v1509_v40 = vpop.f32.mrb[2].mxu1  ;;  %v1446_v41 = vpop.f32.mrb[3].mxu0  ;;  %v423_v37 = vld [vmem:[#allocation2 + $0x38] sm:$0xff] }
 0x130   : > { %v1447_v43 = vadd.f32 %v1446_v41, %v1445_v38  ;;  %v1510_v44 = vpop.f32.mrb[3].mxu1 }
 0x131   : > { %v1012_v45 = vadd.f32 %v1508_v39, %v1444_v36  ;;  %v1511_v46 = vadd.f32 %v1510_v44, %v1509_v40 }
 0x133   : > { %v1074_v48 = vadd.f32 %v1012_v45, %v416_v42  ;;  %v1015_v49 = vadd.f32 %v1511_v46, %v1447_v43 }
 0x134   : > { %v1448_v50 = vpop.f32.mrb[4].mxu0 }
 0x135   : > { %1090 = vst [vmem:[#allocation2] sm:$0xff] %v1074_v48  ;;  %v1075_v51 = vadd.f32 %v1015_v49, %v417_v47  ;;  %v1512_v52 = vpop.f32.mrb[4].mxu1  ;;  %v1449_v53 = vpop.f32.mrb[5].mxu0 }
 0x136   : > { %v1450_v54 = vadd.f32 %v1449_v53, %v1448_v50  ;;  %v1513_v55 = vpop.f32.mrb[5].mxu1  ;;  %v1451_v56 = vpop.f32.mrb[6].mxu0  ;;  %v424_v50 = vld [vmem:[#allocation2 + $0x40] sm:$0xff] }
 0x137   : > { %1091 = vst [vmem:[#allocation2 + $0x8] sm:$0xff] %v1075_v51  ;;  %v1514_v57 = vadd.f32 %v1513_v55, %v1512_v52  ;;  %v1515_v58 = vpop.f32.mrb[6].mxu1  ;;  %v1452_v59 = vpop.f32.mrb[7].mxu0  ;;  %v425_v55 = vld [vmem:[#allocation2 + $0x48] sm:$0xff] }
 0x138   : > { %v1453_v61 = vadd.f32 %v1452_v59, %v1451_v56  ;;  %v1516_v62 = vpop.f32.mrb[7].mxu1 }
 0x139   : > { %v1020_v63 = vadd.f32 %v1514_v57, %v1450_v54  ;;  %v1517_v0 = vadd.f32 %v1516_v62, %v1515_v58 }
 0x13b   : > { %v1076_v2 = vadd.f32 %v1020_v63, %v418_v60  ;;  %v1023_v3 = vadd.f32 %v1517_v0, %v1453_v61 }
 0x13c   : > { %v1454_v4 = vpop.f32.mrb[8].mxu0 }
 0x13d   : > { %1092 = vst [vmem:[#allocation2 + $0x10] sm:$0xff] %v1076_v2  ;;  %v1077_v5 = vadd.f32 %v1023_v3, %v419_v1  ;;  %v1518_v6 = vpop.f32.mrb[8].mxu1  ;;  %v1455_v7 = vpop.f32.mrb[9].mxu0 }
 0x13e   : > { %v1456_v8 = vadd.f32 %v1455_v7, %v1454_v4  ;;  %v1519_v9 = vpop.f32.mrb[9].mxu1  ;;  %v1457_v10 = vpop.f32.mrb[10].mxu0  ;;  %v426_v4 = vld [vmem:[#allocation2 + $0x50] sm:$0xff] }
 0x13f   : > { %1093 = vst [vmem:[#allocation2 + $0x18] sm:$0xff] %v1077_v5  ;;  %v1520_v11 = vadd.f32 %v1519_v9, %v1518_v6  ;;  %v1521_v12 = vpop.f32.mrb[10].mxu1  ;;  %v1458_v13 = vpop.f32.mrb[11].mxu0  ;;  %v427_v9 = vld [vmem:[#allocation2 + $0x58] sm:$0xff] }
 0x140   : > { %v1459_v15 = vadd.f32 %v1458_v13, %v1457_v10  ;;  %v1522_v16 = vpop.f32.mrb[11].mxu1 }
 0x141   : > { %v1028_v17 = vadd.f32 %v1520_v11, %v1456_v8  ;;  %v1523_v18 = vadd.f32 %v1522_v16, %v1521_v12 }
 0x143   : > { %v1078_v20 = vadd.f32 %v1028_v17, %v420_v14  ;;  %v1031_v21 = vadd.f32 %v1523_v18, %v1459_v15 }
 0x144   : > { %v1460_v22 = vpop.f32.mrb[12].mxu0 }
 0x145   : > { %1094 = vst [vmem:[#allocation2 + $0x20] sm:$0xff] %v1078_v20  ;;  %v1079_v23 = vadd.f32 %v1031_v21, %v421_v19  ;;  %v1524_v24 = vpop.f32.mrb[12].mxu1  ;;  %v1461_v25 = vpop.f32.mrb[13].mxu0 }
 0x146   : > { %v1462_v26 = vadd.f32 %v1461_v25, %v1460_v22  ;;  %v1525_v27 = vpop.f32.mrb[13].mxu1  ;;  %v1463_v28 = vpop.f32.mrb[14].mxu0  ;;  %v428_v22 = vld [vmem:[#allocation2 + $0x60] sm:$0xff] }
 0x147   : > { %1095 = vst [vmem:[#allocation2 + $0x28] sm:$0xff] %v1079_v23  ;;  %v1526_v29 = vadd.f32 %v1525_v27, %v1524_v24  ;;  %v1527_v30 = vpop.f32.mrb[14].mxu1  ;;  %v1464_v31 = vpop.f32.mrb[15].mxu0  ;;  %v429_v27 = vld [vmem:[#allocation2 + $0x68] sm:$0xff] }
 0x148   : > { %v1465_v33 = vadd.f32 %v1464_v31, %v1463_v28  ;;  %v1528_v34 = vpop.f32.mrb[15].mxu1 }
 0x149   : > { %v1036_v35 = vadd.f32 %v1526_v29, %v1462_v26  ;;  %v1529_v36 = vadd.f32 %v1528_v34, %v1527_v30 }
 0x14b   : > { %v1080_v38 = vadd.f32 %v1036_v35, %v422_v32  ;;  %v1039_v39 = vadd.f32 %v1529_v36, %v1465_v33 }
 0x14c   : > { %v1466_v40 = vpop.f32.mrb[16].mxu0 }
 0x14d   : > { %1096 = vst [vmem:[#allocation2 + $0x30] sm:$0xff] %v1080_v38  ;;  %v1081_v41 = vadd.f32 %v1039_v39, %v423_v37  ;;  %v1530_v42 = vpop.f32.mrb[16].mxu1  ;;  %v1467_v43 = vpop.f32.mrb[17].mxu0 }
 0x14e   : > { %v1468_v44 = vadd.f32 %v1467_v43, %v1466_v40  ;;  %v1531_v45 = vpop.f32.mrb[17].mxu1  ;;  %v1469_v46 = vpop.f32.mrb[18].mxu0  ;;  %v430_v40 = vld [vmem:[#allocation2 + $0x70] sm:$0xff] }
 0x14f   : > { %1097 = vst [vmem:[#allocation2 + $0x38] sm:$0xff] %v1081_v41  ;;  %v1532_v47 = vadd.f32 %v1531_v45, %v1530_v42  ;;  %v1533_v48 = vpop.f32.mrb[18].mxu1  ;;  %v1470_v49 = vpop.f32.mrb[19].mxu0  ;;  %v431_v45 = vld [vmem:[#allocation2 + $0x78] sm:$0xff] }
 0x150   : > { %v1471_v51 = vadd.f32 %v1470_v49, %v1469_v46  ;;  %v1534_v52 = vpop.f32.mrb[19].mxu1  ;;  %v1110_v49 = vld [vmem:[#allocation2] sm:$0xff] (!%p1419_p11) }
 0x151   : > { %v1044_v53 = vadd.f32 %v1532_v47, %v1468_v44  ;;  %v1535_v54 = vadd.f32 %v1534_v52, %v1533_v48 }
 0x153   : > { %v1082_v56 = vadd.f32 %v1044_v53, %v424_v50  ;;  %v1047_v57 = vadd.f32 %v1535_v54, %v1471_v51  ;;  %v1932_v50 = vld [vmem:[%s2063_s2] ss:$0 sm:$0xff] (!%p1419_p11)  ;;  %v1111_v53 = vld [vmem:[#allocation2 + $0x8] sm:$0xff] (!%p1419_p11) }
 0x154   : > { %v1472_v58 = vpop.f32.mrb[20].mxu0  ;;  %v1149_v51 = vld [vmem:[%s2064_s3] sm:$0xff] (!%p1419_p11)  ;;  %v1133_v52 = vadd.f32 (!%p1419_p11), %v1932_v50, %v1110_v49  ;;  %v1150_v54 = vld [vmem:[%s2064_s3 + $0x8] sm:$0xff] (!%p1419_p11) }
 0x155   : > { %1098 = vst [vmem:[#allocation2 + $0x40] sm:$0xff] %v1082_v56  ;;  %v1083_v59 = vadd.f32 %v1047_v57, %v425_v55  ;;  %v1536_v60 = vpop.f32.mrb[20].mxu1  ;;  %v1473_v61 = vpop.f32.mrb[21].mxu0  ;;  %v1112_v55 = vld [vmem:[#allocation2 + $0x10] sm:$0xff] (!%p1419_p11)  ;;  %v1134_v56 = vadd.f32 (!%p1419_p11), %v1932_v50, %v1111_v53 }
 0x156   : > { %v1474_v62 = vadd.f32 %v1473_v61, %v1472_v58  ;;  %v1537_v63 = vpop.f32.mrb[21].mxu1  ;;  %v1475_v0 = vpop.f32.mrb[22].mxu0  ;;  %v1135_v57 = vadd.f32 (!%p1419_p11), %v1932_v50, %v1112_v55  ;;  %v1151_v58 = vld [vmem:[%s2064_s3 + $0x10] sm:$0xff] (!%p1419_p11)  ;;  %v1165_v61 = vadd.f32 (!%p1419_p11), %v1149_v51, %v1133_v52 }
 0x157   : > { %1099 = vst [vmem:[#allocation2 + $0x48] sm:$0xff] %v1083_v59  ;;  %v1538_v1 = vadd.f32 %v1537_v63, %v1536_v60  ;;  %v1539_v2 = vpop.f32.mrb[22].mxu1  ;;  %v1476_v3 = vpop.f32.mrb[23].mxu0  ;;  %v1113_v59 = vld [vmem:[#allocation2 + $0x18] sm:$0xff] (!%p1419_p11)  ;;  %v1114_v63 = vld [vmem:[#allocation2 + $0x20] sm:$0xff] (!%p1419_p11) }
 0x158   : > { %v1477_v5 = vadd.f32 %v1476_v3, %v1475_v0  ;;  %v1540_v6 = vpop.f32.mrb[23].mxu1  ;;  %v1152_v60 = vld [vmem:[%s2064_s3 + $0x18] sm:$0xff] (!%p1419_p11)  ;;  %v1153_v0 = vld [vmem:[%s2064_s3 + $0x20] sm:$0xff] (!%p1419_p11)  ;;  %v1167_v3 = vadd.f32 (!%p1419_p11), %v1151_v58, %v1135_v57 }
 0x159   : > { %v1052_v7 = vadd.f32 %v1538_v1, %v1474_v62  ;;  %v1541_v8 = vadd.f32 %v1540_v6, %v1539_v2  ;;  %v1136_v62 = vadd.f32 (!%p1419_p11), %v1932_v50, %v1113_v59  ;;  %v1115_v1 = vld [vmem:[#allocation2 + $0x28] sm:$0xff] (!%p1419_p11)  ;;  %v1166_v2 = vadd.f32 (!%p1419_p11), %v1150_v54, %v1134_v56  ;;  %v1164_v58 = vld [vmem:[%s2064_s3 + $0x78] sm:$0xff] (!%p1419_p11) }
 0x15a   : > { %v1154_v6 = vld [vmem:[%s2064_s3 + $0x28] sm:$0xff] (!%p1419_p11) }
 0x15b   : > { %v1084_v10 = vadd.f32 %v1052_v7, %v426_v4  ;;  %v1055_v11 = vadd.f32 %v1541_v8, %v1477_v5  ;;  %v1137_v4 = vadd.f32 (!%p1419_p11), %v1932_v50, %v1114_v63  ;;  %v1138_v5 = vadd.f32 (!%p1419_p11), %v1932_v50, %v1115_v1  ;;  %v1116_v7 = vld [vmem:[#allocation2 + $0x30] sm:$0xff] (!%p1419_p11) }
 0x15c   : > { %v1478_v12 = vpop.f32.mrb[24].mxu0  ;;  %v1155_v8 = vld [vmem:[%s2064_s3 + $0x30] sm:$0xff] (!%p1419_p11) }
 0x15d   : > { %1100 = vst [vmem:[#allocation2 + $0x50] sm:$0xff] %v1084_v10  ;;  %v1085_v13 = vadd.f32 %v1055_v11, %v427_v9  ;;  %v1542_v14 = vpop.f32.mrb[24].mxu1  ;;  %v1479_v15 = vpop.f32.mrb[25].mxu0  ;;  %v1181_v9 = vmax.f32 (!%p1419_p11), %v1165_v61, 0.0  ;;  %v1168_v10 = vadd.f32 (!%p1419_p11), %v1152_v60, %v1136_v62  ;;  %v1139_v11 = vadd.f32 (!%p1419_p11), %v1932_v50, %v1116_v7 }
 0x15e   : > { %v1480_v16 = vadd.f32 %v1479_v15, %v1478_v12  ;;  %v1543_v17 = vpop.f32.mrb[25].mxu1  ;;  %v1481_v18 = vpop.f32.mrb[26].mxu0  ;;  %v1117_v12 = vld [vmem:[#allocation2 + $0x38] sm:$0xff] (!%p1419_p11)  ;;  %v1182_v15 = vmax.f32 (!%p1419_p11), %v1166_v2, 0.0 }
 0x15f   : > { %1101 = vst [vmem:[#allocation2 + $0x58] sm:$0xff] %v1085_v13  ;;  %v1544_v19 = vadd.f32 %v1543_v17, %v1542_v14  ;;  %v1545_v20 = vpop.f32.mrb[26].mxu1  ;;  %v1482_v21 = vpop.f32.mrb[27].mxu0  ;;  %v1156_v13 = vld [vmem:[%s2064_s3 + $0x38] sm:$0xff] (!%p1419_p11)  ;;  %v1118_v14 = vld [vmem:[#allocation2 + $0x40] sm:$0xff] (!%p1419_p11)  ;;  %v1169_v17 = vadd.f32 (!%p1419_p11), %v1153_v0, %v1137_v4  ;;  %1197 = vst [vmem:[%s2065_s4] sm:$0xff] (!%p1419_p11), %v1181_v9 }
 0x160   : > { %v1483_v23 = vadd.f32 %v1482_v21, %v1481_v18  ;;  %v1546_v24 = vpop.f32.mrb[27].mxu1  ;;  %v1170_v18 = vadd.f32 (!%p1419_p11), %v1154_v6, %v1138_v5  ;;  %v1158_v21 = vld [vmem:[%s2064_s3 + $0x48] sm:$0xff] (!%p1419_p11)  ;;  %1198 = vst [vmem:[%s2065_s4 + $0x8] sm:$0xff] (!%p1419_p11), %v1182_v15 }
 0x161   : > { %v1060_v25 = vadd.f32 %v1544_v19, %v1480_v16  ;;  %v1547_v26 = vadd.f32 %v1546_v24, %v1545_v20  ;;  %v1183_v16 = vmax.f32 (!%p1419_p11), %v1167_v3, 0.0  ;;  %v1157_v19 = vld [vmem:[%s2064_s3 + $0x40] sm:$0xff] (!%p1419_p11)  ;;  %v1119_v20 = vld [vmem:[#allocation2 + $0x48] sm:$0xff] (!%p1419_p11)  ;;  %v1140_v24 = vadd.f32 (!%p1419_p11), %v1932_v50, %v1117_v12 }
 0x163   : > { %v1086_v28 = vadd.f32 %v1060_v25, %v428_v22  ;;  %v1063_v29 = vadd.f32 %v1547_v26, %v1483_v23  ;;  %v1184_v22 = vmax.f32 (!%p1419_p11), %v1168_v10, 0.0  ;;  %v1171_v23 = vadd.f32 (!%p1419_p11), %v1155_v8, %v1139_v11  ;;  %1199 = vst [vmem:[%s2065_s4 + $0x10] sm:$0xff] (!%p1419_p11), %v1183_v16 }
 0x164   : > { %v1484_v30 = vpop.f32.mrb[28].mxu0  ;;  %v1141_v25 = vadd.f32 (!%p1419_p11), %v1932_v50, %v1118_v14  ;;  %v1120_v26 = vld [vmem:[#allocation2 + $0x50] sm:$0xff] (!%p1419_p11) }
 0x165   : > { %1102 = vst [vmem:[#allocation2 + $0x60] sm:$0xff] %v1086_v28  ;;  %v1087_v31 = vadd.f32 %v1063_v29, %v429_v27  ;;  %v1548_v32 = vpop.f32.mrb[28].mxu1  ;;  %v1485_v33 = vpop.f32.mrb[29].mxu0  ;;  %v1159_v27 = vld [vmem:[%s2064_s3 + $0x50] sm:$0xff] (!%p1419_p11)  ;;  %v1185_v29 = vmax.f32 (!%p1419_p11), %v1169_v17, 0.0  ;;  %1200 = vst [vmem:[%s2065_s4 + $0x18] sm:$0xff] (!%p1419_p11), %v1184_v22 }
 0x166   : > { %v1486_v34 = vadd.f32 %v1485_v33, %v1484_v30  ;;  %v1549_v35 = vpop.f32.mrb[29].mxu1  ;;  %v1487_v36 = vpop.f32.mrb[30].mxu0  ;;  %v1121_v28 = vld [vmem:[#allocation2 + $0x58] sm:$0xff] (!%p1419_p11)  ;;  %v1186_v30 = vmax.f32 (!%p1419_p11), %v1170_v18, 0.0 }
 0x167   : > { %1103 = vst [vmem:[#allocation2 + $0x68] sm:$0xff] %v1087_v31  ;;  %v1550_v37 = vadd.f32 %v1549_v35, %v1548_v32  ;;  %v1551_v38 = vpop.f32.mrb[30].mxu1  ;;  %v1488_v39 = vpop.f32.mrb[31].mxu0  ;;  %v1142_v31 = vadd.f32 (!%p1419_p11), %v1932_v50, %v1119_v20  ;;  %v1143_v32 = vadd.f32 (!%p1419_p11), %v1932_v50, %v1120_v26  ;;  %v1160_v33 = vld [vmem:[%s2064_s3 + $0x58] sm:$0xff] (!%p1419_p11)  ;;  %v1161_v35 = vld [vmem:[%s2064_s3 + $0x60] sm:$0xff] (!%p1419_p11)  ;;  %1201 = vst [vmem:[%s2065_s4 + $0x20] sm:$0xff] (!%p1419_p11), %v1185_v29 }
 0x168   : > { %v1489_v41 = vadd.f32 %v1488_v39, %v1487_v36  ;;  %v1552_v42 = vpop.f32.mrb[31].mxu1  ;;  %v1187_v36 = vmax.f32 (!%p1419_p11), %v1171_v23, 0.0  ;;  %v1144_v39 = vadd.f32 (!%p1419_p11), %v1932_v50, %v1121_v28  ;;  %1202 = vst [vmem:[%s2065_s4 + $0x28] sm:$0xff] (!%p1419_p11), %v1186_v30 }
 0x169   : > { %v1068_v43 = vadd.f32 %v1550_v37, %v1486_v34  ;;  %v1553_v44 = vadd.f32 %v1552_v42, %v1551_v38  ;;  %1109 = sbr.rel (%p1419_p11) target bundleno = 382 (0x17e), region = 67  ;;  %v1172_v37 = vadd.f32 (!%p1419_p11), %v1156_v13, %v1140_v24  ;;  %v1173_v38 = vadd.f32 (!%p1419_p11), %v1157_v19, %v1141_v25 }
 0x16a   : > { %1203 = vst [vmem:[%s2065_s4 + $0x30] sm:$0xff] (!%p1419_p11), %v1187_v36  ;;  %v1176_v52 = vadd.f32 (!%p1419_p11), %v1160_v33, %v1144_v39 }
 0x16b   : > { %v1088_v46 = vadd.f32 %v1068_v43, %v430_v40  ;;  %v1071_v47 = vadd.f32 %v1553_v44, %v1489_v41  ;;  %v1162_v41 = vld [vmem:[%s2064_s3 + $0x68] sm:$0xff] (!%p1419_p11)  ;;  %v1174_v43 = vadd.f32 (!%p1419_p11), %v1158_v21, %v1142_v31  ;;  %v1175_v44 = vadd.f32 (!%p1419_p11), %v1159_v27, %v1143_v32 }
 0x16c   : > { %v1122_v34 = vld [vmem:[#allocation2 + $0x60] sm:$0xff] (!%p1419_p11)  ;;  %v1188_v49 = vmax.f32 (!%p1419_p11), %v1172_v37, 0.0  ;;  %v1189_v51 = vmax.f32 (!%p1419_p11), %v1173_v38, 0.0  ;;  %v1192_v59 = vmax.f32 (!%p1419_p11), %v1176_v52, 0.0 }
 0x16d   : > { %1104 = vst [vmem:[#allocation2 + $0x70] sm:$0xff] %v1088_v46  ;;  %v1089_v48 = vadd.f32 %v1071_v47, %v431_v45  ;;  %v1145_v45 = vadd.f32 (!%p1419_p11), %v1932_v50, %v1122_v34  ;;  %v1163_v47 = vld [vmem:[%s2064_s3 + $0x70] sm:$0xff] (!%p1419_p11)  ;;  %v1190_v54 = vmax.f32 (!%p1419_p11), %v1174_v43, 0.0  ;;  %v1191_v55 = vmax.f32 (!%p1419_p11), %v1175_v44, 0.0 }
 0x16e   : > { %v1123_v40 = vld [vmem:[#allocation2 + $0x68] sm:$0xff] (!%p1419_p11)  ;;  %1204 = vst [vmem:[%s2065_s4 + $0x38] sm:$0xff] (!%p1419_p11), %v1188_v49  ;;  %1205 = vst [vmem:[%s2065_s4 + $0x40] sm:$0xff] (!%p1419_p11), %v1189_v51 }
 0x16f   : > { %1105 = vst [vmem:[#allocation2 + $0x78] sm:$0xff] %v1089_v48  ;;  %v1146_v46 = vadd.f32 (!%p1419_p11), %v1932_v50, %v1123_v40  ;;  %v1177_v56 = vadd.f32 (!%p1419_p11), %v1161_v35, %v1145_v45  ;;  %1206 = vst [vmem:[%s2065_s4 + $0x48] sm:$0xff] (!%p1419_p11), %v1190_v54 }
 0x170   : > { %1207 = vst [vmem:[%s2065_s4 + $0x50] sm:$0xff] %v1191_v55  ;;  %1208 = vst [vmem:[%s2065_s4 + $0x58] sm:$0xff] %v1192_v59 }
 0x171   : > { %v1178_v57 = vadd.f32 %v1162_v41, %v1146_v46  ;;  %v1193_v62 = vmax.f32 %v1177_v56, 0.0 }
 0x173   : > { %v1194_v63 = vmax.f32 %v1178_v57, 0.0  ;;  %1209 = vst [vmem:[%s2065_s4 + $0x60] sm:$0xff] %v1193_v62 }
 0x174   : > { %v1124_v42 = vld [vmem:[#allocation2 + $0x70] sm:$0xff] }
 0x175   : > { %v1147_v53 = vadd.f32 %v1932_v50, %v1124_v42  ;;  %1210 = vst [vmem:[%s2065_s4 + $0x68] sm:$0xff] %v1194_v63 }
 0x176   : > { %v1125_v48 = vld [vmem:[#allocation2 + $0x78] sm:$0xff] }
 0x177   : > { %v1179_v60 = vadd.f32 %v1163_v47, %v1147_v53  ;;  %v1148_v61 = vadd.f32 %v1932_v50, %v1125_v48 }
 0x179   : > { %v1195_v0 = vmax.f32 %v1179_v60, 0.0  ;;  %v1180_v1 = vadd.f32 %v1164_v58, %v1148_v61 }
 0x17b   : > { %1211 = vst [vmem:[%s2065_s4 + $0x70] sm:$0xff] %v1195_v0  ;;  %v1196_v50 = vmax.f32 %v1180_v1, 0.0 }
 0x17d   : > { %1212 = vst [vmem:[%s2065_s4 + $0x78] sm:$0xff] %v1196_v50 }
 0x17e PF: > { %s14_s19 = sadd.s32 1, %s1713_s19   ;;  %s2066_s15 = smov %s1701_s16 }
 0x17f   : > { %p11_p12 = scmp.ge.s32.totalorder %s14_s19, 6   ;;  %s2067_s16 = smov %s1776_s23 }
 0x180   : > { %s2068_s17 = smov %s1709_s18  ;;  %s2069_s18 = smov %s2071_s20 }
 0x181   :  { %13 = sbr.rel (!%p11_p12) target bundleno = 3 (0x3), region = 111 }

// kernel: resnet_forward.16
= control target key start
LH: loop header
LB: loop body
LE: loop exit
PB: predicated region body
PF: predicated region fallthrough
CT: control target
= control target key end

     0   :  { %s1023_s12 = smov 0   ;;  %s1025_s13 = smov 0   ;;  %s1139_s0 = inlined_call_operand.vmem [shape: bf16[16,2048], index: 0, kind: input, shape index: {}]   ;;  %s1140_s1 = inlined_call_operand.vmem [shape: bf16[2048,128], index: 1, kind: input, shape index: {}]   ;;  %s1141_s2 = inlined_call_operand.vmem [shape: f32[1,128], index: 2, kind: input, shape index: {}]   ;;  %s1142_s3 = inlined_call_operand.vmem [shape: f32[16,128], index: 3, kind: output, shape index: {}]  }
   0x1   :  { %s1027_s14 = smov 0   ;;  %s1029_s15 = smov 0  }
   0x2   :  { %s1031_s16 = smov 0  }
   0x3 LB: > { %s25_s17 = sadd.s32 1, %s996_s15  ;;  %p48_p1 = scmp.ne.s32.totalorder %s988_s13, %s984_s12  ;;  %s1000_s16 = sphi %s1031_s16, %s13_s16   ;;  %s996_s15 = sphi %s1029_s15, %s1146_s15   ;;  %s992_s14 = sphi %s1027_s14, %s1145_s14   ;;  %s988_s13 = sphi %s1025_s13, %s1144_s13   ;;  %s984_s12 = sphi %s1023_s12, %s1143_s12  }
   0x4   : > { %p26_p0 = scmp.ge.s32.totalorder %s25_s17, 4  ;;  %p49_p2 = scmp.eq.s32.totalorder %s1000_s16, 0 }
   0x5   : > { %s41_s19 = sadd.s32 1, %s988_s13  ;;  %p787_p5 = scmp.ge.s32.totalorder %s1000_s16, 4 }
   0x6   : > { %s1148_s17 = smov (%p26_p0, %s25_s17), 0  ;;  %p50_p3 = por %p49_p2, %p48_p1 }
   0x7   : > { %s37_s18 = ssub.s32 %s996_s15, %s1148_s17  ;;  %162 = sbr.rel (%p787_p5) target bundleno = 21 (0x15), region = 20 }
   0x8   : > { %p39_p4 = scmp.eq.s32.totalorder %s37_s18, 0 }
   0xa   : > { %s1058_s20 = scalar_select %p39_p4, %s988_s13, %s41_s19  }
   0xe   : > { %165 = sbr.rel (!%p50_p3) target bundleno = 21 (0x15), region = 24  ;;  %s167_s21 = sand.u32 (%p50_p3), 1, %s988_s13  }
   0xf   : > { %s838_s22 = sshll.u32 (%p50_p3), %s996_s15, 4  ;;  %s788_s23 = sshll.u32 (%p50_p3), %s167_s21, 5 }
  0x10   : > { %s175_s26 = scalar_lea.vmem (%p50_p3), %s1139_s0, %s838_s22  ;;  %s169_s27 = scalar_lea.vmem (%p50_p3), [#allocation3], %s788_s23 }
  0x11   : > { %v188_v0 = vld [vmem:[%s175_s26] sm:$0xff] (%p50_p3)  ;;  %v190_v1 = vld [vmem:[%s175_s26 + $0x8] sm:$0xff] (%p50_p3) }
  0x12   : > { %v192_v2 = vld [vmem:[%s175_s26 + $0x40] sm:$0xff] (%p50_p3)  ;;  %189 = vst [vmem:[%s169_s27] sm:$0xff] (%p50_p3), %v188_v0  ;;  %191 = vst [vmem:[%s169_s27 + $0x8] sm:$0xff] (%p50_p3), %v190_v1  ;;  %v194_v3 = vld [vmem:[%s175_s26 + $0x48] sm:$0xff] (%p50_p3) }
  0x13   : > { %193 = vst [vmem:[%s169_s27 + $0x10] sm:$0xff] (%p50_p3), %v192_v2  ;;  %195 = vst [vmem:[%s169_s27 + $0x18] sm:$0xff] (%p50_p3), %v194_v3 }
  0x15 PF: > { %p791_p6 = scmp.ge.s32.totalorder %s1000_s16, 1  ;;  %p212_p7 = scmp.lt.s32.totalorder %s1000_s16, 5 }
  0x17   : > { %p213_p8 = pnand %p791_p6, %p212_p7 }
  0x18   : > { %s219_s28 = sand.u32 (!%p213_p8), 1, %s984_s12   ;;  %s793_s29 = sshll.u32 (!%p213_p8), %s992_s14, 6 }
  0x19   : > { %216 = sbr.rel (%p213_p8) target bundleno = 308 (0x134), region = 51  ;;  %s792_s30 = sshll.u32 (!%p213_p8), %s219_s28, 5 }
  0x1a   : > { %p259_p9 = scmp.lt.s32.totalorder (!%p213_p8), %s793_s29, 255  ;;  %s1075_s8 = scalar_lea.vmem (!%p213_p8), [#allocation3], %s792_s30 }
  0x1b   : > { %p795_p10 = scmp.ne.s32.totalorder (!%p213_p8), %s992_s14, 0 }
  0x20   : > { %s1150_s29 = smov (!%p259_p9, %s793_s29), 255  ;;  %283 = sbr.rel (%p795_p10) target bundleno = 39 (0x27), region = 59 }
  0x21   : > { %s794_s4 = sshll.u32 %s1150_s29, 2  ;;  %v1002_v4 = vmov (!%p795_p10), 0.0  }
  0x22   : > { %s1073_s7 = scalar_lea.vmem %s1140_s1, %s794_s4  ;;  %284 = vst [vmem:[#allocation2] sm:$0xff] (!%p795_p10), %v1002_v4  ;;  %285 = vst [vmem:[#allocation2 + $0x8] sm:$0xff] (!%p795_p10), %v1002_v4 }
  0x27 PF: > { %v924_v5 = vld [vmem:[%s1073_s7 + $0x40] sm:$0xff]   ;;  %v928_v9 = vld [vmem:[%s1073_s7 + $0x48] sm:$0xff]   ;;  %v932_v13 = vld [vmem:[%s1073_s7 + $0x50] sm:$0xff]   ;;  %p832_p11 = scmp.ne.s32.totalorder %s992_s14, 3 }
  0x28   : > { %v925_v6 = vld [vmem:[%s1073_s7 + $0xc0] sm:$0xff]   ;;  %839 = vmatprep.subr.bf16.mxu0 %v924_v5  ;;  %v929_v10 = vld [vmem:[%s1073_s7 + $0xc8] sm:$0xff]   ;;  %v933_v14 = vld [vmem:[%s1073_s7 + $0xd0] sm:$0xff]  }
  0x29   : > { %v926_v7 = vld [vmem:[%s1073_s7] sm:$0xff]   ;;  %861 = vmatprep.subr.bf16.mxu1 %v925_v6  ;;  %v930_v11 = vld [vmem:[%s1073_s7 + $0x8] sm:$0xff]   ;;  %v934_v15 = vld [vmem:[%s1073_s7 + $0x10] sm:$0xff]  }
  0x2a   : > { %v927_v8 = vld [vmem:[%s1073_s7 + $0x80] sm:$0xff]   ;;  %840 = vmatpush3.bf16.msra.mxu0 %v926_v7  ;;  %v931_v12 = vld [vmem:[%s1073_s7 + $0x88] sm:$0xff]   ;;  %v935_v16 = vld [vmem:[%s1073_s7 + $0x90] sm:$0xff]  }
  0x2b   : > { %862 = vmatpush3.bf16.msra.mxu1 %v927_v8  ;;  %841 = vmatprep.subr.bf16.mxu0 %v928_v9  ;;  %v936_v17 = vld [vmem:[%s1073_s7 + $0x58] sm:$0xff]   ;;  %v940_v21 = vld [vmem:[%s1073_s7 + $0x60] sm:$0xff]   ;;  %v944_v25 = vld [vmem:[%s1073_s7 + $0x68] sm:$0xff]  }
  0x2c   : > { %863 = vmatprep.subr.bf16.mxu1 %v929_v10  ;;  %v937_v18 = vld [vmem:[%s1073_s7 + $0xd8] sm:$0xff]   ;;  %v941_v22 = vld [vmem:[%s1073_s7 + $0xe0] sm:$0xff]   ;;  %v945_v26 = vld [vmem:[%s1073_s7 + $0xe8] sm:$0xff]  }
  0x2d   : > { %v938_v19 = vld [vmem:[%s1073_s7 + $0x18] sm:$0xff]   ;;  %v942_v23 = vld [vmem:[%s1073_s7 + $0x20] sm:$0xff]   ;;  %v946_v27 = vld [vmem:[%s1073_s7 + $0x28] sm:$0xff]  }
  0x2e   : > { %842 = vmatpush3.bf16.msra.mxu0 %v930_v11  ;;  %v939_v20 = vld [vmem:[%s1073_s7 + $0x98] sm:$0xff]   ;;  %v943_v24 = vld [vmem:[%s1073_s7 + $0xa0] sm:$0xff]   ;;  %v947_v28 = vld [vmem:[%s1073_s7 + $0xa8] sm:$0xff]  }
  0x2f   : > { %864 = vmatpush3.bf16.msra.mxu1 %v931_v12  ;;  %843 = vmatprep.subr.bf16.mxu0 %v932_v13  ;;  %v948_v29 = vld [vmem:[%s1073_s7 + $0x70] sm:$0xff]   ;;  %v952_v33 = vld [vmem:[%s1073_s7 + $0x78] sm:$0xff]   ;;  %v286_v50 = vld [vmem:[#allocation2] sm:$0xff] }
  0x30   : > { %865 = vmatprep.subr.bf16.mxu1 %v933_v14  ;;  %v949_v30 = vld [vmem:[%s1073_s7 + $0xf0] sm:$0xff]   ;;  %v953_v34 = vld [vmem:[%s1073_s7 + $0xf8] sm:$0xff]   ;;  %v287_v55 = vld [vmem:[#allocation2 + $0x8] sm:$0xff] }
  0x31   : > { %v950_v31 = vld [vmem:[%s1073_s7 + $0x30] sm:$0xff]   ;;  %v954_v35 = vld [vmem:[%s1073_s7 + $0x38] sm:$0xff]   ;;  %v833_v60 = vld [vmem:[%s1141_s2] ss:$0 sm:$0xff] (!%p832_p11) }
  0x32   : > { %844 = vmatpush3.bf16.msra.mxu0 %v934_v15  ;;  %v951_v32 = vld [vmem:[%s1073_s7 + $0xb0] sm:$0xff]   ;;  %v955_v36 = vld [vmem:[%s1073_s7 + $0xb8] sm:$0xff]  }
  0x33   : > { %866 = vmatpush3.bf16.msra.mxu1 %v935_v16  ;;  %845 = vmatprep.subr.bf16.mxu0 %v936_v17  ;;  %v956_v37 = vld [vmem:[%s1075_s8] ss:$16 sps:$4 sm:$0xff]   ;;  %v958_v38 = vld [vmem:[%s1075_s8 + $0x4] ss:$16 sps:$4 sm:$0xff]   ;;  %v959_v39 = vld [vmem:[%s1075_s8 + $0x8] ss:$16 sps:$4 sm:$0xff]  }
  0x34   : > { %867 = vmatprep.subr.bf16.mxu1 %v937_v18  ;;  %v961_v40 = vld [vmem:[%s1075_s8 + $0xc] ss:$16 sps:$4 sm:$0xff]   ;;  %600 = vmatprep.mubr.bf16.mxu0 %v958_v38 }
  0x35   : > { %641 = vmatprep.mubr.bf16.mxu1 %v961_v40 }
  0x36   : > { %846 = vmatpush3.bf16.msra.mxu0 %v938_v19 }
  0x37   : > { %868 = vmatpush3.bf16.msra.mxu1 %v939_v20  ;;  %847 = vmatprep.subr.bf16.mxu0 %v940_v21 }
  0x38   : > { %869 = vmatprep.subr.bf16.mxu1 %v941_v22 }
  0x3a   : > { %848 = vmatpush3.bf16.msra.mxu0 %v942_v23 }
  0x3b   : > { %870 = vmatpush3.bf16.msra.mxu1 %v943_v24  ;;  %849 = vmatprep.subr.bf16.mxu0 %v944_v25 }
  0x3c   : > { %871 = vmatprep.subr.bf16.mxu1 %v945_v26 }
  0x3e   : > { %850 = vmatpush3.bf16.msra.mxu0 %v946_v27 }
  0x3f   : > { %872 = vmatpush3.bf16.msra.mxu1 %v947_v28  ;;  %851 = vmatprep.subr.bf16.mxu0 %v948_v29 }
  0x40   : > { %873 = vmatprep.subr.bf16.mxu1 %v949_v30 }
  0x42   : > { %852 = vmatpush3.bf16.msra.mxu0 %v950_v31 }
  0x43   : > { %874 = vmatpush3.bf16.msra.mxu1 %v951_v32  ;;  %853 = vmatprep.subr.bf16.mxu0 %v952_v33 }
  0x44   : > { %875 = vmatprep.subr.bf16.mxu1 %v953_v34 }
  0x46   : > { %854 = vmatpush3.bf16.msra.mxu0 %v954_v35 }
  0x47   : > { %876 = vmatpush3.bf16.msra.mxu1 %v955_v36 }
  0x49   : > { %601 = vmatmul.mubr.bf16.vlgmr.msra.gmra.mrb[0].mxu0 %v956_v37 }
  0x4a   : > { %642 = vmatmul.mubr.bf16.vlgmr.msra.gmra.mrb[0].mxu1 %v959_v39 }
 0x11c   : > { %v855_v41 = vpop.f32.mrb[0].mxu0 }
 0x11d   : > { %v877_v42 = vpop.f32.mrb[0].mxu1  ;;  %v856_v43 = vpop.f32.mrb[1].mxu0 }
 0x11e   : > { %v857_v44 = vadd.f32 %v856_v43, %v855_v41  ;;  %v878_v45 = vpop.f32.mrb[1].mxu1  ;;  %v858_v46 = vpop.f32.mrb[2].mxu0 }
 0x11f   : > { %v879_v47 = vadd.f32 %v878_v45, %v877_v42  ;;  %v880_v48 = vpop.f32.mrb[2].mxu1  ;;  %v859_v49 = vpop.f32.mrb[3].mxu0 }
 0x120   : > { %v860_v51 = vadd.f32 %v859_v49, %v858_v46  ;;  %v881_v52 = vpop.f32.mrb[3].mxu1 }
 0x121   : > { %v644_v53 = vadd.f32 %v879_v47, %v857_v44  ;;  %v882_v54 = vadd.f32 %v881_v52, %v880_v48  ;;  %657 = sbr.rel (%p832_p11) target bundleno = 308 (0x134), region = 63 }
 0x123   : > { %v650_v56 = vadd.f32 %v644_v53, %v286_v50  ;;  %v647_v57 = vadd.f32 %v882_v54, %v860_v51 }
 0x125   : > { %652 = vst [vmem:[#allocation2] sm:$0xff] %v650_v56  ;;  %v651_v58 = vadd.f32 %v647_v57, %v287_v55 }
 0x127   : > { %653 = vst [vmem:[#allocation2 + $0x8] sm:$0xff] %v651_v58 }
 0x12c   : > { %v658_v59 = vld [vmem:[#allocation2] sm:$0xff] }
 0x12d   : > { %v667_v62 = vadd.f32 %v833_v60, %v658_v59 }
 0x12e   : > { %v659_v61 = vld [vmem:[#allocation2 + $0x8] sm:$0xff] }
 0x12f   : > { %v668_v63 = vadd.f32 %v833_v60, %v659_v61  ;;  %v669_v0 = vmax.f32 %v667_v62, 0.0 }
 0x131   : > { %v670_v1 = vmax.f32 %v668_v63, 0.0  ;;  %671 = vst [vmem:[%s1142_s3] sm:$0xff] %v669_v0 }
 0x133   : > { %672 = vst [vmem:[%s1142_s3 + $0x8] sm:$0xff] %v670_v1 }
 0x134 PF: > { %s13_s16 = sadd.s32 1, %s1000_s16   ;;  %s1143_s12 = smov %s988_s13 }
 0x135   : > { %p10_p12 = scmp.ge.s32.totalorder %s13_s16, 6   ;;  %s1144_s13 = smov %s1058_s20 }
 0x136   : > { %s1145_s14 = smov %s996_s15  ;;  %s1146_s15 = smov %s1148_s17 }
 0x137   :  { %12 = sbr.rel (!%p10_p12) target bundleno = 3 (0x3), region = 104 }

// kernel: resnet_forward.17
= control target key start
LH: loop header
LB: loop body
LE: loop exit
PB: predicated region body
PF: predicated region fallthrough
CT: control target
= control target key end

     0   :  { %v210_v0 = vmov 0.0   ;;  %vm211_vm0 = vmmov 0   ;;  %s268_s1 = inlined_call_operand.vmem [shape: bf16[128,128], index: 1, kind: input, shape index: {}]   ;;  %s269_s0 = inlined_call_operand.vmem [shape: bf16[16,128], index: 0, kind: input, shape index: {}]   ;;  %s270_s2 = inlined_call_operand.vmem [shape: f32[1,128], index: 2, kind: input, shape index: {}]   ;;  %s271_s3 = inlined_call_operand.vmem [shape: f32[16,128], index: 3, kind: output, shape index: {}]  }
   0x1   :  { %179 = vmatprep.subr.bf16.mxu0 %v210_v0  ;;  %v201_v1 = vld [vmem:[%s268_s1] sm:$0xff]   ;;  %195 = vmatprep.mubr.msk.bf16.mxu0 %vm211_vm0, %v210_v0  ;;  %v202_v2 = vld [vmem:[%s268_s1 + $0x8] sm:$0xff]   ;;  %v203_v3 = vld [vmem:[%s268_s1 + $0x10] sm:$0xff]  }
   0x2   :  { %180 = vmatpush3.bf16.msra.mxu0 %v201_v1  ;;  %v204_v4 = vld [vmem:[%s268_s1 + $0x18] sm:$0xff]   ;;  %v205_v5 = vld [vmem:[%s268_s1 + $0x20] sm:$0xff]   ;;  %v206_v6 = vld [vmem:[%s268_s1 + $0x28] sm:$0xff]  }
   0x3   :  { %181 = vmatprep.subr.bf16.mxu0 %v210_v0  ;;  %v207_v7 = vld [vmem:[%s268_s1 + $0x30] sm:$0xff]   ;;  %v208_v8 = vld [vmem:[%s268_s1 + $0x38] sm:$0xff]   ;;  %v209_v9 = vld [vmem:[%s269_s0] sm:$0xff]  }
   0x4   :  { %v169_v10 = vld [vmem:[%s270_s2] ss:$0 sm:$0xff] }
   0x6   :  { %182 = vmatpush3.bf16.msra.mxu0 %v202_v2 }
   0x7   :  { %183 = vmatprep.subr.bf16.mxu0 %v210_v0 }
   0xa   :  { %184 = vmatpush3.bf16.msra.mxu0 %v203_v3 }
   0xb   :  { %185 = vmatprep.subr.bf16.mxu0 %v210_v0 }
   0xe   :  { %186 = vmatpush3.bf16.msra.mxu0 %v204_v4 }
   0xf   :  { %187 = vmatprep.subr.bf16.mxu0 %v210_v0 }
  0x12   :  { %188 = vmatpush3.bf16.msra.mxu0 %v205_v5 }
  0x13   :  { %189 = vmatprep.subr.bf16.mxu0 %v210_v0 }
  0x16   :  { %190 = vmatpush3.bf16.msra.mxu0 %v206_v6 }
  0x17   :  { %191 = vmatprep.subr.bf16.mxu0 %v210_v0 }
  0x1a   :  { %192 = vmatpush3.bf16.msra.mxu0 %v207_v7 }
  0x1b   :  { %193 = vmatprep.subr.bf16.mxu0 %v210_v0 }
  0x1e   :  { %194 = vmatpush3.bf16.msra.mxu0 %v208_v8 }
  0x21   :  { %196 = vmatmul.mubr.bf16.vlgmr.msra.gmra.mrb[0].mxu0 %v209_v9 }
  0xf4   :  { %v129_v11 = vpop.f32.mrb[0].mxu0 }
  0xf5   :  { %v152_v12 = vadd.f32 %v169_v10, %v129_v11  ;;  %v197_v13 = vpop.f32.mrb[1].mxu0 }
  0xf6   :  { %v132_v14 = vpop.f32.mrb[2].mxu0 }
  0xf7   :  { %154 = vst [vmem:[%s271_s3] sm:$0xff] %v152_v12  ;;  %v153_v15 = vadd.f32 %v169_v10, %v132_v14  ;;  %v198_v16 = vpop.f32.mrb[3].mxu0 }
  0xf9   :  { %155 = vst [vmem:[%s271_s3 + $0x8] sm:$0xff] %v153_v15 }

// kernel: resnet_forward.18
= control target key start
LH: loop header
LB: loop body
LE: loop exit
PB: predicated region body
PF: predicated region fallthrough
CT: control target
= control target key end

     0   :  { %s1111_s15 = smov 0   ;;  %s1113_s16 = smov 0   ;;  %s1233_s0 = inlined_call_operand.vmem [shape: bf16[16,3584], index: 0, kind: input, shape index: {}]   ;;  %s1234_s1 = inlined_call_operand.vmem [shape: bf16[3584,128], index: 1, kind: input, shape index: {}]   ;;  %s1235_s2 = inlined_call_operand.vmem [shape: f32[1,128], index: 2, kind: input, shape index: {}]   ;;  %s1236_s3 = inlined_call_operand.vmem [shape: f32[16,128], index: 3, kind: input, shape index: {}]   ;;  %s1237_s4 = inlined_call_operand.vmem [shape: f32[16,128], index: 4, kind: output, shape index: {}]  }
   0x1   :  { %s1115_s17 = smov 0   ;;  %s1117_s18 = smov 0  }
   0x2   :  { %s1119_s19 = smov 0  }
   0x3 LB: > { %s26_s20 = sadd.s32 1, %s1079_s18  ;;  %p49_p1 = scmp.ne.s32.totalorder %s1071_s16, %s1067_s15  ;;  %s1083_s19 = sphi %s1119_s19, %s14_s19   ;;  %s1079_s18 = sphi %s1117_s18, %s1241_s18   ;;  %s1075_s17 = sphi %s1115_s17, %s1240_s17   ;;  %s1071_s16 = sphi %s1113_s16, %s1239_s16   ;;  %s1067_s15 = sphi %s1111_s15, %s1238_s15  }
   0x4   : > { %p27_p0 = scmp.ge.s32.totalorder %s26_s20, 7  ;;  %p50_p2 = scmp.eq.s32.totalorder %s1083_s19, 0 }
   0x5   : > { %s42_s22 = sadd.s32 1, %s1071_s16  ;;  %p870_p5 = scmp.ge.s32.totalorder %s1083_s19, 7 }
   0x6   : > { %s1243_s20 = smov (%p27_p0, %s26_s20), 0  ;;  %p51_p3 = por %p50_p2, %p49_p1 }
   0x7   : > { %s38_s21 = ssub.s32 %s1079_s18, %s1243_s20  ;;  %203 = sbr.rel (%p870_p5) target bundleno = 21 (0x15), region = 24 }
   0x8   : > { %p40_p4 = scmp.eq.s32.totalorder %s38_s21, 0 }
   0xa   : > { %s1146_s23 = scalar_select %p40_p4, %s1071_s16, %s42_s22  }
   0xe   : > { %206 = sbr.rel (!%p51_p3) target bundleno = 21 (0x15), region = 28  ;;  %s208_s24 = sand.u32 (%p51_p3), 1, %s1071_s16  }
   0xf   : > { %s921_s25 = sshll.u32 (%p51_p3), %s1079_s18, 4  ;;  %s871_s26 = sshll.u32 (%p51_p3), %s208_s24, 5 }
  0x10   : > { %s216_s29 = scalar_lea.vmem (%p51_p3), %s1233_s0, %s921_s25  ;;  %s210_s30 = scalar_lea.vmem (%p51_p3), [#allocation3], %s871_s26 }
  0x11   : > { %v229_v0 = vld [vmem:[%s216_s29] sm:$0xff] (%p51_p3)  ;;  %v231_v1 = vld [vmem:[%s216_s29 + $0x8] sm:$0xff] (%p51_p3)  ;;  %v233_v2 = vld [vmem:[%s216_s29 + $0x70] sm:$0xff] (%p51_p3) }
  0x12   : > { %230 = vst [vmem:[%s210_s30] sm:$0xff] (%p51_p3), %v229_v0  ;;  %232 = vst [vmem:[%s210_s30 + $0x8] sm:$0xff] (%p51_p3), %v231_v1  ;;  %v235_v3 = vld [vmem:[%s216_s29 + $0x78] sm:$0xff] (%p51_p3) }
  0x13   : > { %234 = vst [vmem:[%s210_s30 + $0x10] sm:$0xff] (%p51_p3), %v233_v2  ;;  %236 = vst [vmem:[%s210_s30 + $0x18] sm:$0xff] (%p51_p3), %v235_v3 }
  0x15 PF: > { %p874_p6 = scmp.ge.s32.totalorder %s1083_s19, 1  ;;  %p253_p7 = scmp.lt.s32.totalorder %s1083_s19, 8 }
  0x17   : > { %p254_p8 = pnand %p874_p6, %p253_p7 }
  0x18   : > { %s260_s5 = sand.u32 (!%p254_p8), 1, %s1067_s15   ;;  %s876_s6 = sshll.u32 (!%p254_p8), %s1075_s17, 6 }
  0x19   : > { %257 = sbr.rel (%p254_p8) target bundleno = 310 (0x136), region = 55  ;;  %s875_s7 = sshll.u32 (!%p254_p8), %s260_s5, 5 }
  0x1a   : > { %p310_p9 = scmp.lt.s32.totalorder (!%p254_p8), %s876_s6, 447  ;;  %s1163_s12 = scalar_lea.vmem (!%p254_p8), [#allocation3], %s875_s7 }
  0x1b   : > { %p878_p10 = scmp.ne.s32.totalorder (!%p254_p8), %s1075_s17, 0 }
  0x20   : > { %s1245_s6 = smov (!%p310_p9, %s876_s6), 447  ;;  %343 = sbr.rel (%p878_p10) target bundleno = 39 (0x27), region = 63 }
  0x21   : > { %s877_s8 = sshll.u32 %s1245_s6, 2  ;;  %v1085_v4 = vmov (!%p878_p10), 0.0  }
  0x22   : > { %s1161_s11 = scalar_lea.vmem %s1234_s1, %s877_s8  ;;  %344 = vst [vmem:[#allocation2] sm:$0xff] (!%p878_p10), %v1085_v4  ;;  %345 = vst [vmem:[#allocation2 + $0x8] sm:$0xff] (!%p878_p10), %v1085_v4 }
  0x27 PF: > { %v1007_v5 = vld [vmem:[%s1161_s11 + $0x40] sm:$0xff]   ;;  %v1011_v9 = vld [vmem:[%s1161_s11 + $0x48] sm:$0xff]   ;;  %v1015_v13 = vld [vmem:[%s1161_s11 + $0x50] sm:$0xff]   ;;  %p915_p11 = scmp.ne.s32.totalorder %s1075_s17, 6 }
  0x28   : > { %v1008_v6 = vld [vmem:[%s1161_s11 + $0xc0] sm:$0xff]   ;;  %922 = vmatprep.subr.bf16.mxu0 %v1007_v5  ;;  %v1012_v10 = vld [vmem:[%s1161_s11 + $0xc8] sm:$0xff]   ;;  %v1016_v14 = vld [vmem:[%s1161_s11 + $0xd0] sm:$0xff]  }
  0x29   : > { %v1009_v7 = vld [vmem:[%s1161_s11] sm:$0xff]   ;;  %944 = vmatprep.subr.bf16.mxu1 %v1008_v6  ;;  %v1013_v11 = vld [vmem:[%s1161_s11 + $0x8] sm:$0xff]   ;;  %v1017_v15 = vld [vmem:[%s1161_s11 + $0x10] sm:$0xff]  }
  0x2a   : > { %v1010_v8 = vld [vmem:[%s1161_s11 + $0x80] sm:$0xff]   ;;  %923 = vmatpush3.bf16.msra.mxu0 %v1009_v7  ;;  %v1014_v12 = vld [vmem:[%s1161_s11 + $0x88] sm:$0xff]   ;;  %v1018_v16 = vld [vmem:[%s1161_s11 + $0x90] sm:$0xff]  }
  0x2b   : > { %945 = vmatpush3.bf16.msra.mxu1 %v1010_v8  ;;  %924 = vmatprep.subr.bf16.mxu0 %v1011_v9  ;;  %v1019_v17 = vld [vmem:[%s1161_s11 + $0x58] sm:$0xff]   ;;  %v1023_v21 = vld [vmem:[%s1161_s11 + $0x60] sm:$0xff]   ;;  %v1027_v25 = vld [vmem:[%s1161_s11 + $0x68] sm:$0xff]  }
  0x2c   : > { %946 = vmatprep.subr.bf16.mxu1 %v1012_v10  ;;  %v1020_v18 = vld [vmem:[%s1161_s11 + $0xd8] sm:$0xff]   ;;  %v1024_v22 = vld [vmem:[%s1161_s11 + $0xe0] sm:$0xff]   ;;  %v1028_v26 = vld [vmem:[%s1161_s11 + $0xe8] sm:$0xff]  }
  0x2d   : > { %v1021_v19 = vld [vmem:[%s1161_s11 + $0x18] sm:$0xff]   ;;  %v1025_v23 = vld [vmem:[%s1161_s11 + $0x20] sm:$0xff]   ;;  %v1029_v27 = vld [vmem:[%s1161_s11 + $0x28] sm:$0xff]  }
  0x2e   : > { %925 = vmatpush3.bf16.msra.mxu0 %v1013_v11  ;;  %v1022_v20 = vld [vmem:[%s1161_s11 + $0x98] sm:$0xff]   ;;  %v1026_v24 = vld [vmem:[%s1161_s11 + $0xa0] sm:$0xff]   ;;  %v1030_v28 = vld [vmem:[%s1161_s11 + $0xa8] sm:$0xff]  }
  0x2f   : > { %947 = vmatpush3.bf16.msra.mxu1 %v1014_v12  ;;  %926 = vmatprep.subr.bf16.mxu0 %v1015_v13  ;;  %v1031_v29 = vld [vmem:[%s1161_s11 + $0x70] sm:$0xff]   ;;  %v1035_v33 = vld [vmem:[%s1161_s11 + $0x78] sm:$0xff]   ;;  %v346_v50 = vld [vmem:[#allocation2] sm:$0xff] }
  0x30   : > { %948 = vmatprep.subr.bf16.mxu1 %v1016_v14  ;;  %v1032_v30 = vld [vmem:[%s1161_s11 + $0xf0] sm:$0xff]   ;;  %v1036_v34 = vld [vmem:[%s1161_s11 + $0xf8] sm:$0xff]   ;;  %v347_v55 = vld [vmem:[#allocation2 + $0x8] sm:$0xff] }
  0x31   : > { %v1033_v31 = vld [vmem:[%s1161_s11 + $0x30] sm:$0xff]   ;;  %v1037_v35 = vld [vmem:[%s1161_s11 + $0x38] sm:$0xff]   ;;  %v916_v60 = vld [vmem:[%s1235_s2] ss:$0 sm:$0xff] (!%p915_p11) }
  0x32   : > { %927 = vmatpush3.bf16.msra.mxu0 %v1017_v15  ;;  %v1034_v32 = vld [vmem:[%s1161_s11 + $0xb0] sm:$0xff]   ;;  %v1038_v36 = vld [vmem:[%s1161_s11 + $0xb8] sm:$0xff]   ;;  %v729_v61 = vld [vmem:[%s1236_s3] sm:$0xff] (!%p915_p11) }
  0x33   : > { %949 = vmatpush3.bf16.msra.mxu1 %v1018_v16  ;;  %928 = vmatprep.subr.bf16.mxu0 %v1019_v17  ;;  %v1039_v37 = vld [vmem:[%s1163_s12] ss:$16 sps:$4 sm:$0xff]   ;;  %v1041_v38 = vld [vmem:[%s1163_s12 + $0x4] ss:$16 sps:$4 sm:$0xff]   ;;  %v1042_v39 = vld [vmem:[%s1163_s12 + $0x8] ss:$16 sps:$4 sm:$0xff]  }
  0x34   : > { %950 = vmatprep.subr.bf16.mxu1 %v1020_v18  ;;  %v1044_v40 = vld [vmem:[%s1163_s12 + $0xc] ss:$16 sps:$4 sm:$0xff]   ;;  %660 = vmatprep.mubr.bf16.mxu0 %v1041_v38 }
  0x35   : > { %701 = vmatprep.mubr.bf16.mxu1 %v1044_v40  ;;  %v730_v0 = vld [vmem:[%s1236_s3 + $0x8] sm:$0xff] (!%p915_p11) }
  0x36   : > { %929 = vmatpush3.bf16.msra.mxu0 %v1021_v19 }
  0x37   : > { %951 = vmatpush3.bf16.msra.mxu1 %v1022_v20  ;;  %930 = vmatprep.subr.bf16.mxu0 %v1023_v21 }
  0x38   : > { %952 = vmatprep.subr.bf16.mxu1 %v1024_v22 }
  0x3a   : > { %931 = vmatpush3.bf16.msra.mxu0 %v1025_v23 }
  0x3b   : > { %953 = vmatpush3.bf16.msra.mxu1 %v1026_v24  ;;  %932 = vmatprep.subr.bf16.mxu0 %v1027_v25 }
  0x3c   : > { %954 = vmatprep.subr.bf16.mxu1 %v1028_v26 }
  0x3e   : > { %933 = vmatpush3.bf16.msra.mxu0 %v1029_v27 }
  0x3f   : > { %955 = vmatpush3.bf16.msra.mxu1 %v1030_v28  ;;  %934 = vmatprep.subr.bf16.mxu0 %v1031_v29 }
  0x40   : > { %956 = vmatprep.subr.bf16.mxu1 %v1032_v30 }
  0x42   : > { %935 = vmatpush3.bf16.msra.mxu0 %v1033_v31 }
  0x43   : > { %957 = vmatpush3.bf16.msra.mxu1 %v1034_v32  ;;  %936 = vmatprep.subr.bf16.mxu0 %v1035_v33 }
  0x44   : > { %958 = vmatprep.subr.bf16.mxu1 %v1036_v34 }
  0x46   : > { %937 = vmatpush3.bf16.msra.mxu0 %v1037_v35 }
  0x47   : > { %959 = vmatpush3.bf16.msra.mxu1 %v1038_v36 }
  0x49   : > { %661 = vmatmul.mubr.bf16.vlgmr.msra.gmra.mrb[0].mxu0 %v1039_v37 }
  0x4a   : > { %702 = vmatmul.mubr.bf16.vlgmr.msra.gmra.mrb[0].mxu1 %v1042_v39 }
 0x11c   : > { %v938_v41 = vpop.f32.mrb[0].mxu0 }
 0x11d   : > { %v960_v42 = vpop.f32.mrb[0].mxu1  ;;  %v939_v43 = vpop.f32.mrb[1].mxu0 }
 0x11e   : > { %v940_v44 = vadd.f32 %v939_v43, %v938_v41  ;;  %v961_v45 = vpop.f32.mrb[1].mxu1  ;;  %v941_v46 = vpop.f32.mrb[2].mxu0 }
 0x11f   : > { %v962_v47 = vadd.f32 %v961_v45, %v960_v42  ;;  %v963_v48 = vpop.f32.mrb[2].mxu1  ;;  %v942_v49 = vpop.f32.mrb[3].mxu0 }
 0x120   : > { %v943_v51 = vadd.f32 %v942_v49, %v941_v46  ;;  %v964_v52 = vpop.f32.mrb[3].mxu1 }
 0x121   : > { %v704_v53 = vadd.f32 %v962_v47, %v940_v44  ;;  %v965_v54 = vadd.f32 %v964_v52, %v963_v48  ;;  %717 = sbr.rel (%p915_p11) target bundleno = 310 (0x136), region = 67 }
 0x123   : > { %v710_v56 = vadd.f32 %v704_v53, %v346_v50  ;;  %v707_v57 = vadd.f32 %v965_v54, %v943_v51 }
 0x125   : > { %712 = vst [vmem:[#allocation2] sm:$0xff] %v710_v56  ;;  %v711_v58 = vadd.f32 %v707_v57, %v347_v55 }
 0x127   : > { %713 = vst [vmem:[#allocation2 + $0x8] sm:$0xff] %v711_v58 }
 0x12c   : > { %v718_v59 = vld [vmem:[#allocation2] sm:$0xff] }
 0x12d   : > { %v727_v62 = vadd.f32 %v916_v60, %v718_v59 }
 0x12e   : > { %v719_v63 = vld [vmem:[#allocation2 + $0x8] sm:$0xff] }
 0x12f   : > { %v728_v1 = vadd.f32 %v916_v60, %v719_v63  ;;  %v731_v2 = vadd.f32 %v729_v61, %v727_v62 }
 0x131   : > { %v732_v3 = vadd.f32 %v730_v0, %v728_v1  ;;  %v733_v4 = vmax.f32 %v731_v2, 0.0 }
 0x133   : > { %v734_v5 = vmax.f32 %v732_v3, 0.0  ;;  %735 = vst [vmem:[%s1237_s4] sm:$0xff] %v733_v4 }
 0x135   : > { %736 = vst [vmem:[%s1237_s4 + $0x8] sm:$0xff] %v734_v5 }
 0x136 PF: > { %s14_s19 = sadd.s32 1, %s1083_s19   ;;  %s1238_s15 = smov %s1071_s16 }
 0x137   : > { %p11_p12 = scmp.ge.s32.totalorder %s14_s19, 9   ;;  %s1239_s16 = smov %s1146_s23 }
 0x138   : > { %s1240_s17 = smov %s1079_s18  ;;  %s1241_s18 = smov %s1243_s20 }
 0x139   :  { %13 = sbr.rel (!%p11_p12) target bundleno = 3 (0x3), region = 111 }

// kernel: resnet_forward.19
= control target key start
LH: loop header
LB: loop body
LE: loop exit
PB: predicated region body
PF: predicated region fallthrough
CT: control target
= control target key end

     0   :  { %v260_v1 = vmov 0   ;;  %v191_v18 = vlaneseq  ;;  %s347_s1 = inlined_call_operand.vmem [shape: bf16[128,256], index: 1, kind: input, shape index: {}]   ;;  %s348_s0 = inlined_call_operand.vmem [shape: bf16[16,128], index: 0, kind: input, shape index: {}]   ;;  %s349_s2 = inlined_call_operand.vmem [shape: f32[1,256], index: 2, kind: input, shape index: {}]   ;;  %s350_s3 = inlined_call_operand.vmem [shape: f32[16,256], index: 3, kind: output, shape index: {}]  }
   0x1   :  { %v235_v0 = vld [vmem:[%s347_s1 + $0x4] ss:$8 sps:$4 sm:$0xff]   ;;  %163 = vmatprep.mubr.bf16.mxu0 %v260_v1  ;;  %v237_v2 = vld [vmem:[%s347_s1] ss:$8 sps:$4 sm:$0xff]   ;;  %v238_v3 = vld [vmem:[%s347_s1 + $0x14] ss:$8 sps:$4 sm:$0xff]  }
   0x2   :  { %131 = vmatprep.subr.bf16.mxu0 %v235_v0  ;;  %v240_v4 = vld [vmem:[%s347_s1 + $0x10] ss:$8 sps:$4 sm:$0xff]   ;;  %v241_v5 = vld [vmem:[%s347_s1 + $0x24] ss:$8 sps:$4 sm:$0xff]   ;;  %v243_v6 = vld [vmem:[%s347_s1 + $0x20] ss:$8 sps:$4 sm:$0xff]  }
   0x3   :  { %132 = vmatpush1.bf16.msra.mxu0 %v237_v2  ;;  %v244_v7 = vld [vmem:[%s347_s1 + $0x34] ss:$8 sps:$4 sm:$0xff]   ;;  %v246_v8 = vld [vmem:[%s347_s1 + $0x30] ss:$8 sps:$4 sm:$0xff]   ;;  %v247_v9 = vld [vmem:[%s347_s1 + $0x44] ss:$8 sps:$4 sm:$0xff]  }
   0x4   :  { %133 = vmatprep.subr.bf16.mxu0 %v238_v3  ;;  %v249_v10 = vld [vmem:[%s347_s1 + $0x40] ss:$8 sps:$4 sm:$0xff]   ;;  %v250_v11 = vld [vmem:[%s347_s1 + $0x54] ss:$8 sps:$4 sm:$0xff]   ;;  %v252_v12 = vld [vmem:[%s347_s1 + $0x50] ss:$8 sps:$4 sm:$0xff]  }
   0x5   :  { %v253_v13 = vld [vmem:[%s347_s1 + $0x64] ss:$8 sps:$4 sm:$0xff]   ;;  %v255_v14 = vld [vmem:[%s347_s1 + $0x60] ss:$8 sps:$4 sm:$0xff]   ;;  %v256_v15 = vld [vmem:[%s347_s1 + $0x74] ss:$8 sps:$4 sm:$0xff]  }
   0x6   :  { %v258_v16 = vld [vmem:[%s347_s1 + $0x70] ss:$8 sps:$4 sm:$0xff]   ;;  %v259_v17 = vld [vmem:[%s348_s0] sm:$0xff]   ;;  %v192_v19 = vshrl.u32 %v191_v18, 7 }
   0x7   :  { %134 = vmatpush1.bf16.msra.mxu0 %v240_v4  ;;  %v189_v21 = vld [vmem:[%s349_s2] sm:$0x3] }
   0x8   :  { %135 = vmatprep.subr.bf16.mxu0 %v241_v5  ;;  %v193_v20 = vsub.s32 0, %v192_v19  ;;  %v197_v22 = vsub.s32 1, %v192_v19 }
   0xa   :  { %v194_v23 = vrot.slane %v189_v21, %v193_v20  ;;  %v198_v24 = vrot.slane %v189_v21, %v197_v22 }
   0xb   :  { %136 = vmatpush1.bf16.msra.mxu0 %v243_v6 }
   0xc   :  { %137 = vmatprep.subr.bf16.mxu0 %v244_v7 }
   0xf   :  { %138 = vmatpush1.bf16.msra.mxu0 %v246_v8 }
  0x10   :  { %139 = vmatprep.subr.bf16.mxu0 %v247_v9 }
  0x13   :  { %140 = vmatpush1.bf16.msra.mxu0 %v249_v10 }
  0x14   :  { %141 = vmatprep.subr.bf16.mxu0 %v250_v11 }
  0x17   :  { %142 = vmatpush1.bf16.msra.mxu0 %v252_v12 }
  0x18   :  { %143 = vmatprep.subr.bf16.mxu0 %v253_v13 }
  0x1b   :  { %144 = vmatpush1.bf16.msra.mxu0 %v255_v14 }
  0x1c   :  { %145 = vmatprep.subr.bf16.mxu0 %v256_v15 }
  0x1f   :  { %146 = vmatpush1.bf16.msra.mxu0 %v258_v16 }
  0x22   :  { %164 = vmatmul.mubr.bf16.vlgmr.msra.gmra.mrb[0].mxu0 %v259_v17 }
  0xf5   :  { %v165_v25 = vpop.f32.mrb[0].mxu0 }
  0xf6   :  { %v201_v26 = vadd.f32 %v194_v23, %v165_v25  ;;  %v167_v27 = vpop.f32.mrb[1].mxu0 }
  0xf7   :  { %v202_v28 = vadd.f32 %v198_v24, %v167_v27  ;;  %v169_v29 = vpop.f32.mrb[2].mxu0 }
  0xf8   :  { %v205_v30 = vmax.f32 %v201_v26, 0.0  ;;  %v203_v31 = vadd.f32 %v194_v23, %v169_v29  ;;  %v171_v32 = vpop.f32.mrb[3].mxu0 }
  0xf9   :  { %v206_v33 = vmax.f32 %v202_v28, 0.0  ;;  %v204_v34 = vadd.f32 %v198_v24, %v171_v32 }
  0xfa   :  { %209 = vst [vmem:[%s350_s3] sm:$0xff] %v205_v30  ;;  %v207_v35 = vmax.f32 %v203_v31, 0.0 }
  0xfb   :  { %210 = vst [vmem:[%s350_s3 + $0x8] sm:$0xff] %v206_v33  ;;  %v208_v36 = vmax.f32 %v204_v34, 0.0 }
  0xfc   :  { %211 = vst [vmem:[%s350_s3 + $0x10] sm:$0xff] %v207_v35 }
  0xfd   :  { %212 = vst [vmem:[%s350_s3 + $0x18] sm:$0xff] %v208_v36 }

// kernel: resnet_forward.20
= control target key start
LH: loop header
LB: loop body
LE: loop exit
PB: predicated region body
PF: predicated region fallthrough
CT: control target
= control target key end

     0   :  { %v256_v1 = vmov 0   ;;  %v191_v18 = vlaneseq  ;;  %s343_s1 = inlined_call_operand.vmem [shape: bf16[128,256], index: 1, kind: input, shape index: {}]   ;;  %s344_s0 = inlined_call_operand.vmem [shape: bf16[16,128], index: 0, kind: input, shape index: {}]   ;;  %s345_s2 = inlined_call_operand.vmem [shape: f32[1,256], index: 2, kind: input, shape index: {}]   ;;  %s346_s3 = inlined_call_operand.vmem [shape: f32[16,256], index: 3, kind: output, shape index: {}]  }
   0x1   :  { %v231_v0 = vld [vmem:[%s343_s1 + $0x4] ss:$8 sps:$4 sm:$0xff]   ;;  %163 = vmatprep.mubr.bf16.mxu0 %v256_v1  ;;  %v233_v2 = vld [vmem:[%s343_s1] ss:$8 sps:$4 sm:$0xff]   ;;  %v234_v3 = vld [vmem:[%s343_s1 + $0x14] ss:$8 sps:$4 sm:$0xff]  }
   0x2   :  { %131 = vmatprep.subr.bf16.mxu0 %v231_v0  ;;  %v236_v4 = vld [vmem:[%s343_s1 + $0x10] ss:$8 sps:$4 sm:$0xff]   ;;  %v237_v5 = vld [vmem:[%s343_s1 + $0x24] ss:$8 sps:$4 sm:$0xff]   ;;  %v239_v6 = vld [vmem:[%s343_s1 + $0x20] ss:$8 sps:$4 sm:$0xff]  }
   0x3   :  { %132 = vmatpush1.bf16.msra.mxu0 %v233_v2  ;;  %v240_v7 = vld [vmem:[%s343_s1 + $0x34] ss:$8 sps:$4 sm:$0xff]   ;;  %v242_v8 = vld [vmem:[%s343_s1 + $0x30] ss:$8 sps:$4 sm:$0xff]   ;;  %v243_v9 = vld [vmem:[%s343_s1 + $0x44] ss:$8 sps:$4 sm:$0xff]  }
   0x4   :  { %133 = vmatprep.subr.bf16.mxu0 %v234_v3  ;;  %v245_v10 = vld [vmem:[%s343_s1 + $0x40] ss:$8 sps:$4 sm:$0xff]   ;;  %v246_v11 = vld [vmem:[%s343_s1 + $0x54] ss:$8 sps:$4 sm:$0xff]   ;;  %v248_v12 = vld [vmem:[%s343_s1 + $0x50] ss:$8 sps:$4 sm:$0xff]  }
   0x5   :  { %v249_v13 = vld [vmem:[%s343_s1 + $0x64] ss:$8 sps:$4 sm:$0xff]   ;;  %v251_v14 = vld [vmem:[%s343_s1 + $0x60] ss:$8 sps:$4 sm:$0xff]   ;;  %v252_v15 = vld [vmem:[%s343_s1 + $0x74] ss:$8 sps:$4 sm:$0xff]  }
   0x6   :  { %v254_v16 = vld [vmem:[%s343_s1 + $0x70] ss:$8 sps:$4 sm:$0xff]   ;;  %v255_v17 = vld [vmem:[%s344_s0] sm:$0xff]   ;;  %v192_v19 = vshrl.u32 %v191_v18, 7 }
   0x7   :  { %134 = vmatpush1.bf16.msra.mxu0 %v236_v4  ;;  %v189_v21 = vld [vmem:[%s345_s2] sm:$0x3] }
   0x8   :  { %135 = vmatprep.subr.bf16.mxu0 %v237_v5  ;;  %v193_v20 = vsub.s32 0, %v192_v19  ;;  %v197_v22 = vsub.s32 1, %v192_v19 }
   0xa   :  { %v194_v23 = vrot.slane %v189_v21, %v193_v20  ;;  %v198_v24 = vrot.slane %v189_v21, %v197_v22 }
   0xb   :  { %136 = vmatpush1.bf16.msra.mxu0 %v239_v6 }
   0xc   :  { %137 = vmatprep.subr.bf16.mxu0 %v240_v7 }
   0xf   :  { %138 = vmatpush1.bf16.msra.mxu0 %v242_v8 }
  0x10   :  { %139 = vmatprep.subr.bf16.mxu0 %v243_v9 }
  0x13   :  { %140 = vmatpush1.bf16.msra.mxu0 %v245_v10 }
  0x14   :  { %141 = vmatprep.subr.bf16.mxu0 %v246_v11 }
  0x17   :  { %142 = vmatpush1.bf16.msra.mxu0 %v248_v12 }
  0x18   :  { %143 = vmatprep.subr.bf16.mxu0 %v249_v13 }
  0x1b   :  { %144 = vmatpush1.bf16.msra.mxu0 %v251_v14 }
  0x1c   :  { %145 = vmatprep.subr.bf16.mxu0 %v252_v15 }
  0x1f   :  { %146 = vmatpush1.bf16.msra.mxu0 %v254_v16 }
  0x22   :  { %164 = vmatmul.mubr.bf16.vlgmr.msra.gmra.mrb[0].mxu0 %v255_v17 }
  0xf5   :  { %v165_v25 = vpop.f32.mrb[0].mxu0 }
  0xf6   :  { %v201_v26 = vadd.f32 %v194_v23, %v165_v25  ;;  %v167_v27 = vpop.f32.mrb[1].mxu0 }
  0xf7   :  { %v202_v28 = vadd.f32 %v198_v24, %v167_v27  ;;  %v169_v29 = vpop.f32.mrb[2].mxu0 }
  0xf8   :  { %205 = vst [vmem:[%s346_s3] sm:$0xff] %v201_v26  ;;  %v203_v30 = vadd.f32 %v194_v23, %v169_v29  ;;  %v171_v31 = vpop.f32.mrb[3].mxu0 }
  0xf9   :  { %206 = vst [vmem:[%s346_s3 + $0x8] sm:$0xff] %v202_v28  ;;  %v204_v32 = vadd.f32 %v198_v24, %v171_v31 }
  0xfa   :  { %207 = vst [vmem:[%s346_s3 + $0x10] sm:$0xff] %v203_v30 }
  0xfb   :  { %208 = vst [vmem:[%s346_s3 + $0x18] sm:$0xff] %v204_v32 }

// kernel: resnet_forward.21
= control target key start
LH: loop header
LB: loop body
LE: loop exit
PB: predicated region body
PF: predicated region fallthrough
CT: control target
= control target key end

     0   :  { %v293_v34 = vlaneseq  ;;  %s566_s1 = inlined_call_operand.vmem [shape: bf16[256,256], index: 1, kind: input, shape index: {}]   ;;  %s567_s0 = inlined_call_operand.vmem [shape: bf16[16,256], index: 0, kind: input, shape index: {}]   ;;  %s568_s2 = inlined_call_operand.vmem [shape: f32[1,256], index: 2, kind: input, shape index: {}]   ;;  %s569_s3 = inlined_call_operand.vmem [shape: f32[16,256], index: 3, kind: input, shape index: {}]   ;;  %s570_s4 = inlined_call_operand.vmem [shape: f32[16,256], index: 4, kind: output, shape index: {}]  }
   0x1   :  { %v361_v0 = vld [vmem:[%s566_s1 + $0x4] ss:$8 sps:$4 sm:$0xff]   ;;  %v363_v1 = vld [vmem:[%s566_s1] ss:$8 sps:$4 sm:$0xff]   ;;  %v364_v2 = vld [vmem:[%s566_s1 + $0x14] ss:$8 sps:$4 sm:$0xff]  }
   0x2   :  { %233 = vmatprep.subr.bf16.mxu0 %v361_v0  ;;  %v366_v3 = vld [vmem:[%s566_s1 + $0x10] ss:$8 sps:$4 sm:$0xff]   ;;  %v367_v4 = vld [vmem:[%s566_s1 + $0x24] ss:$8 sps:$4 sm:$0xff]   ;;  %v369_v5 = vld [vmem:[%s566_s1 + $0x20] ss:$8 sps:$4 sm:$0xff]  }
   0x3   :  { %234 = vmatpush1.bf16.msra.mxu0 %v363_v1  ;;  %v370_v6 = vld [vmem:[%s566_s1 + $0x34] ss:$8 sps:$4 sm:$0xff]   ;;  %v372_v7 = vld [vmem:[%s566_s1 + $0x30] ss:$8 sps:$4 sm:$0xff]   ;;  %v373_v8 = vld [vmem:[%s566_s1 + $0x44] ss:$8 sps:$4 sm:$0xff]  }
   0x4   :  { %235 = vmatprep.subr.bf16.mxu0 %v364_v2  ;;  %v375_v9 = vld [vmem:[%s566_s1 + $0x40] ss:$8 sps:$4 sm:$0xff]   ;;  %v376_v10 = vld [vmem:[%s566_s1 + $0x54] ss:$8 sps:$4 sm:$0xff]   ;;  %v378_v11 = vld [vmem:[%s566_s1 + $0x50] ss:$8 sps:$4 sm:$0xff]  }
   0x5   :  { %v379_v12 = vld [vmem:[%s566_s1 + $0x64] ss:$8 sps:$4 sm:$0xff]   ;;  %v381_v14 = vld [vmem:[%s566_s1 + $0x60] ss:$8 sps:$4 sm:$0xff]   ;;  %v382_v15 = vld [vmem:[%s566_s1 + $0x74] ss:$8 sps:$4 sm:$0xff]  }
   0x6   :  { %v411_v13 = vld [vmem:[%s567_s0 + $0x4] ss:$8 sps:$4 sm:$0xff]   ;;  %v384_v16 = vld [vmem:[%s566_s1 + $0x70] ss:$8 sps:$4 sm:$0xff]   ;;  %v387_v18 = vld [vmem:[%s566_s1 + $0x80] ss:$8 sps:$4 sm:$0xff]  }
   0x7   :  { %236 = vmatpush1.bf16.msra.mxu0 %v366_v3  ;;  %265 = vmatprep.mubr.bf16.mxu0 %v411_v13  ;;  %v385_v17 = vld [vmem:[%s566_s1 + $0x84] ss:$8 sps:$4 sm:$0xff]   ;;  %v388_v19 = vld [vmem:[%s566_s1 + $0x94] ss:$8 sps:$4 sm:$0xff]   ;;  %v390_v20 = vld [vmem:[%s566_s1 + $0x90] ss:$8 sps:$4 sm:$0xff]  }
   0x8   :  { %237 = vmatprep.subr.bf16.mxu0 %v367_v4  ;;  %v391_v21 = vld [vmem:[%s566_s1 + $0xa4] ss:$8 sps:$4 sm:$0xff]   ;;  %v393_v22 = vld [vmem:[%s566_s1 + $0xa0] ss:$8 sps:$4 sm:$0xff]   ;;  %v394_v23 = vld [vmem:[%s566_s1 + $0xb4] ss:$8 sps:$4 sm:$0xff]  }
   0x9   :  { %v396_v24 = vld [vmem:[%s566_s1 + $0xb0] ss:$8 sps:$4 sm:$0xff]   ;;  %v397_v25 = vld [vmem:[%s566_s1 + $0xc4] ss:$8 sps:$4 sm:$0xff]   ;;  %v399_v26 = vld [vmem:[%s566_s1 + $0xc0] ss:$8 sps:$4 sm:$0xff]  }
   0xa   :  { %v400_v27 = vld [vmem:[%s566_s1 + $0xd4] ss:$8 sps:$4 sm:$0xff]   ;;  %v402_v28 = vld [vmem:[%s566_s1 + $0xd0] ss:$8 sps:$4 sm:$0xff]   ;;  %v403_v29 = vld [vmem:[%s566_s1 + $0xe4] ss:$8 sps:$4 sm:$0xff]  }
   0xb   :  { %238 = vmatpush1.bf16.msra.mxu0 %v369_v5  ;;  %v405_v30 = vld [vmem:[%s566_s1 + $0xe0] ss:$8 sps:$4 sm:$0xff]   ;;  %v406_v31 = vld [vmem:[%s566_s1 + $0xf4] ss:$8 sps:$4 sm:$0xff]   ;;  %v408_v32 = vld [vmem:[%s566_s1 + $0xf0] ss:$8 sps:$4 sm:$0xff]  }
   0xc   :  { %239 = vmatprep.subr.bf16.mxu0 %v370_v6  ;;  %v409_v33 = vld [vmem:[%s567_s0] ss:$8 sps:$4 sm:$0xff]   ;;  %v294_v35 = vshrl.u32 %v293_v34, 7  ;;  %v309_v48 = vld [vmem:[%s569_s3 + $0x10] sm:$0xff]  ;;  %v310_v52 = vld [vmem:[%s569_s3 + $0x18] sm:$0xff] }
   0xd   :  { %v291_v37 = vld [vmem:[%s568_s2] sm:$0x3]  ;;  %v308_v45 = vld [vmem:[%s569_s3 + $0x8] sm:$0xff] }
   0xe   :  { %v295_v36 = vsub.s32 0, %v294_v35  ;;  %v299_v38 = vsub.s32 1, %v294_v35  ;;  %v307_v42 = vld [vmem:[%s569_s3] sm:$0xff] }
   0xf   :  { %240 = vmatpush1.bf16.msra.mxu0 %v372_v7 }
  0x10   :  { %241 = vmatprep.subr.bf16.mxu0 %v373_v8  ;;  %v296_v39 = vrot.slane %v291_v37, %v295_v36  ;;  %v300_v40 = vrot.slane %v291_v37, %v299_v38 }
  0x13   :  { %242 = vmatpush1.bf16.msra.mxu0 %v375_v9 }
  0x14   :  { %243 = vmatprep.subr.bf16.mxu0 %v376_v10 }
  0x17   :  { %244 = vmatpush1.bf16.msra.mxu0 %v378_v11 }
  0x18   :  { %245 = vmatprep.subr.bf16.mxu0 %v379_v12 }
  0x1b   :  { %246 = vmatpush1.bf16.msra.mxu0 %v381_v14 }
  0x1c   :  { %247 = vmatprep.subr.bf16.mxu0 %v382_v15 }
  0x1f   :  { %248 = vmatpush1.bf16.msra.mxu0 %v384_v16 }
  0x20   :  { %249 = vmatprep.subr.bf16.mxu0 %v385_v17 }
  0x23   :  { %250 = vmatpush1.bf16.msra.mxu0 %v387_v18 }
  0x24   :  { %251 = vmatprep.subr.bf16.mxu0 %v388_v19 }
  0x27   :  { %252 = vmatpush1.bf16.msra.mxu0 %v390_v20 }
  0x28   :  { %253 = vmatprep.subr.bf16.mxu0 %v391_v21 }
  0x2b   :  { %254 = vmatpush1.bf16.msra.mxu0 %v393_v22 }
  0x2c   :  { %255 = vmatprep.subr.bf16.mxu0 %v394_v23 }
  0x2f   :  { %256 = vmatpush1.bf16.msra.mxu0 %v396_v24 }
  0x30   :  { %257 = vmatprep.subr.bf16.mxu0 %v397_v25 }
  0x33   :  { %258 = vmatpush1.bf16.msra.mxu0 %v399_v26 }
  0x34   :  { %259 = vmatprep.subr.bf16.mxu0 %v400_v27 }
  0x37   :  { %260 = vmatpush1.bf16.msra.mxu0 %v402_v28 }
  0x38   :  { %261 = vmatprep.subr.bf16.mxu0 %v403_v29 }
  0x3b   :  { %262 = vmatpush1.bf16.msra.mxu0 %v405_v30 }
  0x3c   :  { %263 = vmatprep.subr.bf16.mxu0 %v406_v31 }
  0x3f   :  { %264 = vmatpush1.bf16.msra.mxu0 %v408_v32 }
  0x42   :  { %266 = vmatmul.mubr.bf16.vlgmr.msra.gmra.mrb[0].mxu0 %v409_v33 }
 0x115   :  { %v267_v41 = vpop.f32.mrb[0].mxu0 }
 0x116   :  { %v303_v43 = vadd.f32 %v296_v39, %v267_v41  ;;  %v269_v44 = vpop.f32.mrb[1].mxu0 }
 0x117   :  { %v304_v46 = vadd.f32 %v300_v40, %v269_v44  ;;  %v271_v47 = vpop.f32.mrb[2].mxu0 }
 0x118   :  { %v311_v49 = vadd.f32 %v307_v42, %v303_v43  ;;  %v305_v50 = vadd.f32 %v296_v39, %v271_v47  ;;  %v273_v51 = vpop.f32.mrb[3].mxu0 }
 0x119   :  { %v312_v53 = vadd.f32 %v308_v45, %v304_v46  ;;  %v306_v54 = vadd.f32 %v300_v40, %v273_v51 }
 0x11a   :  { %v315_v55 = vmax.f32 %v311_v49, 0.0  ;;  %v313_v56 = vadd.f32 %v309_v48, %v305_v50 }
 0x11b   :  { %v316_v57 = vmax.f32 %v312_v53, 0.0  ;;  %v314_v58 = vadd.f32 %v310_v52, %v306_v54 }
 0x11c   :  { %319 = vst [vmem:[%s570_s4] sm:$0xff] %v315_v55  ;;  %v317_v59 = vmax.f32 %v313_v56, 0.0 }
 0x11d   :  { %320 = vst [vmem:[%s570_s4 + $0x8] sm:$0xff] %v316_v57  ;;  %v318_v60 = vmax.f32 %v314_v58, 0.0 }
 0x11e   :  { %321 = vst [vmem:[%s570_s4 + $0x10] sm:$0xff] %v317_v59 }
 0x11f   :  { %322 = vst [vmem:[%s570_s4 + $0x18] sm:$0xff] %v318_v60 }

// kernel: resnet_forward.22
= control target key start
LH: loop header
LB: loop body
LE: loop exit
PB: predicated region body
PF: predicated region fallthrough
CT: control target
= control target key end

     0   :  { %s1056_s12 = smov 0   ;;  %s1058_s13 = smov 0   ;;  %s1244_s0 = inlined_call_operand.vmem [shape: bf16[16,256], index: 0, kind: input, shape index: {}]   ;;  %s1245_s1 = inlined_call_operand.vmem [shape: bf16[256,512], index: 1, kind: input, shape index: {}]   ;;  %s1246_s2 = inlined_call_operand.vmem [shape: f32[1,512], index: 2, kind: input, shape index: {}]   ;;  %s1247_s3 = inlined_call_operand.vmem [shape: f32[16,512], index: 3, kind: output, shape index: {}]  }
   0x1   :  { %s1060_s14 = smov 0   ;;  %s1062_s15 = smov 0  }
   0x2   :  { %s1064_s16 = smov 0  }
   0x3 LB: > { %s28_s17 = sadd.s32 1, %s1030_s15  ;;  %s852_s18 = sadd.s32 4294967295, %s1034_s16   ;;  %s1034_s16 = sphi %s1064_s16, %s13_s16   ;;  %s1030_s15 = sphi %s1062_s15, %s1252_s15   ;;  %s1026_s14 = sphi %s1060_s14, %s1251_s14   ;;  %s1022_s13 = sphi %s1058_s13, %s1250_s13   ;;  %s1018_s12 = sphi %s1056_s12, %s1249_s12  }
   0x4   : > { %p30_p0 = scmp.ge.s32.totalorder %s28_s17, 2  ;;  %p76_p1 = scmp.ne.s32.totalorder %s1022_s13, %s1018_s12 }
   0x5   : > { %p77_p2 = scmp.eq.s32.totalorder %s1034_s16, 0  ;;  %p134_p4 = scmp.eq.s32.totalorder %s852_s18, 1 }
   0x6   : > { %s1254_s17 = smov (%p30_p0, %s28_s17), 0  ;;  %s69_s20 = sadd.s32 1, %s1022_s13 }
   0x7   : > { %p78_p3 = por %p77_p2, %p76_p1  ;;  %s65_s19 = ssub.s32 %s1030_s15, %s1254_s17 }
   0x8   : > { %p67_p5 = scmp.eq.s32.totalorder %s65_s19, 0  ;;  %p1091_p6 = por %p134_p4, %p76_p1 }
   0x9   : > { %p856_p7 = scmp.ge.s32.totalorder %s1034_s16, 2 }
   0xa   : > { %s1096_s22 = scalar_select %p67_p5, %s1022_s13, %s69_s20  }
   0xb   : > { %171 = sbr.rel (%p856_p7) target bundleno = 38 (0x26), region = 20 }
  0x12   : > { %174 = sbr.rel (!%p78_p3) target bundleno = 38 (0x26), region = 24  ;;  %s176_s23 = sand.u32 (%p78_p3), 1, %s1022_s13  }
  0x13   : > { %s903_s24 = sshll.u32 (%p78_p3), %s1030_s15, 3  ;;  %s857_s25 = sshll.u32 (%p78_p3), %s176_s23, 8 }
  0x14   : > { %s1104_s28 = scalar_lea.vmem (%p78_p3), %s1245_s1, %s903_s24  ;;  %s1109_s29 = scalar_lea.vmem (%p78_p3), [#allocation3], %s857_s25 }
  0x15   : > { %v274_v0 = vld [vmem:[%s1104_s28] sm:$0xff] (%p78_p3)  ;;  %v276_v1 = vld [vmem:[%s1104_s28 + $0x10] sm:$0xff] (%p78_p3) }
  0x16   : > { %v278_v2 = vld [vmem:[%s1104_s28 + $0x20] sm:$0xff] (%p78_p3)  ;;  %275 = vst [vmem:[%s1109_s29] sm:$0xff] (%p78_p3), %v274_v0  ;;  %277 = vst [vmem:[%s1109_s29 + $0x8] sm:$0xff] (%p78_p3), %v276_v1  ;;  %v280_v3 = vld [vmem:[%s1104_s28 + $0x30] sm:$0xff] (%p78_p3) }
  0x17   : > { %279 = vst [vmem:[%s1109_s29 + $0x10] sm:$0xff] (%p78_p3), %v278_v2  ;;  %v282_v4 = vld [vmem:[%s1104_s28 + $0x40] sm:$0xff] (%p78_p3)  ;;  %v284_v5 = vld [vmem:[%s1104_s28 + $0x50] sm:$0xff] (%p78_p3)  ;;  %281 = vst [vmem:[%s1109_s29 + $0x18] sm:$0xff] (%p78_p3), %v280_v3 }
  0x18   : > { %283 = vst [vmem:[%s1109_s29 + $0x20] sm:$0xff] (%p78_p3), %v282_v4  ;;  %285 = vst [vmem:[%s1109_s29 + $0x28] sm:$0xff] (%p78_p3), %v284_v5  ;;  %v286_v6 = vld [vmem:[%s1104_s28 + $0x60] sm:$0xff] (%p78_p3)  ;;  %v288_v7 = vld [vmem:[%s1104_s28 + $0x70] sm:$0xff] (%p78_p3) }
  0x19   : > { %v290_v8 = vld [vmem:[%s1104_s28 + $0x80] sm:$0xff]  ;;  %287 = vst [vmem:[%s1109_s29 + $0x30] sm:$0xff] %v286_v6  ;;  %289 = vst [vmem:[%s1109_s29 + $0x38] sm:$0xff] %v288_v7  ;;  %v292_v9 = vld [vmem:[%s1104_s28 + $0x90] sm:$0xff] }
  0x1a   : > { %291 = vst [vmem:[%s1109_s29 + $0x40] sm:$0xff] %v290_v8  ;;  %v294_v10 = vld [vmem:[%s1104_s28 + $0xa0] sm:$0xff]  ;;  %v296_v11 = vld [vmem:[%s1104_s28 + $0xb0] sm:$0xff]  ;;  %293 = vst [vmem:[%s1109_s29 + $0x48] sm:$0xff] %v292_v9 }
  0x1b   : > { %295 = vst [vmem:[%s1109_s29 + $0x50] sm:$0xff] %v294_v10  ;;  %297 = vst [vmem:[%s1109_s29 + $0x58] sm:$0xff] %v296_v11  ;;  %v298_v12 = vld [vmem:[%s1104_s28 + $0xc0] sm:$0xff]  ;;  %v300_v13 = vld [vmem:[%s1104_s28 + $0xd0] sm:$0xff] }
  0x1c   : > { %v302_v14 = vld [vmem:[%s1104_s28 + $0xe0] sm:$0xff]  ;;  %299 = vst [vmem:[%s1109_s29 + $0x60] sm:$0xff] %v298_v12  ;;  %301 = vst [vmem:[%s1109_s29 + $0x68] sm:$0xff] %v300_v13  ;;  %v304_v15 = vld [vmem:[%s1104_s28 + $0xf0] sm:$0xff] }
  0x1d   : > { %303 = vst [vmem:[%s1109_s29 + $0x70] sm:$0xff] %v302_v14  ;;  %v306_v16 = vld [vmem:[%s1104_s28 + $0x100] sm:$0xff]  ;;  %v308_v17 = vld [vmem:[%s1104_s28 + $0x110] sm:$0xff]  ;;  %305 = vst [vmem:[%s1109_s29 + $0x78] sm:$0xff] %v304_v15 }
  0x1e   : > { %307 = vst [vmem:[%s1109_s29 + $0x80] sm:$0xff] %v306_v16  ;;  %309 = vst [vmem:[%s1109_s29 + $0x88] sm:$0xff] %v308_v17  ;;  %v310_v18 = vld [vmem:[%s1104_s28 + $0x120] sm:$0xff]  ;;  %v312_v19 = vld [vmem:[%s1104_s28 + $0x130] sm:$0xff] }
  0x1f   : > { %v314_v20 = vld [vmem:[%s1104_s28 + $0x140] sm:$0xff]  ;;  %311 = vst [vmem:[%s1109_s29 + $0x90] sm:$0xff] %v310_v18  ;;  %313 = vst [vmem:[%s1109_s29 + $0x98] sm:$0xff] %v312_v19  ;;  %v316_v21 = vld [vmem:[%s1104_s28 + $0x150] sm:$0xff] }
  0x20   : > { %315 = vst [vmem:[%s1109_s29 + $0xa0] sm:$0xff] %v314_v20  ;;  %v318_v22 = vld [vmem:[%s1104_s28 + $0x160] sm:$0xff]  ;;  %v320_v23 = vld [vmem:[%s1104_s28 + $0x170] sm:$0xff]  ;;  %317 = vst [vmem:[%s1109_s29 + $0xa8] sm:$0xff] %v316_v21 }
  0x21   : > { %319 = vst [vmem:[%s1109_s29 + $0xb0] sm:$0xff] %v318_v22  ;;  %321 = vst [vmem:[%s1109_s29 + $0xb8] sm:$0xff] %v320_v23  ;;  %v322_v24 = vld [vmem:[%s1104_s28 + $0x180] sm:$0xff]  ;;  %v324_v25 = vld [vmem:[%s1104_s28 + $0x190] sm:$0xff] }
  0x22   : > { %v326_v26 = vld [vmem:[%s1104_s28 + $0x1a0] sm:$0xff]  ;;  %323 = vst [vmem:[%s1109_s29 + $0xc0] sm:$0xff] %v322_v24  ;;  %325 = vst [vmem:[%s1109_s29 + $0xc8] sm:$0xff] %v324_v25  ;;  %v328_v27 = vld [vmem:[%s1104_s28 + $0x1b0] sm:$0xff] }
  0x23   : > { %327 = vst [vmem:[%s1109_s29 + $0xd0] sm:$0xff] %v326_v26  ;;  %v330_v28 = vld [vmem:[%s1104_s28 + $0x1c0] sm:$0xff]  ;;  %v332_v29 = vld [vmem:[%s1104_s28 + $0x1d0] sm:$0xff]  ;;  %329 = vst [vmem:[%s1109_s29 + $0xd8] sm:$0xff] %v328_v27 }
  0x24   : > { %331 = vst [vmem:[%s1109_s29 + $0xe0] sm:$0xff] %v330_v28  ;;  %333 = vst [vmem:[%s1109_s29 + $0xe8] sm:$0xff] %v332_v29  ;;  %v334_v30 = vld [vmem:[%s1104_s28 + $0x1e0] sm:$0xff]  ;;  %v336_v31 = vld [vmem:[%s1104_s28 + $0x1f0] sm:$0xff] }
  0x25   : > { %335 = vst [vmem:[%s1109_s29 + $0xf0] sm:$0xff] %v334_v30  ;;  %337 = vst [vmem:[%s1109_s29 + $0xf8] sm:$0xff] %v336_v31 }
  0x26 PF: > { %p860_p8 = scmp.ge.s32.totalorder %s1034_s16, 1  ;;  %p350_p9 = scmp.lt.s32.totalorder %s1034_s16, 3 }
  0x28   : > { %p351_p10 = pnand %p860_p8, %p350_p9 }
  0x29   : > { %s357_s30 = sand.u32 (!%p351_p10), 1, %s1018_s12   ;;  %v995_v32 = vld [vmem:[%s1244_s0 + $0x4] ss:$8 sps:$4 sm:$0xff] (!%p351_p10)   ;;  %v993_v1 = vld [vmem:[%s1244_s0] ss:$8 sps:$4 sm:$0xff] (!%p351_p10)   ;;  %s863_s10 = sshll.u32 (!%p351_p10), %s1026_s14, 1  ;;  %v690_v2 = vlaneseq (!%p351_p10) }
  0x2a   : > { %354 = sbr.rel (%p351_p10) target bundleno = 337 (0x151), region = 66  ;;  %s861_s4 = sshll.u32 (!%p351_p10), %s357_s30, 8  ;;  %662 = vmatprep.mubr.bf16.mxu0 (!%p351_p10), %v995_v32 }
  0x2b   : > { %s1180_s7 = scalar_lea.vmem (!%p351_p10), [#allocation3], %s861_s4  ;;  %p408_p11 = scmp.lt.s32.totalorder (!%p351_p10), %s863_s10, 3  ;;  %v691_v3 = vshrl.u32 (!%p351_p10), %v690_v2, 7 }
  0x2c   : > { %v945_v33 = vld [vmem:[%s1180_s7 + $0x4] ss:$8 sps:$4 sm:$0xff] (!%p351_p10)   ;;  %v947_v34 = vld [vmem:[%s1180_s7] ss:$8 sps:$4 sm:$0xff] (!%p351_p10)   ;;  %v948_v35 = vld [vmem:[%s1180_s7 + $0x14] ss:$8 sps:$4 sm:$0xff] (!%p351_p10)  }
  0x2d   : > { %630 = vmatprep.subr.bf16.mxu0 (!%p351_p10), %v945_v33  ;;  %v950_v36 = vld [vmem:[%s1180_s7 + $0x10] ss:$8 sps:$4 sm:$0xff] (!%p351_p10)   ;;  %v951_v37 = vld [vmem:[%s1180_s7 + $0x24] ss:$8 sps:$4 sm:$0xff] (!%p351_p10)   ;;  %v953_v38 = vld [vmem:[%s1180_s7 + $0x20] ss:$8 sps:$4 sm:$0xff] (!%p351_p10)  }
  0x2e   : > { %631 = vmatpush1.bf16.msra.mxu0 (!%p351_p10), %v947_v34  ;;  %v954_v39 = vld [vmem:[%s1180_s7 + $0x34] ss:$8 sps:$4 sm:$0xff] (!%p351_p10)   ;;  %v956_v40 = vld [vmem:[%s1180_s7 + $0x30] ss:$8 sps:$4 sm:$0xff] (!%p351_p10)   ;;  %v957_v41 = vld [vmem:[%s1180_s7 + $0x44] ss:$8 sps:$4 sm:$0xff] (!%p351_p10)  }
  0x2f   : > { %632 = vmatprep.subr.bf16.mxu0 (!%p351_p10), %v948_v35  ;;  %v959_v42 = vld [vmem:[%s1180_s7 + $0x40] ss:$8 sps:$4 sm:$0xff] (!%p351_p10)   ;;  %v960_v43 = vld [vmem:[%s1180_s7 + $0x54] ss:$8 sps:$4 sm:$0xff] (!%p351_p10)   ;;  %v962_v44 = vld [vmem:[%s1180_s7 + $0x50] ss:$8 sps:$4 sm:$0xff] (!%p351_p10)  }
  0x30   : > { %v963_v45 = vld [vmem:[%s1180_s7 + $0x64] ss:$8 sps:$4 sm:$0xff] (!%p351_p10)   ;;  %v965_v46 = vld [vmem:[%s1180_s7 + $0x60] ss:$8 sps:$4 sm:$0xff] (!%p351_p10)   ;;  %v966_v47 = vld [vmem:[%s1180_s7 + $0x74] ss:$8 sps:$4 sm:$0xff] (!%p351_p10)  }
  0x31   : > { %v968_v48 = vld [vmem:[%s1180_s7 + $0x70] ss:$8 sps:$4 sm:$0xff]   ;;  %v969_v49 = vld [vmem:[%s1180_s7 + $0x84] ss:$8 sps:$4 sm:$0xff]   ;;  %v971_v50 = vld [vmem:[%s1180_s7 + $0x80] ss:$8 sps:$4 sm:$0xff]  }
  0x32   : > { %633 = vmatpush1.bf16.msra.mxu0 %v950_v36  ;;  %v972_v51 = vld [vmem:[%s1180_s7 + $0x94] ss:$8 sps:$4 sm:$0xff]   ;;  %v974_v52 = vld [vmem:[%s1180_s7 + $0x90] ss:$8 sps:$4 sm:$0xff]   ;;  %v975_v53 = vld [vmem:[%s1180_s7 + $0xa4] ss:$8 sps:$4 sm:$0xff]  }
  0x33   : > { %634 = vmatprep.subr.bf16.mxu0 %v951_v37  ;;  %v977_v54 = vld [vmem:[%s1180_s7 + $0xa0] ss:$8 sps:$4 sm:$0xff]   ;;  %v978_v55 = vld [vmem:[%s1180_s7 + $0xb4] ss:$8 sps:$4 sm:$0xff]   ;;  %v980_v56 = vld [vmem:[%s1180_s7 + $0xb0] ss:$8 sps:$4 sm:$0xff]  }
  0x34   : > { %v981_v57 = vld [vmem:[%s1180_s7 + $0xc4] ss:$8 sps:$4 sm:$0xff]   ;;  %v983_v58 = vld [vmem:[%s1180_s7 + $0xc0] ss:$8 sps:$4 sm:$0xff]   ;;  %v984_v59 = vld [vmem:[%s1180_s7 + $0xd4] ss:$8 sps:$4 sm:$0xff]  }
  0x35   : > { %v986_v60 = vld [vmem:[%s1180_s7 + $0xd0] ss:$8 sps:$4 sm:$0xff]   ;;  %v987_v61 = vld [vmem:[%s1180_s7 + $0xe4] ss:$8 sps:$4 sm:$0xff]   ;;  %v989_v62 = vld [vmem:[%s1180_s7 + $0xe0] ss:$8 sps:$4 sm:$0xff]  }
  0x36   : > { %635 = vmatpush1.bf16.msra.mxu0 %v953_v38  ;;  %v990_v63 = vld [vmem:[%s1180_s7 + $0xf4] ss:$8 sps:$4 sm:$0xff]   ;;  %v992_v0 = vld [vmem:[%s1180_s7 + $0xf0] ss:$8 sps:$4 sm:$0xff]   ;;  %s1256_s10 = smov (!%p408_p11, %s863_s10), 3  ;;  %v692_v4 = vsub.s32 0, %v691_v3 }
  0x37   : > { %636 = vmatprep.subr.bf16.mxu0 %v954_v39  ;;  %s410_s19 = scalar_lea.vmem %s1246_s2, %s1256_s10  ;;  %v696_v6 = vsub.s32 1, %v691_v3  ;;  %s862_s20 = sshll.u32 %s357_s30, 5 }
  0x38   : > { %v688_v5 = vld [vmem:[%s410_s19] sm:$0x3]  ;;  %s392_s23 = scalar_lea.vmem [#allocation4], %s862_s20  ;;  %s904_s12 = sshll.u32 (%p1091_p6), %s1026_s14, 4 }
  0x39   : > { %v693_v7 = vrot.slane %v688_v5, %v692_v4  ;;  %v697_v8 = vrot.slane %v688_v5, %v696_v6  ;;  %s724_s26 = scalar_lea.vmem (%p1091_p6), %s1247_s3, %s904_s12 }
  0x3a   : > { %637 = vmatpush1.bf16.msra.mxu0 %v956_v40 }
  0x3b   : > { %638 = vmatprep.subr.bf16.mxu0 %v957_v41 }
  0x3e   : > { %639 = vmatpush1.bf16.msra.mxu0 %v959_v42 }
  0x3f   : > { %640 = vmatprep.subr.bf16.mxu0 %v960_v43 }
  0x42   : > { %641 = vmatpush1.bf16.msra.mxu0 %v962_v44 }
  0x43   : > { %642 = vmatprep.subr.bf16.mxu0 %v963_v45 }
  0x46   : > { %643 = vmatpush1.bf16.msra.mxu0 %v965_v46 }
  0x47   : > { %644 = vmatprep.subr.bf16.mxu0 %v966_v47 }
  0x4a   : > { %645 = vmatpush1.bf16.msra.mxu0 %v968_v48 }
  0x4b   : > { %646 = vmatprep.subr.bf16.mxu0 %v969_v49 }
  0x4e   : > { %647 = vmatpush1.bf16.msra.mxu0 %v971_v50 }
  0x4f   : > { %648 = vmatprep.subr.bf16.mxu0 %v972_v51 }
  0x52   : > { %649 = vmatpush1.bf16.msra.mxu0 %v974_v52 }
  0x53   : > { %650 = vmatprep.subr.bf16.mxu0 %v975_v53 }
  0x56   : > { %651 = vmatpush1.bf16.msra.mxu0 %v977_v54 }
  0x57   : > { %652 = vmatprep.subr.bf16.mxu0 %v978_v55 }
  0x5a   : > { %653 = vmatpush1.bf16.msra.mxu0 %v980_v56 }
  0x5b   : > { %654 = vmatprep.subr.bf16.mxu0 %v981_v57 }
  0x5e   : > { %655 = vmatpush1.bf16.msra.mxu0 %v983_v58 }
  0x5f   : > { %656 = vmatprep.subr.bf16.mxu0 %v984_v59 }
  0x62   : > { %657 = vmatpush1.bf16.msra.mxu0 %v986_v60 }
  0x63   : > { %658 = vmatprep.subr.bf16.mxu0 %v987_v61 }
  0x66   : > { %659 = vmatpush1.bf16.msra.mxu0 %v989_v62 }
  0x67   : > { %660 = vmatprep.subr.bf16.mxu0 %v990_v63 }
  0x6a   : > { %661 = vmatpush1.bf16.msra.mxu0 %v992_v0 }
  0x6d   : > { %663 = vmatmul.mubr.bf16.vlgmr.msra.gmra.mrb[0].mxu0 %v993_v1 }
 0x140   : > { %v664_v9 = vpop.f32.mrb[0].mxu0 }
 0x141   : > { %v700_v10 = vadd.f32 %v693_v7, %v664_v9  ;;  %v666_v11 = vpop.f32.mrb[1].mxu0 }
 0x142   : > { %v701_v12 = vadd.f32 %v697_v8, %v666_v11  ;;  %v668_v13 = vpop.f32.mrb[2].mxu0  ;;  %718 = sbr.rel (!%p1091_p6) target bundleno = 337 (0x151), region = 82 }
 0x143   : > { %v704_v14 = vmax.f32 %v700_v10, 0.0  ;;  %v702_v15 = vadd.f32 %v693_v7, %v668_v13  ;;  %v670_v16 = vpop.f32.mrb[3].mxu0 }
 0x144   : > { %v705_v17 = vmax.f32 %v701_v12, 0.0  ;;  %v703_v18 = vadd.f32 %v697_v8, %v670_v16 }
 0x145   : > { %708 = vst [vmem:[%s392_s23] sm:$0xff] %v704_v14  ;;  %v706_v19 = vmax.f32 %v702_v15, 0.0 }
 0x146   : > { %709 = vst [vmem:[%s392_s23 + $0x8] sm:$0xff] %v705_v17  ;;  %v707_v20 = vmax.f32 %v703_v18, 0.0 }
 0x147   : > { %710 = vst [vmem:[%s392_s23 + $0x10] sm:$0xff] %v706_v19 }
 0x148   : > { %711 = vst [vmem:[%s392_s23 + $0x18] sm:$0xff] %v707_v20 }
 0x14c   : > { %v737_v21 = vld [vmem:[%s392_s23] sm:$0xff] }
 0x14d   : > { %v739_v22 = vld [vmem:[%s392_s23 + $0x8] sm:$0xff]  ;;  %738 = vst [vmem:[%s724_s26] sm:$0xff] %v737_v21 }
 0x14e   : > { %v741_v23 = vld [vmem:[%s392_s23 + $0x10] sm:$0xff]  ;;  %740 = vst [vmem:[%s724_s26 + $0x8] sm:$0xff] %v739_v22 }
 0x14f   : > { %v743_v24 = vld [vmem:[%s392_s23 + $0x18] sm:$0xff]  ;;  %742 = vst [vmem:[%s724_s26 + $0x20] sm:$0xff] %v741_v23 }
 0x150   : > { %744 = vst [vmem:[%s724_s26 + $0x28] sm:$0xff] %v743_v24 }
 0x151 PF: > { %s13_s16 = sadd.s32 1, %s1034_s16   ;;  %s1249_s12 = smov %s1022_s13 }
 0x152   : > { %p10_p12 = scmp.ge.s32.totalorder %s13_s16, 4   ;;  %s1250_s13 = smov %s1096_s22 }
 0x153   : > { %s1251_s14 = smov %s1030_s15  ;;  %s1252_s15 = smov %s1254_s17 }
 0x154   :  { %12 = sbr.rel (!%p10_p12) target bundleno = 3 (0x3), region = 142 }

// kernel: resnet_forward.23
= control target key start
LH: loop header
LB: loop body
LE: loop exit
PB: predicated region body
PF: predicated region fallthrough
CT: control target
= control target key end

     0   :  { %s1052_s12 = smov 0   ;;  %s1054_s13 = smov 0   ;;  %s1240_s0 = inlined_call_operand.vmem [shape: bf16[16,256], index: 0, kind: input, shape index: {}]   ;;  %s1241_s1 = inlined_call_operand.vmem [shape: bf16[256,512], index: 1, kind: input, shape index: {}]   ;;  %s1242_s2 = inlined_call_operand.vmem [shape: f32[1,512], index: 2, kind: input, shape index: {}]   ;;  %s1243_s3 = inlined_call_operand.vmem [shape: f32[16,512], index: 3, kind: output, shape index: {}]  }
   0x1   :  { %s1056_s14 = smov 0   ;;  %s1058_s15 = smov 0  }
   0x2   :  { %s1060_s16 = smov 0  }
   0x3 LB: > { %s28_s17 = sadd.s32 1, %s1026_s15  ;;  %s848_s18 = sadd.s32 4294967295, %s1030_s16   ;;  %s1030_s16 = sphi %s1060_s16, %s13_s16   ;;  %s1026_s15 = sphi %s1058_s15, %s1248_s15   ;;  %s1022_s14 = sphi %s1056_s14, %s1247_s14   ;;  %s1018_s13 = sphi %s1054_s13, %s1246_s13   ;;  %s1014_s12 = sphi %s1052_s12, %s1245_s12  }
   0x4   : > { %p30_p0 = scmp.ge.s32.totalorder %s28_s17, 2  ;;  %p76_p1 = scmp.ne.s32.totalorder %s1018_s13, %s1014_s12 }
   0x5   : > { %p77_p2 = scmp.eq.s32.totalorder %s1030_s16, 0  ;;  %p134_p4 = scmp.eq.s32.totalorder %s848_s18, 1 }
   0x6   : > { %s1250_s17 = smov (%p30_p0, %s28_s17), 0  ;;  %s69_s20 = sadd.s32 1, %s1018_s13 }
   0x7   : > { %p78_p3 = por %p77_p2, %p76_p1  ;;  %s65_s19 = ssub.s32 %s1026_s15, %s1250_s17 }
   0x8   : > { %p67_p5 = scmp.eq.s32.totalorder %s65_s19, 0  ;;  %p1087_p6 = por %p134_p4, %p76_p1 }
   0x9   : > { %p852_p7 = scmp.ge.s32.totalorder %s1030_s16, 2 }
   0xa   : > { %s1092_s22 = scalar_select %p67_p5, %s1018_s13, %s69_s20  }
   0xb   : > { %171 = sbr.rel (%p852_p7) target bundleno = 38 (0x26), region = 20 }
  0x12   : > { %174 = sbr.rel (!%p78_p3) target bundleno = 38 (0x26), region = 24  ;;  %s176_s23 = sand.u32 (%p78_p3), 1, %s1018_s13  }
  0x13   : > { %s899_s24 = sshll.u32 (%p78_p3), %s1026_s15, 3  ;;  %s853_s25 = sshll.u32 (%p78_p3), %s176_s23, 8 }
  0x14   : > { %s1100_s28 = scalar_lea.vmem (%p78_p3), %s1241_s1, %s899_s24  ;;  %s1105_s29 = scalar_lea.vmem (%p78_p3), [#allocation3], %s853_s25 }
  0x15   : > { %v274_v0 = vld [vmem:[%s1100_s28] sm:$0xff] (%p78_p3)  ;;  %v276_v1 = vld [vmem:[%s1100_s28 + $0x10] sm:$0xff] (%p78_p3) }
  0x16   : > { %v278_v2 = vld [vmem:[%s1100_s28 + $0x20] sm:$0xff] (%p78_p3)  ;;  %275 = vst [vmem:[%s1105_s29] sm:$0xff] (%p78_p3), %v274_v0  ;;  %277 = vst [vmem:[%s1105_s29 + $0x8] sm:$0xff] (%p78_p3), %v276_v1  ;;  %v280_v3 = vld [vmem:[%s1100_s28 + $0x30] sm:$0xff] (%p78_p3) }
  0x17   : > { %279 = vst [vmem:[%s1105_s29 + $0x10] sm:$0xff] (%p78_p3), %v278_v2  ;;  %v282_v4 = vld [vmem:[%s1100_s28 + $0x40] sm:$0xff] (%p78_p3)  ;;  %v284_v5 = vld [vmem:[%s1100_s28 + $0x50] sm:$0xff] (%p78_p3)  ;;  %281 = vst [vmem:[%s1105_s29 + $0x18] sm:$0xff] (%p78_p3), %v280_v3 }
  0x18   : > { %283 = vst [vmem:[%s1105_s29 + $0x20] sm:$0xff] (%p78_p3), %v282_v4  ;;  %285 = vst [vmem:[%s1105_s29 + $0x28] sm:$0xff] (%p78_p3), %v284_v5  ;;  %v286_v6 = vld [vmem:[%s1100_s28 + $0x60] sm:$0xff] (%p78_p3)  ;;  %v288_v7 = vld [vmem:[%s1100_s28 + $0x70] sm:$0xff] (%p78_p3) }
  0x19   : > { %v290_v8 = vld [vmem:[%s1100_s28 + $0x80] sm:$0xff]  ;;  %287 = vst [vmem:[%s1105_s29 + $0x30] sm:$0xff] %v286_v6  ;;  %289 = vst [vmem:[%s1105_s29 + $0x38] sm:$0xff] %v288_v7  ;;  %v292_v9 = vld [vmem:[%s1100_s28 + $0x90] sm:$0xff] }
  0x1a   : > { %291 = vst [vmem:[%s1105_s29 + $0x40] sm:$0xff] %v290_v8  ;;  %v294_v10 = vld [vmem:[%s1100_s28 + $0xa0] sm:$0xff]  ;;  %v296_v11 = vld [vmem:[%s1100_s28 + $0xb0] sm:$0xff]  ;;  %293 = vst [vmem:[%s1105_s29 + $0x48] sm:$0xff] %v292_v9 }
  0x1b   : > { %295 = vst [vmem:[%s1105_s29 + $0x50] sm:$0xff] %v294_v10  ;;  %297 = vst [vmem:[%s1105_s29 + $0x58] sm:$0xff] %v296_v11  ;;  %v298_v12 = vld [vmem:[%s1100_s28 + $0xc0] sm:$0xff]  ;;  %v300_v13 = vld [vmem:[%s1100_s28 + $0xd0] sm:$0xff] }
  0x1c   : > { %v302_v14 = vld [vmem:[%s1100_s28 + $0xe0] sm:$0xff]  ;;  %299 = vst [vmem:[%s1105_s29 + $0x60] sm:$0xff] %v298_v12  ;;  %301 = vst [vmem:[%s1105_s29 + $0x68] sm:$0xff] %v300_v13  ;;  %v304_v15 = vld [vmem:[%s1100_s28 + $0xf0] sm:$0xff] }
  0x1d   : > { %303 = vst [vmem:[%s1105_s29 + $0x70] sm:$0xff] %v302_v14  ;;  %v306_v16 = vld [vmem:[%s1100_s28 + $0x100] sm:$0xff]  ;;  %v308_v17 = vld [vmem:[%s1100_s28 + $0x110] sm:$0xff]  ;;  %305 = vst [vmem:[%s1105_s29 + $0x78] sm:$0xff] %v304_v15 }
  0x1e   : > { %307 = vst [vmem:[%s1105_s29 + $0x80] sm:$0xff] %v306_v16  ;;  %309 = vst [vmem:[%s1105_s29 + $0x88] sm:$0xff] %v308_v17  ;;  %v310_v18 = vld [vmem:[%s1100_s28 + $0x120] sm:$0xff]  ;;  %v312_v19 = vld [vmem:[%s1100_s28 + $0x130] sm:$0xff] }
  0x1f   : > { %v314_v20 = vld [vmem:[%s1100_s28 + $0x140] sm:$0xff]  ;;  %311 = vst [vmem:[%s1105_s29 + $0x90] sm:$0xff] %v310_v18  ;;  %313 = vst [vmem:[%s1105_s29 + $0x98] sm:$0xff] %v312_v19  ;;  %v316_v21 = vld [vmem:[%s1100_s28 + $0x150] sm:$0xff] }
  0x20   : > { %315 = vst [vmem:[%s1105_s29 + $0xa0] sm:$0xff] %v314_v20  ;;  %v318_v22 = vld [vmem:[%s1100_s28 + $0x160] sm:$0xff]  ;;  %v320_v23 = vld [vmem:[%s1100_s28 + $0x170] sm:$0xff]  ;;  %317 = vst [vmem:[%s1105_s29 + $0xa8] sm:$0xff] %v316_v21 }
  0x21   : > { %319 = vst [vmem:[%s1105_s29 + $0xb0] sm:$0xff] %v318_v22  ;;  %321 = vst [vmem:[%s1105_s29 + $0xb8] sm:$0xff] %v320_v23  ;;  %v322_v24 = vld [vmem:[%s1100_s28 + $0x180] sm:$0xff]  ;;  %v324_v25 = vld [vmem:[%s1100_s28 + $0x190] sm:$0xff] }
  0x22   : > { %v326_v26 = vld [vmem:[%s1100_s28 + $0x1a0] sm:$0xff]  ;;  %323 = vst [vmem:[%s1105_s29 + $0xc0] sm:$0xff] %v322_v24  ;;  %325 = vst [vmem:[%s1105_s29 + $0xc8] sm:$0xff] %v324_v25  ;;  %v328_v27 = vld [vmem:[%s1100_s28 + $0x1b0] sm:$0xff] }
  0x23   : > { %327 = vst [vmem:[%s1105_s29 + $0xd0] sm:$0xff] %v326_v26  ;;  %v330_v28 = vld [vmem:[%s1100_s28 + $0x1c0] sm:$0xff]  ;;  %v332_v29 = vld [vmem:[%s1100_s28 + $0x1d0] sm:$0xff]  ;;  %329 = vst [vmem:[%s1105_s29 + $0xd8] sm:$0xff] %v328_v27 }
  0x24   : > { %331 = vst [vmem:[%s1105_s29 + $0xe0] sm:$0xff] %v330_v28  ;;  %333 = vst [vmem:[%s1105_s29 + $0xe8] sm:$0xff] %v332_v29  ;;  %v334_v30 = vld [vmem:[%s1100_s28 + $0x1e0] sm:$0xff]  ;;  %v336_v31 = vld [vmem:[%s1100_s28 + $0x1f0] sm:$0xff] }
  0x25   : > { %335 = vst [vmem:[%s1105_s29 + $0xf0] sm:$0xff] %v334_v30  ;;  %337 = vst [vmem:[%s1105_s29 + $0xf8] sm:$0xff] %v336_v31 }
  0x26 PF: > { %p856_p8 = scmp.ge.s32.totalorder %s1030_s16, 1  ;;  %p350_p9 = scmp.lt.s32.totalorder %s1030_s16, 3 }
  0x28   : > { %p351_p10 = pnand %p856_p8, %p350_p9 }
  0x29   : > { %s357_s30 = sand.u32 (!%p351_p10), 1, %s1014_s12   ;;  %v991_v32 = vld [vmem:[%s1240_s0 + $0x4] ss:$8 sps:$4 sm:$0xff] (!%p351_p10)   ;;  %v989_v1 = vld [vmem:[%s1240_s0] ss:$8 sps:$4 sm:$0xff] (!%p351_p10)   ;;  %s859_s10 = sshll.u32 (!%p351_p10), %s1022_s14, 1  ;;  %v690_v2 = vlaneseq (!%p351_p10) }
  0x2a   : > { %354 = sbr.rel (%p351_p10) target bundleno = 335 (0x14f), region = 66  ;;  %s857_s4 = sshll.u32 (!%p351_p10), %s357_s30, 8  ;;  %662 = vmatprep.mubr.bf16.mxu0 (!%p351_p10), %v991_v32 }
  0x2b   : > { %s1176_s7 = scalar_lea.vmem (!%p351_p10), [#allocation3], %s857_s4  ;;  %p408_p11 = scmp.lt.s32.totalorder (!%p351_p10), %s859_s10, 3  ;;  %v691_v3 = vshrl.u32 (!%p351_p10), %v690_v2, 7 }
  0x2c   : > { %v941_v33 = vld [vmem:[%s1176_s7 + $0x4] ss:$8 sps:$4 sm:$0xff] (!%p351_p10)   ;;  %v943_v34 = vld [vmem:[%s1176_s7] ss:$8 sps:$4 sm:$0xff] (!%p351_p10)   ;;  %v944_v35 = vld [vmem:[%s1176_s7 + $0x14] ss:$8 sps:$4 sm:$0xff] (!%p351_p10)  }
  0x2d   : > { %630 = vmatprep.subr.bf16.mxu0 (!%p351_p10), %v941_v33  ;;  %v946_v36 = vld [vmem:[%s1176_s7 + $0x10] ss:$8 sps:$4 sm:$0xff] (!%p351_p10)   ;;  %v947_v37 = vld [vmem:[%s1176_s7 + $0x24] ss:$8 sps:$4 sm:$0xff] (!%p351_p10)   ;;  %v949_v38 = vld [vmem:[%s1176_s7 + $0x20] ss:$8 sps:$4 sm:$0xff] (!%p351_p10)  }
  0x2e   : > { %631 = vmatpush1.bf16.msra.mxu0 (!%p351_p10), %v943_v34  ;;  %v950_v39 = vld [vmem:[%s1176_s7 + $0x34] ss:$8 sps:$4 sm:$0xff] (!%p351_p10)   ;;  %v952_v40 = vld [vmem:[%s1176_s7 + $0x30] ss:$8 sps:$4 sm:$0xff] (!%p351_p10)   ;;  %v953_v41 = vld [vmem:[%s1176_s7 + $0x44] ss:$8 sps:$4 sm:$0xff] (!%p351_p10)  }
  0x2f   : > { %632 = vmatprep.subr.bf16.mxu0 (!%p351_p10), %v944_v35  ;;  %v955_v42 = vld [vmem:[%s1176_s7 + $0x40] ss:$8 sps:$4 sm:$0xff] (!%p351_p10)   ;;  %v956_v43 = vld [vmem:[%s1176_s7 + $0x54] ss:$8 sps:$4 sm:$0xff] (!%p351_p10)   ;;  %v958_v44 = vld [vmem:[%s1176_s7 + $0x50] ss:$8 sps:$4 sm:$0xff] (!%p351_p10)  }
  0x30   : > { %v959_v45 = vld [vmem:[%s1176_s7 + $0x64] ss:$8 sps:$4 sm:$0xff] (!%p351_p10)   ;;  %v961_v46 = vld [vmem:[%s1176_s7 + $0x60] ss:$8 sps:$4 sm:$0xff] (!%p351_p10)   ;;  %v962_v47 = vld [vmem:[%s1176_s7 + $0x74] ss:$8 sps:$4 sm:$0xff] (!%p351_p10)  }
  0x31   : > { %v964_v48 = vld [vmem:[%s1176_s7 + $0x70] ss:$8 sps:$4 sm:$0xff]   ;;  %v965_v49 = vld [vmem:[%s1176_s7 + $0x84] ss:$8 sps:$4 sm:$0xff]   ;;  %v967_v50 = vld [vmem:[%s1176_s7 + $0x80] ss:$8 sps:$4 sm:$0xff]  }
  0x32   : > { %633 = vmatpush1.bf16.msra.mxu0 %v946_v36  ;;  %v968_v51 = vld [vmem:[%s1176_s7 + $0x94] ss:$8 sps:$4 sm:$0xff]   ;;  %v970_v52 = vld [vmem:[%s1176_s7 + $0x90] ss:$8 sps:$4 sm:$0xff]   ;;  %v971_v53 = vld [vmem:[%s1176_s7 + $0xa4] ss:$8 sps:$4 sm:$0xff]  }
  0x33   : > { %634 = vmatprep.subr.bf16.mxu0 %v947_v37  ;;  %v973_v54 = vld [vmem:[%s1176_s7 + $0xa0] ss:$8 sps:$4 sm:$0xff]   ;;  %v974_v55 = vld [vmem:[%s1176_s7 + $0xb4] ss:$8 sps:$4 sm:$0xff]   ;;  %v976_v56 = vld [vmem:[%s1176_s7 + $0xb0] ss:$8 sps:$4 sm:$0xff]  }
  0x34   : > { %v977_v57 = vld [vmem:[%s1176_s7 + $0xc4] ss:$8 sps:$4 sm:$0xff]   ;;  %v979_v58 = vld [vmem:[%s1176_s7 + $0xc0] ss:$8 sps:$4 sm:$0xff]   ;;  %v980_v59 = vld [vmem:[%s1176_s7 + $0xd4] ss:$8 sps:$4 sm:$0xff]  }
  0x35   : > { %v982_v60 = vld [vmem:[%s1176_s7 + $0xd0] ss:$8 sps:$4 sm:$0xff]   ;;  %v983_v61 = vld [vmem:[%s1176_s7 + $0xe4] ss:$8 sps:$4 sm:$0xff]   ;;  %v985_v62 = vld [vmem:[%s1176_s7 + $0xe0] ss:$8 sps:$4 sm:$0xff]  }
  0x36   : > { %635 = vmatpush1.bf16.msra.mxu0 %v949_v38  ;;  %v986_v63 = vld [vmem:[%s1176_s7 + $0xf4] ss:$8 sps:$4 sm:$0xff]   ;;  %v988_v0 = vld [vmem:[%s1176_s7 + $0xf0] ss:$8 sps:$4 sm:$0xff]   ;;  %s1252_s10 = smov (!%p408_p11, %s859_s10), 3  ;;  %v692_v4 = vsub.s32 0, %v691_v3 }
  0x37   : > { %636 = vmatprep.subr.bf16.mxu0 %v950_v39  ;;  %s410_s19 = scalar_lea.vmem %s1242_s2, %s1252_s10  ;;  %v696_v6 = vsub.s32 1, %v691_v3  ;;  %s858_s20 = sshll.u32 %s357_s30, 5 }
  0x38   : > { %v688_v5 = vld [vmem:[%s410_s19] sm:$0x3]  ;;  %s392_s23 = scalar_lea.vmem [#allocation4], %s858_s20  ;;  %s900_s12 = sshll.u32 (%p1087_p6), %s1022_s14, 4 }
  0x39   : > { %v693_v7 = vrot.slane %v688_v5, %v692_v4  ;;  %v697_v8 = vrot.slane %v688_v5, %v696_v6  ;;  %s720_s26 = scalar_lea.vmem (%p1087_p6), %s1243_s3, %s900_s12 }
  0x3a   : > { %637 = vmatpush1.bf16.msra.mxu0 %v952_v40 }
  0x3b   : > { %638 = vmatprep.subr.bf16.mxu0 %v953_v41 }
  0x3e   : > { %639 = vmatpush1.bf16.msra.mxu0 %v955_v42 }
  0x3f   : > { %640 = vmatprep.subr.bf16.mxu0 %v956_v43 }
  0x42   : > { %641 = vmatpush1.bf16.msra.mxu0 %v958_v44 }
  0x43   : > { %642 = vmatprep.subr.bf16.mxu0 %v959_v45 }
  0x46   : > { %643 = vmatpush1.bf16.msra.mxu0 %v961_v46 }
  0x47   : > { %644 = vmatprep.subr.bf16.mxu0 %v962_v47 }
  0x4a   : > { %645 = vmatpush1.bf16.msra.mxu0 %v964_v48 }
  0x4b   : > { %646 = vmatprep.subr.bf16.mxu0 %v965_v49 }
  0x4e   : > { %647 = vmatpush1.bf16.msra.mxu0 %v967_v50 }
  0x4f   : > { %648 = vmatprep.subr.bf16.mxu0 %v968_v51 }
  0x52   : > { %649 = vmatpush1.bf16.msra.mxu0 %v970_v52 }
  0x53   : > { %650 = vmatprep.subr.bf16.mxu0 %v971_v53 }
  0x56   : > { %651 = vmatpush1.bf16.msra.mxu0 %v973_v54 }
  0x57   : > { %652 = vmatprep.subr.bf16.mxu0 %v974_v55 }
  0x5a   : > { %653 = vmatpush1.bf16.msra.mxu0 %v976_v56 }
  0x5b   : > { %654 = vmatprep.subr.bf16.mxu0 %v977_v57 }
  0x5e   : > { %655 = vmatpush1.bf16.msra.mxu0 %v979_v58 }
  0x5f   : > { %656 = vmatprep.subr.bf16.mxu0 %v980_v59 }
  0x62   : > { %657 = vmatpush1.bf16.msra.mxu0 %v982_v60 }
  0x63   : > { %658 = vmatprep.subr.bf16.mxu0 %v983_v61 }
  0x66   : > { %659 = vmatpush1.bf16.msra.mxu0 %v985_v62 }
  0x67   : > { %660 = vmatprep.subr.bf16.mxu0 %v986_v63 }
  0x6a   : > { %661 = vmatpush1.bf16.msra.mxu0 %v988_v0 }
  0x6d   : > { %663 = vmatmul.mubr.bf16.vlgmr.msra.gmra.mrb[0].mxu0 %v989_v1 }
 0x140   : > { %v664_v9 = vpop.f32.mrb[0].mxu0  ;;  %714 = sbr.rel (!%p1087_p6) target bundleno = 335 (0x14f), region = 82 }
 0x141   : > { %v700_v10 = vadd.f32 %v693_v7, %v664_v9  ;;  %v666_v11 = vpop.f32.mrb[1].mxu0 }
 0x142   : > { %v701_v12 = vadd.f32 %v697_v8, %v666_v11  ;;  %v668_v13 = vpop.f32.mrb[2].mxu0 }
 0x143   : > { %704 = vst [vmem:[%s392_s23] sm:$0xff] %v700_v10  ;;  %v702_v14 = vadd.f32 %v693_v7, %v668_v13  ;;  %v670_v15 = vpop.f32.mrb[3].mxu0 }
 0x144   : > { %705 = vst [vmem:[%s392_s23 + $0x8] sm:$0xff] %v701_v12  ;;  %v703_v16 = vadd.f32 %v697_v8, %v670_v15 }
 0x145   : > { %706 = vst [vmem:[%s392_s23 + $0x10] sm:$0xff] %v702_v14 }
 0x146   : > { %707 = vst [vmem:[%s392_s23 + $0x18] sm:$0xff] %v703_v16 }
 0x14a   : > { %v733_v17 = vld [vmem:[%s392_s23] sm:$0xff] }
 0x14b   : > { %v735_v18 = vld [vmem:[%s392_s23 + $0x8] sm:$0xff]  ;;  %734 = vst [vmem:[%s720_s26] sm:$0xff] %v733_v17 }
 0x14c   : > { %v737_v19 = vld [vmem:[%s392_s23 + $0x10] sm:$0xff]  ;;  %736 = vst [vmem:[%s720_s26 + $0x8] sm:$0xff] %v735_v18 }
 0x14d   : > { %v739_v20 = vld [vmem:[%s392_s23 + $0x18] sm:$0xff]  ;;  %738 = vst [vmem:[%s720_s26 + $0x20] sm:$0xff] %v737_v19 }
 0x14e   : > { %740 = vst [vmem:[%s720_s26 + $0x28] sm:$0xff] %v739_v20 }
 0x14f PF: > { %s13_s16 = sadd.s32 1, %s1030_s16   ;;  %s1245_s12 = smov %s1018_s13 }
 0x150   : > { %p10_p12 = scmp.ge.s32.totalorder %s13_s16, 4   ;;  %s1246_s13 = smov %s1092_s22 }
 0x151   : > { %s1247_s14 = smov %s1026_s15  ;;  %s1248_s15 = smov %s1250_s17 }
 0x152   :  { %12 = sbr.rel (!%p10_p12) target bundleno = 3 (0x3), region = 142 }

// kernel: resnet_forward.24
= control target key start
LH: loop header
LB: loop body
LE: loop exit
PB: predicated region body
PF: predicated region fallthrough
CT: control target
= control target key end

     0   :  { %s1639_s15 = smov 0   ;;  %s1641_s16 = smov 0   ;;  %s1946_s0 = inlined_call_operand.vmem [shape: bf16[16,512], index: 0, kind: input, shape index: {}]   ;;  %s1947_s1 = inlined_call_operand.vmem [shape: bf16[512,512], index: 1, kind: input, shape index: {}]   ;;  %s1948_s2 = inlined_call_operand.vmem [shape: f32[1,512], index: 2, kind: input, shape index: {}]   ;;  %s1949_s3 = inlined_call_operand.vmem [shape: f32[16,512], index: 3, kind: input, shape index: {}]   ;;  %s1950_s4 = inlined_call_operand.vmem [shape: f32[16,512], index: 4, kind: output, shape index: {}]  }
   0x1   :  { %s1643_s17 = smov 0   ;;  %s1645_s18 = smov 0  }
   0x2   :  { %s1647_s19 = smov 0  }
   0x3 LB: > { %s29_s20 = sadd.s32 1, %s1608_s18  ;;  %s1336_s21 = sadd.s32 4294967295, %s1612_s19   ;;  %s1612_s19 = sphi %s1647_s19, %s14_s19   ;;  %s1608_s18 = sphi %s1645_s18, %s1956_s18   ;;  %s1604_s17 = sphi %s1643_s17, %s1955_s17   ;;  %s1600_s16 = sphi %s1641_s16, %s1954_s16   ;;  %s1596_s15 = sphi %s1639_s15, %s1953_s15  }
   0x4   : > { %p31_p0 = scmp.ge.s32.totalorder %s29_s20, 2  ;;  %p77_p1 = scmp.ne.s32.totalorder %s1600_s16, %s1596_s15 }
   0x5   : > { %p78_p2 = scmp.eq.s32.totalorder %s1612_s19, 0  ;;  %p163_p4 = scmp.eq.s32.totalorder %s1336_s21, 1 }
   0x6   : > { %s1958_s20 = smov (%p31_p0, %s29_s20), 0  ;;  %s70_s24 = sadd.s32 1, %s1600_s16 }
   0x7   : > { %p1671_p3 = por %p78_p2, %p77_p1  ;;  %s66_s23 = ssub.s32 %s1608_s18, %s1958_s20 }
   0x8   : > { %p68_p5 = scmp.eq.s32.totalorder %s66_s23, 0  ;;  %p1678_p6 = por %p163_p4, %p77_p1 }
   0x9   : > { %p1340_p7 = scmp.ge.s32.totalorder %s1612_s19, 2 }
   0xa   : > { %s1683_s26 = scalar_select %p68_p5, %s1600_s16, %s70_s24  }
   0xb   : > { %200 = sbr.rel (%p1340_p7) target bundleno = 61 (0x3d), region = 20 }
  0x12   : > { %203 = sbr.rel (!%p1671_p3) target bundleno = 54 (0x36), region = 24  ;;  %s205_s27 = sand.u32 (%p1671_p3), 1, %s1600_s16  }
  0x13   : > { %s1425_s28 = sshll.u32 (%p1671_p3), %s1608_s18, 3  ;;  %s1341_s29 = sshll.u32 (%p1671_p3), %s205_s27, 9 }
  0x14   : > { %s1693_s6 = scalar_lea.vmem (%p1671_p3), %s1947_s1, %s1425_s28  ;;  %s1698_s7 = scalar_lea.vmem (%p1671_p3), [#allocation3], %s1341_s29 }
  0x15   : > { %v367_v0 = vld [vmem:[%s1693_s6] sm:$0xff] (%p1671_p3)  ;;  %v369_v1 = vld [vmem:[%s1693_s6 + $0x10] sm:$0xff] (%p1671_p3) }
  0x16   : > { %v371_v2 = vld [vmem:[%s1693_s6 + $0x20] sm:$0xff] (%p1671_p3)  ;;  %368 = vst [vmem:[%s1698_s7] sm:$0xff] (%p1671_p3), %v367_v0  ;;  %370 = vst [vmem:[%s1698_s7 + $0x8] sm:$0xff] (%p1671_p3), %v369_v1  ;;  %v373_v3 = vld [vmem:[%s1693_s6 + $0x30] sm:$0xff] (%p1671_p3) }
  0x17   : > { %372 = vst [vmem:[%s1698_s7 + $0x10] sm:$0xff] (%p1671_p3), %v371_v2  ;;  %v375_v4 = vld [vmem:[%s1693_s6 + $0x40] sm:$0xff] (%p1671_p3)  ;;  %v377_v5 = vld [vmem:[%s1693_s6 + $0x50] sm:$0xff] (%p1671_p3)  ;;  %374 = vst [vmem:[%s1698_s7 + $0x18] sm:$0xff] (%p1671_p3), %v373_v3 }
  0x18   : > { %376 = vst [vmem:[%s1698_s7 + $0x20] sm:$0xff] (%p1671_p3), %v375_v4  ;;  %378 = vst [vmem:[%s1698_s7 + $0x28] sm:$0xff] (%p1671_p3), %v377_v5  ;;  %v379_v6 = vld [vmem:[%s1693_s6 + $0x60] sm:$0xff] (%p1671_p3)  ;;  %v381_v7 = vld [vmem:[%s1693_s6 + $0x70] sm:$0xff] (%p1671_p3) }
  0x19   : > { %v383_v8 = vld [vmem:[%s1693_s6 + $0x80] sm:$0xff]  ;;  %380 = vst [vmem:[%s1698_s7 + $0x30] sm:$0xff] %v379_v6  ;;  %382 = vst [vmem:[%s1698_s7 + $0x38] sm:$0xff] %v381_v7  ;;  %v385_v9 = vld [vmem:[%s1693_s6 + $0x90] sm:$0xff] }
  0x1a   : > { %384 = vst [vmem:[%s1698_s7 + $0x40] sm:$0xff] %v383_v8  ;;  %v387_v10 = vld [vmem:[%s1693_s6 + $0xa0] sm:$0xff]  ;;  %v389_v11 = vld [vmem:[%s1693_s6 + $0xb0] sm:$0xff]  ;;  %386 = vst [vmem:[%s1698_s7 + $0x48] sm:$0xff] %v385_v9 }
  0x1b   : > { %388 = vst [vmem:[%s1698_s7 + $0x50] sm:$0xff] %v387_v10  ;;  %390 = vst [vmem:[%s1698_s7 + $0x58] sm:$0xff] %v389_v11  ;;  %v391_v12 = vld [vmem:[%s1693_s6 + $0xc0] sm:$0xff]  ;;  %v393_v13 = vld [vmem:[%s1693_s6 + $0xd0] sm:$0xff] }
  0x1c   : > { %v395_v14 = vld [vmem:[%s1693_s6 + $0xe0] sm:$0xff]  ;;  %392 = vst [vmem:[%s1698_s7 + $0x60] sm:$0xff] %v391_v12  ;;  %394 = vst [vmem:[%s1698_s7 + $0x68] sm:$0xff] %v393_v13  ;;  %v397_v15 = vld [vmem:[%s1693_s6 + $0xf0] sm:$0xff] }
  0x1d   : > { %396 = vst [vmem:[%s1698_s7 + $0x70] sm:$0xff] %v395_v14  ;;  %v399_v16 = vld [vmem:[%s1693_s6 + $0x100] sm:$0xff]  ;;  %v401_v17 = vld [vmem:[%s1693_s6 + $0x110] sm:$0xff]  ;;  %398 = vst [vmem:[%s1698_s7 + $0x78] sm:$0xff] %v397_v15 }
  0x1e   : > { %400 = vst [vmem:[%s1698_s7 + $0x80] sm:$0xff] %v399_v16  ;;  %402 = vst [vmem:[%s1698_s7 + $0x88] sm:$0xff] %v401_v17  ;;  %v403_v18 = vld [vmem:[%s1693_s6 + $0x120] sm:$0xff]  ;;  %v405_v19 = vld [vmem:[%s1693_s6 + $0x130] sm:$0xff] }
  0x1f   : > { %v407_v20 = vld [vmem:[%s1693_s6 + $0x140] sm:$0xff]  ;;  %404 = vst [vmem:[%s1698_s7 + $0x90] sm:$0xff] %v403_v18  ;;  %406 = vst [vmem:[%s1698_s7 + $0x98] sm:$0xff] %v405_v19  ;;  %v409_v21 = vld [vmem:[%s1693_s6 + $0x150] sm:$0xff] }
  0x20   : > { %408 = vst [vmem:[%s1698_s7 + $0xa0] sm:$0xff] %v407_v20  ;;  %v411_v22 = vld [vmem:[%s1693_s6 + $0x160] sm:$0xff]  ;;  %v413_v23 = vld [vmem:[%s1693_s6 + $0x170] sm:$0xff]  ;;  %410 = vst [vmem:[%s1698_s7 + $0xa8] sm:$0xff] %v409_v21 }
  0x21   : > { %412 = vst [vmem:[%s1698_s7 + $0xb0] sm:$0xff] %v411_v22  ;;  %414 = vst [vmem:[%s1698_s7 + $0xb8] sm:$0xff] %v413_v23  ;;  %v415_v24 = vld [vmem:[%s1693_s6 + $0x180] sm:$0xff]  ;;  %v417_v25 = vld [vmem:[%s1693_s6 + $0x190] sm:$0xff] }
  0x22   : > { %v419_v26 = vld [vmem:[%s1693_s6 + $0x1a0] sm:$0xff]  ;;  %416 = vst [vmem:[%s1698_s7 + $0xc0] sm:$0xff] %v415_v24  ;;  %418 = vst [vmem:[%s1698_s7 + $0xc8] sm:$0xff] %v417_v25  ;;  %v421_v27 = vld [vmem:[%s1693_s6 + $0x1b0] sm:$0xff] }
  0x23   : > { %420 = vst [vmem:[%s1698_s7 + $0xd0] sm:$0xff] %v419_v26  ;;  %v423_v28 = vld [vmem:[%s1693_s6 + $0x1c0] sm:$0xff]  ;;  %v425_v29 = vld [vmem:[%s1693_s6 + $0x1d0] sm:$0xff]  ;;  %422 = vst [vmem:[%s1698_s7 + $0xd8] sm:$0xff] %v421_v27 }
  0x24   : > { %424 = vst [vmem:[%s1698_s7 + $0xe0] sm:$0xff] %v423_v28  ;;  %426 = vst [vmem:[%s1698_s7 + $0xe8] sm:$0xff] %v425_v29  ;;  %v427_v30 = vld [vmem:[%s1693_s6 + $0x1e0] sm:$0xff]  ;;  %v429_v31 = vld [vmem:[%s1693_s6 + $0x1f0] sm:$0xff] }
  0x25   : > { %v431_v32 = vld [vmem:[%s1693_s6 + $0x200] sm:$0xff]  ;;  %428 = vst [vmem:[%s1698_s7 + $0xf0] sm:$0xff] %v427_v30  ;;  %430 = vst [vmem:[%s1698_s7 + $0xf8] sm:$0xff] %v429_v31  ;;  %v433_v33 = vld [vmem:[%s1693_s6 + $0x210] sm:$0xff] }
  0x26   : > { %432 = vst [vmem:[%s1698_s7 + $0x100] sm:$0xff] %v431_v32  ;;  %v435_v34 = vld [vmem:[%s1693_s6 + $0x220] sm:$0xff]  ;;  %v437_v35 = vld [vmem:[%s1693_s6 + $0x230] sm:$0xff]  ;;  %434 = vst [vmem:[%s1698_s7 + $0x108] sm:$0xff] %v433_v33 }
  0x27   : > { %436 = vst [vmem:[%s1698_s7 + $0x110] sm:$0xff] %v435_v34  ;;  %438 = vst [vmem:[%s1698_s7 + $0x118] sm:$0xff] %v437_v35  ;;  %v439_v36 = vld [vmem:[%s1693_s6 + $0x240] sm:$0xff]  ;;  %v441_v37 = vld [vmem:[%s1693_s6 + $0x250] sm:$0xff] }
  0x28   : > { %v443_v38 = vld [vmem:[%s1693_s6 + $0x260] sm:$0xff]  ;;  %440 = vst [vmem:[%s1698_s7 + $0x120] sm:$0xff] %v439_v36  ;;  %442 = vst [vmem:[%s1698_s7 + $0x128] sm:$0xff] %v441_v37  ;;  %v445_v39 = vld [vmem:[%s1693_s6 + $0x270] sm:$0xff] }
  0x29   : > { %444 = vst [vmem:[%s1698_s7 + $0x130] sm:$0xff] %v443_v38  ;;  %v447_v40 = vld [vmem:[%s1693_s6 + $0x280] sm:$0xff]  ;;  %v449_v41 = vld [vmem:[%s1693_s6 + $0x290] sm:$0xff]  ;;  %446 = vst [vmem:[%s1698_s7 + $0x138] sm:$0xff] %v445_v39 }
  0x2a   : > { %448 = vst [vmem:[%s1698_s7 + $0x140] sm:$0xff] %v447_v40  ;;  %450 = vst [vmem:[%s1698_s7 + $0x148] sm:$0xff] %v449_v41  ;;  %v451_v42 = vld [vmem:[%s1693_s6 + $0x2a0] sm:$0xff]  ;;  %v453_v43 = vld [vmem:[%s1693_s6 + $0x2b0] sm:$0xff] }
  0x2b   : > { %v455_v44 = vld [vmem:[%s1693_s6 + $0x2c0] sm:$0xff]  ;;  %452 = vst [vmem:[%s1698_s7 + $0x150] sm:$0xff] %v451_v42  ;;  %454 = vst [vmem:[%s1698_s7 + $0x158] sm:$0xff] %v453_v43  ;;  %v457_v45 = vld [vmem:[%s1693_s6 + $0x2d0] sm:$0xff] }
  0x2c   : > { %456 = vst [vmem:[%s1698_s7 + $0x160] sm:$0xff] %v455_v44  ;;  %v459_v46 = vld [vmem:[%s1693_s6 + $0x2e0] sm:$0xff]  ;;  %v461_v47 = vld [vmem:[%s1693_s6 + $0x2f0] sm:$0xff]  ;;  %458 = vst [vmem:[%s1698_s7 + $0x168] sm:$0xff] %v457_v45 }
  0x2d   : > { %460 = vst [vmem:[%s1698_s7 + $0x170] sm:$0xff] %v459_v46  ;;  %462 = vst [vmem:[%s1698_s7 + $0x178] sm:$0xff] %v461_v47  ;;  %v463_v48 = vld [vmem:[%s1693_s6 + $0x300] sm:$0xff]  ;;  %v465_v49 = vld [vmem:[%s1693_s6 + $0x310] sm:$0xff] }
  0x2e   : > { %v467_v50 = vld [vmem:[%s1693_s6 + $0x320] sm:$0xff]  ;;  %464 = vst [vmem:[%s1698_s7 + $0x180] sm:$0xff] %v463_v48  ;;  %466 = vst [vmem:[%s1698_s7 + $0x188] sm:$0xff] %v465_v49  ;;  %v469_v51 = vld [vmem:[%s1693_s6 + $0x330] sm:$0xff] }
  0x2f   : > { %468 = vst [vmem:[%s1698_s7 + $0x190] sm:$0xff] %v467_v50  ;;  %v471_v52 = vld [vmem:[%s1693_s6 + $0x340] sm:$0xff]  ;;  %v473_v53 = vld [vmem:[%s1693_s6 + $0x350] sm:$0xff]  ;;  %470 = vst [vmem:[%s1698_s7 + $0x198] sm:$0xff] %v469_v51 }
  0x30   : > { %472 = vst [vmem:[%s1698_s7 + $0x1a0] sm:$0xff] %v471_v52  ;;  %474 = vst [vmem:[%s1698_s7 + $0x1a8] sm:$0xff] %v473_v53  ;;  %v475_v54 = vld [vmem:[%s1693_s6 + $0x360] sm:$0xff]  ;;  %v477_v55 = vld [vmem:[%s1693_s6 + $0x370] sm:$0xff] }
  0x31   : > { %v479_v56 = vld [vmem:[%s1693_s6 + $0x380] sm:$0xff]  ;;  %476 = vst [vmem:[%s1698_s7 + $0x1b0] sm:$0xff] %v475_v54  ;;  %478 = vst [vmem:[%s1698_s7 + $0x1b8] sm:$0xff] %v477_v55  ;;  %v481_v57 = vld [vmem:[%s1693_s6 + $0x390] sm:$0xff] }
  0x32   : > { %480 = vst [vmem:[%s1698_s7 + $0x1c0] sm:$0xff] %v479_v56  ;;  %v483_v58 = vld [vmem:[%s1693_s6 + $0x3a0] sm:$0xff]  ;;  %v485_v59 = vld [vmem:[%s1693_s6 + $0x3b0] sm:$0xff]  ;;  %482 = vst [vmem:[%s1698_s7 + $0x1c8] sm:$0xff] %v481_v57 }
  0x33   : > { %484 = vst [vmem:[%s1698_s7 + $0x1d0] sm:$0xff] %v483_v58  ;;  %486 = vst [vmem:[%s1698_s7 + $0x1d8] sm:$0xff] %v485_v59  ;;  %v487_v60 = vld [vmem:[%s1693_s6 + $0x3c0] sm:$0xff]  ;;  %v489_v61 = vld [vmem:[%s1693_s6 + $0x3d0] sm:$0xff] }
  0x34   : > { %v491_v62 = vld [vmem:[%s1693_s6 + $0x3e0] sm:$0xff]  ;;  %488 = vst [vmem:[%s1698_s7 + $0x1e0] sm:$0xff] %v487_v60  ;;  %490 = vst [vmem:[%s1698_s7 + $0x1e8] sm:$0xff] %v489_v61  ;;  %v493_v63 = vld [vmem:[%s1693_s6 + $0x3f0] sm:$0xff] }
  0x35   : > { %492 = vst [vmem:[%s1698_s7 + $0x1f0] sm:$0xff] %v491_v62  ;;  %494 = vst [vmem:[%s1698_s7 + $0x1f8] sm:$0xff] %v493_v63 }
  0x36 PF: > { %508 = sbr.rel (!%p1671_p3) target bundleno = 61 (0x3d), region = 66  ;;  %s510_s8 = sand.u32 (%p1671_p3), 1, %s1600_s16  }
  0x37   : > { %s1426_s9 = sshll.u32 (%p1671_p3), %s1608_s18, 4  ;;  %s1344_s10 = sshll.u32 (%p1671_p3), %s510_s8, 5 }
  0x38   : > { %s518_s13 = scalar_lea.vmem (%p1671_p3), %s1949_s3, %s1426_s9  ;;  %s512_s14 = scalar_lea.vmem (%p1671_p3), [#allocation4], %s1344_s10 }
  0x39   : > { %v531_v0 = vld [vmem:[%s518_s13] sm:$0xff] (%p1671_p3)  ;;  %v533_v1 = vld [vmem:[%s518_s13 + $0x8] sm:$0xff] (%p1671_p3) }
  0x3a   : > { %v535_v2 = vld [vmem:[%s518_s13 + $0x20] sm:$0xff] (%p1671_p3)  ;;  %532 = vst [vmem:[%s512_s14] sm:$0xff] (%p1671_p3), %v531_v0  ;;  %534 = vst [vmem:[%s512_s14 + $0x8] sm:$0xff] (%p1671_p3), %v533_v1  ;;  %v537_v3 = vld [vmem:[%s518_s13 + $0x28] sm:$0xff] (%p1671_p3) }
  0x3b   : > { %536 = vst [vmem:[%s512_s14 + $0x10] sm:$0xff] (%p1671_p3), %v535_v2  ;;  %538 = vst [vmem:[%s512_s14 + $0x18] sm:$0xff] (%p1671_p3), %v537_v3 }
  0x3d PF: > { %p1347_p8 = scmp.ge.s32.totalorder %s1612_s19, 1  ;;  %p543_p9 = scmp.lt.s32.totalorder %s1612_s19, 3 }
  0x3f   : > { %p544_p10 = pnand %p1347_p8, %p543_p9 }
  0x40   : > { %s550_s21 = sand.u32 (!%p544_p10), 1, %s1596_s15   ;;  %v1570_v4 = vld [vmem:[%s1946_s0 + $0x4] ss:$16 sps:$4 sm:$0xff] (!%p544_p10)   ;;  %v1573_v5 = vld [vmem:[%s1946_s0 + $0xc] ss:$16 sps:$4 sm:$0xff] (!%p544_p10)   ;;  %s1351_s8 = sshll.u32 (!%p544_p10), %s1604_s17, 1 }
  0x41   : > { %547 = sbr.rel (%p544_p10) target bundleno = 365 (0x16d), region = 89  ;;  %s1348_s22 = sshll.u32 (!%p544_p10), %s550_s21, 9  ;;  %1074 = vmatprep.mubr.bf16.mxu1 (!%p544_p10), %v1570_v4  ;;  %1117 = vmatprep.mubr.bf16.mxu0 (!%p544_p10), %v1573_v5 }
  0x42   : > { %s1843_s29 = scalar_lea.vmem (!%p544_p10), [#allocation3], %s1348_s22  ;;  %p614_p11 = scmp.lt.s32.totalorder (!%p544_p10), %s1351_s8, 3 }
  0x43   : > { %v1472_v6 = vld [vmem:[%s1843_s29 + $0x4] ss:$8 sps:$4 sm:$0xff] (!%p544_p10)   ;;  %v1476_v8 = vld [vmem:[%s1843_s29] ss:$8 sps:$4 sm:$0xff] (!%p544_p10)   ;;  %v1478_v10 = vld [vmem:[%s1843_s29 + $0x14] ss:$8 sps:$4 sm:$0xff] (!%p544_p10)  }
  0x44   : > { %v1474_v7 = vld [vmem:[%s1843_s29 + $0x104] ss:$8 sps:$4 sm:$0xff] (!%p544_p10)   ;;  %1042 = vmatprep.subr.bf16.mxu1 (!%p544_p10), %v1472_v6  ;;  %v1477_v9 = vld [vmem:[%s1843_s29 + $0x100] ss:$8 sps:$4 sm:$0xff] (!%p544_p10)   ;;  %v1480_v11 = vld [vmem:[%s1843_s29 + $0x114] ss:$8 sps:$4 sm:$0xff] (!%p544_p10)  }
  0x45   : > { %1085 = vmatprep.subr.bf16.mxu0 (!%p544_p10), %v1474_v7  ;;  %1043 = vmatpush1.bf16.msra.mxu1 (!%p544_p10), %v1476_v8  ;;  %v1482_v12 = vld [vmem:[%s1843_s29 + $0x10] ss:$8 sps:$4 sm:$0xff] (!%p544_p10)   ;;  %v1484_v14 = vld [vmem:[%s1843_s29 + $0x24] ss:$8 sps:$4 sm:$0xff] (!%p544_p10)   ;;  %v1488_v16 = vld [vmem:[%s1843_s29 + $0x20] ss:$8 sps:$4 sm:$0xff] (!%p544_p10)   ;;  %v1145_v8 = vlaneseq (!%p544_p10) }
  0x46   : > { %1086 = vmatpush1.bf16.msra.mxu0 (!%p544_p10), %v1477_v9  ;;  %1044 = vmatprep.subr.bf16.mxu1 (!%p544_p10), %v1478_v10  ;;  %v1483_v13 = vld [vmem:[%s1843_s29 + $0x110] ss:$8 sps:$4 sm:$0xff] (!%p544_p10)   ;;  %v1486_v15 = vld [vmem:[%s1843_s29 + $0x124] ss:$8 sps:$4 sm:$0xff] (!%p544_p10)   ;;  %v1489_v17 = vld [vmem:[%s1843_s29 + $0x120] ss:$8 sps:$4 sm:$0xff] (!%p544_p10)  }
  0x47   : > { %1087 = vmatprep.subr.bf16.mxu0 (!%p544_p10), %v1480_v11  ;;  %v1490_v18 = vld [vmem:[%s1843_s29 + $0x34] ss:$8 sps:$4 sm:$0xff] (!%p544_p10)   ;;  %v1494_v20 = vld [vmem:[%s1843_s29 + $0x30] ss:$8 sps:$4 sm:$0xff] (!%p544_p10)   ;;  %v1496_v22 = vld [vmem:[%s1843_s29 + $0x44] ss:$8 sps:$4 sm:$0xff] (!%p544_p10)  }
  0x48   : > { %v1492_v19 = vld [vmem:[%s1843_s29 + $0x134] ss:$8 sps:$4 sm:$0xff]   ;;  %v1495_v21 = vld [vmem:[%s1843_s29 + $0x130] ss:$8 sps:$4 sm:$0xff]   ;;  %v1498_v23 = vld [vmem:[%s1843_s29 + $0x144] ss:$8 sps:$4 sm:$0xff]  }
  0x49   : > { %1045 = vmatpush1.bf16.msra.mxu1 %v1482_v12  ;;  %v1500_v24 = vld [vmem:[%s1843_s29 + $0x40] ss:$8 sps:$4 sm:$0xff]   ;;  %v1502_v26 = vld [vmem:[%s1843_s29 + $0x54] ss:$8 sps:$4 sm:$0xff]   ;;  %v1506_v28 = vld [vmem:[%s1843_s29 + $0x50] ss:$8 sps:$4 sm:$0xff]  }
  0x4a   : > { %1088 = vmatpush1.bf16.msra.mxu0 %v1483_v13  ;;  %1046 = vmatprep.subr.bf16.mxu1 %v1484_v14  ;;  %v1501_v25 = vld [vmem:[%s1843_s29 + $0x140] ss:$8 sps:$4 sm:$0xff]   ;;  %v1504_v27 = vld [vmem:[%s1843_s29 + $0x154] ss:$8 sps:$4 sm:$0xff]   ;;  %v1507_v29 = vld [vmem:[%s1843_s29 + $0x150] ss:$8 sps:$4 sm:$0xff]  }
  0x4b   : > { %1089 = vmatprep.subr.bf16.mxu0 %v1486_v15  ;;  %v1508_v30 = vld [vmem:[%s1843_s29 + $0x64] ss:$8 sps:$4 sm:$0xff]   ;;  %v1512_v32 = vld [vmem:[%s1843_s29 + $0x60] ss:$8 sps:$4 sm:$0xff]   ;;  %v1514_v34 = vld [vmem:[%s1843_s29 + $0x74] ss:$8 sps:$4 sm:$0xff]  }
  0x4c   : > { %v1510_v31 = vld [vmem:[%s1843_s29 + $0x164] ss:$8 sps:$4 sm:$0xff]   ;;  %v1513_v33 = vld [vmem:[%s1843_s29 + $0x160] ss:$8 sps:$4 sm:$0xff]   ;;  %v1516_v35 = vld [vmem:[%s1843_s29 + $0x174] ss:$8 sps:$4 sm:$0xff]  }
  0x4d   : > { %1047 = vmatpush1.bf16.msra.mxu1 %v1488_v16  ;;  %v1518_v36 = vld [vmem:[%s1843_s29 + $0x70] ss:$8 sps:$4 sm:$0xff]   ;;  %v1520_v38 = vld [vmem:[%s1843_s29 + $0x84] ss:$8 sps:$4 sm:$0xff]   ;;  %v1524_v40 = vld [vmem:[%s1843_s29 + $0x80] ss:$8 sps:$4 sm:$0xff]  }
  0x4e   : > { %1090 = vmatpush1.bf16.msra.mxu0 %v1489_v17  ;;  %1048 = vmatprep.subr.bf16.mxu1 %v1490_v18  ;;  %v1519_v37 = vld [vmem:[%s1843_s29 + $0x170] ss:$8 sps:$4 sm:$0xff]   ;;  %v1522_v39 = vld [vmem:[%s1843_s29 + $0x184] ss:$8 sps:$4 sm:$0xff]   ;;  %v1525_v41 = vld [vmem:[%s1843_s29 + $0x180] ss:$8 sps:$4 sm:$0xff]  }
  0x4f   : > { %1091 = vmatprep.subr.bf16.mxu0 %v1492_v19  ;;  %v1526_v42 = vld [vmem:[%s1843_s29 + $0x94] ss:$8 sps:$4 sm:$0xff]   ;;  %v1530_v44 = vld [vmem:[%s1843_s29 + $0x90] ss:$8 sps:$4 sm:$0xff]   ;;  %v1532_v46 = vld [vmem:[%s1843_s29 + $0xa4] ss:$8 sps:$4 sm:$0xff]  }
  0x50   : > { %v1528_v43 = vld [vmem:[%s1843_s29 + $0x194] ss:$8 sps:$4 sm:$0xff]   ;;  %v1531_v45 = vld [vmem:[%s1843_s29 + $0x190] ss:$8 sps:$4 sm:$0xff]   ;;  %v1534_v47 = vld [vmem:[%s1843_s29 + $0x1a4] ss:$8 sps:$4 sm:$0xff]  }
  0x51   : > { %1049 = vmatpush1.bf16.msra.mxu1 %v1494_v20  ;;  %v1536_v48 = vld [vmem:[%s1843_s29 + $0xa0] ss:$8 sps:$4 sm:$0xff]   ;;  %v1538_v50 = vld [vmem:[%s1843_s29 + $0xb4] ss:$8 sps:$4 sm:$0xff]   ;;  %v1542_v52 = vld [vmem:[%s1843_s29 + $0xb0] ss:$8 sps:$4 sm:$0xff]  }
  0x52   : > { %1092 = vmatpush1.bf16.msra.mxu0 %v1495_v21  ;;  %1050 = vmatprep.subr.bf16.mxu1 %v1496_v22  ;;  %v1537_v49 = vld [vmem:[%s1843_s29 + $0x1a0] ss:$8 sps:$4 sm:$0xff]   ;;  %v1540_v51 = vld [vmem:[%s1843_s29 + $0x1b4] ss:$8 sps:$4 sm:$0xff]   ;;  %v1543_v53 = vld [vmem:[%s1843_s29 + $0x1b0] ss:$8 sps:$4 sm:$0xff]  }
  0x53   : > { %1093 = vmatprep.subr.bf16.mxu0 %v1498_v23  ;;  %v1544_v54 = vld [vmem:[%s1843_s29 + $0xc4] ss:$8 sps:$4 sm:$0xff]   ;;  %v1548_v56 = vld [vmem:[%s1843_s29 + $0xc0] ss:$8 sps:$4 sm:$0xff]   ;;  %v1550_v58 = vld [vmem:[%s1843_s29 + $0xd4] ss:$8 sps:$4 sm:$0xff]  }
  0x54   : > { %v1546_v55 = vld [vmem:[%s1843_s29 + $0x1c4] ss:$8 sps:$4 sm:$0xff]   ;;  %v1549_v57 = vld [vmem:[%s1843_s29 + $0x1c0] ss:$8 sps:$4 sm:$0xff]   ;;  %v1552_v59 = vld [vmem:[%s1843_s29 + $0x1d4] ss:$8 sps:$4 sm:$0xff]  }
  0x55   : > { %1051 = vmatpush1.bf16.msra.mxu1 %v1500_v24  ;;  %v1554_v60 = vld [vmem:[%s1843_s29 + $0xd0] ss:$8 sps:$4 sm:$0xff]   ;;  %v1556_v62 = vld [vmem:[%s1843_s29 + $0xe4] ss:$8 sps:$4 sm:$0xff]   ;;  %v1560_v0 = vld [vmem:[%s1843_s29 + $0xe0] ss:$8 sps:$4 sm:$0xff]  }
  0x56   : > { %1094 = vmatpush1.bf16.msra.mxu0 %v1501_v25  ;;  %1052 = vmatprep.subr.bf16.mxu1 %v1502_v26  ;;  %v1555_v61 = vld [vmem:[%s1843_s29 + $0x1d0] ss:$8 sps:$4 sm:$0xff]   ;;  %v1558_v63 = vld [vmem:[%s1843_s29 + $0x1e4] ss:$8 sps:$4 sm:$0xff]   ;;  %v1561_v1 = vld [vmem:[%s1843_s29 + $0x1e0] ss:$8 sps:$4 sm:$0xff]  }
  0x57   : > { %1095 = vmatprep.subr.bf16.mxu0 %v1504_v27  ;;  %v1562_v2 = vld [vmem:[%s1843_s29 + $0xf4] ss:$8 sps:$4 sm:$0xff]   ;;  %v1566_v4 = vld [vmem:[%s1843_s29 + $0xf0] ss:$8 sps:$4 sm:$0xff]   ;;  %s1960_s8 = smov (!%p614_p11, %s1351_s8), 3  ;;  %v1146_v9 = vshrl.u32 %v1145_v8, 7 }
  0x58   : > { %v1564_v3 = vld [vmem:[%s1843_s29 + $0x1f4] ss:$8 sps:$4 sm:$0xff]   ;;  %v1567_v5 = vld [vmem:[%s1843_s29 + $0x1f0] ss:$8 sps:$4 sm:$0xff]   ;;  %s616_s11 = scalar_lea.vmem %s1948_s2, %s1960_s8  ;;  %s1921_s12 = sshll.u32 %s550_s21, 5 }
  0x59   : > { %1053 = vmatpush1.bf16.msra.mxu1 %v1506_v28  ;;  %v1568_v6 = vld [vmem:[%s1946_s0] ss:$16 sps:$4 sm:$0xff]   ;;  %v1571_v7 = vld [vmem:[%s1946_s0 + $0x8] ss:$16 sps:$4 sm:$0xff]   ;;  %v1147_v10 = vsub.s32 0, %v1146_v9  ;;  %v1151_v12 = vsub.s32 1, %v1146_v9 }
  0x5a   : > { %1096 = vmatpush1.bf16.msra.mxu0 %v1507_v29  ;;  %1054 = vmatprep.subr.bf16.mxu1 %v1508_v30  ;;  %v1143_v11 = vld [vmem:[%s616_s11] sm:$0x3]  ;;  %s559_s13 = scalar_lea.vmem [#allocation4], %s1921_s12  ;;  %s598_s15 = scalar_lea.vmem [#allocation5], %s1921_s12 }
  0x5b   : > { %1097 = vmatprep.subr.bf16.mxu0 %v1510_v31  ;;  %v1148_v13 = vrot.slane %v1143_v11, %v1147_v10  ;;  %v1152_v16 = vrot.slane %v1143_v11, %v1151_v12  ;;  %v1159_v20 = vld [vmem:[%s559_s13] sm:$0xff]  ;;  %v1160_v25 = vld [vmem:[%s559_s13 + $0x8] sm:$0xff]  ;;  %v1161_v30 = vld [vmem:[%s559_s13 + $0x10] sm:$0xff]  ;;  %s1427_s14 = sshll.u32 (%p1678_p6), %s1604_s17, 4 }
  0x5c   : > { %s1187_s23 = scalar_lea.vmem (%p1678_p6), %s1950_s4, %s1427_s14 }
  0x5d   : > { %1055 = vmatpush1.bf16.msra.mxu1 %v1512_v32 }
  0x5e   : > { %1098 = vmatpush1.bf16.msra.mxu0 %v1513_v33  ;;  %1056 = vmatprep.subr.bf16.mxu1 %v1514_v34  ;;  %v1162_v34 = vld [vmem:[%s559_s13 + $0x18] sm:$0xff] }
  0x5f   : > { %1099 = vmatprep.subr.bf16.mxu0 %v1516_v35 }
  0x61   : > { %1057 = vmatpush1.bf16.msra.mxu1 %v1518_v36 }
  0x62   : > { %1100 = vmatpush1.bf16.msra.mxu0 %v1519_v37  ;;  %1058 = vmatprep.subr.bf16.mxu1 %v1520_v38 }
  0x63   : > { %1101 = vmatprep.subr.bf16.mxu0 %v1522_v39 }
  0x65   : > { %1059 = vmatpush1.bf16.msra.mxu1 %v1524_v40 }
  0x66   : > { %1102 = vmatpush1.bf16.msra.mxu0 %v1525_v41  ;;  %1060 = vmatprep.subr.bf16.mxu1 %v1526_v42 }
  0x67   : > { %1103 = vmatprep.subr.bf16.mxu0 %v1528_v43 }
  0x69   : > { %1061 = vmatpush1.bf16.msra.mxu1 %v1530_v44 }
  0x6a   : > { %1104 = vmatpush1.bf16.msra.mxu0 %v1531_v45  ;;  %1062 = vmatprep.subr.bf16.mxu1 %v1532_v46 }
  0x6b   : > { %1105 = vmatprep.subr.bf16.mxu0 %v1534_v47 }
  0x6d   : > { %1063 = vmatpush1.bf16.msra.mxu1 %v1536_v48 }
  0x6e   : > { %1106 = vmatpush1.bf16.msra.mxu0 %v1537_v49  ;;  %1064 = vmatprep.subr.bf16.mxu1 %v1538_v50 }
  0x6f   : > { %1107 = vmatprep.subr.bf16.mxu0 %v1540_v51 }
  0x71   : > { %1065 = vmatpush1.bf16.msra.mxu1 %v1542_v52 }
  0x72   : > { %1108 = vmatpush1.bf16.msra.mxu0 %v1543_v53  ;;  %1066 = vmatprep.subr.bf16.mxu1 %v1544_v54 }
  0x73   : > { %1109 = vmatprep.subr.bf16.mxu0 %v1546_v55 }
  0x75   : > { %1067 = vmatpush1.bf16.msra.mxu1 %v1548_v56 }
  0x76   : > { %1110 = vmatpush1.bf16.msra.mxu0 %v1549_v57  ;;  %1068 = vmatprep.subr.bf16.mxu1 %v1550_v58 }
  0x77   : > { %1111 = vmatprep.subr.bf16.mxu0 %v1552_v59 }
  0x79   : > { %1069 = vmatpush1.bf16.msra.mxu1 %v1554_v60 }
  0x7a   : > { %1112 = vmatpush1.bf16.msra.mxu0 %v1555_v61  ;;  %1070 = vmatprep.subr.bf16.mxu1 %v1556_v62 }
  0x7b   : > { %1113 = vmatprep.subr.bf16.mxu0 %v1558_v63 }
  0x7d   : > { %1071 = vmatpush1.bf16.msra.mxu1 %v1560_v0 }
  0x7e   : > { %1114 = vmatpush1.bf16.msra.mxu0 %v1561_v1  ;;  %1072 = vmatprep.subr.bf16.mxu1 %v1562_v2 }
  0x7f   : > { %1115 = vmatprep.subr.bf16.mxu0 %v1564_v3 }
  0x81   : > { %1073 = vmatpush1.bf16.msra.mxu1 %v1566_v4 }
  0x82   : > { %1116 = vmatpush1.bf16.msra.mxu0 %v1567_v5 }
  0x84   : > { %1075 = vmatmul.mubr.bf16.vlgmr.msra.gmra.mrb[0].mxu1 %v1568_v6 }
  0x85   : > { %1118 = vmatmul.mubr.bf16.vlgmr.msra.gmra.mrb[0].mxu0 %v1571_v7 }
 0x157   : > { %v1076_v14 = vpop.f32.mrb[0].mxu1 }
 0x158   : > { %v1119_v15 = vpop.f32.mrb[0].mxu0  ;;  %v1078_v18 = vpop.f32.mrb[1].mxu1 }
 0x159   : > { %v1120_v17 = vadd.f32 %v1119_v15, %v1076_v14  ;;  %v1121_v19 = vpop.f32.mrb[1].mxu0  ;;  %v1080_v22 = vpop.f32.mrb[2].mxu1 }
 0x15a   : > { %v1122_v21 = vadd.f32 %v1121_v19, %v1078_v18  ;;  %v1123_v23 = vpop.f32.mrb[2].mxu0  ;;  %v1082_v27 = vpop.f32.mrb[3].mxu1 }
 0x15b   : > { %v1155_v24 = vadd.f32 %v1148_v13, %v1120_v17  ;;  %v1124_v26 = vadd.f32 %v1123_v23, %v1080_v22  ;;  %v1125_v28 = vpop.f32.mrb[3].mxu0 }
 0x15c   : > { %v1156_v29 = vadd.f32 %v1152_v16, %v1122_v21  ;;  %v1126_v31 = vadd.f32 %v1125_v28, %v1082_v27 }
 0x15d   : > { %v1163_v32 = vadd.f32 %v1159_v20, %v1155_v24  ;;  %v1157_v33 = vadd.f32 %v1148_v13, %v1124_v26 }
 0x15e   : > { %v1164_v35 = vadd.f32 %v1160_v25, %v1156_v29  ;;  %v1158_v36 = vadd.f32 %v1152_v16, %v1126_v31  ;;  %1181 = sbr.rel (!%p1678_p6) target bundleno = 365 (0x16d), region = 109 }
 0x15f   : > { %v1167_v37 = vmax.f32 %v1163_v32, 0.0  ;;  %v1165_v38 = vadd.f32 %v1161_v30, %v1157_v33 }
 0x160   : > { %v1168_v39 = vmax.f32 %v1164_v35, 0.0  ;;  %v1166_v40 = vadd.f32 %v1162_v34, %v1158_v36 }
 0x161   : > { %1171 = vst [vmem:[%s598_s15] sm:$0xff] %v1167_v37  ;;  %v1169_v41 = vmax.f32 %v1165_v38, 0.0 }
 0x162   : > { %1172 = vst [vmem:[%s598_s15 + $0x8] sm:$0xff] %v1168_v39  ;;  %v1170_v42 = vmax.f32 %v1166_v40, 0.0 }
 0x163   : > { %1173 = vst [vmem:[%s598_s15 + $0x10] sm:$0xff] %v1169_v41 }
 0x164   : > { %1174 = vst [vmem:[%s598_s15 + $0x18] sm:$0xff] %v1170_v42 }
 0x168   : > { %v1200_v43 = vld [vmem:[%s598_s15] sm:$0xff] }
 0x169   : > { %v1202_v44 = vld [vmem:[%s598_s15 + $0x8] sm:$0xff]  ;;  %1201 = vst [vmem:[%s1187_s23] sm:$0xff] %v1200_v43 }
 0x16a   : > { %v1204_v45 = vld [vmem:[%s598_s15 + $0x10] sm:$0xff]  ;;  %1203 = vst [vmem:[%s1187_s23 + $0x8] sm:$0xff] %v1202_v44 }
 0x16b   : > { %v1206_v46 = vld [vmem:[%s598_s15 + $0x18] sm:$0xff]  ;;  %1205 = vst [vmem:[%s1187_s23 + $0x20] sm:$0xff] %v1204_v45 }
 0x16c   : > { %1207 = vst [vmem:[%s1187_s23 + $0x28] sm:$0xff] %v1206_v46 }
 0x16d PF: > { %s14_s19 = sadd.s32 1, %s1612_s19   ;;  %s1953_s15 = smov %s1600_s16 }
 0x16e   : > { %p11_p12 = scmp.ge.s32.totalorder %s14_s19, 4   ;;  %s1954_s16 = smov %s1683_s26 }
 0x16f   : > { %s1955_s17 = smov %s1608_s18  ;;  %s1956_s18 = smov %s1958_s20 }
 0x170   :  { %13 = sbr.rel (!%p11_p12) target bundleno = 3 (0x3), region = 177 }

// kernel: resnet_forward.25
= control target key start
LH: loop header
LB: loop body
LE: loop exit
PB: predicated region body
PF: predicated region fallthrough
CT: control target
= control target key end

     0   :  { %vm439_vm0 = vcmask 1041409   ;;  %vm441_vm1 = vcmask 1042434   ;;  %vm443_vm2 = vcmask 1043459   ;;  %vm445_vm3 = vcmask 1044484   ;;  %s1114_s1 = inlined_call_operand.vmem [shape: bf16[512,128], index: 1, kind: input, shape index: {}]   ;;  %s1115_s0 = inlined_call_operand.vmem [shape: f32[8,8,512], index: 0, kind: input, shape index: {}]   ;;  %s1116_s2 = inlined_call_operand.vmem [shape: f32[1,128], index: 2, kind: input, shape index: {}]   ;;  %s1117_s3 = inlined_call_operand.vmem [shape: f32[8,128], index: 3, kind: output, shape index: {}]  }
   0x1   :  { %v836_v0 = vld [vmem:[%s1114_s1 + $0x40] sm:$0xff]   ;;  %v840_v4 = vld [vmem:[%s1114_s1 + $0x48] sm:$0xff]   ;;  %v844_v8 = vld [vmem:[%s1114_s1 + $0x50] sm:$0xff]   ;;  %vm447_vm4 = vcmask 1045509   ;;  %vm449_vm5 = vcmask 1046534   ;;  %vm451_vm6 = vcmask 1047559  }
   0x2   :  { %v837_v1 = vld [vmem:[%s1114_s1 + $0xc0] sm:$0xff]   ;;  %792 = vmatprep.subr.bf16.mxu0 %v836_v0  ;;  %v841_v5 = vld [vmem:[%s1114_s1 + $0xc8] sm:$0xff]   ;;  %v845_v9 = vld [vmem:[%s1114_s1 + $0xd0] sm:$0xff]  }
   0x3   :  { %v838_v2 = vld [vmem:[%s1114_s1] sm:$0xff]   ;;  %814 = vmatprep.subr.bf16.mxu1 %v837_v1  ;;  %v842_v6 = vld [vmem:[%s1114_s1 + $0x8] sm:$0xff]   ;;  %v846_v10 = vld [vmem:[%s1114_s1 + $0x10] sm:$0xff]  }
   0x4   :  { %v839_v3 = vld [vmem:[%s1114_s1 + $0x80] sm:$0xff]   ;;  %793 = vmatpush3.bf16.msra.mxu0 %v838_v2  ;;  %v843_v7 = vld [vmem:[%s1114_s1 + $0x88] sm:$0xff]   ;;  %v847_v11 = vld [vmem:[%s1114_s1 + $0x90] sm:$0xff]  }
   0x5   :  { %815 = vmatpush3.bf16.msra.mxu1 %v839_v3  ;;  %794 = vmatprep.subr.bf16.mxu0 %v840_v4  ;;  %v848_v12 = vld [vmem:[%s1114_s1 + $0x58] sm:$0xff]   ;;  %v852_v16 = vld [vmem:[%s1114_s1 + $0x60] sm:$0xff]   ;;  %v856_v20 = vld [vmem:[%s1114_s1 + $0x68] sm:$0xff]  }
   0x6   :  { %816 = vmatprep.subr.bf16.mxu1 %v841_v5  ;;  %v849_v13 = vld [vmem:[%s1114_s1 + $0xd8] sm:$0xff]   ;;  %v853_v17 = vld [vmem:[%s1114_s1 + $0xe0] sm:$0xff]   ;;  %v857_v21 = vld [vmem:[%s1114_s1 + $0xe8] sm:$0xff]  }
   0x7   :  { %v850_v14 = vld [vmem:[%s1114_s1 + $0x18] sm:$0xff]   ;;  %v854_v18 = vld [vmem:[%s1114_s1 + $0x20] sm:$0xff]   ;;  %v858_v22 = vld [vmem:[%s1114_s1 + $0x28] sm:$0xff]  }
   0x8   :  { %795 = vmatpush3.bf16.msra.mxu0 %v842_v6  ;;  %v851_v15 = vld [vmem:[%s1114_s1 + $0x98] sm:$0xff]   ;;  %v855_v19 = vld [vmem:[%s1114_s1 + $0xa0] sm:$0xff]   ;;  %v859_v23 = vld [vmem:[%s1114_s1 + $0xa8] sm:$0xff]  }
   0x9   :  { %817 = vmatpush3.bf16.msra.mxu1 %v843_v7  ;;  %796 = vmatprep.subr.bf16.mxu0 %v844_v8  ;;  %v860_v24 = vld [vmem:[%s1114_s1 + $0x70] sm:$0xff]   ;;  %v864_v28 = vld [vmem:[%s1114_s1 + $0x78] sm:$0xff]   ;;  %v16_v32 = vld [vmem:[%s1115_s0 + $0x8] sm:$0xff] }
   0xa   :  { %818 = vmatprep.subr.bf16.mxu1 %v845_v9  ;;  %v861_v25 = vld [vmem:[%s1114_s1 + $0xf0] sm:$0xff]   ;;  %v865_v29 = vld [vmem:[%s1114_s1 + $0xf8] sm:$0xff]   ;;  %v20_v33 = vld [vmem:[%s1115_s0 + $0x28] sm:$0xff]  ;;  %v53_v38 = vrot.slane %v16_v32, 4 }
   0xb   :  { %v862_v26 = vld [vmem:[%s1114_s1 + $0x30] sm:$0xff]   ;;  %v866_v30 = vld [vmem:[%s1114_s1 + $0x38] sm:$0xff]   ;;  %v24_v34 = vld [vmem:[%s1115_s0 + $0x48] sm:$0xff]  ;;  %v77_v39 = vrot.slane %v20_v33, 4 }
   0xc   :  { %797 = vmatpush3.bf16.msra.mxu0 %v846_v10  ;;  %v863_v27 = vld [vmem:[%s1114_s1 + $0xb0] sm:$0xff]   ;;  %v867_v31 = vld [vmem:[%s1114_s1 + $0xb8] sm:$0xff]   ;;  %v28_v35 = vld [vmem:[%s1115_s0 + $0x68] sm:$0xff]  ;;  %v101_v40 = vrot.slane %v24_v34, 4  ;;  %v54_v46 = vadd.f32 %v53_v38, %v16_v32 }
   0xd   :  { %819 = vmatpush3.bf16.msra.mxu1 %v847_v11  ;;  %798 = vmatprep.subr.bf16.mxu0 %v848_v12  ;;  %v32_v36 = vld [vmem:[%s1115_s0 + $0x88] sm:$0xff]  ;;  %v125_v43 = vrot.slane %v28_v35, 4  ;;  %v78_v47 = vadd.f32 %v77_v39, %v20_v33  ;;  %v18_v38 = vld [vmem:[%s1115_s0 + $0x18] sm:$0xff] }
   0xe   :  { %820 = vmatprep.subr.bf16.mxu1 %v849_v13  ;;  %v36_v37 = vld [vmem:[%s1115_s0 + $0xa8] sm:$0xff]  ;;  %v149_v44 = vrot.slane %v32_v36, 4  ;;  %v102_v48 = vadd.f32 %v101_v40, %v24_v34  ;;  %v55_v54 = vrot.slane %v54_v46, 2  ;;  %v22_v39 = vld [vmem:[%s1115_s0 + $0x38] sm:$0xff] }
   0xf   :  { %v40_v41 = vld [vmem:[%s1115_s0 + $0xc8] sm:$0xff]  ;;  %v173_v45 = vrot.slane %v36_v37, 4  ;;  %v126_v50 = vadd.f32 %v125_v43, %v28_v35  ;;  %v79_v55 = vrot.slane %v78_v47, 2 }
  0x10   :  { %799 = vmatpush3.bf16.msra.mxu0 %v850_v14  ;;  %v44_v42 = vld [vmem:[%s1115_s0 + $0xe8] sm:$0xff]  ;;  %v197_v49 = vrot.slane %v40_v41, 4  ;;  %v150_v51 = vadd.f32 %v149_v44, %v32_v36  ;;  %v103_v56 = vrot.slane %v102_v48, 2  ;;  %v56_v62 = vadd.f32 %v55_v54, %v54_v46  ;;  %v26_v44 = vld [vmem:[%s1115_s0 + $0x58] sm:$0xff] }
  0x11   :  { %821 = vmatpush3.bf16.msra.mxu1 %v851_v15  ;;  %800 = vmatprep.subr.bf16.mxu0 %v852_v16  ;;  %v174_v52 = vadd.f32 %v173_v45, %v36_v37  ;;  %v221_v53 = vrot.slane %v44_v42, 4  ;;  %v127_v58 = vrot.slane %v126_v50, 2  ;;  %v80_v63 = vadd.f32 %v79_v55, %v78_v47  ;;  %v30_v45 = vld [vmem:[%s1115_s0 + $0x78] sm:$0xff] }
  0x12   :  { %822 = vmatprep.subr.bf16.mxu1 %v853_v17  ;;  %v198_v57 = vadd.f32 %v197_v49, %v40_v41  ;;  %v151_v59 = vrot.slane %v150_v51, 2  ;;  %v104_v0 = vadd.f32 %v103_v56, %v102_v48  ;;  %v57_v6 = vrot.slane %v56_v62, 1 }
  0x13   :  { %v175_v60 = vrot.slane %v174_v52, 2  ;;  %v222_v61 = vadd.f32 %v221_v53, %v44_v42  ;;  %v128_v2 = vadd.f32 %v127_v58, %v126_v50  ;;  %v81_v7 = vrot.slane %v80_v63, 1  ;;  %v34_v50 = vld [vmem:[%s1115_s0 + $0x98] sm:$0xff] }
  0x14   :  { %801 = vmatpush3.bf16.msra.mxu0 %v854_v18  ;;  %v199_v1 = vrot.slane %v198_v57, 2  ;;  %v152_v3 = vadd.f32 %v151_v59, %v150_v51  ;;  %v105_v8 = vrot.slane %v104_v0, 1  ;;  %v58_v14 = vadd.f32 %v57_v6, %v56_v62  ;;  %v38_v53 = vld [vmem:[%s1115_s0 + $0xb8] sm:$0xff] }
  0x15   :  { %823 = vmatpush3.bf16.msra.mxu1 %v855_v19  ;;  %802 = vmatprep.subr.bf16.mxu0 %v856_v20  ;;  %v176_v4 = vadd.f32 %v175_v60, %v174_v52  ;;  %v223_v5 = vrot.slane %v222_v61, 2  ;;  %v129_v10 = vrot.slane %v128_v2, 1  ;;  %v82_v15 = vadd.f32 %v81_v7, %v80_v63 }
  0x16   :  { %824 = vmatprep.subr.bf16.mxu1 %v857_v21  ;;  %v200_v9 = vadd.f32 %v199_v1, %v198_v57  ;;  %v153_v11 = vrot.slane %v152_v3, 1  ;;  %v106_v16 = vadd.f32 %v105_v8, %v104_v0  ;;  %v65_v54 = vrot.slane %v18_v38, 4 }
  0x17   :  { %v177_v12 = vrot.slane %v176_v4, 1  ;;  %v224_v13 = vadd.f32 %v223_v5, %v222_v61  ;;  %v130_v18 = vadd.f32 %v129_v10, %v128_v2  ;;  %v89_v55 = vrot.slane %v22_v39, 4 }
  0x18   :  { %803 = vmatpush3.bf16.msra.mxu0 %v858_v22  ;;  %v201_v17 = vrot.slane %v200_v9, 1  ;;  %v154_v19 = vadd.f32 %v153_v11, %v152_v3  ;;  %v113_v58 = vrot.slane %v26_v44, 4  ;;  %v137_v59 = vrot.slane %v30_v45, 4 }
  0x19   :  { %825 = vmatpush3.bf16.msra.mxu1 %v859_v23  ;;  %804 = vmatprep.subr.bf16.mxu0 %v860_v24  ;;  %v178_v20 = vadd.f32 %v177_v12, %v176_v4  ;;  %v225_v21 = vrot.slane %v224_v13, 1  ;;  %v241_v23 = vmul.f32 0.125, %v58_v14  ;;  %v245_v24 = vmul.f32 0.125, %v82_v15  ;;  %v46_v14 = vld [vmem:[%s1115_s0 + $0xf8] sm:$0xff] }
  0x1a   :  { %826 = vmatprep.subr.bf16.mxu1 %v861_v25  ;;  %v202_v22 = vadd.f32 %v201_v17, %v200_v9  ;;  %v249_v25 = vmul.f32 0.125, %v106_v16  ;;  %v66_v61 = vadd.f32 %v65_v54, %v18_v38  ;;  %v90_v62 = vadd.f32 %v89_v55, %v22_v39  ;;  %v42_v9 = vld [vmem:[%s1115_s0 + $0xd8] sm:$0xff]  ;;  %v15_v54 = vld [vmem:[%s1115_s0] sm:$0xff] }
  0x1b   :  { %v277_v32 = vpack.c.bf16 %v245_v24, %v245_v24  ;;  %v161_v63 = vrot.slane %v34_v50, 4  ;;  %v114_v1 = vadd.f32 %v113_v58, %v26_v44  ;;  %v138_v2 = vadd.f32 %v137_v59, %v30_v45  ;;  %v19_v59 = vld [vmem:[%s1115_s0 + $0x20] sm:$0xff] }
  0x1c   :  { %805 = vmatpush3.bf16.msra.mxu0 %v862_v26  ;;  %v226_v26 = vadd.f32 %v225_v21, %v224_v13  ;;  %v281_v33 = vpack.c.bf16 %v249_v25, %v249_v25  ;;  %v185_v3 = vrot.slane %v38_v53, 4  ;;  %v67_v5 = vrot.slane %v66_v61, 2 }
  0x1d   :  { %827 = vmatpush3.bf16.msra.mxu1 %v863_v27  ;;  %806 = vmatprep.subr.bf16.mxu0 %v864_v28  ;;  %v253_v27 = vmul.f32 0.125, %v130_v18  ;;  %v257_v28 = vmul.f32 0.125, %v154_v19  ;;  %v412_v42 = vunpack.c.l.b16 %v277_v32  ;;  %v91_v6 = vrot.slane %v90_v62, 2 }
  0x1e   :  { %828 = vmatprep.subr.bf16.mxu1 %v865_v29  ;;  %v261_v29 = vmul.f32 0.125, %v178_v20  ;;  %v269_v34 = vmul.f32 0.125, %v226_v26  ;;  %v416_v43 = vunpack.c.l.b16 %v281_v33  ;;  %v162_v7 = vadd.f32 %v161_v63, %v34_v50 }
  0x1f   :  { %v285_v35 = vpack.c.bf16 %v253_v27, %v253_v27  ;;  %v289_v36 = vpack.c.bf16 %v257_v28, %v257_v28  ;;  %v115_v10 = vrot.slane %v114_v1, 2  ;;  %v139_v11 = vrot.slane %v138_v2, 2 }
  0x20   :  { %807 = vmatpush3.bf16.msra.mxu0 %v866_v30  ;;  %v265_v30 = vmul.f32 0.125, %v202_v22  ;;  %v293_v37 = vpack.c.bf16 %v261_v29, %v261_v29  ;;  %v301_v46 = vpack.c.bf16 %v269_v34, %v269_v34  ;;  %v186_v12 = vadd.f32 %v185_v3, %v38_v53 }
  0x21   :  { %829 = vmatpush3.bf16.msra.mxu1 %v867_v31  ;;  %v273_v31 = vpack.c.bf16 %v241_v23, %v241_v23  ;;  %v420_v47 = vunpack.c.l.b16 %v285_v35  ;;  %v424_v48 = vunpack.c.l.b16 %v289_v36  ;;  %v68_v15 = vadd.f32 %v67_v5, %v66_v61 }
  0x22   :  { %v297_v40 = vpack.c.bf16 %v265_v30, %v265_v30  ;;  %v428_v49 = vunpack.c.l.b16 %v293_v37  ;;  %v436_v56 = vunpack.c.l.b16 %v301_v46  ;;  %v92_v16 = vadd.f32 %v91_v6, %v90_v62 }
  0x23   :  { %v408_v41 = vunpack.c.l.b16 %v273_v31  ;;  %v163_v17 = vrot.slane %v162_v7, 2  ;;  %v116_v19 = vadd.f32 %v115_v10, %v114_v1  ;;  %v140_v20 = vadd.f32 %v139_v11, %v138_v2 }
  0x24   :  { %v432_v51 = vunpack.c.l.b16 %v297_v40  ;;  %v187_v21 = vrot.slane %v186_v12, 2  ;;  %v69_v22 = vrot.slane %v68_v15, 1  ;;  %v93_v23 = vrot.slane %v92_v16, 1 }
  0x25   :  { %v453_v52 = vsel %vm439_vm0, %v412_v42, %v408_v41  ;;  %v164_v24 = vadd.f32 %v163_v17, %v162_v7  ;;  %v209_v25 = vrot.slane %v42_v9, 4  ;;  %v117_v26 = vrot.slane %v116_v19, 1  ;;  %v35_v17 = vld [vmem:[%s1115_s0 + $0xa0] sm:$0xff] }
  0x26   :  { %v454_v57 = vsel %vm441_vm1, %v416_v43, %v453_v52  ;;  %v141_v27 = vrot.slane %v140_v20, 1  ;;  %v188_v28 = vadd.f32 %v187_v21, %v186_v12  ;;  %v233_v29 = vrot.slane %v46_v14, 4  ;;  %v31_v12 = vld [vmem:[%s1115_s0 + $0x80] sm:$0xff] }
  0x27   :  { %v455_v60 = vsel %vm443_vm2, %v420_v47, %v454_v57  ;;  %v70_v30 = vadd.f32 %v69_v22, %v68_v15  ;;  %v94_v31 = vadd.f32 %v93_v23, %v92_v16  ;;  %v165_v32 = vrot.slane %v164_v24, 1 }
  0x28   :  { %v456_v0 = vsel %vm445_vm3, %v424_v48, %v455_v60  ;;  %v210_v33 = vadd.f32 %v209_v25, %v42_v9  ;;  %v118_v34 = vadd.f32 %v117_v26, %v116_v19  ;;  %v142_v35 = vadd.f32 %v141_v27, %v140_v20 }
  0x29   :  { %v457_v4 = vsel %vm447_vm4, %v428_v49, %v456_v0  ;;  %v189_v36 = vrot.slane %v188_v28, 1  ;;  %v234_v37 = vadd.f32 %v233_v29, %v46_v14  ;;  %v166_v38 = vadd.f32 %v165_v32, %v164_v24  ;;  %v23_v0 = vld [vmem:[%s1115_s0 + $0x40] sm:$0xff] }
  0x2a   :  { %v458_v8 = vsel %vm449_vm5, %v432_v51, %v457_v4  ;;  %v211_v39 = vrot.slane %v210_v33, 2  ;;  %v243_v40 = vmul.f32 0.125, %v70_v30  ;;  %v247_v41 = vmul.f32 0.125, %v94_v31  ;;  %v27_v4 = vld [vmem:[%s1115_s0 + $0x60] sm:$0xff] }
  0x2b   :  { %v459_v13 = vsel %vm451_vm6, %v436_v56, %v458_v8  ;;  %v190_v42 = vadd.f32 %v189_v36, %v188_v28  ;;  %v235_v43 = vrot.slane %v234_v37, 2  ;;  %v251_v44 = vmul.f32 0.125, %v118_v34 }
  0x2c   :  { %v475_v18 = vpack.c.b16 %v459_v13, %v459_v13  ;;  %v255_v45 = vmul.f32 0.125, %v142_v35  ;;  %v212_v46 = vadd.f32 %v211_v39, %v210_v33  ;;  %v259_v47 = vmul.f32 0.125, %v166_v38 }
  0x2d   :  { %v275_v48 = vpack.c.bf16 %v243_v40, %v243_v40  ;;  %v279_v49 = vpack.c.bf16 %v247_v41, %v247_v41  ;;  %v236_v50 = vadd.f32 %v235_v43, %v234_v37  ;;  %v263_v51 = vmul.f32 0.125, %v190_v42  ;;  %v39_v37 = vld [vmem:[%s1115_s0 + $0xc0] sm:$0xff] }
  0x2e   :  { %706 = vmatprep.mubr.bf16.mxu0 %v475_v18  ;;  %v283_v52 = vpack.c.bf16 %v251_v44, %v251_v44  ;;  %v287_v53 = vpack.c.bf16 %v255_v45, %v255_v45  ;;  %v213_v55 = vrot.slane %v212_v46, 1  ;;  %v291_v56 = vpack.c.bf16 %v259_v47, %v259_v47  ;;  %v43_v42 = vld [vmem:[%s1115_s0 + $0xe0] sm:$0xff] }
  0x2f   :  { %v410_v57 = vunpack.c.l.b16 %v275_v48  ;;  %v414_v58 = vunpack.c.l.b16 %v279_v49  ;;  %v237_v60 = vrot.slane %v236_v50, 1  ;;  %v295_v61 = vpack.c.bf16 %v263_v51, %v263_v51 }
  0x30   :  { %v418_v62 = vunpack.c.l.b16 %v283_v52  ;;  %v422_v63 = vunpack.c.l.b16 %v287_v53  ;;  %v214_v1 = vadd.f32 %v213_v55, %v212_v46  ;;  %v426_v2 = vunpack.c.l.b16 %v291_v56 }
  0x31   :  { %v467_v3 = vsel %vm439_vm0, %v414_v58, %v410_v57  ;;  %v47_v5 = vrot.slane %v15_v54, 4  ;;  %v238_v6 = vadd.f32 %v237_v60, %v236_v50  ;;  %v430_v7 = vunpack.c.l.b16 %v295_v61 }
  0x32   :  { %v468_v8 = vsel %vm441_vm1, %v418_v62, %v467_v3  ;;  %v71_v9 = vrot.slane %v19_v59, 4  ;;  %v267_v10 = vmul.f32 0.125, %v214_v1  ;;  %v95_v14 = vrot.slane %v23_v0, 4 }
  0x33   :  { %v469_v11 = vsel %vm443_vm2, %v422_v63, %v468_v8  ;;  %v48_v13 = vadd.f32 %v47_v5, %v15_v54  ;;  %v271_v15 = vmul.f32 0.125, %v238_v6  ;;  %v119_v19 = vrot.slane %v27_v4, 4  ;;  %v17_v6 = vld [vmem:[%s1115_s0 + $0x10] sm:$0xff] }
  0x34   :  { %v470_v16 = vsel %vm445_vm3, %v426_v2, %v469_v11  ;;  %v72_v18 = vadd.f32 %v71_v9, %v19_v59  ;;  %v299_v20 = vpack.c.bf16 %v267_v10, %v267_v10  ;;  %v96_v23 = vadd.f32 %v95_v14, %v23_v0 }
  0x35   :  { %v471_v21 = vsel %vm447_vm4, %v430_v7, %v470_v16  ;;  %v49_v22 = vrot.slane %v48_v13, 2  ;;  %v303_v24 = vpack.c.bf16 %v271_v15, %v271_v15  ;;  %v120_v26 = vadd.f32 %v119_v19, %v27_v4 }
  0x36   :  { %v73_v25 = vrot.slane %v72_v18, 2  ;;  %v143_v27 = vrot.slane %v31_v12, 4  ;;  %v434_v28 = vunpack.c.l.b16 %v299_v20  ;;  %v97_v30 = vrot.slane %v96_v23, 2 }
  0x37   :  { %v50_v29 = vadd.f32 %v49_v22, %v48_v13  ;;  %v167_v31 = vrot.slane %v35_v17, 4  ;;  %v438_v32 = vunpack.c.l.b16 %v303_v24  ;;  %v121_v34 = vrot.slane %v120_v26, 2  ;;  %v25_v24 = vld [vmem:[%s1115_s0 + $0x50] sm:$0xff] }
  0x38   :  { %v74_v33 = vadd.f32 %v73_v25, %v72_v18  ;;  %v144_v35 = vadd.f32 %v143_v27, %v31_v12  ;;  %v472_v36 = vsel %vm449_vm5, %v434_v28, %v471_v21  ;;  %v98_v39 = vadd.f32 %v97_v30, %v96_v23  ;;  %v21_v18 = vld [vmem:[%s1115_s0 + $0x30] sm:$0xff] }
  0x39   :  { %v51_v38 = vrot.slane %v50_v29, 1  ;;  %v168_v40 = vadd.f32 %v167_v31, %v35_v17  ;;  %v473_v41 = vsel %vm451_vm6, %v438_v32, %v472_v36  ;;  %v122_v44 = vadd.f32 %v121_v34, %v120_v26  ;;  %v29_v28 = vld [vmem:[%s1115_s0 + $0x70] sm:$0xff] }
  0x3a   :  { %v75_v43 = vrot.slane %v74_v33, 1  ;;  %v145_v45 = vrot.slane %v144_v35, 2  ;;  %v477_v46 = vpack.c.b16 %v473_v41, %v473_v41  ;;  %v99_v48 = vrot.slane %v98_v39, 1  ;;  %v33_v36 = vld [vmem:[%s1115_s0 + $0x90] sm:$0xff] }
  0x3b   :  { %v52_v47 = vadd.f32 %v51_v38, %v50_v29  ;;  %v169_v49 = vrot.slane %v168_v40, 2  ;;  %v123_v51 = vrot.slane %v122_v44, 1  ;;  %v191_v53 = vrot.slane %v39_v37, 4  ;;  %v37_v41 = vld [vmem:[%s1115_s0 + $0xb0] sm:$0xff] }
  0x3c   :  { %v76_v50 = vadd.f32 %v75_v43, %v74_v33  ;;  %v146_v52 = vadd.f32 %v145_v45, %v144_v35  ;;  %746 = vmatprep.mubr.bf16.mxu1 %v477_v46  ;;  %v100_v54 = vadd.f32 %v99_v48, %v98_v39  ;;  %v215_v56 = vrot.slane %v43_v42, 4 }
  0x3d   :  { %v170_v55 = vadd.f32 %v169_v49, %v168_v40  ;;  %v240_v57 = vmul.f32 0.125, %v52_v47  ;;  %v124_v58 = vadd.f32 %v123_v51, %v122_v44  ;;  %v192_v60 = vadd.f32 %v191_v53, %v39_v37 }
  0x3e   :  { %v147_v59 = vrot.slane %v146_v52, 1  ;;  %v244_v61 = vmul.f32 0.125, %v76_v50  ;;  %v216_v63 = vadd.f32 %v215_v56, %v43_v42  ;;  %v248_v0 = vmul.f32 0.125, %v100_v54 }
  0x3f   :  { %v171_v62 = vrot.slane %v170_v55, 1  ;;  %v272_v1 = vpack.c.bf16 %v240_v57, %v240_v57  ;;  %v193_v3 = vrot.slane %v192_v60, 2  ;;  %v252_v4 = vmul.f32 0.125, %v124_v58  ;;  %v41_v57 = vld [vmem:[%s1115_s0 + $0xd0] sm:$0xff] }
  0x40   :  { %v148_v2 = vadd.f32 %v147_v59, %v146_v52  ;;  %v276_v5 = vpack.c.bf16 %v244_v61, %v244_v61  ;;  %v217_v8 = vrot.slane %v216_v63, 2  ;;  %v280_v9 = vpack.c.bf16 %v248_v0, %v248_v0 }
  0x41   :  { %v172_v7 = vadd.f32 %v171_v62, %v170_v55  ;;  %v407_v10 = vunpack.c.l.b16 %v272_v1  ;;  %v194_v11 = vadd.f32 %v193_v3, %v192_v60  ;;  %v284_v13 = vpack.c.bf16 %v252_v4, %v252_v4 }
  0x42   :  { %v256_v12 = vmul.f32 0.125, %v148_v2  ;;  %v411_v14 = vunpack.c.l.b16 %v276_v5  ;;  %v218_v15 = vadd.f32 %v217_v8, %v216_v63  ;;  %v415_v17 = vunpack.c.l.b16 %v280_v9  ;;  %v45_v2 = vld [vmem:[%s1115_s0 + $0xf0] sm:$0xff] }
  0x43   :  { %v260_v16 = vmul.f32 0.125, %v172_v7  ;;  %v59_v19 = vrot.slane %v17_v6, 4  ;;  %v195_v20 = vrot.slane %v194_v11, 1  ;;  %v419_v22 = vunpack.c.l.b16 %v284_v13 }
  0x44   :  { %v288_v21 = vpack.c.bf16 %v256_v12, %v256_v12  ;;  %v440_v23 = vsel %vm439_vm0, %v411_v14, %v407_v10  ;;  %v219_v25 = vrot.slane %v218_v15, 1  ;;  %v83_v33 = vrot.slane %v21_v18, 4 }
  0x45   :  { %v292_v26 = vpack.c.bf16 %v260_v16, %v260_v16  ;;  %v442_v27 = vsel %vm441_vm1, %v415_v17, %v440_v23  ;;  %v60_v29 = vadd.f32 %v59_v19, %v17_v6  ;;  %v196_v30 = vadd.f32 %v195_v20, %v194_v11 }
  0x46   :  { %v423_v31 = vunpack.c.l.b16 %v288_v21  ;;  %v444_v32 = vsel %vm443_vm2, %v419_v22, %v442_v27  ;;  %v220_v34 = vadd.f32 %v219_v25, %v218_v15  ;;  %v107_v38 = vrot.slane %v25_v24, 4 }
  0x47   :  { %v427_v35 = vunpack.c.l.b16 %v292_v26  ;;  %v61_v37 = vrot.slane %v60_v29, 2  ;;  %v264_v39 = vmul.f32 0.125, %v196_v30  ;;  %v84_v42 = vadd.f32 %v83_v33, %v21_v18 }
  0x48   :  { %v446_v40 = vsel %vm445_vm3, %v423_v31, %v444_v32  ;;  %v131_v43 = vrot.slane %v29_v28, 4  ;;  %v268_v44 = vmul.f32 0.125, %v220_v34  ;;  %v108_v47 = vadd.f32 %v107_v38, %v25_v24 }
  0x49   :  { %v448_v45 = vsel %vm447_vm4, %v427_v35, %v446_v40  ;;  %v62_v46 = vadd.f32 %v61_v37, %v60_v29  ;;  %v296_v48 = vpack.c.bf16 %v264_v39, %v264_v39  ;;  %v85_v49 = vrot.slane %v84_v42, 2 }
  0x4a   :  { %v132_v50 = vadd.f32 %v131_v43, %v29_v28  ;;  %v155_v51 = vrot.slane %v33_v36, 4  ;;  %v300_v52 = vpack.c.bf16 %v268_v44, %v268_v44  ;;  %v109_v54 = vrot.slane %v108_v47, 2 }
  0x4b   :  { %v63_v53 = vrot.slane %v62_v46, 1  ;;  %v179_v55 = vrot.slane %v37_v41, 4  ;;  %v431_v56 = vunpack.c.l.b16 %v296_v48  ;;  %v86_v58 = vadd.f32 %v85_v49, %v84_v42 }
  0x4c   :  { %v133_v59 = vrot.slane %v132_v50, 2  ;;  %v156_v60 = vadd.f32 %v155_v51, %v33_v36  ;;  %v435_v61 = vunpack.c.l.b16 %v300_v52  ;;  %v110_v63 = vadd.f32 %v109_v54, %v108_v47 }
  0x4d   :  { %v64_v62 = vadd.f32 %v63_v53, %v62_v46  ;;  %v180_v0 = vadd.f32 %v179_v55, %v37_v41  ;;  %v450_v1 = vsel %vm449_vm5, %v431_v56, %v448_v45  ;;  %v87_v3 = vrot.slane %v86_v58, 1 }
  0x4e   :  { %v134_v4 = vadd.f32 %v133_v59, %v132_v50  ;;  %v157_v5 = vrot.slane %v156_v60, 2  ;;  %v452_v6 = vsel %vm451_vm6, %v435_v61, %v450_v1  ;;  %v111_v7 = vrot.slane %v110_v63, 1 }
  0x4f   :  { %v181_v8 = vrot.slane %v180_v0, 2  ;;  %v203_v9 = vrot.slane %v41_v57, 4  ;;  %v474_v10 = vpack.c.b16 %v452_v6, %v452_v6  ;;  %v88_v11 = vadd.f32 %v87_v3, %v86_v58 }
  0x50   :  { %v135_v12 = vrot.slane %v134_v4, 1  ;;  %v158_v13 = vadd.f32 %v157_v5, %v156_v60  ;;  %v112_v14 = vadd.f32 %v111_v7, %v110_v63  ;;  %v227_v17 = vrot.slane %v45_v2, 4  ;;  %v759_v5 = vld [vmem:[%s1116_s2] ss:$0 sm:$0xff] }
  0x51   :  { %v182_v15 = vadd.f32 %v181_v8, %v180_v0  ;;  %v204_v16 = vadd.f32 %v203_v9, %v41_v57  ;;  %707 = vmatmul.mubr.bf16.vlgmr.msra.gmra.mrb[0].mxu0 %v474_v10  ;;  %v242_v20 = vmul.f32 0.125, %v64_v62  ;;  %v246_v21 = vmul.f32 0.125, %v88_v11 }
  0x52   :  { %v136_v18 = vadd.f32 %v135_v12, %v134_v4  ;;  %v159_v19 = vrot.slane %v158_v13, 1  ;;  %v228_v24 = vadd.f32 %v227_v17, %v45_v2  ;;  %v250_v25 = vmul.f32 0.125, %v112_v14 }
  0x53   :  { %v183_v22 = vrot.slane %v182_v15, 1  ;;  %v205_v23 = vrot.slane %v204_v16, 2  ;;  %v274_v28 = vpack.c.bf16 %v242_v20, %v242_v20  ;;  %v278_v29 = vpack.c.bf16 %v246_v21, %v246_v21 }
  0x54   :  { %v160_v26 = vadd.f32 %v159_v19, %v158_v13  ;;  %v254_v27 = vmul.f32 0.125, %v136_v18  ;;  %v229_v32 = vrot.slane %v228_v24, 2  ;;  %v282_v33 = vpack.c.bf16 %v250_v25, %v250_v25 }
  0x55   :  { %v184_v30 = vadd.f32 %v183_v22, %v182_v15  ;;  %v206_v31 = vadd.f32 %v205_v23, %v204_v16  ;;  %v409_v36 = vunpack.c.l.b16 %v274_v28  ;;  %v413_v37 = vunpack.c.l.b16 %v278_v29 }
  0x56   :  { %v258_v34 = vmul.f32 0.125, %v160_v26  ;;  %v286_v35 = vpack.c.bf16 %v254_v27, %v254_v27  ;;  %v230_v39 = vadd.f32 %v229_v32, %v228_v24  ;;  %v417_v41 = vunpack.c.l.b16 %v282_v33 }
  0x57   :  { %v207_v38 = vrot.slane %v206_v31, 1  ;;  %v262_v40 = vmul.f32 0.125, %v184_v30  ;;  %v460_v44 = vsel %vm439_vm0, %v413_v37, %v409_v36 }
  0x58   :  { %v290_v42 = vpack.c.bf16 %v258_v34, %v258_v34  ;;  %v421_v43 = vunpack.c.l.b16 %v286_v35  ;;  %v231_v46 = vrot.slane %v230_v39, 1  ;;  %v461_v48 = vsel %vm441_vm1, %v417_v41, %v460_v44 }
  0x59   :  { %v208_v45 = vadd.f32 %v207_v38, %v206_v31  ;;  %v294_v47 = vpack.c.bf16 %v262_v40, %v262_v40 }
  0x5a   :  { %v425_v49 = vunpack.c.l.b16 %v290_v42  ;;  %v462_v50 = vsel %vm443_vm2, %v421_v43, %v461_v48  ;;  %v232_v51 = vadd.f32 %v231_v46, %v230_v39 }
  0x5b   :  { %v266_v52 = vmul.f32 0.125, %v208_v45  ;;  %v429_v53 = vunpack.c.l.b16 %v294_v47 }
  0x5c   :  { %v463_v54 = vsel %vm445_vm3, %v425_v49, %v462_v50  ;;  %v270_v55 = vmul.f32 0.125, %v232_v51 }
  0x5d   :  { %v298_v56 = vpack.c.bf16 %v266_v52, %v266_v52  ;;  %v464_v57 = vsel %vm447_vm4, %v429_v53, %v463_v54 }
  0x5e   :  { %v302_v58 = vpack.c.bf16 %v270_v55, %v270_v55 }
  0x5f   :  { %v433_v59 = vunpack.c.l.b16 %v298_v56 }
  0x60   :  { %v437_v60 = vunpack.c.l.b16 %v302_v58 }
  0x61   :  { %v465_v61 = vsel %vm449_vm5, %v433_v59, %v464_v57 }
  0x62   :  { %v466_v62 = vsel %vm451_vm6, %v437_v60, %v465_v61 }
  0x63   :  { %v476_v63 = vpack.c.b16 %v466_v62, %v466_v62 }
  0x65   :  { %747 = vmatmul.mubr.bf16.vlgmr.msra.gmra.mrb[0].mxu1 %v476_v63 }
 0x124   :  { %v808_v0 = vpop.f32.mrb[0].mxu0 }
 0x125   :  { %v809_v1 = vpop.f32.mrb[1].mxu0 }
 0x126   :  { %v810_v2 = vadd.f32 %v809_v1, %v808_v0  ;;  %v811_v3 = vpop.f32.mrb[2].mxu0 }
 0x127   :  { %v812_v4 = vpop.f32.mrb[3].mxu0 }
 0x128   :  { %v709_v7 = vadd.f32 %v810_v2, %v759_v5 }
 0x138   :  { %v830_v6 = vpop.f32.mrb[0].mxu1 }
 0x139   :  { %v831_v8 = vpop.f32.mrb[1].mxu1 }
 0x13a   :  { %v832_v9 = vadd.f32 %v831_v8, %v830_v6  ;;  %v833_v10 = vpop.f32.mrb[2].mxu1 }
 0x13b   :  { %v834_v11 = vpop.f32.mrb[3].mxu1 }
 0x13c   :  { %v749_v12 = vadd.f32 %v832_v9, %v709_v7 }
 0x13e   :  { %754 = vst [vmem:[%s1117_s3] sm:$0xff] %v749_v12 }

</bundles_post_ra>
